<compile_context>
chip_gen: v5e
topology: v5e:2x2
jax: 0.10.0
libtpu: 0.0.40
codegen_flags: <defaults>
</compile_context>

<pallas_src>
import functools
import numpy as np
import jax
import jax.numpy as jnp
from jax.experimental import pallas as pl
from jax.experimental.pallas import tpu as pltpu

H_IN = W_IN = 10          # MinAtar board
KH = KW = 3               # conv kernel
H_OUT = W_OUT = 8         # (10 - 3) // 1 + 1
CONV_OUT = 16             # conv output channels
HIDDEN = 128              # per-head hidden width
NUM_LIN = CONV_OUT * H_OUT * W_OUT   # 1024
MAX_BATCH_TILE = 1024     # bf16 weights + Buffered(1) keep this within v7x VMEM


# ----------------------------- Pallas kernel ------------------------------- #

def fused_kernel(x_ref, wc_ref, bc_ref, w1_ref, b1_ref, w2_ref, b2_ref, o_ref):
    """Whole forward pass for one batch tile.

    x:  (TB, 10*10*C) f32       wc: (10*10*C, 1024) bf16   bc: (1, 1024) f32
    w1: (1024, n_heads*128) bf16  b1: (1, n_heads*128) f32
    w2: (n_heads*128, OUT_PAD) bf16  b2: (1, OUT_PAD) f32   o: (TB, OUT_PAD) f32

    bf16 operands feed the MXU; accumulation is f32; bias/ReLU stay f32 (VPU).
    """
    x_bf = x_ref[...].astype(jnp.bfloat16)
    feat = jnp.dot(x_bf, wc_ref[...], preferred_element_type=jnp.float32)
    feat = jnp.maximum(feat + bc_ref[...], 0.0)

    hid = jnp.dot(feat.astype(jnp.bfloat16), w1_ref[...],
                  preferred_element_type=jnp.float32)
    hid = jnp.maximum(hid + b1_ref[...], 0.0)

    out = jnp.dot(hid.astype(jnp.bfloat16), w2_ref[...],
                  preferred_element_type=jnp.float32)
    o_ref[...] = out + b2_ref[...]


# ------------------------------ parameters --------------------------------- #

def init_params(key, in_channels, n_outputs, n_heads, weight_scale=float(np.sqrt(2))):
    """Orthogonal(gain) weights, zero biases (mirrors PyTorch init_weights)."""
    ortho = jax.nn.initializers.orthogonal(scale=weight_scale)
    k_conv, k1, k2 = jax.random.split(key, 3)

    w_conv = ortho(k_conv, (KH, KW, in_channels, CONV_OUT), jnp.float32)
    b_conv = jnp.zeros((1, CONV_OUT), jnp.float32)

    w1 = jnp.stack([ortho(k, (NUM_LIN, HIDDEN), jnp.float32)
                    for k in jax.random.split(k1, n_heads)])
    b1 = jnp.zeros((n_heads, 1, HIDDEN), jnp.float32)
    w2 = jnp.stack([ortho(k, (HIDDEN, n_outputs), jnp.float32)
                    for k in jax.random.split(k2, n_heads)])
    b2 = jnp.zeros((n_heads, 1, n_outputs), jnp.float32)
    return dict(w_conv=w_conv, b_conv=b_conv, w1=w1, b1=b1, w2=w2, b2=b2)


def pack_params(params, in_channels, n_heads, n_outputs):
    """One-time host-side repack into the fused-kernel layout (weights -> bf16)."""
    C = in_channels
    w_conv = np.asarray(params["w_conv"], np.float32).reshape(KH, KW, C, CONV_OUT)
    b_conv = np.asarray(params["b_conv"], np.float32).reshape(CONV_OUT)

    # Toeplitz / im2col-folded conv weight.  Column m = c*64 + h*8 + w matches
    # PyTorch's NCHW .view(B, -1) flatten order; row p indexes NHWC x.reshape(B,-1).
    w_big = np.zeros((H_IN * W_IN * C, NUM_LIN), np.float32)
    ch_cols = np.arange(CONV_OUT) * (H_OUT * W_OUT)
    for h in range(H_OUT):
        for w in range(W_OUT):
            m = ch_cols + h * W_OUT + w
            for kh in range(KH):
                for kw in range(KW):
                    for cin in range(C):
                        p = ((h + kh) * W_IN + (w + kw)) * C + cin
                        w_big[p, m] = w_conv[kh, kw, cin, :]
    b_big = np.repeat(b_conv, H_OUT * W_OUT)[None, :]            # (1, 1024)

    # Merge all heads' first layers into one wide matmul.
    w1 = np.asarray(params["w1"], np.float32)                     # (H, 1024, 128)
    b1 = np.asarray(params["b1"], np.float32)                     # (H, 1, 128)
    w1_all = np.transpose(w1, (1, 0, 2)).reshape(NUM_LIN, n_heads * HIDDEN)
    b1_all = b1.reshape(1, n_heads * HIDDEN)

    # Second layers as one block-diagonal, lane-dense (padded to 128) matmul.
    w2 = np.asarray(params["w2"], np.float32)                     # (H, 128, n_out)
    b2 = np.asarray(params["b2"], np.float32)                     # (H, 1, n_out)
    out_pad = max(128, ((n_heads * n_outputs + 127) // 128) * 128)
    w2_bd = np.zeros((n_heads * HIDDEN, out_pad), np.float32)
    b2_bd = np.zeros((1, out_pad), np.float32)
    for hh in range(n_heads):
        w2_bd[hh * HIDDEN:(hh + 1) * HIDDEN,
              hh * n_outputs:(hh + 1) * n_outputs] = w2[hh]
        b2_bd[0, hh * n_outputs:(hh + 1) * n_outputs] = b2[hh, 0]

    # Weights -> bf16 (MXU operands); biases stay f32 (added post-accumulation).
    return dict(w_conv_big=jnp.asarray(w_big, jnp.bfloat16),
                b_conv_big=jnp.asarray(b_big, jnp.float32),
                w1_all=jnp.asarray(w1_all, jnp.bfloat16),
                b1_all=jnp.asarray(b1_all, jnp.float32),
                w2_bd=jnp.asarray(w2_bd, jnp.bfloat16),
                b2_bd=jnp.asarray(b2_bd, jnp.float32))


# -------------------------------- wrapper ----------------------------------- #

def _round_up(v, m):
    return ((v + m - 1) // m) * m


def _pick_batch_tile(B):
    """Batch-tile rows: full batch for small B; otherwise a multiple of 8 chosen
    so the grid has >=2 blocks (keeps both v7x TensorCores busy) and the tile
    stays <= MAX_BATCH_TILE."""
    if B <= 256:
        return B                       # block dim == full array dim is legal
    n_tiles = max(2, pl.cdiv(B, MAX_BATCH_TILE))
    return min(_round_up(pl.cdiv(B, n_tiles), 8), MAX_BATCH_TILE)


def _resident_spec(shape):
    """Constant-index (VMEM-resident) spec; single-buffered when supported."""
    idx = lambda i: (0,) * len(shape)
    try:
        return pl.BlockSpec(shape, idx, pipeline_mode=pl.Buffered(1))
    except TypeError:                  # older jax without pipeline_mode kwarg
        return pl.BlockSpec(shape, idx)


@functools.partial(jax.jit, static_argnames=("n_heads", "n_outputs"))
def cnn_minatar_k_head_forward(x, packed, n_heads, n_outputs):
    if x.ndim == 3:              # matches PyTorch's unsqueeze(0) for single obs
        x = x[None]
    B = x.shape[0]
    x_flat = x.reshape(B, -1).astype(jnp.float32)        # NHWC flatten (B, 400)
    in_feat = x_flat.shape[1]
    w1_cols = packed["w1_all"].shape[1]
    out_pad = packed["w2_bd"].shape[1]

    tb = _pick_batch_tile(B)
    n_tiles = pl.cdiv(B, tb)     # last block may be partial; Pallas masks it

    flops = 2 * B * (in_feat * NUM_LIN + NUM_LIN * w1_cols + w1_cols * out_pad)
    bytes_accessed = (
        x_flat.size * 4 + B * out_pad * 4
        + sum(packed[k].size * packed[k].dtype.itemsize
              for k in ("w_conv_big", "b_conv_big", "w1_all",
                        "b1_all", "w2_bd", "b2_bd")))

    out = pl.pallas_call(
        fused_kernel,
        out_shape=jax.ShapeDtypeStruct((B, out_pad), jnp.float32),
        grid=(n_tiles,),
        in_specs=[
            pl.BlockSpec((tb, in_feat), lambda i: (i, 0)),
            _resident_spec(packed["w_conv_big"].shape),
            _resident_spec(packed["b_conv_big"].shape),
            _resident_spec(packed["w1_all"].shape),
            _resident_spec(packed["b1_all"].shape),
            _resident_spec(packed["w2_bd"].shape),
            _resident_spec(packed["b2_bd"].shape),
        ],
        out_specs=pl.BlockSpec((tb, out_pad), lambda i: (i, 0)),
        compiler_params=pltpu.CompilerParams(
            dimension_semantics=("parallel",),
            vmem_limit_bytes=48 * 1024 * 1024,   # under v7x 64 MiB physical
        ),
        cost_estimate=pl.CostEstimate(flops=flops, transcendentals=0,
                                      bytes_accessed=bytes_accessed),
    )(x_flat, packed["w_conv_big"], packed["b_conv_big"],
      packed["w1_all"], packed["b1_all"], packed["w2_bd"], packed["b2_bd"])

    # TODO(synk): optional v6e micro-opt — pad contraction dim 400 -> 512 at
    # pack time; skipped to avoid an extra wrapper-side copy of x.
    out = out[:, :n_heads * n_outputs]
    return out.reshape(B, n_heads, n_outputs)


# ------------------------- pure-JAX reference ------------------------------ #

def reference_forward(x, params, n_heads, n_outputs, dot_dtype=jnp.float32):
    """Reference matching the PyTorch module.  dot_dtype=bf16 reproduces the
    kernel's operand quantization (f32 accumulation) for tight comparison."""
    B, H, W, C = x.shape
    xc = jnp.transpose(x, (0, 3, 1, 2)).astype(dot_dtype)             # NCHW
    w_oihw = jnp.transpose(params["w_conv"].reshape(KH, KW, C, CONV_OUT),
                           (3, 2, 0, 1)).astype(dot_dtype)
    conv = jax.lax.conv_general_dilated(
        xc, w_oihw, (1, 1), "VALID",
        dimension_numbers=("NCHW", "OIHW", "NCHW"),
        preferred_element_type=jnp.float32)
    conv = jax.nn.relu(conv + params["b_conv"].reshape(1, CONV_OUT, 1, 1))
    flat = conv.reshape(B, -1)
    outs = []
    for h in range(n_heads):
        hid = jnp.dot(flat.astype(dot_dtype), params["w1"][h].astype(dot_dtype),
                      preferred_element_type=jnp.float32) + params["b1"][h, 0]
        hid = jax.nn.relu(hid)
        outs.append(jnp.dot(hid.astype(dot_dtype), params["w2"][h].astype(dot_dtype),
                            preferred_element_type=jnp.float32) + params["b2"][h, 0])
    return jnp.stack(outs, axis=1)                                    # (B, H, A)


# --------------------------------- main ------------------------------------ #

if __name__ == "__main__":
    B, C = 2, 4               # batch, MinAtar obs channels
    n_heads, n_outputs = 10, 6

    key = jax.random.PRNGKey(0)
    k_x, k_p = jax.random.split(key)
    x = jax.random.uniform(k_x, (B, H_IN, W_IN, C), dtype=jnp.float32)
    params = init_params(k_p, C, n_outputs, n_heads)
    packed = pack_params(params, C, n_heads, n_outputs)

    out = cnn_minatar_k_head_forward(x, packed, n_heads=n_heads, n_outputs=n_outputs)
    out = jax.block_until_ready(out)
    assert out.shape == (B, n_heads, n_outputs), out.shape

    # Tight check vs a reference using the same bf16 operand quantization.
    ref_bf16 = reference_forward(x, params, n_heads, n_outputs,
                                 dot_dtype=jnp.bfloat16)
    np.testing.assert_allclose(np.asarray(out), np.asarray(ref_bf16),
                               rtol=1e-2, atol=1e-2)

    # Loose sanity check vs the full-f32 reference (bf16 input quantization only).
    ref_f32 = reference_forward(x, params, n_heads, n_outputs,
                                dot_dtype=jnp.float32)
    np.testing.assert_allclose(np.asarray(out), np.asarray(ref_f32),
                               rtol=5e-2, atol=5e-2)

    print("KERNEL_OK")
</pallas_src>

<mosaic_0001>
module attributes {stable_mosaic.version = 11 : i64} {
  func.func @fused_kernel(%arg0: i32, %arg1: memref<2x400xf32, #tpu.memory_space<vmem>>, %arg2: memref<400x1024xbf16, #tpu.memory_space<vmem>>, %arg3: memref<1x1024xf32, #tpu.memory_space<vmem>>, %arg4: memref<1024x1280xbf16, #tpu.memory_space<vmem>>, %arg5: memref<1x1280xf32, #tpu.memory_space<vmem>>, %arg6: memref<1280x128xbf16, #tpu.memory_space<vmem>>, %arg7: memref<1x128xf32, #tpu.memory_space<vmem>>, %arg8: memref<2x128xf32, #tpu.memory_space<vmem>>) attributes {dimension_semantics = [#tpu.dimension_semantics<parallel>], iteration_bounds = array<i64: 1>, scalar_prefetch = 0 : i64, scratch_operands = 0 : i64, tpu.core_type = #tpu.core_type<tc>, window_params = [{transform_indices = @transform_0, window_bounds = array<i64: 2, 400>}, {pipeline_mode = #tpu.pipeline_mode<synchronous>, transform_indices = @transform_1, window_bounds = array<i64: 400, 1024>}, {pipeline_mode = #tpu.pipeline_mode<synchronous>, transform_indices = @transform_2, window_bounds = array<i64: 1, 1024>}, {pipeline_mode = #tpu.pipeline_mode<synchronous>, transform_indices = @transform_3, window_bounds = array<i64: 1024, 1280>}, {pipeline_mode = #tpu.pipeline_mode<synchronous>, transform_indices = @transform_4, window_bounds = array<i64: 1, 1280>}, {pipeline_mode = #tpu.pipeline_mode<synchronous>, transform_indices = @transform_5, window_bounds = array<i64: 1280, 128>}, {pipeline_mode = #tpu.pipeline_mode<synchronous>, transform_indices = @transform_6, window_bounds = array<i64: 1, 128>}, {transform_indices = @transform_7, window_bounds = array<i64: 2, 128>}]} {
    %c0 = arith.constant 0 : index
    %c0_0 = arith.constant 0 : index
    %0 = vector.load %arg1[%c0, %c0_0] : memref<2x400xf32, #tpu.memory_space<vmem>>, vector<2x400xf32>
    %1 = arith.truncf %0 : vector<2x400xf32> to vector<2x400xbf16>
    %c0_1 = arith.constant 0 : index
    %c0_2 = arith.constant 0 : index
    %2 = vector.load %arg2[%c0_1, %c0_2] : memref<400x1024xbf16, #tpu.memory_space<vmem>>, vector<400x1024xbf16>
    %cst = arith.constant dense<0.000000e+00> : vector<2x1024xf32>
    %3 = tpu.matmul %1, %2, %cst {dimension_numbers = #tpu.dot_dimension_numbers<[1], [0], [0], [1], [0, 0, 1, 1], [], []>} : vector<2x400xbf16>, vector<400x1024xbf16>, vector<2x1024xf32> -> vector<2x1024xf32>
    %c0_3 = arith.constant 0 : index
    %c0_4 = arith.constant 0 : index
    %4 = vector.load %arg3[%c0_3, %c0_4] : memref<1x1024xf32, #tpu.memory_space<vmem>>, vector<1x1024xf32>
    %5 = vector.broadcast %4 : vector<1x1024xf32> to vector<2x1024xf32>
    %6 = arith.addf %3, %5 : vector<2x1024xf32>
    %cst_5 = arith.constant 0.000000e+00 : f32
    %7 = vector.broadcast %cst_5 : f32 to vector<2x1024xf32>
    %8 = arith.maximumf %6, %7 : vector<2x1024xf32>
    %9 = arith.truncf %8 : vector<2x1024xf32> to vector<2x1024xbf16>
    %c0_6 = arith.constant 0 : index
    %c0_7 = arith.constant 0 : index
    %10 = vector.load %arg4[%c0_6, %c0_7] : memref<1024x1280xbf16, #tpu.memory_space<vmem>>, vector<1024x1280xbf16>
    %cst_8 = arith.constant dense<0.000000e+00> : vector<2x1280xf32>
    %11 = tpu.matmul %9, %10, %cst_8 {dimension_numbers = #tpu.dot_dimension_numbers<[1], [0], [0], [1], [0, 0, 1, 1], [], []>} : vector<2x1024xbf16>, vector<1024x1280xbf16>, vector<2x1280xf32> -> vector<2x1280xf32>
    %c0_9 = arith.constant 0 : index
    %c0_10 = arith.constant 0 : index
    %12 = vector.load %arg5[%c0_9, %c0_10] : memref<1x1280xf32, #tpu.memory_space<vmem>>, vector<1x1280xf32>
    %13 = vector.broadcast %12 : vector<1x1280xf32> to vector<2x1280xf32>
    %14 = arith.addf %11, %13 : vector<2x1280xf32>
    %cst_11 = arith.constant 0.000000e+00 : f32
    %15 = vector.broadcast %cst_11 : f32 to vector<2x1280xf32>
    %16 = arith.maximumf %14, %15 : vector<2x1280xf32>
    %17 = arith.truncf %16 : vector<2x1280xf32> to vector<2x1280xbf16>
    %c0_12 = arith.constant 0 : index
    %c0_13 = arith.constant 0 : index
    %18 = vector.load %arg6[%c0_12, %c0_13] : memref<1280x128xbf16, #tpu.memory_space<vmem>>, vector<1280x128xbf16>
    %cst_14 = arith.constant dense<0.000000e+00> : vector<2x128xf32>
    %19 = tpu.matmul %17, %18, %cst_14 {dimension_numbers = #tpu.dot_dimension_numbers<[1], [0], [0], [1], [0, 0, 1, 1], [], []>} : vector<2x1280xbf16>, vector<1280x128xbf16>, vector<2x128xf32> -> vector<2x128xf32>
    %c0_15 = arith.constant 0 : index
    %c0_16 = arith.constant 0 : index
    %20 = vector.load %arg7[%c0_15, %c0_16] : memref<1x128xf32, #tpu.memory_space<vmem>>, vector<1x128xf32>
    %21 = vector.broadcast %20 : vector<1x128xf32> to vector<2x128xf32>
    %22 = arith.addf %19, %21 : vector<2x128xf32>
    %c0_17 = arith.constant 0 : index
    %c0_18 = arith.constant 0 : index
    %23 = vector.load %arg8[%c0_17, %c0_18] : memref<2x128xf32, #tpu.memory_space<vmem>>, vector<2x128xf32>
    tpu.vector_store %arg8[%c0_17, %c0_18], %22 {strides = array<i32>} : memref<2x128xf32, #tpu.memory_space<vmem>>, vector<2x128xf32>,
    return
  }
  func.func @transform_0(%arg0: i32) -> (i32, i32) {
    %c0_i32 = arith.constant 0 : i32
    %c0_i32_0 = arith.constant 0 : i32
    return %arg0, %c0_i32 : i32, i32
  }
  func.func @transform_1(%arg0: i32) -> (i32, i32) {
    %c0_i32 = arith.constant 0 : i32
    %c0_i32_0 = arith.constant 0 : i32
    %c0_i32_1 = arith.constant 0 : i32
    return %c0_i32, %c0_i32_0 : i32, i32
  }
  func.func @transform_2(%arg0: i32) -> (i32, i32) {
    %c0_i32 = arith.constant 0 : i32
    %c0_i32_0 = arith.constant 0 : i32
    %c0_i32_1 = arith.constant 0 : i32
    return %c0_i32, %c0_i32_0 : i32, i32
  }
  func.func @transform_3(%arg0: i32) -> (i32, i32) {
    %c0_i32 = arith.constant 0 : i32
    %c0_i32_0 = arith.constant 0 : i32
    %c0_i32_1 = arith.constant 0 : i32
    return %c0_i32, %c0_i32_0 : i32, i32
  }
  func.func @transform_4(%arg0: i32) -> (i32, i32) {
    %c0_i32 = arith.constant 0 : i32
    %c0_i32_0 = arith.constant 0 : i32
    %c0_i32_1 = arith.constant 0 : i32
    return %c0_i32, %c0_i32_0 : i32, i32
  }
  func.func @transform_5(%arg0: i32) -> (i32, i32) {
    %c0_i32 = arith.constant 0 : i32
    %c0_i32_0 = arith.constant 0 : i32
    %c0_i32_1 = arith.constant 0 : i32
    return %c0_i32, %c0_i32_0 : i32, i32
  }
  func.func @transform_6(%arg0: i32) -> (i32, i32) {
    %c0_i32 = arith.constant 0 : i32
    %c0_i32_0 = arith.constant 0 : i32
    %c0_i32_1 = arith.constant 0 : i32
    return %c0_i32, %c0_i32_0 : i32, i32
  }
  func.func @transform_7(%arg0: i32) -> (i32, i32) {
    %c0_i32 = arith.constant 0 : i32
    %c0_i32_0 = arith.constant 0 : i32
    return %arg0, %c0_i32 : i32, i32
  }
}

</mosaic_0001>

<bundles_post_ra>
// kernel: cnn_minatar_k_head_forward.1
= control target key start
LH: loop header
LB: loop body
LE: loop exit
PB: predicated region body
PF: predicated region fallthrough
CT: control target
= control target key end

     0   :  { %12 = vsyncpa [#allocation3], 0  ;;  %s12718_s0 = inlined_call_operand.vmem [shape: f32[2,400], index: 0, kind: input, shape index: {}]   ;;  %s12719_s1 = inlined_call_operand.hbm [shape: bf16[400,1024], index: 1, kind: input, shape index: {}]   ;;  %s12720_s2 = inlined_call_operand.hbm [shape: f32[1,1024], index: 2, kind: input, shape index: {}]   ;;  %s12721_s3 = inlined_call_operand.hbm [shape: bf16[1024,1280], index: 3, kind: input, shape index: {}]   ;;  %s12722_s4 = inlined_call_operand.hbm [shape: f32[1,1280], index: 4, kind: input, shape index: {}]   ;;  %s12723_s5 = inlined_call_operand.hbm [shape: bf16[1280,128], index: 5, kind: input, shape index: {}]   ;;  %s12724_s6 = inlined_call_operand.hbm [shape: f32[1,128], index: 6, kind: input, shape index: {}]   ;;  %s12725_s7 = inlined_call_operand.vmem [shape: f32[2,128], index: 7, kind: output, shape index: {}]  }
   0x1   :  { %13 = vsyncpa [#allocation5], 0 }
   0x2   :  { %14 = vsyncpa [#allocation8], 0  ;;  %s36_s26 = sshll.u32 %s12720_s2, 4  ;;  %s37_s26 = int_to_ptr.hbm [resolvable:$true] %s36_s26 }
   0x3   :  { %15 = vsyncpa [#allocation11], 0  ;;  %s12268_s27 = smov [#allocation4]   ;;  %s60_s8 = sshll.u32 %s12722_s4, 4  ;;  %s61_s8 = int_to_ptr.hbm [resolvable:$true] %s60_s8 }
   0x4   :  { %s38_s28 = sshll.u32 %s12268_s27, 4  ;;  %s12269_s9 = smov [#allocation7]   ;;  %s39_s28 = int_to_ptr.vmem [resolvable:$true] %s38_s28 }
   0x5   :  { %41 = dma.hbm_to_vmem [thread:$0]  %s37_s26, 128, %s39_s28, [#allocation5]  }
   0x6   :  { %s62_s10 = sshll.u32 %s12269_s9, 4  ;;  %s22_s13 = sshll.u32 %s12719_s1, 4  ;;  %s63_s10 = int_to_ptr.vmem [resolvable:$true] %s62_s10  ;;  %s23_s13 = int_to_ptr.hbm [resolvable:$true] %s22_s13 }
   0x7   :  { %65 = dma.hbm_to_vmem [thread:$0]  %s61_s8, 160, %s63_s10, [#allocation8]  }
   0x8   :  { %s12270_s2 = smov [#allocation2]   ;;  %s46_s17 = sshll.u32 %s12721_s3, 4  ;;  %s47_s17 = int_to_ptr.hbm [resolvable:$true] %s46_s17 }
   0x9   :  { %s24_s14 = sshll.u32 %s12270_s2, 4  ;;  %s12271_s18 = smov 512   ;;  %s25_s14 = int_to_ptr.vmem [resolvable:$true] %s24_s14 }
   0xa   :  { %s12272_s4 = smov 32   ;;  %s12273_s19 = smov [#allocation6]  }
   0xb   :  { %30 = dma.hbm_to_vmem [thread:$0]  %s23_s13, 25600, %s25_s14, [#allocation3], %s12271_s18, %s12271_s18, %s12272_s4  }
   0xc   :  { %s48_s20 = sshll.u32 %s12273_s19, 4  ;;  %s12274_s21 = smov 640   ;;  %s49_s20 = int_to_ptr.vmem [resolvable:$true] %s48_s20 }
   0xd   :  { %s12275_s22 = smov 40   ;;  %s70_s24 = sshll.u32 %s12723_s5, 4  ;;  %s71_s24 = int_to_ptr.hbm [resolvable:$true] %s70_s24 }
   0xe   :  { %54 = dma.hbm_to_vmem [thread:$0]  %s47_s17, 81920, %s49_s20, [#allocation5], %s12274_s21, %s12274_s21, %s12275_s22  }
   0xf   :  { %s12276_s25 = smov [#allocation9]   ;;  %s84_s28 = sshll.u32 %s12724_s6, 4  ;;  %s85_s28 = int_to_ptr.hbm [resolvable:$true] %s84_s28 }
  0x10   :  { %s72_s26 = sshll.u32 %s12276_s25, 4  ;;  %s12277_s29 = smov 64   ;;  %s73_s26 = int_to_ptr.vmem [resolvable:$true] %s72_s26 }
  0x11   :  { %s12278_s30 = smov 4   ;;  %s12279_s8 = smov [#allocation10]  }
  0x12   :  { %78 = dma.hbm_to_vmem [thread:$0]  %s71_s24, 10240, %s73_s26, [#allocation8], %s12277_s29, %s12277_s29, %s12278_s30  }
  0x13   :  { %s86_s9 = sshll.u32 %s12279_s8, 4  ;;  %s87_s9 = int_to_ptr.vmem [resolvable:$true] %s86_s9 }
  0x14   :  { %89 = dma.hbm_to_vmem [thread:$0]  %s85_s28, 16, %s87_s9, [#allocation11]  }
  0x15   :  { %12260 = dma.done.wait [#allocation3], 25600  }
  0x16   :  { %12261 = vsyncadd [#allocation3], 4294941696 }
  0x17   :  { %12262 = dma.done.wait [#allocation5], 82048  }
  0x18   :  { %12263 = vsyncadd [#allocation5], 4294885248 }
  0x19   :  { %12264 = dma.done.wait [#allocation8], 10400  }
  0x1a   :  { %12265 = vsyncadd [#allocation8], 4294956896 }
  0x1b   :  { %12266 = dma.done.wait [#allocation11], 16  }
  0x1c   :  { %12267 = vsyncadd [#allocation11], 4294967280  ;;  %v7717_v0 = vld [vmem:[#allocation2 + $0x1c0] sm:$0xf]  ;;  %v11235_v5 = vld [vmem:[#allocation2 + $0x1c4] sm:$0xf] }
  0x1d   :  { %v11239_v1 = vld [vmem:[#allocation2 + $0x1dc] sm:$0xf0]  ;;  %v7719_v6 = vld [vmem:[#allocation2 + $0x1e0] sm:$0xf0]  ;;  %vm1348_vm0 = vcmask 130048  }
  0x1e   :  { %v8229_v2 = vld [vmem:[#allocation2 + $0x5c0] sm:$0xf]  ;;  %v7718_v3 = vor.u32 %v11239_v1, %v7717_v0  ;;  %v7722_v8 = vor.u32 %v11235_v5, %v7719_v6  ;;  %v11227_v18 = vld [vmem:[#allocation2 + $0x184] sm:$0xf] }
  0x1f   :  { %v11367_v4 = vld [vmem:[#allocation2 + $0x5dc] sm:$0xf0]  ;;  %v7687_v19 = vld [vmem:[#allocation2 + $0x1a0] sm:$0xf0] }
  0x20   :  { %v8230_v7 = vor.u32 %v11367_v4, %v8229_v2  ;;  %v7685_v9 = vld [vmem:[#allocation2 + $0x180] sm:$0xf]  ;;  %1352 = vmatpush.bf16.msra.mxu0 %v7718_v3  ;;  %1404 = vmatpush.bf16.msra.mxu3 %v7722_v8  ;;  %v7690_v21 = vor.u32 %v11227_v18, %v7687_v19  ;;  %v11219_v28 = vld [vmem:[#allocation2 + $0x144] sm:$0xf] }
  0x21   :  { %v11231_v10 = vld [vmem:[#allocation2 + $0x19c] sm:$0xf0]  ;;  %v7655_v30 = vld [vmem:[#allocation2 + $0x160] sm:$0xf0] }
  0x22   :  { %v7973_v11 = vld [vmem:[#allocation2 + $0x3c0] sm:$0xf]  ;;  %v7686_v12 = vor.u32 %v11231_v10, %v7685_v9  ;;  %1378 = vmatpush.bf16.msra.mxu2 %v8230_v7  ;;  %v7658_v34 = vor.u32 %v11219_v28, %v7655_v30  ;;  %v11211_v39 = vld [vmem:[#allocation2 + $0x104] sm:$0xf]  ;;  %v11240_v30 = vld [vmem:[#allocation2 + $0x1e4] sm:$0xf0] }
  0x23   :  { %v11303_v13 = vld [vmem:[#allocation2 + $0x3dc] sm:$0xf0]  ;;  %v7623_v40 = vld [vmem:[#allocation2 + $0x120] sm:$0xf0] }
  0x24   :  { %v8197_v14 = vld [vmem:[#allocation2 + $0x580] sm:$0xf]  ;;  %v7974_v16 = vor.u32 %v11303_v13, %v7973_v11  ;;  %1353 = vmatpush.bf16.msra.mxu0 %v7686_v12  ;;  %1405 = vmatpush.bf16.msra.mxu3 %v7690_v21  ;;  %v7626_v46 = vor.u32 %v11211_v39, %v7623_v40  ;;  %v11203_v51 = vld [vmem:[#allocation2 + $0xc4] sm:$0xf]  ;;  %v7693_v40 = vld [vmem:[#allocation2 + $0x188] sm:$0xf] }
  0x25   :  { %v11359_v15 = vld [vmem:[#allocation2 + $0x59c] sm:$0xf0]  ;;  %v7591_v52 = vld [vmem:[#allocation2 + $0xe0] sm:$0xf0] }
  0x26   :  { %v8198_v17 = vor.u32 %v11359_v15, %v8197_v14  ;;  %v7653_v20 = vld [vmem:[#allocation2 + $0x140] sm:$0xf]  ;;  %1365 = vmatpush.bf16.msra.mxu1 %v7974_v16  ;;  %v7594_v58 = vor.u32 %v11203_v51, %v7591_v52  ;;  %v11195_v63 = vld [vmem:[#allocation2 + $0x84] sm:$0xf]  ;;  %v115_v15 = vld [vmem:[%s12718_s0] sm:$0xff] }
  0x27   :  { %v11223_v22 = vld [vmem:[#allocation2 + $0x15c] sm:$0xf0]  ;;  %v7559_v0 = vld [vmem:[#allocation2 + $0xa0] sm:$0xf0]  ;;  %117 = vst [vmem:[#allocation1] ss:$4 sm:$0xff] %v115_v15 }
  0x28   :  { %v7941_v23 = vld [vmem:[#allocation2 + $0x380] sm:$0xf]  ;;  %v7654_v29 = vor.u32 %v11223_v22, %v7653_v20  ;;  %1379 = vmatpush.bf16.msra.mxu2 %v8198_v17  ;;  %1406 = vmatpush.bf16.msra.mxu3 %v7658_v34  ;;  %v7562_v6 = vor.u32 %v11195_v63, %v7559_v0  ;;  %v11187_v11 = vld [vmem:[#allocation2 + $0x44] sm:$0xf]  ;;  %v11224_v63 = vld [vmem:[#allocation2 + $0x164] sm:$0xf0] }
  0x29   :  { %v11295_v24 = vld [vmem:[#allocation2 + $0x39c] sm:$0xf0]  ;;  %v7527_v12 = vld [vmem:[#allocation2 + $0x60] sm:$0xf0] }
  0x2a   :  { %v7942_v25 = vor.u32 %v11295_v24, %v7941_v23  ;;  %v8165_v26 = vld [vmem:[#allocation2 + $0x540] sm:$0xf]  ;;  %1354 = vmatpush.bf16.msra.mxu0 %v7654_v29  ;;  %v7530_v20 = vor.u32 %v11187_v11, %v7527_v12  ;;  %v11179_v24 = vld [vmem:[#allocation2 + $0x4] sm:$0xf]  ;;  %v7725_v29 = vld [vmem:[#allocation2 + $0x1c8] sm:$0xf] }
  0x2b   :  { %v11351_v27 = vld [vmem:[#allocation2 + $0x55c] sm:$0xf0]  ;;  %v7975_v28 = vld [vmem:[#allocation2 + $0x3e0] sm:$0xf0] }
  0x2c   :  { %v7621_v31 = vld [vmem:[#allocation2 + $0x100] sm:$0xf]  ;;  %v8166_v33 = vor.u32 %v11351_v27, %v8165_v26  ;;  %1366 = vmatpush.bf16.msra.mxu1 %v7942_v25  ;;  %1407 = vmatpush.bf16.msra.mxu3 %v7626_v46  ;;  %v7495_v25 = vld [vmem:[#allocation2 + $0x20] sm:$0xf0] }
  0x2d   :  { %v11215_v32 = vld [vmem:[#allocation2 + $0x11c] sm:$0xf0]  ;;  %v11299_v26 = vld [vmem:[#allocation2 + $0x3c4] sm:$0xf] }
  0x2e   :  { %v7909_v35 = vld [vmem:[#allocation2 + $0x340] sm:$0xf]  ;;  %v7622_v42 = vor.u32 %v11215_v32, %v7621_v31  ;;  %1380 = vmatpush.bf16.msra.mxu2 %v8166_v33  ;;  %v8231_v39 = vld [vmem:[#allocation2 + $0x5e0] sm:$0xf0] }
  0x2f   :  { %v11287_v36 = vld [vmem:[#allocation2 + $0x35c] sm:$0xf0]  ;;  %v120_v46 = vld.sshfl [vmem:[#allocation1 + $0x10] sm:$0xff pattern:$0x73625140] }
  0x30   :  { %v8133_v37 = vld [vmem:[#allocation2 + $0x500] sm:$0xf]  ;;  %v7910_v41 = vor.u32 %v11287_v36, %v7909_v35  ;;  %1355 = vmatpush.bf16.msra.mxu0 %v7622_v42  ;;  %1408 = vmatpush.bf16.msra.mxu3 %v7594_v58  ;;  %v7498_v35 = vor.u32 %v11179_v24, %v7495_v25  ;;  %v11291_v36 = vld [vmem:[#allocation2 + $0x384] sm:$0xf]  ;;  %v7726_v42 = vor.u32 %v11240_v30, %v7725_v29  ;;  %v7565_v30 = vld [vmem:[#allocation2 + $0x88] sm:$0xf] }
  0x31   :  { %v11343_v38 = vld [vmem:[#allocation2 + $0x51c] sm:$0xf0]  ;;  %v11283_v58 = vld [vmem:[#allocation2 + $0x344] sm:$0xf] }
  0x32   :  { %v7877_v43 = vld [vmem:[#allocation2 + $0x300] sm:$0xf]  ;;  %v8134_v45 = vor.u32 %v11343_v38, %v8133_v37  ;;  %1367 = vmatpush.bf16.msra.mxu1 %v7910_v41  ;;  %v7943_v37 = vld [vmem:[#allocation2 + $0x3a0] sm:$0xf0]  ;;  %v7978_v41 = vor.u32 %v11299_v26, %v7975_v28  ;;  %v7981_v26 = vld [vmem:[#allocation2 + $0x3c8] sm:$0xf] }
  0x33   :  { %v11279_v44 = vld [vmem:[#allocation2 + $0x31c] sm:$0xf0]  ;;  %v11363_v38 = vld [vmem:[#allocation2 + $0x5c4] sm:$0xf] }
  0x34   :  { %v7589_v47 = vld [vmem:[#allocation2 + $0xc0] sm:$0xf]  ;;  %v7878_v53 = vor.u32 %v11279_v44, %v7877_v43  ;;  %1381 = vmatpush.bf16.msra.mxu2 %v8134_v45  ;;  %1409 = vmatpush.bf16.msra.mxu3 %v7562_v6  ;;  %v11232_v43 = vld [vmem:[#allocation2 + $0x1a4] sm:$0xf0]  ;;  %v8234_v51 = vor.u32 %v11363_v38, %v8231_v39  ;;  %v8263_v0 = vld [vmem:[#allocation2 + $0x620] sm:$0xf0] }
  0x35   :  { %v11207_v48 = vld [vmem:[#allocation2 + $0xdc] sm:$0xf0]  ;;  %v11339_v12 = vld [vmem:[#allocation2 + $0x504] sm:$0xf]  ;;  %v7949_v39 = vld [vmem:[#allocation2 + $0x388] sm:$0xf] }
  0x36   :  { %v8101_v49 = vld [vmem:[#allocation2 + $0x4c0] sm:$0xf]  ;;  %v7590_v54 = vor.u32 %v11207_v48, %v7589_v47  ;;  %1368 = vmatpush.bf16.msra.mxu1 %v7878_v53  ;;  %v118_v48 = vld.sshfl [vmem:[#allocation1] sm:$0xff pattern:$0x73625140] }
  0x37   :  { %v11335_v50 = vld [vmem:[#allocation2 + $0x4dc] sm:$0xf0]  ;;  %v11355_v53 = vld [vmem:[#allocation2 + $0x584] sm:$0xf] }
  0x38   :  { %v7845_v55 = vld [vmem:[#allocation2 + $0x2c0] sm:$0xf]  ;;  %v8102_v57 = vor.u32 %v11335_v50, %v8101_v49  ;;  %1356 = vmatpush.bf16.msra.mxu0 %v7590_v54  ;;  %1410 = vmatpush.bf16.msra.mxu3 %v7530_v20  ;;  %v12341_v49 = vpack.c.bf16 %v120_v46, %v120_v46  ;;  %v12343_v50 = vpack.c.bf16 %v118_v48, %v118_v48  ;;  %v8199_v54 = vld [vmem:[#allocation2 + $0x5a0] sm:$0xf0] }
  0x39   :  { %v11271_v56 = vld [vmem:[#allocation2 + $0x2dc] sm:$0xf0]  ;;  %v11259_v28 = vld [vmem:[#allocation2 + $0x284] sm:$0xf] }
  0x3a   :  { %v7557_v59 = vld [vmem:[#allocation2 + $0x80] sm:$0xf]  ;;  %v7846_v1 = vor.u32 %v11271_v56, %v7845_v55  ;;  %1382 = vmatpush.bf16.msra.mxu2 %v8102_v57  ;;  %v7946_v56 = vor.u32 %v11291_v36, %v7943_v37  ;;  %v7694_v57 = vor.u32 %v11232_v43, %v7693_v40  ;;  %v7815_v29 = vld [vmem:[#allocation2 + $0x2a0] sm:$0xf0]  ;;  %v11296_v40 = vld [vmem:[#allocation2 + $0x3a4] sm:$0xf0] }
  0x3b   :  { %v11199_v60 = vld [vmem:[#allocation2 + $0x9c] sm:$0xf0]  ;;  %v8071_v36 = vld [vmem:[#allocation2 + $0x4a0] sm:$0xf0]  ;;  %v7818_v37 = vor.u32 %v11259_v28, %v7815_v29  ;;  %v7533_v43 = vld [vmem:[#allocation2 + $0x48] sm:$0xf]  ;;  %v7950_v46 = vor.u32 %v11296_v40, %v7949_v39 }
  0x3c   :  { %v8069_v61 = vld [vmem:[#allocation2 + $0x480] sm:$0xf]  ;;  %v7558_v2 = vor.u32 %v11199_v60, %v7557_v59  ;;  %1369 = vmatpush.bf16.msra.mxu1 %v7846_v1  ;;  %1411 = vmatpush.bf16.msra.mxu3 %v7498_v35  ;;  %v7911_v59 = vld [vmem:[#allocation2 + $0x360] sm:$0xf0]  ;;  %v8202_v1 = vor.u32 %v11355_v53, %v8199_v54  ;;  %v11288_v54 = vld [vmem:[#allocation2 + $0x364] sm:$0xf0] }
  0x3d   :  { %v11327_v62 = vld [vmem:[#allocation2 + $0x49c] sm:$0xf0]  ;;  %v11371_v60 = vld [vmem:[#allocation2 + $0x604] sm:$0xf]  ;;  %v7663_v28 = vld [vmem:[#allocation2 + $0x168] sm:$0xf0] }
  0x3e   :  { %v7813_v3 = vld [vmem:[#allocation2 + $0x280] sm:$0xf]  ;;  %v8070_v5 = vor.u32 %v11327_v62, %v8069_v61  ;;  %1357 = vmatpush.bf16.msra.mxu0 %v7558_v2  ;;  %v7661_v62 = vld [vmem:[#allocation2 + $0x148] sm:$0xf]  ;;  %v8266_v2 = vor.u32 %v11371_v60, %v8263_v0  ;;  %v11323_v35 = vld [vmem:[#allocation2 + $0x484] sm:$0xf] }
  0x3f   :  { %v11263_v4 = vld [vmem:[#allocation2 + $0x29c] sm:$0xf0]  ;;  %1412 = vmatmul.bf16.vlgmr.msra.gmra.mxu3 %v12343_v50  ;;  %v7662_v6 = vor.u32 %v11224_v63, %v7661_v62  ;;  %v11315_v48 = vld [vmem:[#allocation2 + $0x444] sm:$0xf]  ;;  %v11368_v62 = vld [vmem:[#allocation2 + $0x5e4] sm:$0xf0] }
  0x40   :  { %v7525_v7 = vld [vmem:[#allocation2 + $0x40] sm:$0xf]  ;;  %v7814_v13 = vor.u32 %v11263_v4, %v7813_v3  ;;  %1383 = vmatpush.bf16.msra.mxu2 %v8070_v5  ;;  %1456 = vmatpush.bf16.msrb.mxu3 %v7726_v42  ;;  %v11347_v3 = vld [vmem:[#allocation2 + $0x544] sm:$0xf]  ;;  %v7914_v5 = vor.u32 %v11283_v58, %v7911_v59  ;;  %v11184_v58 = vld [vmem:[#allocation2 + $0x24] sm:$0xf0] }
  0x41   :  { %v11191_v8 = vld [vmem:[#allocation2 + $0x5c] sm:$0xf0]  ;;  %v8167_v4 = vld [vmem:[#allocation2 + $0x560] sm:$0xf0]  ;;  %v8237_v59 = vld [vmem:[#allocation2 + $0x5c8] sm:$0xf] }
  0x42   :  { %v8037_v9 = vld [vmem:[#allocation2 + $0x440] sm:$0xf]  ;;  %v7526_v16 = vor.u32 %v11191_v8, %v7525_v7  ;;  %1370 = vmatpush.bf16.msra.mxu1 %v7814_v13  ;;  %v11275_v7 = vld [vmem:[#allocation2 + $0x304] sm:$0xf]  ;;  %v8170_v11 = vor.u32 %v11347_v3, %v8167_v4  ;;  %v11236_v63 = vld [vmem:[#allocation2 + $0x1cc] sm:$0xf] }
  0x43   :  { %v11319_v10 = vld [vmem:[#allocation2 + $0x45c] sm:$0xf0]  ;;  %v7879_v8 = vld [vmem:[#allocation2 + $0x320] sm:$0xf0]  ;;  %v7727_v0 = vld [vmem:[#allocation2 + $0x1e8] sm:$0xf0] }
  0x44   :  { %v7493_v14 = vld [vmem:[#allocation2] sm:$0xf]  ;;  %v8038_v19 = vor.u32 %v11319_v10, %v8037_v9  ;;  %1358 = vmatpush.bf16.msra.mxu0 %v7526_v16  ;;  %1457 = vmatpush.bf16.msrb.mxu3 %v7694_v57  ;;  %v7629_v9 = vld [vmem:[#allocation2 + $0x108] sm:$0xf]  ;;  %v8135_v13 = vld [vmem:[#allocation2 + $0x520] sm:$0xf0] }
  0x45   :  { %v7781_v17 = vld [vmem:[#allocation2 + $0x240] sm:$0xf]  ;;  %v11216_v10 = vld [vmem:[#allocation2 + $0x124] sm:$0xf0]  ;;  %v11267_v16 = vld [vmem:[#allocation2 + $0x2c4] sm:$0xf]  ;;  %v8138_v20 = vor.u32 %v11339_v12, %v8135_v13 }
  0x46   :  { %v11255_v18 = vld [vmem:[#allocation2 + $0x25c] sm:$0xf0]  ;;  %1384 = vmatpush.bf16.msra.mxu2 %v8038_v19  ;;  %v7630_v15 = vor.u32 %v11216_v10, %v7629_v9  ;;  %v11208_v19 = vld [vmem:[#allocation2 + $0xe4] sm:$0xf0]  ;;  %v7783_v42 = vld [vmem:[#allocation2 + $0x260] sm:$0xf0]  ;;  %v8238_v10 = vor.u32 %v11368_v62, %v8237_v59 }
  0x47   :  { %v11183_v21 = vld [vmem:[#allocation2 + $0x1c] sm:$0xf0]  ;;  %v7782_v27 = vor.u32 %v11255_v18, %v7781_v17  ;;  %v7847_v17 = vld [vmem:[#allocation2 + $0x2e0] sm:$0xf0]  ;;  %v7597_v18 = vld [vmem:[#allocation2 + $0xc8] sm:$0xf] }
  0x48   :  { %v8005_v22 = vld [vmem:[#allocation2 + $0x400] sm:$0xf]  ;;  %v7494_v31 = vor.u32 %v11183_v21, %v7493_v14  ;;  %1458 = vmatpush.bf16.msrb.mxu3 %v7662_v6  ;;  %v7882_v14 = vor.u32 %v11275_v7, %v7879_v8  ;;  %v121_v21 = vld.sshfl [vmem:[#allocation1 + $0x18] sm:$0xff pattern:$0x73625140]  ;;  %v7850_v24 = vor.u32 %v11267_v16, %v7847_v17  ;;  %v7598_v25 = vor.u32 %v11208_v19, %v7597_v18 }
  0x49   :  { %v11311_v23 = vld [vmem:[#allocation2 + $0x41c] sm:$0xf0]  ;;  %1371 = vmatpush.bf16.msra.mxu1 %v7782_v27  ;;  %v11304_v27 = vld [vmem:[#allocation2 + $0x3e4] sm:$0xf0]  ;;  %v11307_v3 = vld [vmem:[#allocation2 + $0x404] sm:$0xf] }
  0x4a   :  { %v7749_v32 = vld [vmem:[#allocation2 + $0x200] sm:$0xf]  ;;  %v8006_v34 = vor.u32 %v11311_v23, %v8005_v22  ;;  %1359 = vmatpush.bf16.msra.mxu0 %v7494_v31  ;;  %v11331_v22 = vld [vmem:[#allocation2 + $0x4c4] sm:$0xf]  ;;  %v11200_v31 = vld [vmem:[#allocation2 + $0xa4] sm:$0xf0] }
  0x4b   :  { %v11247_v33 = vld [vmem:[#allocation2 + $0x21c] sm:$0xf0]  ;;  %v8103_v23 = vld [vmem:[#allocation2 + $0x4e0] sm:$0xf0]  ;;  %v7566_v38 = vor.u32 %v11200_v31, %v7565_v30  ;;  %v7501_v57 = vld [vmem:[#allocation2 + $0x8] sm:$0xf] }
  0x4c   :  { %v8261_v44 = vld [vmem:[#allocation2 + $0x600] sm:$0xf]  ;;  %v7750_v47 = vor.u32 %v11247_v33, %v7749_v32  ;;  %1385 = vmatpush.bf16.msra.mxu2 %v8006_v34  ;;  %1459 = vmatpush.bf16.msrb.mxu3 %v7630_v15  ;;  %v12351_v32 = vpack.c.bf16 %v121_v21, %v121_v21  ;;  %v8106_v33 = vor.u32 %v11331_v22, %v8103_v23  ;;  %v8007_v4 = vld [vmem:[#allocation2 + $0x420] sm:$0xf0]  ;;  %v11280_v7 = vld [vmem:[#allocation2 + $0x324] sm:$0xf0] }
  0x4d   :  { %v11375_v45 = vld [vmem:[#allocation2 + $0x61c] sm:$0xf0]  ;;  %1360 = vmatmul.bf16.vlgmr.msra.gmra.mxu0 %v12343_v50  ;;  %v7982_v34 = vor.u32 %v11304_v27, %v7981_v26  ;;  %v7502_v6 = vor.u32 %v11184_v58, %v7501_v57  ;;  %v8269_v8 = vld [vmem:[#allocation2 + $0x608] sm:$0xf]  ;;  %v8010_v13 = vor.u32 %v11307_v3, %v8007_v4  ;;  %v11228_v15 = vld [vmem:[#allocation2 + $0x18c] sm:$0xf] }
  0x4e   :  { %v119_v52 = vld.sshfl [vmem:[#allocation1 + $0x8] sm:$0xff pattern:$0x73625140]  ;;  %v8262_v55 = vor.u32 %v11375_v45, %v8261_v44  ;;  %1417 = vmatpush.bf16.msrb.mxu0 %v7978_v41  ;;  %1372 = vmatpush.bf16.msra.mxu1 %v7750_v47  ;;  %v11192_v44 = vld [vmem:[#allocation2 + $0x64] sm:$0xf0]  ;;  %v8074_v45 = vor.u32 %v11323_v35, %v8071_v36 }
  0x4f   :  { %v12346_v61 = vpack.c.bf16 %v119_v52, %v119_v52  ;;  %1386 = vmatmul.bf16.vlgmr.msra.gmra.mxu2 %v12341_v49  ;;  %v11251_v41 = vld [vmem:[#allocation2 + $0x244] sm:$0xf]  ;;  %v7917_v47 = vld [vmem:[#allocation2 + $0x348] sm:$0xf]  ;;  %v7534_v53 = vor.u32 %v11192_v44, %v7533_v43  ;;  %v7695_v16 = vld [vmem:[#allocation2 + $0x1a8] sm:$0xf0] }
  0x50   :  { %1398 = vmatpush.bf16.msrb.mxu2 %v8262_v55  ;;  %1460 = vmatpush.bf16.msrb.mxu3 %v7598_v25  ;;  %v7786_v52 = vor.u32 %v11251_v41, %v7783_v42  ;;  %v11243_v55 = vld [vmem:[#allocation2 + $0x204] sm:$0xf]  ;;  %v11376_v9 = vld [vmem:[#allocation2 + $0x624] sm:$0xf0]  ;;  %v11300_v21 = vld [vmem:[#allocation2 + $0x3cc] sm:$0xf] }
  0x51   :  { %1373 = vmatmul.bf16.vlgmr.msra.gmra.mxu1 %v12346_v61  ;;  %v8205_v12 = vld [vmem:[#allocation2 + $0x588] sm:$0xf]  ;;  %v8270_v19 = vor.u32 %v11376_v9, %v8269_v8  ;;  %v7983_v22 = vld [vmem:[#allocation2 + $0x3e8] sm:$0xf0] }
  0x52   :  { %1430 = vmatpush.bf16.msrb.mxu1 %v8234_v51  ;;  %1418 = vmatpush.bf16.msrb.mxu0 %v7946_v56  ;;  %v8039_v51 = vld [vmem:[#allocation2 + $0x460] sm:$0xf0]  ;;  %v7853_v18 = vld [vmem:[#allocation2 + $0x2c8] sm:$0xf]  ;;  %v11220_v27 = vld [vmem:[#allocation2 + $0x14c] sm:$0xf]  ;;  %v7986_v30 = vor.u32 %v11300_v21, %v7983_v22 }
  0x53   :  { %v7751_v56 = vld [vmem:[#allocation2 + $0x220] sm:$0xf0]  ;;  %v8042_v60 = vor.u32 %v11315_v48, %v8039_v51  ;;  %v8173_v25 = vld [vmem:[#allocation2 + $0x548] sm:$0xf]  ;;  %v7951_v35 = vld [vmem:[#allocation2 + $0x3a8] sm:$0xf0] }
  0x54   :  { %1450 = vmatpush.bf16.msra.mxu2 %v8266_v2  ;;  %1461 = vmatpush.bf16.msrb.mxu3 %v7566_v38  ;;  %v7885_v2 = vld [vmem:[#allocation2 + $0x308] sm:$0xf]  ;;  %v11212_v40 = vld [vmem:[#allocation2 + $0x10c] sm:$0xf] }
  0x55   :  { %v7886_v17 = vor.u32 %v11280_v7, %v7885_v2  ;;  %v11352_v26 = vld [vmem:[#allocation2 + $0x564] sm:$0xf0]  ;;  %v7631_v41 = vld [vmem:[#allocation2 + $0x128] sm:$0xf0] }
  0x56   :  { %1431 = vmatpush.bf16.msrb.mxu1 %v8202_v1  ;;  %1419 = vmatpush.bf16.msrb.mxu0 %v7914_v5  ;;  %v7918_v1 = vor.u32 %v11288_v54, %v7917_v47  ;;  %v7754_v5 = vor.u32 %v11243_v55, %v7751_v56  ;;  %v7821_v31 = vld [vmem:[#allocation2 + $0x288] sm:$0xf]  ;;  %v8174_v36 = vor.u32 %v11352_v26, %v8173_v25  ;;  %v7919_v47 = vld [vmem:[#allocation2 + $0x368] sm:$0xf0] }
  0x57   :  { %v8141_v38 = vld [vmem:[#allocation2 + $0x508] sm:$0xf]  ;;  %v7634_v51 = vor.u32 %v11212_v40, %v7631_v41  ;;  %v11204_v54 = vld [vmem:[#allocation2 + $0xcc] sm:$0xf] }
  0x58   :  { %1462 = vmatpush.bf16.msrb.mxu3 %v7534_v53  ;;  %v11344_v39 = vld [vmem:[#allocation2 + $0x524] sm:$0xf0]  ;;  %v7599_v55 = vld [vmem:[#allocation2 + $0xe8] sm:$0xf0] }
  0x59   :  { %v7789_v44 = vld [vmem:[#allocation2 + $0x248] sm:$0xf]  ;;  %v8142_v48 = vor.u32 %v11344_v39, %v8141_v38  ;;  %v7887_v62 = vld [vmem:[#allocation2 + $0x328] sm:$0xf0] }
  0x5a   :  { %1432 = vmatpush.bf16.msrb.mxu1 %v8170_v11  ;;  %1420 = vmatpush.bf16.msrb.mxu0 %v7882_v14  ;;  %v7730_v11 = vor.u32 %v11236_v63, %v7727_v0  ;;  %v11360_v14 = vld [vmem:[#allocation2 + $0x5a4] sm:$0xf0]  ;;  %v7602_v0 = vor.u32 %v11204_v54, %v7599_v55  ;;  %v8239_v2 = vld [vmem:[#allocation2 + $0x5e8] sm:$0xf0] }
  0x5b   :  { %v8206_v23 = vor.u32 %v11360_v14, %v8205_v12  ;;  %v11336_v53 = vld [vmem:[#allocation2 + $0x4e4] sm:$0xf0]  ;;  %v11356_v14 = vld [vmem:[#allocation2 + $0x58c] sm:$0xf] }
  0x5c   :  { %1463 = vmatpush.bf16.msrb.mxu3 %v7502_v6  ;;  %v7757_v58 = vld [vmem:[#allocation2 + $0x208] sm:$0xf]  ;;  %v7567_v6 = vld [vmem:[#allocation2 + $0xa8] sm:$0xf0] }
  0x5d   :  { %v11248_v59 = vld [vmem:[#allocation2 + $0x224] sm:$0xf0]  ;;  %v11348_v21 = vld [vmem:[#allocation2 + $0x54c] sm:$0xf] }
  0x5e   :  { %1433 = vmatpush.bf16.msrb.mxu1 %v8138_v20  ;;  %1421 = vmatpush.bf16.msrb.mxu0 %v7850_v24  ;;  %v11272_v20 = vld [vmem:[#allocation2 + $0x2e4] sm:$0xf0]  ;;  %v7698_v24 = vor.u32 %v11228_v15, %v7695_v16  ;;  %v7758_v7 = vor.u32 %v11248_v59, %v7757_v58  ;;  %v8207_v15 = vld [vmem:[#allocation2 + $0x5a8] sm:$0xf0] }
  0x5f   :  { %8291 = vmatmul.msk.bf16.vlgmr.msrb.gmra.mxu2 %vm1348_vm0, %v12351_v32  ;;  %v7854_v29 = vor.u32 %v11272_v20, %v7853_v18  ;;  %1464 = vmatmul.bf16.vlgmr.msrb.gmra.mxu3 %v12343_v50  ;;  %v8077_v3 = vld [vmem:[#allocation2 + $0x488] sm:$0xf]  ;;  %v11188_v18 = vld [vmem:[#allocation2 + $0x4c] sm:$0xf]  ;;  %v8210_v22 = vor.u32 %v11356_v14, %v8207_v15  ;;  %v11217_v14 = vld [vmem:[#allocation2 + $0x12c] sm:$0xf0] }
  0x60   :  { %1469 = vmatpush.bf16.msrb.mxu2 %v7982_v34  ;;  %1508 = vmatpush.bf16.msra.mxu3 %v7730_v11  ;;  %v11292_v34 = vld [vmem:[#allocation2 + $0x38c] sm:$0xf]  ;;  %v11328_v4 = vld [vmem:[#allocation2 + $0x4a4] sm:$0xf0]  ;;  %v7893_v15 = vld [vmem:[#allocation2 + $0x310] sm:$0xf] }
  0x61   :  { %v7954_v43 = vor.u32 %v11292_v34, %v7951_v35  ;;  %v7855_v11 = vld [vmem:[#allocation2 + $0x2e8] sm:$0xf0]  ;;  %v8078_v12 = vor.u32 %v11328_v4, %v8077_v3  ;;  %v8045_v16 = vld [vmem:[#allocation2 + $0x448] sm:$0xf]  ;;  %v11241_v34 = vld [vmem:[#allocation2 + $0x1ec] sm:$0xf0] }
  0x62   :  { %1434 = vmatpush.bf16.msrb.mxu1 %v8106_v33  ;;  %1422 = vmatpush.bf16.msrb.mxu0 %v7818_v37  ;;  %v11264_v33 = vld [vmem:[#allocation2 + $0x2a4] sm:$0xf0]  ;;  %v7666_v37 = vor.u32 %v11220_v27, %v7663_v28  ;;  %v7823_v25 = vld [vmem:[#allocation2 + $0x2a8] sm:$0xf0]  ;;  %v7925_v3 = vld [vmem:[#allocation2 + $0x350] sm:$0xf] }
  0x63   :  { %v7822_v42 = vor.u32 %v11264_v33, %v7821_v31  ;;  %v8013_v28 = vld [vmem:[#allocation2 + $0x408] sm:$0xf]  ;;  %v7503_v31 = vld [vmem:[#allocation2 + $0x28] sm:$0xf0]  ;;  %v7733_v33 = vld [vmem:[#allocation2 + $0x1d0] sm:$0xf] }
  0x64   :  { %1470 = vmatpush.bf16.msrb.mxu2 %v7950_v46  ;;  %1509 = vmatpush.bf16.msra.mxu3 %v7698_v24  ;;  %v11284_v46 = vld [vmem:[#allocation2 + $0x34c] sm:$0xf]  ;;  %v11289_v4 = vld [vmem:[#allocation2 + $0x36c] sm:$0xf0] }
  0x65   :  { %v7922_v57 = vor.u32 %v11284_v46, %v7919_v47  ;;  %v11260_v24 = vld [vmem:[#allocation2 + $0x28c] sm:$0xf]  ;;  %v7701_v47 = vld [vmem:[#allocation2 + $0x190] sm:$0xf] }
  0x66   :  { %1435 = vmatpush.bf16.msrb.mxu1 %v8074_v45  ;;  %1423 = vmatpush.bf16.msrb.mxu0 %v7786_v52  ;;  %v11256_v45 = vld [vmem:[#allocation2 + $0x264] sm:$0xf0]  ;;  %v7826_v35 = vor.u32 %v11260_v24, %v7823_v25  ;;  %v11252_v39 = vld [vmem:[#allocation2 + $0x24c] sm:$0xf]  ;;  %v7605_v25 = vld [vmem:[#allocation2 + $0xd0] sm:$0xf] }
  0x67   :  { %v8109_v52 = vld [vmem:[#allocation2 + $0x4c8] sm:$0xf]  ;;  %v7790_v56 = vor.u32 %v11256_v45, %v7789_v44  ;;  %v7791_v40 = vld [vmem:[#allocation2 + $0x268] sm:$0xf0]  ;;  %v7734_v45 = vor.u32 %v11241_v34, %v7733_v33  ;;  %v8181_v34 = vld [vmem:[#allocation2 + $0x550] sm:$0xf] }
  0x68   :  { %1471 = vmatpush.bf16.msrb.mxu2 %v7918_v1  ;;  %1510 = vmatpush.bf16.msra.mxu3 %v7666_v37  ;;  %v8110_v63 = vor.u32 %v11336_v53, %v8109_v52  ;;  %v11364_v1 = vld [vmem:[#allocation2 + $0x5cc] sm:$0xf]  ;;  %v11305_v37 = vld [vmem:[#allocation2 + $0x3ec] sm:$0xf0] }
  0x69   :  { %v8242_v9 = vor.u32 %v11364_v1, %v8239_v2  ;;  %v8143_v44 = vld [vmem:[#allocation2 + $0x528] sm:$0xf0]  ;;  %v7957_v52 = vld [vmem:[#allocation2 + $0x390] sm:$0xf] }
  0x6a   :  { %1436 = vmatpush.bf16.msrb.mxu1 %v8042_v60  ;;  %1424 = vmatpush.bf16.msrb.mxu0 %v7754_v5  ;;  %v11276_v60 = vld [vmem:[#allocation2 + $0x30c] sm:$0xf]  ;;  %v11297_v53 = vld [vmem:[#allocation2 + $0x3ac] sm:$0xf0] }
  0x6b   :  { %v11196_v5 = vld [vmem:[#allocation2 + $0x8c] sm:$0xf]  ;;  %v7890_v8 = vor.u32 %v11276_v60, %v7887_v62  ;;  %v11225_v2 = vld [vmem:[#allocation2 + $0x16c] sm:$0xf0] }
  0x6c   :  { %1472 = vmatpush.bf16.msrb.mxu2 %v7886_v17  ;;  %1511 = vmatpush.bf16.msra.mxu3 %v7634_v51  ;;  %v11320_v17 = vld [vmem:[#allocation2 + $0x464] sm:$0xf0]  ;;  %v11233_v51 = vld [vmem:[#allocation2 + $0x1ac] sm:$0xf0]  ;;  %v11332_v55 = vld [vmem:[#allocation2 + $0x4cc] sm:$0xf] }
  0x6d   :  { %1425 = vmatmul.bf16.vlgmr.msrb.gmra.mxu0 %v12346_v61  ;;  %v8046_v26 = vor.u32 %v11320_v17, %v8045_v16  ;;  %v8111_v58 = vld [vmem:[#allocation2 + $0x4e8] sm:$0xf0]  ;;  %v7702_v62 = vor.u32 %v11233_v51, %v7701_v47  ;;  %v11281_v16 = vld [vmem:[#allocation2 + $0x32c] sm:$0xf0] }
  0x6e   :  { %1482 = vmatpush.bf16.msra.mxu0 %v8238_v10  ;;  %1437 = vmatpush.bf16.msrb.mxu1 %v8010_v13  ;;  %v11268_v10 = vld [vmem:[#allocation2 + $0x2cc] sm:$0xf]  ;;  %v7570_v13 = vor.u32 %v11196_v5, %v7567_v6  ;;  %v8114_v5 = vor.u32 %v11332_v55, %v8111_v58  ;;  %v7894_v24 = vor.u32 %v11281_v16, %v7893_v15  ;;  %v8149_v51 = vld [vmem:[#allocation2 + $0x510] sm:$0xf]  ;;  %v7671_v15 = vld [vmem:[#allocation2 + $0x170] sm:$0xf0] }
  0x6f   :  { %8292 = vmatmul.msk.bf16.vlgmr.msra.gmra.mxu2 %vm1348_vm0, %v12351_v32  ;;  %v7858_v20 = vor.u32 %v11268_v10, %v7855_v11  ;;  %v11372_v59 = vld [vmem:[#allocation2 + $0x60c] sm:$0xf]  ;;  %v11369_v10 = vld [vmem:[#allocation2 + $0x5ec] sm:$0xf0] }
  0x70   :  { %1473 = vmatpush.bf16.msrb.mxu2 %v7854_v29  ;;  %1512 = vmatpush.bf16.msra.mxu3 %v7602_v0  ;;  %v11312_v29 = vld [vmem:[#allocation2 + $0x424] sm:$0xf0]  ;;  %v8271_v60 = vld [vmem:[#allocation2 + $0x628] sm:$0xf0]  ;;  %v7669_v0 = vld [vmem:[#allocation2 + $0x150] sm:$0xf] }
  0x71   :  { %1438 = vmatmul.bf16.vlgmr.msrb.gmra.mxu1 %v12341_v49  ;;  %v8014_v41 = vor.u32 %v11312_v29, %v8013_v28  ;;  %v11324_v6 = vld [vmem:[#allocation2 + $0x48c] sm:$0xf]  ;;  %v7670_v11 = vor.u32 %v11225_v2, %v7669_v0  ;;  %v11273_v28 = vld [vmem:[#allocation2 + $0x2ec] sm:$0xf0] }
  0x72   :  { %1502 = vmatpush.bf16.msra.mxu1 %v8270_v19  ;;  %1483 = vmatpush.bf16.msra.mxu0 %v8206_v23  ;;  %v7535_v19 = vld [vmem:[#allocation2 + $0x68] sm:$0xf0]  ;;  %v7541_v55 = vld [vmem:[#allocation2 + $0x50] sm:$0xf] }
  0x73   :  { %v8175_v23 = vld [vmem:[#allocation2 + $0x568] sm:$0xf0]  ;;  %v7538_v27 = vor.u32 %v11188_v18, %v7535_v19  ;;  %v11257_v58 = vld [vmem:[#allocation2 + $0x26c] sm:$0xf0] }
  0x74   :  { %1474 = vmatpush.bf16.msrb.mxu2 %v7822_v42  ;;  %1513 = vmatpush.bf16.msra.mxu3 %v7570_v13  ;;  %v8178_v38 = vor.u32 %v11348_v21, %v8175_v23  ;;  %v7637_v13 = vld [vmem:[#allocation2 + $0x110] sm:$0xf]  ;;  %v11316_v19 = vld [vmem:[#allocation2 + $0x44c] sm:$0xf] }
  0x75   :  { %v8213_v21 = vld [vmem:[#allocation2 + $0x590] sm:$0xf]  ;;  %v7638_v23 = vor.u32 %v11217_v14, %v7637_v13  ;;  %v8015_v33 = vld [vmem:[#allocation2 + $0x428] sm:$0xf0]  ;;  %v11365_v13 = vld [vmem:[#allocation2 + $0x5d4] sm:$0xf] }
  0x76   :  { %1521 = vmatpush.bf16.msrb.mxu1 %v7986_v30  ;;  %1484 = vmatpush.bf16.msra.mxu0 %v8174_v36  ;;  %v11180_v30 = vld [vmem:[#allocation2 + $0xc] sm:$0xf]  ;;  %v7989_v36 = vld [vmem:[#allocation2 + $0x3d0] sm:$0xf]  ;;  %v8247_v14 = vld [vmem:[#allocation2 + $0x5f0] sm:$0xf0] }
  0x77   :  { %v7506_v42 = vor.u32 %v11180_v30, %v7503_v31  ;;  %v7990_v46 = vor.u32 %v11305_v37, %v7989_v36  ;;  %v11308_v31 = vld [vmem:[#allocation2 + $0x40c] sm:$0xf]  ;;  %v8117_v0 = vld [vmem:[#allocation2 + $0x4d0] sm:$0xf] }
  0x78   :  { %1475 = vmatpush.bf16.msrb.mxu2 %v7790_v56  ;;  %1514 = vmatpush.bf16.msra.mxu3 %v7538_v27  ;;  %v11244_v56 = vld [vmem:[#allocation2 + $0x20c] sm:$0xf]  ;;  %v7861_v27 = vld [vmem:[#allocation2 + $0x2d0] sm:$0xf] }
  0x79   :  { %v7862_v37 = vor.u32 %v11273_v28, %v7861_v27  ;;  %v8085_v16 = vld [vmem:[#allocation2 + $0x490] sm:$0xf]  ;;  %v11357_v27 = vld [vmem:[#allocation2 + $0x594] sm:$0xf] }
  0x7a   :  { %1522 = vmatpush.bf16.msrb.mxu1 %v7954_v43  ;;  %1485 = vmatpush.bf16.msra.mxu0 %v8142_v48  ;;  %v11340_v43 = vld [vmem:[#allocation2 + $0x50c] sm:$0xf]  ;;  %v7794_v48 = vor.u32 %v11252_v39, %v7791_v40  ;;  %v8277_v39 = vld [vmem:[#allocation2 + $0x610] sm:$0xf]  ;;  %v8215_v28 = vld [vmem:[#allocation2 + $0x5b0] sm:$0xf0] }
  0x7b   :  { %v8146_v54 = vor.u32 %v11340_v43, %v8143_v44  ;;  %v11377_v40 = vld [vmem:[#allocation2 + $0x62c] sm:$0xf0]  ;;  %v8018_v44 = vor.u32 %v11308_v31, %v8015_v33 }
  0x7c   :  { %1476 = vmatpush.bf16.msrb.mxu2 %v7758_v7  ;;  %1515 = vmatpush.bf16.msra.mxu3 %v7506_v42  ;;  %v8274_v7 = vor.u32 %v11372_v59, %v8271_v60  ;;  %v7829_v42 = vld [vmem:[#allocation2 + $0x290] sm:$0xf]  ;;  %v8278_v47 = vor.u32 %v11377_v40, %v8277_v39  ;;  %v7927_v39 = vld [vmem:[#allocation2 + $0x370] sm:$0xf0] }
  0x7d   :  { %v11265_v43 = vld [vmem:[#allocation2 + $0x2ac] sm:$0xf0]  ;;  %v7607_v40 = vld [vmem:[#allocation2 + $0xf0] sm:$0xf0] }
  0x7e   :  { %1523 = vmatpush.bf16.msrb.mxu1 %v7922_v57  ;;  %1486 = vmatpush.bf16.msra.mxu0 %v8110_v63  ;;  %v7759_v57 = vld [vmem:[#allocation2 + $0x228] sm:$0xf0]  ;;  %v7958_v63 = vor.u32 %v11297_v53, %v7957_v52  ;;  %v11345_v52 = vld [vmem:[#allocation2 + $0x52c] sm:$0xf0] }
  0x7f   :  { %1477 = vmatmul.bf16.vlgmr.msrb.gmra.mxu2 %v12346_v61  ;;  %v7762_v1 = vor.u32 %v11244_v56, %v7759_v57  ;;  %1516 = vmatmul.bf16.vlgmr.msra.gmra.mxu3 %v12343_v50  ;;  %v11193_v56 = vld [vmem:[#allocation2 + $0x6c] sm:$0xf0]  ;;  %v8150_v60 = vor.u32 %v11345_v52, %v8149_v51  ;;  %v11277_v52 = vld [vmem:[#allocation2 + $0x314] sm:$0xf] }
  0x80   :  { %1534 = vmatpush.bf16.msra.mxu2 %v8242_v9  ;;  %1560 = vmatpush.bf16.msrb.mxu3 %v7734_v45  ;;  %v8245_v9 = vld [vmem:[#allocation2 + $0x5d0] sm:$0xf]  ;;  %v7542_v2 = vor.u32 %v11193_v56, %v7541_v55  ;;  %v11197_v55 = vld [vmem:[#allocation2 + $0x94] sm:$0xf] }
  0x81   :  { %8293 = vmatmul.msk.bf16.vlgmr.msra.gmra.mxu1 %vm1348_vm0, %v12351_v32  ;;  %v8246_v18 = vor.u32 %v11369_v10, %v8245_v9  ;;  %v7797_v57 = vld [vmem:[#allocation2 + $0x250] sm:$0xf]  ;;  %v11301_v9 = vld [vmem:[#allocation2 + $0x3d4] sm:$0xf] }
  0x82   :  { %1524 = vmatpush.bf16.msrb.mxu1 %v7890_v8  ;;  %1487 = vmatpush.bf16.msra.mxu0 %v8078_v12  ;;  %v8079_v8 = vld [vmem:[#allocation2 + $0x4a8] sm:$0xf0]  ;;  %v7926_v12 = vor.u32 %v11289_v4, %v7925_v3  ;;  %v7798_v3 = vor.u32 %v11257_v58, %v7797_v57  ;;  %v7509_v4 = vld [vmem:[#allocation2 + $0x10] sm:$0xf]  ;;  %v7575_v56 = vld [vmem:[#allocation2 + $0xb0] sm:$0xf0] }
  0x83   :  { %v8082_v17 = vor.u32 %v11324_v6, %v8079_v8  ;;  %v7765_v6 = vld [vmem:[#allocation2 + $0x210] sm:$0xf]  ;;  %v11221_v8 = vld [vmem:[#allocation2 + $0x154] sm:$0xf] }
  0x84   :  { %1535 = vmatpush.bf16.msra.mxu2 %v8210_v22  ;;  %1561 = vmatpush.bf16.msrb.mxu3 %v7702_v62  ;;  %v11361_v22 = vld [vmem:[#allocation2 + $0x5ac] sm:$0xf0]  ;;  %v11229_v62 = vld [vmem:[#allocation2 + $0x194] sm:$0xf] }
  0x85   :  { %v8214_v30 = vor.u32 %v11361_v22, %v8213_v21  ;;  %v8250_v21 = vor.u32 %v11365_v13, %v8247_v14  ;;  %v11213_v22 = vld [vmem:[#allocation2 + $0x114] sm:$0xf]  ;;  %v11321_v31 = vld [vmem:[#allocation2 + $0x46c] sm:$0xf0] }
  0x86   :  { %1525 = vmatpush.bf16.msrb.mxu1 %v7858_v20  ;;  %1488 = vmatpush.bf16.msra.mxu0 %v8046_v26  ;;  %v8047_v20 = vld [vmem:[#allocation2 + $0x468] sm:$0xf0]  ;;  %v11209_v26 = vld [vmem:[#allocation2 + $0xec] sm:$0xf0]  ;;  %v11341_v57 = vld [vmem:[#allocation2 + $0x514] sm:$0xf] }
  0x87   :  { %v8050_v29 = vor.u32 %v11316_v19, %v8047_v20  ;;  %v7606_v36 = vor.u32 %v11209_v26, %v7605_v25  ;;  %v7959_v26 = vld [vmem:[#allocation2 + $0x3b0] sm:$0xf0] }
  0x88   :  { %1536 = vmatpush.bf16.msra.mxu2 %v8178_v38  ;;  %1562 = vmatpush.bf16.msrb.mxu3 %v7670_v11  ;;  %v7573_v38 = vld [vmem:[#allocation2 + $0x90] sm:$0xf]  ;;  %v8151_v58 = vld [vmem:[#allocation2 + $0x530] sm:$0xf0] }
  0x89   :  { %v11261_v13 = vld [vmem:[#allocation2 + $0x294] sm:$0xf] }
  0x8a   :  { %1526 = vmatpush.bf16.msrb.mxu1 %v7826_v35  ;;  %1489 = vmatpush.bf16.msra.mxu0 %v8014_v41  ;;  %v11353_v35 = vld [vmem:[#allocation2 + $0x56c] sm:$0xf0]  ;;  %v7831_v14 = vld [vmem:[#allocation2 + $0x2b0] sm:$0xf0] }
  0x8b   :  { %v11201_v41 = vld [vmem:[#allocation2 + $0xac] sm:$0xf0]  ;;  %v8182_v45 = vor.u32 %v11353_v35, %v8181_v34  ;;  %v8218_v34 = vor.u32 %v11357_v27, %v8215_v28  ;;  %v11253_v27 = vld [vmem:[#allocation2 + $0x254] sm:$0xf] }
  0x8c   :  { %1537 = vmatpush.bf16.msra.mxu2 %v8146_v54  ;;  %1563 = vmatpush.bf16.msrb.mxu3 %v7638_v23  ;;  %v7574_v53 = vor.u32 %v11201_v41, %v7573_v38  ;;  %v7830_v54 = vor.u32 %v11265_v43, %v7829_v42  ;;  %v11293_v23 = vld [vmem:[#allocation2 + $0x394] sm:$0xf]  ;;  %v8021_v43 = vld [vmem:[#allocation2 + $0x410] sm:$0xf] }
  0x8d   :  { %1490 = vmatmul.bf16.vlgmr.msra.gmra.mxu0 %v12341_v49  ;;  %v7962_v33 = vor.u32 %v11293_v23, %v7959_v26  ;;  %v11285_v38 = vld [vmem:[#allocation2 + $0x354] sm:$0xf]  ;;  %v7834_v23 = vor.u32 %v11261_v13, %v7831_v14  ;;  %v11354_v13 = vld [vmem:[#allocation2 + $0x574] sm:$0xf0]  ;;  %v7711_v14 = vld [vmem:[#allocation2 + $0x1b8] sm:$0xf0] }
  0x8e   :  { %1573 = vmatpush.bf16.msrb.mxu0 %v7990_v46  ;;  %1527 = vmatpush.bf16.msrb.mxu1 %v7794_v48  ;;  %v11237_v46 = vld [vmem:[#allocation2 + $0x1d4] sm:$0xf] }
  0x8f   :  { %v7735_v48 = vld [vmem:[#allocation2 + $0x1f0] sm:$0xf0] }
  0x90   :  { %1538 = vmatpush.bf16.msra.mxu2 %v8114_v5  ;;  %1564 = vmatpush.bf16.msrb.mxu3 %v7606_v36  ;;  %v7738_v59 = vor.u32 %v11237_v46, %v7735_v48  ;;  %v11185_v5 = vld [vmem:[#allocation2 + $0x2c] sm:$0xf0]  ;;  %v11349_v41 = vld [vmem:[#allocation2 + $0x554] sm:$0xf] }
  0x91   :  { %v8183_v42 = vld [vmem:[#allocation2 + $0x570] sm:$0xf0] }
  0x92   :  { %1574 = vmatpush.bf16.msrb.mxu0 %v7958_v63  ;;  %1528 = vmatpush.bf16.msrb.mxu1 %v7762_v1  ;;  %v7703_v63 = vld [vmem:[#allocation2 + $0x1b0] sm:$0xf0]  ;;  %v11337_v1 = vld [vmem:[#allocation2 + $0x4ec] sm:$0xf0]  ;;  %v8186_v51 = vor.u32 %v11349_v41, %v8183_v42 }
  0x93   :  { %v7706_v10 = vor.u32 %v11229_v62, %v7703_v63  ;;  %v8118_v11 = vor.u32 %v11337_v1, %v8117_v0  ;;  %v11373_v46 = vld [vmem:[#allocation2 + $0x614] sm:$0xf]  ;;  %v11242_v62 = vld [vmem:[#allocation2 + $0x1f4] sm:$0xf0]  ;;  %v7578_v0 = vor.u32 %v11197_v55, %v7575_v56 }
  0x94   :  { %1539 = vmatpush.bf16.msra.mxu2 %v8082_v17  ;;  %1565 = vmatpush.bf16.msrb.mxu3 %v7574_v53  ;;  %v11329_v17 = vld [vmem:[#allocation2 + $0x4ac] sm:$0xf0]  ;;  %v7895_v53 = vld [vmem:[#allocation2 + $0x330] sm:$0xf0]  ;;  %v11378_v55 = vld [vmem:[#allocation2 + $0x634] sm:$0xf0] }
  0x95   :  { %1529 = vmatmul.bf16.vlgmr.msrb.gmra.mxu1 %v12346_v61  ;;  %v8086_v25 = vor.u32 %v11329_v17, %v8085_v16  ;;  %v7898_v63 = vor.u32 %v11277_v52, %v7895_v53  ;;  %v11269_v1 = vld [vmem:[#allocation2 + $0x2d4] sm:$0xf]  ;;  %v11290_v52 = vld [vmem:[#allocation2 + $0x374] sm:$0xf0] }
  0x96   :  { %1554 = vmatpush.bf16.msra.mxu1 %v8274_v7  ;;  %1575 = vmatpush.bf16.msrb.mxu0 %v7926_v12  ;;  %v11249_v7 = vld [vmem:[#allocation2 + $0x22c] sm:$0xf0]  ;;  %v7991_v12 = vld [vmem:[#allocation2 + $0x3f0] sm:$0xf0] }
  0x97   :  { %v7766_v19 = vor.u32 %v11249_v7, %v7765_v6  ;;  %v7994_v20 = vor.u32 %v11301_v9, %v7991_v12  ;;  %v11333_v6 = vld [vmem:[#allocation2 + $0x4d4] sm:$0xf]  ;;  %v7709_v9 = vld [vmem:[#allocation2 + $0x198] sm:$0xf] }
  0x98   :  { %1540 = vmatpush.bf16.msra.mxu2 %v8050_v29  ;;  %1566 = vmatpush.bf16.msrb.mxu3 %v7542_v2  ;;  %v7639_v29 = vld [vmem:[#allocation2 + $0x130] sm:$0xf0] }
  0x99   :  { %v7642_v35 = vor.u32 %v11213_v22, %v7639_v29  ;;  %v7863_v2 = vld [vmem:[#allocation2 + $0x2f0] sm:$0xf0]  ;;  %v11306_v22 = vld [vmem:[#allocation2 + $0x3f4] sm:$0xf0] }
  0x9a   :  { %1586 = vmatpush.bf16.msrb.mxu1 %v8246_v18  ;;  %1576 = vmatpush.bf16.msrb.mxu0 %v7894_v24  ;;  %v7510_v18 = vor.u32 %v11185_v5, %v7509_v4  ;;  %v7674_v24 = vor.u32 %v11221_v8, %v7671_v15  ;;  %v11189_v4 = vld [vmem:[#allocation2 + $0x54] sm:$0xf] }
  0x9b   :  { %v7543_v5 = vld [vmem:[#allocation2 + $0x70] sm:$0xf0] }
  0x9c   :  { %1541 = vmatpush.bf16.msra.mxu2 %v8018_v44  ;;  %1567 = vmatpush.bf16.msrb.mxu3 %v7510_v18  ;;  %v11313_v44 = vld [vmem:[#allocation2 + $0x42c] sm:$0xf0]  ;;  %v8119_v8 = vld [vmem:[#allocation2 + $0x4f0] sm:$0xf0]  ;;  %v7546_v12 = vor.u32 %v11189_v4, %v7543_v5  ;;  %v11282_v4 = vld [vmem:[#allocation2 + $0x334] sm:$0xf0] }
  0x9d   :  { %v8122_v15 = vor.u32 %v11333_v6, %v8119_v8  ;;  %v11181_v16 = vld [vmem:[#allocation2 + $0x14] sm:$0xf]  ;;  %v11202_v8 = vld [vmem:[#allocation2 + $0xb4] sm:$0xf0] }
  0x9e   :  { %1587 = vmatpush.bf16.msrb.mxu1 %v8214_v30  ;;  %1577 = vmatpush.bf16.msrb.mxu0 %v7862_v37  ;;  %v8053_v30 = vld [vmem:[#allocation2 + $0x450] sm:$0xf]  ;;  %v11205_v37 = vld [vmem:[#allocation2 + $0xd4] sm:$0xf] }
  0x9f   :  { %1542 = vmatmul.bf16.vlgmr.msra.gmra.mxu2 %v12341_v49  ;;  %v8054_v36 = vor.u32 %v11321_v31, %v8053_v30  ;;  %1568 = vmatmul.bf16.vlgmr.msrb.gmra.mxu3 %v12343_v50  ;;  %v7610_v48 = vor.u32 %v11205_v37, %v7607_v40  ;;  %v7511_v17 = vld [vmem:[#allocation2 + $0x30] sm:$0xf0] }
  0xa0   :  { %1606 = vmatpush.bf16.msrb.mxu2 %v8278_v47  ;;  %1625 = vmatpush.bf16.msra.mxu3 %v7994_v20  ;;  %v8279_v47 = vld [vmem:[#allocation2 + $0x630] sm:$0xf0]  ;;  %v7514_v26 = vor.u32 %v11181_v16, %v7511_v17  ;;  %v11274_v16 = vld [vmem:[#allocation2 + $0x2f4] sm:$0xf0] }
  0xa1   :  { %v11325_v18 = vld [vmem:[#allocation2 + $0x494] sm:$0xf] }
  0xa2   :  { %1588 = vmatpush.bf16.msrb.mxu1 %v8182_v45  ;;  %1578 = vmatpush.bf16.msrb.mxu0 %v7830_v54  ;;  %v7930_v45 = vor.u32 %v11285_v38, %v7927_v39  ;;  %v8022_v54 = vor.u32 %v11313_v44, %v8021_v43  ;;  %v8087_v20 = vld [vmem:[#allocation2 + $0x4b0] sm:$0xf0]  ;;  %v7645_v38 = vld [vmem:[#allocation2 + $0x118] sm:$0xf] }
  0xa3   :  { %v7799_v28 = vld [vmem:[#allocation2 + $0x270] sm:$0xf0]  ;;  %v8090_v29 = vor.u32 %v11325_v18, %v8087_v20  ;;  %v11218_v39 = vld [vmem:[#allocation2 + $0x134] sm:$0xf0] }
  0xa4   :  { %1612 = vmatpush.bf16.msra.mxu2 %v7738_v59  ;;  %1626 = vmatpush.bf16.msra.mxu3 %v7962_v33  ;;  %v8282_v59 = vor.u32 %v11373_v46, %v8279_v47  ;;  %v11317_v31 = vld [vmem:[#allocation2 + $0x454] sm:$0xf]  ;;  %v7802_v37 = vor.u32 %v11253_v27, %v7799_v28  ;;  %v11370_v46 = vld [vmem:[#allocation2 + $0x5f4] sm:$0xf0] }
  0xa5   :  { %8294 = vmatmul.msk.bf16.vlgmr.msra.gmra.mxu1 %vm1348_vm0, %v12351_v32  ;;  %v8055_v33 = vld [vmem:[#allocation2 + $0x470] sm:$0xf0]  ;;  %v11194_v20 = vld [vmem:[#allocation2 + $0x74] sm:$0xf0] }
  0xa6   :  { %1589 = vmatpush.bf16.msrb.mxu1 %v8150_v60  ;;  %1579 = vmatpush.bf16.msrb.mxu0 %v7798_v3  ;;  %v7741_v60 = vld [vmem:[#allocation2 + $0x1d8] sm:$0xf]  ;;  %v8154_v3 = vor.u32 %v11341_v57, %v8151_v58  ;;  %v11245_v40 = vld [vmem:[#allocation2 + $0x214] sm:$0xf]  ;;  %v8058_v42 = vor.u32 %v11317_v31, %v8055_v33  ;;  %v11214_v31 = vld [vmem:[#allocation2 + $0x11c] sm:$0xf] }
  0xa7   :  { %v7742_v7 = vor.u32 %v11242_v62, %v7741_v60  ;;  %v7767_v41 = vld [vmem:[#allocation2 + $0x230] sm:$0xf0]  ;;  %v7613_v57 = vld [vmem:[#allocation2 + $0xd8] sm:$0xf]  ;;  %v11238_v62 = vld [vmem:[#allocation2 + $0x1dc] sm:$0xf] }
  0xa8   :  { %1613 = vmatpush.bf16.msra.mxu2 %v7706_v10  ;;  %1627 = vmatpush.bf16.msra.mxu3 %v7930_v45  ;;  %v11234_v10 = vld [vmem:[#allocation2 + $0x1b4] sm:$0xf0]  ;;  %v11309_v44 = vld [vmem:[#allocation2 + $0x414] sm:$0xf]  ;;  %v7770_v53 = vor.u32 %v11245_v40, %v7767_v41  ;;  %v7999_v40 = vld [vmem:[#allocation2 + $0x3f8] sm:$0xf0] }
  0xa9   :  { %v8253_v45 = vld [vmem:[#allocation2 + $0x5d8] sm:$0xf]  ;;  %v8023_v47 = vld [vmem:[#allocation2 + $0x430] sm:$0xf0] }
  0xaa   :  { %1590 = vmatpush.bf16.msrb.mxu1 %v8118_v11  ;;  %1580 = vmatpush.bf16.msrb.mxu0 %v7766_v19  ;;  %v7866_v11 = vor.u32 %v11269_v1, %v7863_v2  ;;  %v7710_v19 = vor.u32 %v11234_v10, %v7709_v9  ;;  %v8254_v56 = vor.u32 %v11370_v46, %v8253_v45  ;;  %v11210_v58 = vld [vmem:[#allocation2 + $0xf4] sm:$0xf0]  ;;  %v7743_v2 = vld [vmem:[#allocation2 + $0x1f8] sm:$0xf0] }
  0xab   :  { %v7614_v5 = vor.u32 %v11210_v58, %v7613_v57  ;;  %v7746_v9 = vor.u32 %v11238_v62, %v7743_v2  ;;  %v7837_v27 = vld [vmem:[#allocation2 + $0x298] sm:$0xf]  ;;  %v7615_v58 = vld [vmem:[#allocation2 + $0xf8] sm:$0xf0] }
  0xac   :  { %1614 = vmatpush.bf16.msra.mxu2 %v7674_v24  ;;  %1628 = vmatpush.bf16.msra.mxu3 %v7898_v63  ;;  %v7677_v24 = vld [vmem:[#allocation2 + $0x158] sm:$0xf]  ;;  %v11366_v62 = vld [vmem:[#allocation2 + $0x5dc] sm:$0xf] }
  0xad   :  { %1581 = vmatmul.bf16.vlgmr.msrb.gmra.mxu0 %v12346_v61  ;;  %v8221_v63 = vld [vmem:[#allocation2 + $0x598] sm:$0xf] }
  0xae   :  { %1638 = vmatpush.bf16.msra.mxu0 %v8250_v21  ;;  %1591 = vmatpush.bf16.msrb.mxu1 %v8086_v25  ;;  %v7997_v21 = vld [vmem:[#allocation2 + $0x3d8] sm:$0xf] }
  0xaf   :  { %8295 = vmatmul.msk.bf16.vlgmr.msrb.gmra.mxu2 %vm1348_vm0, %v12351_v32  ;;  %v11226_v25 = vld [vmem:[#allocation2 + $0x174] sm:$0xf0]  ;;  %v7998_v30 = vor.u32 %v11306_v22, %v7997_v21 }
  0xb0   :  { %1615 = vmatpush.bf16.msra.mxu2 %v7642_v35  ;;  %1629 = vmatpush.bf16.msra.mxu3 %v7866_v11  ;;  %v7965_v35 = vld [vmem:[#allocation2 + $0x398] sm:$0xf]  ;;  %v11230_v11 = vld [vmem:[#allocation2 + $0x19c] sm:$0xf] }
  0xb1   :  { %v7714_v21 = vor.u32 %v11230_v11, %v7711_v14  ;;  %v11266_v28 = vld [vmem:[#allocation2 + $0x2b4] sm:$0xf0]  ;;  %v7583_v11 = vld [vmem:[#allocation2 + $0xb8] sm:$0xf0] }
  0xb2   :  { %1639 = vmatpush.bf16.msra.mxu0 %v8218_v34  ;;  %1592 = vmatpush.bf16.msrb.mxu1 %v8054_v36  ;;  %v7678_v34 = vor.u32 %v11226_v25, %v7677_v24  ;;  %v11298_v36 = vld [vmem:[#allocation2 + $0x3b4] sm:$0xf0]  ;;  %v11358_v14 = vld [vmem:[#allocation2 + $0x59c] sm:$0xf] }
  0xb3   :  { %v7966_v43 = vor.u32 %v11298_v36, %v7965_v35  ;;  %v8157_v24 = vld [vmem:[#allocation2 + $0x518] sm:$0xf] }
  0xb4   :  { %1616 = vmatpush.bf16.msra.mxu2 %v7610_v48  ;;  %1630 = vmatpush.bf16.msra.mxu3 %v7834_v23  ;;  %v7646_v48 = vor.u32 %v11218_v39, %v7645_v38  ;;  %v11222_v23 = vld [vmem:[#allocation2 + $0x15c] sm:$0xf]  ;;  %v11346_v25 = vld [vmem:[#allocation2 + $0x534] sm:$0xf0] }
  0xb5   :  { %v7517_v33 = vld [vmem:[#allocation2 + $0x18] sm:$0xf]  ;;  %v11302_v39 = vld [vmem:[#allocation2 + $0x3dc] sm:$0xf] }
  0xb6   :  { %1640 = vmatpush.bf16.msra.mxu0 %v8186_v51  ;;  %1593 = vmatpush.bf16.msrb.mxu1 %v8022_v54  ;;  %v7933_v51 = vld [vmem:[#allocation2 + $0x358] sm:$0xf] }
  0xb7   :  { %v8285_v54 = vld [vmem:[#allocation2 + $0x618] sm:$0xf]  ;;  %v7934_v60 = vor.u32 %v11290_v52, %v7933_v51 }
  0xb8   :  { %1617 = vmatpush.bf16.msra.mxu2 %v7578_v0  ;;  %1631 = vmatpush.bf16.msra.mxu3 %v7802_v37  ;;  %v11362_v0 = vld [vmem:[#allocation2 + $0x5b4] sm:$0xf0]  ;;  %v8286_v1 = vor.u32 %v11378_v55, %v8285_v54  ;;  %v7838_v37 = vor.u32 %v11266_v28, %v7837_v27  ;;  %v11294_v55 = vld [vmem:[#allocation2 + $0x39c] sm:$0xf] }
  0xb9   :  { %1594 = vmatmul.bf16.vlgmr.msrb.gmra.mxu1 %v12341_v49  ;;  %v8222_v6 = vor.u32 %v11362_v0, %v8221_v63  ;;  %v8125_v35 = vld [vmem:[#allocation2 + $0x4d8] sm:$0xf]  ;;  %v8255_v63 = vld [vmem:[#allocation2 + $0x5f8] sm:$0xf0] }
  0xba   :  { %1658 = vmatpush.bf16.msra.mxu1 %v8282_v59  ;;  %1641 = vmatpush.bf16.msra.mxu0 %v8154_v3  ;;  %v8026_v59 = vor.u32 %v11309_v44, %v8023_v47  ;;  %v7901_v3 = vld [vmem:[#allocation2 + $0x318] sm:$0xf]  ;;  %v8002_v47 = vor.u32 %v11302_v39, %v7999_v40  ;;  %v8287_v27 = vld [vmem:[#allocation2 + $0x638] sm:$0xf0] }
  0xbb   :  { %v7902_v10 = vor.u32 %v11282_v4, %v7901_v3  ;;  %v11338_v38 = vld [vmem:[#allocation2 + $0x4f4] sm:$0xf0]  ;;  %v11270_v39 = vld [vmem:[#allocation2 + $0x2dc] sm:$0xf] }
  0xbc   :  { %1618 = vmatpush.bf16.msra.mxu2 %v7546_v12  ;;  %1632 = vmatpush.bf16.msra.mxu3 %v7770_v53  ;;  %v8189_v12 = vld [vmem:[#allocation2 + $0x558] sm:$0xf]  ;;  %v8126_v46 = vor.u32 %v11338_v38, %v8125_v35  ;;  %v11454_v38 = vld [vmem:[#allocation6 + $0x254] sm:$0xf0]  ;;  %v7871_v40 = vld [vmem:[#allocation2 + $0x2f8] sm:$0xf0] }
  0xbd   :  { %v8190_v18 = vor.u32 %v11354_v13, %v8189_v12  ;;  %v11258_v44 = vld [vmem:[#allocation2 + $0x274] sm:$0xf0] }
  0xbe   :  { %1664 = vmatpush.bf16.msrb.mxu1 %v7742_v7  ;;  %1642 = vmatpush.bf16.msra.mxu0 %v8122_v15  ;;  %v7581_v7 = vld [vmem:[#allocation2 + $0x98] sm:$0xf] }
  0xbf   :  { %1633 = vmatmul.bf16.vlgmr.msra.gmra.mxu3 %v12346_v61  ;;  %v7869_v15 = vld [vmem:[#allocation2 + $0x2d8] sm:$0xf]  ;;  %v7582_v17 = vor.u32 %v11202_v8, %v7581_v7  ;;  %v11286_v7 = vld [vmem:[#allocation2 + $0x35c] sm:$0xf] }
  0xc0   :  { %1619 = vmatpush.bf16.msra.mxu2 %v7514_v26  ;;  %1690 = vmatpush.bf16.msrb.mxu3 %v8254_v56  ;;  %v7870_v22 = vor.u32 %v11274_v16, %v7869_v15  ;;  %v7679_v26 = vld [vmem:[#allocation2 + $0x178] sm:$0xf0]  ;;  %v8093_v51 = vld [vmem:[#allocation2 + $0x498] sm:$0xf] }
  0xc1   :  { %v7682_v36 = vor.u32 %v11222_v23, %v7679_v26  ;;  %v11330_v54 = vld [vmem:[#allocation2 + $0x4b4] sm:$0xf0]  ;;  %v7967_v56 = vld [vmem:[#allocation2 + $0x3b8] sm:$0xf0] }
  0xc2   :  { %1665 = vmatpush.bf16.msrb.mxu1 %v7710_v19  ;;  %1643 = vmatpush.bf16.msra.mxu0 %v8090_v29  ;;  %v7549_v19 = vld [vmem:[#allocation2 + $0x58] sm:$0xf]  ;;  %v8094_v0 = vor.u32 %v11330_v54, %v8093_v51  ;;  %v7935_v8 = vld [vmem:[#allocation2 + $0x378] sm:$0xf0]  ;;  %v12386_v12 = vpop.f32.mrf.mxu3  ;;  %v8541_v54 = vld [vmem:[#allocation6 + $0x1e0] sm:$0xf] }
  0xc3   :  { %1620 = vmatmul.bf16.vlgmr.msra.gmra.mxu2 %v12343_v50  ;;  %v7550_v29 = vor.u32 %v11194_v20, %v7549_v19  ;;  %v8061_v2 = vld [vmem:[#allocation2 + $0x458] sm:$0xf]  ;;  %v8223_v15 = vld [vmem:[#allocation2 + $0x5b8] sm:$0xf0] }
  0xc4   :  { %1677 = vmatpush.bf16.msrb.mxu2 %v7998_v30  ;;  %1691 = vmatpush.bf16.msrb.mxu3 %v8222_v6  ;;  %v8158_v30 = vor.u32 %v11346_v25, %v8157_v24  ;;  %v11322_v6 = vld [vmem:[#allocation2 + $0x474] sm:$0xf0]  ;;  %v7903_v23 = vld [vmem:[#allocation2 + $0x338] sm:$0xf0]  ;;  %v8226_v24 = vor.u32 %v11358_v14, %v8223_v15 }
  0xc5   :  { %v8062_v16 = vor.u32 %v11322_v6, %v8061_v2  ;;  %v8029_v19 = vld [vmem:[#allocation2 + $0x418] sm:$0xf]  ;;  %v7551_v25 = vld [vmem:[#allocation2 + $0x78] sm:$0xf0] }
  0xc6   :  { %1666 = vmatpush.bf16.msrb.mxu1 %v7678_v34  ;;  %1644 = vmatpush.bf16.msra.mxu0 %v8058_v42  ;;  %v11186_v34 = vld [vmem:[#allocation2 + $0x34] sm:$0xf0]  ;;  %v7647_v42 = vld [vmem:[#allocation2 + $0x138] sm:$0xf0] }
  0xc7   :  { %v7518_v45 = vor.u32 %v11186_v34, %v7517_v33  ;;  %v7650_v52 = vor.u32 %v11214_v31, %v7647_v42  ;;  %v11374_v26 = vld [vmem:[#allocation2 + $0x61c] sm:$0xf]  ;;  %v8581_v34 = vld [vmem:[#allocation6 + $0x230] sm:$0xf] }
  0xc8   :  { %1678 = vmatpush.bf16.msrb.mxu2 %v7966_v43  ;;  %1692 = vmatpush.bf16.msrb.mxu3 %v8190_v18  ;;  %v7805_v43 = vld [vmem:[#allocation2 + $0x258] sm:$0xf]  ;;  %v11190_v18 = vld [vmem:[#allocation2 + $0x5c] sm:$0xf] }
  0xc9   :  { %8296 = vmatmul.msk.bf16.vlgmr.msra.gmra.mxu1 %vm1348_vm0, %v12351_v32  ;;  %v7806_v53 = vor.u32 %v11258_v44, %v7805_v43  ;;  %v11182_v43 = vld [vmem:[#allocation2 + $0x1c] sm:$0xf]  ;;  %v8821_v15 = vld [vmem:[#allocation6 + $0x410] sm:$0xf] }
  0xca   :  { %1667 = vmatpush.bf16.msrb.mxu1 %v7646_v48  ;;  %1645 = vmatpush.bf16.msra.mxu0 %v8026_v59  ;;  %v12379_v41 = vpop.f32.mrf.mxu0  ;;  %v11206_v48 = vld [vmem:[#allocation2 + $0xdc] sm:$0xf]  ;;  %v7773_v59 = vld [vmem:[#allocation2 + $0x218] sm:$0xf] }
  0xcb   :  { %v7618_v4 = vor.u32 %v11206_v48, %v7615_v58  ;;  %v7519_v44 = vld [vmem:[#allocation2 + $0x38] sm:$0xf0] }
  0xcc   :  { %1679 = vmatpush.bf16.msrb.mxu2 %v7934_v60  ;;  %1693 = vmatpush.bf16.msrb.mxu3 %v8158_v30  ;;  %v11250_v60 = vld [vmem:[#allocation2 + $0x234] sm:$0xf0]  ;;  %v8191_v30 = vld [vmem:[#allocation2 + $0x578] sm:$0xf0] }
  0xcd   :  { %1646 = vmatmul.bf16.vlgmr.msra.gmra.mxu0 %v12341_v49  ;;  %v11342_v48 = vld [vmem:[#allocation2 + $0x51c] sm:$0xf] }
  0xce   :  { %1710 = vmatpush.bf16.msrb.mxu0 %v8286_v1  ;;  %1668 = vmatpush.bf16.msrb.mxu1 %v7614_v5  ;;  %v12381_v57 = vpop.f32.mrf.mxu1  ;;  %v7970_v1 = vor.u32 %v11294_v55, %v7967_v56  ;;  %v7774_v5 = vor.u32 %v11250_v60, %v7773_v59  ;;  %v8159_v51 = vld [vmem:[#allocation2 + $0x538] sm:$0xf0]  ;;  %v7522_v55 = vor.u32 %v11182_v43, %v7519_v44  ;;  %v11444_v56 = vld [vmem:[#allocation6 + $0x204] sm:$0xf0]  ;;  %v11414_v43 = vld [vmem:[#allocation6 + $0x114] sm:$0xf0] }
  0xcf   :  { %v11262_v58 = vld [vmem:[#allocation2 + $0x29c] sm:$0xf] }
  0xd0   :  { %1680 = vmatpush.bf16.msrb.mxu2 %v7902_v10  ;;  %1694 = vmatpush.bf16.msrb.mxu3 %v8126_v46  ;;  %v11198_v10 = vld [vmem:[#allocation2 + $0x9c] sm:$0xf]  ;;  %v1415_v46 = vpop.f32.mrf.mxu3 }
  0xd1   :  { %v7586_v20 = vor.u32 %v11198_v10, %v7583_v11  ;;  %v7839_v59 = vld [vmem:[#allocation2 + $0x2b8] sm:$0xf0] }
  0xd2   :  { %1716 = vmatpush.bf16.msra.mxu0 %v7746_v9  ;;  %1669 = vmatpush.bf16.msrb.mxu1 %v7582_v17  ;;  %v12383_v3 = vpop.f32.mrf.mxu2  ;;  %v8258_v9 = vor.u32 %v11366_v62, %v8255_v63  ;;  %v1363_v13 = vpop.f32.mrf.mxu0  ;;  %v7938_v17 = vor.u32 %v11286_v7, %v7935_v8  ;;  %v8162_v62 = vor.u32 %v11342_v48, %v8159_v51  ;;  %v8861_v63 = vld [vmem:[#allocation6 + $0x460] sm:$0xf]  ;;  %v8127_v2 = vld [vmem:[#allocation2 + $0x4f8] sm:$0xf0]  ;;  %v8501_v7 = vld [vmem:[#allocation6 + $0x190] sm:$0xf] }
  0xd3   :  { %v7842_v6 = vor.u32 %v11262_v58, %v7839_v59  ;;  %v11254_v10 = vld [vmem:[#allocation2 + $0x25c] sm:$0xf]  ;;  %v9181_v48 = vld [vmem:[#allocation6 + $0x6e0] sm:$0xf]  ;;  %v11604_v51 = vld [vmem:[#allocation6 + $0x704] sm:$0xf0] }
  0xd4   :  { %1681 = vmatpush.bf16.msrb.mxu2 %v7870_v22  ;;  %1695 = vmatpush.bf16.msrb.mxu3 %v8094_v0  ;;  %v11278_v22 = vld [vmem:[#allocation2 + $0x31c] sm:$0xf]  ;;  %v11524_v0 = vld [vmem:[#allocation6 + $0x484] sm:$0xf0]  ;;  %v11694_v58 = vld [vmem:[#allocation6 + $0x9d4] sm:$0xf0]  ;;  %v9182_v59 = vor.u32 %v11604_v51, %v9181_v48 }
  0xd5   :  { %v7906_v33 = vor.u32 %v11278_v22, %v7903_v23  ;;  %v7807_v11 = vld [vmem:[#allocation2 + $0x278] sm:$0xf0]  ;;  %v8862_v13 = vor.u32 %v11524_v0, %v8861_v63  ;;  %v8461_v23 = vld [vmem:[#allocation6 + $0x140] sm:$0xf]  ;;  %v11404_v63 = vld [vmem:[#allocation6 + $0xc4] sm:$0xf0] }
  0xd6   :  { %1717 = vmatpush.bf16.msra.mxu0 %v7714_v21  ;;  %1670 = vmatpush.bf16.msrb.mxu1 %v7550_v29  ;;  %v11314_v21 = vld [vmem:[#allocation2 + $0x434] sm:$0xf0]  ;;  %v1376_v28 = vpop.f32.mrf.mxu1  ;;  %v11350_v29 = vld [vmem:[#allocation2 + $0x55c] sm:$0xf] }
  0xd7   :  { %v8030_v31 = vor.u32 %v11314_v21, %v8029_v19  ;;  %v8194_v42 = vor.u32 %v11350_v29, %v8191_v30  ;;  %v7810_v21 = vor.u32 %v11254_v10, %v7807_v11  ;;  %v8781_v29 = vld [vmem:[#allocation6 + $0x3c0] sm:$0xf]  ;;  %v9221_v30 = vld [vmem:[#allocation6 + $0x730] sm:$0xf] }
  0xd8   :  { %1682 = vmatpush.bf16.msrb.mxu2 %v7838_v37  ;;  %1696 = vmatpush.bf16.msrb.mxu3 %v8062_v16  ;;  %v8290_v37 = vor.u32 %v11374_v26, %v8287_v27  ;;  %v11514_v16 = vld [vmem:[#allocation6 + $0x434] sm:$0xf0]  ;;  %v7775_v26 = vld [vmem:[#allocation2 + $0x238] sm:$0xf0] }
  0xd9   :  { %v8822_v27 = vor.u32 %v11514_v16, %v8821_v15 }
  0xda   :  { %1718 = vmatpush.bf16.msra.mxu0 %v7682_v36  ;;  %1671 = vmatpush.bf16.msrb.mxu1 %v7518_v45  ;;  %v1389_v35 = vpop.f32.mrf.mxu2  ;;  %v7554_v36 = vor.u32 %v11190_v18, %v7551_v25  ;;  %v8901_v45 = vld [vmem:[#allocation6 + $0x4b0] sm:$0xf]  ;;  %v8095_v18 = vld [vmem:[#allocation2 + $0x4b8] sm:$0xf0] }
  0xdb   :  { %v11246_v25 = vld [vmem:[#allocation2 + $0x21c] sm:$0xf] }
  0xdc   :  { %1683 = vmatpush.bf16.msrb.mxu2 %v7806_v53  ;;  %1697 = vmatpush.bf16.msrb.mxu3 %v8030_v31  ;;  %v7874_v53 = vor.u32 %v11270_v39, %v7871_v40  ;;  %v11614_v31 = vld [vmem:[#allocation6 + $0x754] sm:$0xf0]  ;;  %v8063_v35 = vld [vmem:[#allocation2 + $0x478] sm:$0xf0] }
  0xdd   :  { %1672 = vmatmul.bf16.vlgmr.msrb.gmra.mxu1 %v12343_v50  ;;  %8297 = vmatmul.msk.bf16.vlgmr.msrb.gmra.mxu0 %vm1348_vm0, %v12351_v32  ;;  %v9222_v40 = vor.u32 %v11614_v31, %v9221_v30 }
  0xde   :  { %1729 = vmatpush.bf16.msra.mxu1 %v8002_v47  ;;  %1719 = vmatpush.bf16.msra.mxu0 %v7650_v52  ;;  %v11534_v47 = vld [vmem:[#allocation6 + $0x4d4] sm:$0xf0]  ;;  %v8582_v52 = vor.u32 %v11454_v38, %v8581_v34  ;;  %v11318_v34 = vld [vmem:[#allocation2 + $0x45c] sm:$0xf] }
  0xdf   :  { %v8902_v60 = vor.u32 %v11534_v47, %v8901_v45  ;;  %1698 = vmatmul.bf16.vlgmr.msrb.gmra.mxu3 %v12341_v49  ;;  %v8066_v46 = vor.u32 %v11318_v34, %v8063_v35  ;;  %v8741_v47 = vld [vmem:[#allocation6 + $0x370] sm:$0xf]  ;;  %v11384_v34 = vld [vmem:[#allocation6 + $0x24] sm:$0xf0] }
  0xe0   :  { %1684 = vmatpush.bf16.msrb.mxu2 %v7774_v5  ;;  %1762 = vmatpush.bf16.msra.mxu3 %v8290_v37  ;;  %v8542_v5 = vor.u32 %v11444_v56, %v8541_v54  ;;  %v7778_v37 = vor.u32 %v11246_v25, %v7775_v26  ;;  %v11310_v54 = vld [vmem:[#allocation2 + $0x41c] sm:$0xf]  ;;  %v9541_v56 = vld [vmem:[#allocation6 + $0x9b0] sm:$0xf] }
  0xe1   :  { %v9542_v10 = vor.u32 %v11694_v58, %v9541_v56  ;;  %v9861_v35 = vld [vmem:[#allocation6 + $0xc30] sm:$0xf]  ;;  %v9021_v58 = vld [vmem:[#allocation6 + $0x5a0] sm:$0xf] }
  0xe2   :  { %1730 = vmatpush.bf16.msra.mxu1 %v7970_v1  ;;  %1720 = vmatpush.bf16.msra.mxu0 %v7618_v4  ;;  %v11334_v1 = vld [vmem:[#allocation2 + $0x4dc] sm:$0xf]  ;;  %v12392_v4 = vld [vmem:[#allocation4] sm:$0xff]  ;;  %v12394_v8 = vpop.f32.mrf.mxu2 }
  0xe3   :  { %1685 = vmatmul.bf16.vlgmr.msrb.gmra.mxu2 %v12346_v61  ;;  %v8130_v14 = vor.u32 %v11334_v1, %v8127_v2  ;;  %v332_v19 = vperm.slane %v12392_v4, 0  ;;  %v333_v22 = vperm.slane %v12392_v4, 1  ;;  %v9141_v2 = vld [vmem:[#allocation6 + $0x690] sm:$0xf] }
  0xe4   :  { %1742 = vmatpush.bf16.msra.mxu2 %v8258_v9  ;;  %5648 = vmatpush.bf16.msrb.mxu3 %v8582_v52  ;;  %v11434_v9 = vld [vmem:[#allocation6 + $0x1b4] sm:$0xf0] }
  0xe5   :  { %v1414_v39 = vadd.f32 %v12386_v12, %v333_v22 }
  0xe6   :  { %1731 = vmatpush.bf16.msra.mxu1 %v7938_v17  ;;  %1721 = vmatpush.bf16.msra.mxu0 %v7586_v20  ;;  %v11326_v17 = vld [vmem:[#allocation2 + $0x49c] sm:$0xf]  ;;  %v8502_v20 = vor.u32 %v11434_v9, %v8501_v7  ;;  %v11484_v7 = vld [vmem:[#allocation6 + $0x344] sm:$0xf0]  ;;  %v12405_v9 = vpop.f32.mrf.mxu3 }
  0xe7   :  { %v8098_v28 = vor.u32 %v11326_v17, %v8095_v18  ;;  %v8341_v18 = vld [vmem:[#allocation6 + $0x50] sm:$0xf] }
  0xe8   :  { %1743 = vmatpush.bf16.msra.mxu2 %v8226_v24  ;;  %5649 = vmatpush.bf16.msrb.mxu3 %v8542_v5  ;;  %v11424_v24 = vld [vmem:[#allocation6 + $0x164] sm:$0xf0] }
  0xea   :  { %1732 = vmatpush.bf16.msra.mxu1 %v7906_v33  ;;  %1722 = vmatpush.bf16.msra.mxu0 %v7554_v36  ;;  %v11504_v33 = vld [vmem:[#allocation6 + $0x3e4] sm:$0xf0]  ;;  %v8462_v36 = vor.u32 %v11424_v24, %v8461_v23  ;;  %v1402_v38 = vpop.f32.mrf.mxu2  ;;  %v1426_v44 = vpop.f32.mrf.mxu0  ;;  %v8661_v23 = vld [vmem:[#allocation6 + $0x2d0] sm:$0xf]  ;;  %v11474_v24 = vld [vmem:[#allocation6 + $0x2f4] sm:$0xf0] }
  0xeb   :  { %v8782_v45 = vor.u32 %v11504_v33, %v8781_v29  ;;  %v8301_v33 = vld [vmem:[#allocation6] sm:$0xf]  ;;  %v11574_v38 = vld [vmem:[#allocation6 + $0x614] sm:$0xf0] }
  0xec   :  { %1744 = vmatpush.bf16.msra.mxu2 %v8194_v42  ;;  %5650 = vmatpush.bf16.msrb.mxu3 %v8502_v20  ;;  %v8421_v42 = vld [vmem:[#allocation6 + $0xf0] sm:$0xf]  ;;  %v11584_v20 = vld [vmem:[#allocation6 + $0x664] sm:$0xf0] }
  0xed   :  { %v8422_v12 = vor.u32 %v11414_v43, %v8421_v42 }
  0xee   :  { %1733 = vmatpush.bf16.msra.mxu1 %v7874_v53  ;;  %1723 = vmatpush.bf16.msra.mxu0 %v7522_v55  ;;  %v1439_v52 = vpop.f32.mrf.mxu1  ;;  %v11494_v53 = vld [vmem:[#allocation6 + $0x394] sm:$0xf0]  ;;  %v8031_v55 = vld [vmem:[#allocation2 + $0x438] sm:$0xf0]  ;;  %v1467_v42 = vpop.f32.mrf.mxu3 }
  0xef   :  { %v8742_v0 = vor.u32 %v11494_v53, %v8741_v47  ;;  %v8034_v1 = vor.u32 %v11310_v54, %v8031_v55  ;;  %8298 = vmatmul.msk.bf16.vlgmr.msra.gmra.mxu3 %vm1348_vm0, %v12351_v32  ;;  %v334_v54 = vperm.slane %v12392_v4, 2  ;;  %v9821_v55 = vld [vmem:[#allocation6 + $0xbe0] sm:$0xf] }
  0xf0   :  { %1745 = vmatpush.bf16.msra.mxu2 %v8162_v62  ;;  %5651 = vmatpush.bf16.msrb.mxu3 %v8462_v36  ;;  %v8381_v62 = vld [vmem:[#allocation6 + $0xa0] sm:$0xf]  ;;  %v11774_v36 = vld [vmem:[#allocation6 + $0xc54] sm:$0xf0] }
  0xf1   :  { %1724 = vmatmul.bf16.vlgmr.msra.gmra.mxu0 %v12343_v50  ;;  %v1362_v50 = vadd.f32 %v12379_v41, %v332_v19  ;;  %v11594_v41 = vld [vmem:[#allocation6 + $0x6b4] sm:$0xf0]  ;;  %v8382_v11 = vor.u32 %v11404_v63, %v8381_v62  ;;  %v9862_v48 = vor.u32 %v11774_v36, %v9861_v35  ;;  %v9381_v63 = vld [vmem:[#allocation6 + $0x870] sm:$0xf]  ;;  %v11824_v35 = vld [vmem:[#allocation6 + $0xde4] sm:$0xf0] }
  0xf2   :  { %5661 = vmatpush.bf16.msrb.mxu0 %v8902_v60  ;;  %1734 = vmatpush.bf16.msra.mxu1 %v7842_v6  ;;  %v1427_v60 = vadd.f32 %v1426_v44, %v1414_v39  ;;  %v8701_v6 = vld [vmem:[#allocation6 + $0x320] sm:$0xf]  ;;  %v1452_v15 = vpop.f32.mrf.mxu2  ;;  %v9142_v17 = vor.u32 %v11594_v41, %v9141_v2  ;;  %v1428_v19 = vpop.f32.mrf.mxu0 }
  0xf3   :  { %v1375_v5 = vadd.f32 %v12381_v57, %v1362_v50  ;;  %v11394_v57 = vld [vmem:[#allocation6 + $0x74] sm:$0xf0]  ;;  %v8702_v32 = vor.u32 %v11484_v7, %v8701_v6  ;;  %v8621_v39 = vld [vmem:[#allocation6 + $0x280] sm:$0xf]  ;;  %v10181_v50 = vld [vmem:[#allocation6 + $0xeb0] sm:$0xf]  ;;  %v1466_v7 = vadd.f32 %v12405_v9, %v334_v54 }
  0xf4   :  { %1746 = vmatpush.bf16.msra.mxu2 %v8130_v14  ;;  %5652 = vmatpush.bf16.msrb.mxu3 %v8422_v12  ;;  %v11684_v14 = vld [vmem:[#allocation6 + $0x984] sm:$0xf0]  ;;  %v1440_v16 = vadd.f32 %v1439_v52, %v1427_v60  ;;  %v8342_v26 = vor.u32 %v11394_v57, %v8341_v18  ;;  %v9421_v44 = vld [vmem:[#allocation6 + $0x8c0] sm:$0xf]  ;;  %v11854_v52 = vld [vmem:[#allocation6 + $0xed4] sm:$0xf0] }
  0xf5   :  { %v11764_v12 = vld [vmem:[#allocation6 + $0xc04] sm:$0xf0]  ;;  %v10182_v62 = vor.u32 %v11854_v52, %v10181_v50  ;;  %v9341_v18 = vld [vmem:[#allocation6 + $0x820] sm:$0xf]  ;;  %v11834_v9 = vld [vmem:[#allocation6 + $0xe34] sm:$0xf0] }
  0xf6   :  { %5662 = vmatpush.bf16.msrb.mxu0 %v8862_v13  ;;  %1735 = vmatpush.bf16.msra.mxu1 %v7810_v21  ;;  %v9501_v13 = vld [vmem:[#allocation6 + $0x960] sm:$0xf]  ;;  %v1388_v21 = vadd.f32 %v12383_v3, %v1375_v5  ;;  %v1441_v22 = vpop.f32.mrf.mxu1  ;;  %v1453_v30 = vadd.f32 %v1452_v15, %v1440_v16  ;;  %v8662_v3 = vor.u32 %v11474_v24, %v8661_v23  ;;  %v11844_v6 = vld [vmem:[#allocation6 + $0xe84] sm:$0xf0]  ;;  %v11554_v15 = vld [vmem:[#allocation6 + $0x574] sm:$0xf0] }
  0xf7   :  { %v9502_v25 = vor.u32 %v11684_v14, %v9501_v13  ;;  %v9822_v41 = vor.u32 %v11764_v12, %v9821_v55  ;;  %v10141_v5 = vld [vmem:[#allocation6 + $0xe60] sm:$0xf]  ;;  %v11754_v13 = vld [vmem:[#allocation6 + $0xbb4] sm:$0xf0]  ;;  %v8981_v14 = vld [vmem:[#allocation6 + $0x550] sm:$0xf] }
  0xf8   :  { %1747 = vmatpush.bf16.msra.mxu2 %v8098_v28  ;;  %5653 = vmatpush.bf16.msrb.mxu3 %v8382_v11  ;;  %v11674_v28 = vld [vmem:[#allocation6 + $0x934] sm:$0xf0]  ;;  %v1401_v29 = vadd.f32 %v12394_v8, %v1388_v21  ;;  %v8302_v8 = vor.u32 %v11384_v34, %v8301_v33  ;;  %v9781_v11 = vld [vmem:[#allocation6 + $0xb90] sm:$0xf]  ;;  %v11644_v57 = vld [vmem:[#allocation6 + $0x844] sm:$0xf0]  ;;  %v8982_v21 = vor.u32 %v11554_v15, %v8981_v14 }
  0xf9   :  { %v9741_v22 = vld [vmem:[#allocation6 + $0xb40] sm:$0xf]  ;;  %v11744_v23 = vld [vmem:[#allocation6 + $0xb64] sm:$0xf0]  ;;  %v11449_v14 = vld [vmem:[#allocation6 + $0x234] sm:$0xf] }
  0xfa   :  { %5663 = vmatpush.bf16.msrb.mxu0 %v8822_v27  ;;  %1736 = vmatpush.bf16.msra.mxu1 %v7778_v37  ;;  %v9461_v27 = vld [vmem:[#allocation6 + $0x910] sm:$0xf]  ;;  %v1454_v47 = vpop.f32.mrf.mxu2  ;;  %v9742_v33 = vor.u32 %v11744_v23, %v9741_v22  ;;  %v10061_v34 = vld [vmem:[#allocation6 + $0xdc0] sm:$0xf]  ;;  %v8583_v15 = vld [vmem:[#allocation6 + $0x258] sm:$0xf0] }
  0xfb   :  { %v9061_v37 = vld [vmem:[#allocation6 + $0x5f0] sm:$0xf]  ;;  %v9462_v43 = vor.u32 %v11674_v28, %v9461_v27  ;;  %v9342_v27 = vor.u32 %v11644_v57, %v9341_v18  ;;  %v10062_v42 = vor.u32 %v11824_v35, %v10061_v34  ;;  %v10461_v57 = vld [vmem:[#allocation6 + $0x10e0] sm:$0xf]  ;;  %v8586_v22 = vor.u32 %v11449_v14, %v8583_v15  ;;  %v11529_v23 = vld [vmem:[#allocation6 + $0x4b4] sm:$0xf] }
  0xfc   :  { %1748 = vmatpush.bf16.msra.mxu2 %v8066_v46  ;;  %5654 = vmatpush.bf16.msrb.mxu3 %v8342_v26  ;;  %v1769_v46 = vmax.f32 %v1453_v30, 0.0  ;;  %v9062_v51 = vor.u32 %v11574_v38, %v9061_v37  ;;  %v11544_v26 = vld [vmem:[#allocation6 + $0x524] sm:$0xf0]  ;;  %v11634_v30 = vld [vmem:[#allocation6 + $0x7f4] sm:$0xf0] }
  0xfd   :  { %1737 = vmatmul.bf16.vlgmr.msra.gmra.mxu1 %v12346_v61  ;;  %v9101_v61 = vld [vmem:[#allocation6 + $0x640] sm:$0xf]  ;;  %v9701_v37 = vld [vmem:[#allocation6 + $0xaf0] sm:$0xf]  ;;  %v11734_v38 = vld [vmem:[#allocation6 + $0xb14] sm:$0xf0] }
  0xfe   :  { %5674 = vmatpush.bf16.msrb.mxu1 %v9222_v40  ;;  %5664 = vmatpush.bf16.msrb.mxu0 %v8782_v45  ;;  %v9102_v31 = vor.u32 %v11584_v20, %v9101_v61  ;;  %v11464_v40 = vld [vmem:[#allocation6 + $0x2a4] sm:$0xf0]  ;;  %v1504_v56 = vpop.f32.mrf.mxu1  ;;  %v12413_v2 = vpack.c.bf16 %v1769_v46, %v1769_v46  ;;  %v10101_v61 = vld [vmem:[#allocation6 + $0xe10] sm:$0xf]  ;;  %v11814_v46 = vld [vmem:[#allocation6 + $0xd94] sm:$0xf0] }
  0xff   :  { %v11664_v45 = vld [vmem:[#allocation6 + $0x8e4] sm:$0xf0]  ;;  %v8622_v53 = vor.u32 %v11464_v40, %v8621_v39  ;;  %v10102_v28 = vor.u32 %v11834_v9, %v10101_v61  ;;  %v9901_v9 = vld [vmem:[#allocation6 + $0xc80] sm:$0xf]  ;;  %v11519_v35 = vld [vmem:[#allocation6 + $0x464] sm:$0xf] }
 0x100   :  { %1749 = vmatpush.bf16.msra.mxu2 %v8034_v1  ;;  %v9422_v60 = vor.u32 %v11664_v45, %v9421_v44  ;;  %5655 = vmatpush.bf16.msrb.mxu3 %v8302_v8  ;;  %v11624_v8 = vld [vmem:[#allocation6 + $0x7a4] sm:$0xf0]  ;;  %v9702_v44 = vor.u32 %v11734_v38, %v9701_v37  ;;  %v8503_v37 = vld [vmem:[#allocation6 + $0x1b8] sm:$0xf0]  ;;  %v10821_v14 = vld [vmem:[#allocation6 + $0x13b0] sm:$0xf] }
 0x101   :  { %v12014_v15 = vld [vmem:[#allocation6 + $0x13d4] sm:$0xf0] }
 0x102   :  { %5675 = vmatpush.bf16.msrb.mxu1 %v9182_v59  ;;  %5665 = vmatpush.bf16.msrb.mxu0 %v8742_v0  ;;  %v11564_v59 = vld [vmem:[#allocation6 + $0x5c4] sm:$0xf0]  ;;  %v11654_v0 = vld [vmem:[#allocation6 + $0x894] sm:$0xf0]  ;;  %v1478_v19 = vpop.f32.mrf.mxu2  ;;  %v1517_v54 = vpop.f32.mrf.mxu3 }
 0x103   :  { %1750 = vmatmul.bf16.vlgmr.msra.gmra.mxu2 %v12341_v49  ;;  %v1768_v49 = vmax.f32 %v1401_v29, 0.0  ;;  %v9382_v16 = vor.u32 %v11654_v0, %v9381_v63  ;;  %v1479_v20 = vadd.f32 %v1478_v19, %v1466_v7  ;;  %v9301_v29 = vld [vmem:[#allocation6 + $0x7d0] sm:$0xf]  ;;  %v11794_v7 = vld [vmem:[#allocation6 + $0xcf4] sm:$0xf0] }
 0x104   :  { %5687 = vmatpush.bf16.msrb.mxu2 %v9542_v10  ;;  %5700 = vmatpush.bf16.msra.mxu3 %v9862_v48  ;;  %v9022_v10 = vor.u32 %v11564_v59, %v9021_v58  ;;  %v9302_v39 = vor.u32 %v11634_v30, %v9301_v29  ;;  %v9661_v48 = vld [vmem:[#allocation6 + $0xaa0] sm:$0xf]  ;;  %v11804_v59 = vld [vmem:[#allocation6 + $0xd44] sm:$0xf0]  ;;  %v10501_v0 = vld [vmem:[#allocation6 + $0x1130] sm:$0xf] }
 0x105   :  { %v12411_v1 = vpack.c.bf16 %v1768_v49, %v1768_v49  ;;  %v10021_v49 = vld [vmem:[#allocation6 + $0xd70] sm:$0xf]  ;;  %v9981_v58 = vld [vmem:[#allocation6 + $0xd20] sm:$0xf]  ;;  %v11924_v19 = vld [vmem:[#allocation6 + $0x1104] sm:$0xf0] }
 0x106   :  { %5676 = vmatpush.bf16.msrb.mxu1 %v9142_v17  ;;  %5666 = vmatpush.bf16.msrb.mxu0 %v8702_v32  ;;  %v10142_v17 = vor.u32 %v11844_v6, %v10141_v5  ;;  %v9782_v32 = vor.u32 %v11754_v13, %v9781_v11  ;;  %v1506_v24 = vpop.f32.mrf.mxu1  ;;  %v10022_v55 = vor.u32 %v11814_v46, %v10021_v49  ;;  %v9941_v6 = vld [vmem:[#allocation6 + $0xcd0] sm:$0xf]  ;;  %v9581_v11 = vld [vmem:[#allocation6 + $0xa00] sm:$0xf]  ;;  %v11704_v13 = vld [vmem:[#allocation6 + $0xa24] sm:$0xf0] }
 0x107   :  { %5656 = vmatmul.bf16.vlgmr.msrb.gmra.mxu3 %v12411_v1  ;;  %v9982_v63 = vor.u32 %v11804_v59, %v9981_v58  ;;  %v9942_v18 = vor.u32 %v11794_v7, %v9941_v6  ;;  %v9582_v61 = vor.u32 %v11704_v13, %v9581_v11  ;;  %v8903_v24 = vld [vmem:[#allocation6 + $0x4d8] sm:$0xf0]  ;;  %v11914_v29 = vld [vmem:[#allocation6 + $0x10b4] sm:$0xf0]  ;;  %v11509_v49 = vld [vmem:[#allocation6 + $0x414] sm:$0xf] }
 0x108   :  { %5688 = vmatpush.bf16.msrb.mxu2 %v9502_v25  ;;  %5701 = vmatpush.bf16.msra.mxu3 %v9822_v41  ;;  %v8941_v25 = vld [vmem:[#allocation6 + $0x500] sm:$0xf]  ;;  %v11934_v41 = vld [vmem:[#allocation6 + $0x1154] sm:$0xf0]  ;;  %v8823_v46 = vld [vmem:[#allocation6 + $0x438] sm:$0xf0] }
 0x109   :  { %v8942_v36 = vor.u32 %v11544_v26, %v8941_v25  ;;  %v11439_v25 = vld [vmem:[#allocation6 + $0x1e4] sm:$0xf]  ;;  %v8543_v26 = vld [vmem:[#allocation6 + $0x208] sm:$0xf0]  ;;  %v11884_v6 = vld [vmem:[#allocation6 + $0xfc4] sm:$0xf0] }
 0x10a   :  { %5677 = vmatpush.bf16.msrb.mxu1 %v9102_v31  ;;  %5667 = vmatpush.bf16.msrb.mxu0 %v8662_v3  ;;  %v1491_v31 = vpop.f32.mrf.mxu0  ;;  %v1480_v45 = vpop.f32.mrf.mxu2  ;;  %v8546_v34 = vor.u32 %v11439_v25, %v8543_v26  ;;  %v11499_v59 = vld [vmem:[#allocation6 + $0x3c4] sm:$0xf]  ;;  %v10781_v25 = vld [vmem:[#allocation6 + $0x1360] sm:$0xf]  ;;  %v12004_v26 = vld [vmem:[#allocation6 + $0x1384] sm:$0xf0] }
 0x10b   :  { %v1492_v3 = vadd.f32 %v1491_v31, %v1479_v20  ;;  %v11784_v20 = vld [vmem:[#allocation6 + $0xca4] sm:$0xf0]  ;;  %v8906_v31 = vor.u32 %v11529_v23, %v8903_v24 }
 0x10c   :  { %5689 = vmatpush.bf16.msrb.mxu2 %v9462_v43  ;;  %5702 = vmatpush.bf16.msra.mxu3 %v9782_v32  ;;  %v9261_v43 = vld [vmem:[#allocation6 + $0x780] sm:$0xf]  ;;  %v335_v32 = vperm.slane %v12392_v4, 3 }
 0x10d   :  { %v1505_v40 = vadd.f32 %v1504_v56, %v1492_v3  ;;  %v9262_v50 = vor.u32 %v11624_v8, %v9261_v43  ;;  %v8863_v3 = vld [vmem:[#allocation6 + $0x488] sm:$0xf0] }
 0x10e   :  { %5678 = vmatpush.bf16.msrb.mxu1 %v9062_v51  ;;  %5668 = vmatpush.bf16.msrb.mxu0 %v8622_v53  ;;  %v11724_v51 = vld [vmem:[#allocation6 + $0xac4] sm:$0xf0]  ;;  %v1518_v30 = vadd.f32 %v1517_v54, %v335_v32  ;;  %v8866_v43 = vor.u32 %v11519_v35, %v8863_v3  ;;  %v11894_v54 = vld [vmem:[#allocation6 + $0x1014] sm:$0xf0]  ;;  %v11399_v32 = vld [vmem:[#allocation6 + $0xa4] sm:$0xf] }
 0x10f   :  { %v1770_v47 = vmax.f32 %v1505_v40, 0.0  ;;  %v9662_v12 = vor.u32 %v11724_v51, %v9661_v48  ;;  %v11904_v40 = vld [vmem:[#allocation6 + $0x1064] sm:$0xf0]  ;;  %v11419_v48 = vld [vmem:[#allocation6 + $0x144] sm:$0xf] }
 0x110   :  { %5690 = vmatpush.bf16.msrb.mxu2 %v9422_v60  ;;  %5703 = vmatpush.bf16.msra.mxu3 %v9742_v33  ;;  %v9621_v60 = vld [vmem:[#allocation6 + $0xa50] sm:$0xf]  ;;  %v8463_v51 = vld [vmem:[#allocation6 + $0x168] sm:$0xf0]  ;;  %v8343_v35 = vld [vmem:[#allocation6 + $0x78] sm:$0xf0] }
 0x111   :  { %5669 = vmatmul.bf16.vlgmr.msrb.gmra.mxu0 %v12413_v2  ;;  %v12418_v52 = vpack.c.bf16 %v1770_v47, %v1770_v47  ;;  %v10221_v3 = vld [vmem:[#allocation6 + $0xf00] sm:$0xf] }
 0x112   :  { %5713 = vmatpush.bf16.msra.mxu0 %v10182_v62  ;;  %5679 = vmatpush.bf16.msrb.mxu1 %v9022_v10  ;;  %v12420_v53 = vpop.f32.mrf.mxu1  ;;  %v1493_v56 = vpop.f32.mrf.mxu0  ;;  %v11714_v62 = vld [vmem:[#allocation6 + $0xa74] sm:$0xf0]  ;;  %v10502_v10 = vor.u32 %v11934_v41, %v10501_v0  ;;  %v8423_v0 = vld [vmem:[#allocation6 + $0x118] sm:$0xf0] }
 0x113   :  { %v9622_v5 = vor.u32 %v11714_v62, %v9621_v60  ;;  %v8783_v60 = vld [vmem:[#allocation6 + $0x3e8] sm:$0xf0] }
 0x114   :  { %5691 = vmatpush.bf16.msrb.mxu2 %v9382_v16  ;;  %5704 = vmatpush.bf16.msra.mxu3 %v9702_v44  ;;  %v8786_v11 = vor.u32 %v11499_v59, %v8783_v60  ;;  %v10701_v60 = vld [vmem:[#allocation6 + $0x12c0] sm:$0xf] }
 0x116   :  { %5714 = vmatpush.bf16.msra.mxu0 %v10142_v17  ;;  %5680 = vmatpush.bf16.msrb.mxu1 %v8982_v21  ;;  %v1519_v17 = vpop.f32.mrf.mxu3  ;;  %v10462_v21 = vor.u32 %v11924_v19, %v10461_v57  ;;  %v8743_v57 = vld [vmem:[#allocation6 + $0x398] sm:$0xf0]  ;;  %v10822_v19 = vor.u32 %v12014_v15, %v10821_v14  ;;  %v11759_v15 = vld [vmem:[#allocation6 + $0xbe4] sm:$0xf] }
 0x118   :  { %5692 = vmatpush.bf16.msrb.mxu2 %v9342_v27  ;;  %5705 = vmatpush.bf16.msra.mxu3 %v9662_v12  ;;  %v9902_v27 = vor.u32 %v11784_v20, %v9901_v9  ;;  %v8826_v12 = vor.u32 %v11509_v49, %v8823_v46  ;;  %v10261_v20 = vld [vmem:[#allocation6 + $0xf50] sm:$0xf]  ;;  %v11469_v49 = vld [vmem:[#allocation6 + $0x2d4] sm:$0xf]  ;;  %v8663_v46 = vld [vmem:[#allocation6 + $0x2f8] sm:$0xf0] }
 0x119   :  { %v8666_v59 = vor.u32 %v11469_v49, %v8663_v46  ;;  %v10541_v46 = vld [vmem:[#allocation6 + $0x1180] sm:$0xf] }
 0x11a   :  { %5715 = vmatpush.bf16.msra.mxu0 %v10102_v28  ;;  %5681 = vmatpush.bf16.msrb.mxu1 %v8942_v36  ;;  %v1532_v16 = vpop.f32.mrf.mxu1  ;;  %v10421_v28 = vld [vmem:[#allocation6 + $0x1090] sm:$0xf]  ;;  %v11429_v36 = vld [vmem:[#allocation6 + $0x194] sm:$0xf] }
 0x11b   :  { %v10422_v33 = vor.u32 %v11914_v29, %v10421_v28  ;;  %v8506_v45 = vor.u32 %v11429_v36, %v8503_v37  ;;  %v11479_v29 = vld [vmem:[#allocation6 + $0x324] sm:$0xf]  ;;  %v11864_v36 = vld [vmem:[#allocation6 + $0xf24] sm:$0xf0] }
 0x11c   :  { %5693 = vmatpush.bf16.msrb.mxu2 %v9302_v39  ;;  %5706 = vmatpush.bf16.msra.mxu3 %v9622_v5  ;;  %v10381_v39 = vld [vmem:[#allocation6 + $0x1040] sm:$0xf] }
 0x11d   :  { %5682 = vmatmul.bf16.vlgmr.msrb.gmra.mxu1 %v12418_v52  ;;  %v10382_v8 = vor.u32 %v11904_v40, %v10381_v39  ;;  %v10301_v5 = vld [vmem:[#allocation6 + $0xfa0] sm:$0xf]  ;;  %v10222_v39 = vor.u32 %v11864_v36, %v10221_v3  ;;  %v10741_v40 = vld [vmem:[#allocation6 + $0x1310] sm:$0xf]  ;;  %v11954_v36 = vld [vmem:[#allocation6 + $0x11f4] sm:$0xf0] }
 0x11e   :  { %5716 = vmatpush.bf16.msra.mxu0 %v10062_v42  ;;  %5726 = vmatpush.bf16.msra.mxu1 %v10502_v10  ;;  %v1531_v42 = vadd.f32 %v12420_v53, %v1518_v30  ;;  %v8466_v53 = vor.u32 %v11419_v48, %v8463_v51  ;;  %v336_v10 = vperm.slane %v12392_v4, 4  ;;  %v10302_v13 = vor.u32 %v11884_v6, %v10301_v5  ;;  %v8703_v30 = vld [vmem:[#allocation6 + $0x348] sm:$0xf0]  ;;  %v9223_v48 = vld [vmem:[#allocation6 + $0x758] sm:$0xf0] }
 0x11f   :  { %v11379_v51 = vld [vmem:[#allocation6 + $0x4] sm:$0xf]  ;;  %v9183_v6 = vld [vmem:[#allocation6 + $0x708] sm:$0xf0]  ;;  %v10581_v3 = vld [vmem:[#allocation6 + $0x11d0] sm:$0xf] }
 0x120   :  { %5694 = vmatpush.bf16.msrb.mxu2 %v9262_v50  ;;  %5707 = vmatpush.bf16.msra.mxu3 %v9582_v61  ;;  %v10341_v50 = vld [vmem:[#allocation6 + $0xff0] sm:$0xf]  ;;  %v8383_v61 = vld [vmem:[#allocation6 + $0xc8] sm:$0xf0] }
 0x121   :  { %v10342_v56 = vor.u32 %v11894_v54, %v10341_v50  ;;  %v8303_v50 = vld [vmem:[#allocation6 + $0x28] sm:$0xf0] }
 0x122   :  { %5717 = vmatpush.bf16.msra.mxu0 %v10022_v55  ;;  %5727 = vmatpush.bf16.msra.mxu1 %v10462_v21  ;;  %v1556_v38 = vpop.f32.mrf.mxu1  ;;  %v1543_v44 = vpop.f32.mrf.mxu2  ;;  %v11874_v21 = vld [vmem:[#allocation6 + $0xf74] sm:$0xf0] }
 0x123   :  { %v1544_v47 = vadd.f32 %v1543_v44, %v1531_v42  ;;  %v1569_v9 = vpop.f32.mrf.mxu3  ;;  %v10262_v24 = vor.u32 %v11874_v21, %v10261_v20  ;;  %v11994_v42 = vld [vmem:[#allocation6 + $0x1334] sm:$0xf0]  ;;  %v9143_v20 = vld [vmem:[#allocation6 + $0x6b8] sm:$0xf0] }
 0x124   :  { %5752 = vmatpush.bf16.msrb.mxu3 %v8586_v22  ;;  %5739 = vmatpush.bf16.msra.mxu2 %v10822_v19  ;;  %v1570_v22 = vadd.f32 %v1569_v9, %v336_v10  ;;  %v8306_v10 = vor.u32 %v11379_v51, %v8303_v50  ;;  %v11974_v19 = vld [vmem:[#allocation6 + $0x1294] sm:$0xf0] }
 0x125   :  { %v1557_v55 = vadd.f32 %v1556_v38, %v1544_v47  ;;  %v8706_v38 = vor.u32 %v11479_v29, %v8703_v30  ;;  %v10742_v47 = vor.u32 %v11994_v42, %v10741_v40  ;;  %v9103_v29 = vld [vmem:[#allocation6 + $0x668] sm:$0xf0]  ;;  %v11569_v40 = vld [vmem:[#allocation6 + $0x5f4] sm:$0xf]  ;;  %v9063_v42 = vld [vmem:[#allocation6 + $0x618] sm:$0xf0] }
 0x126   :  { %5718 = vmatpush.bf16.msra.mxu0 %v9982_v63  ;;  %5728 = vmatpush.bf16.msra.mxu1 %v10422_v33  ;;  %v11409_v63 = vld [vmem:[#allocation6 + $0xf4] sm:$0xf] }
 0x127   :  { %v1771_v62 = vmax.f32 %v1557_v55, 0.0  ;;  %v8426_v17 = vor.u32 %v11409_v63, %v8423_v0  ;;  %v11599_v63 = vld [vmem:[#allocation6 + $0x6e4] sm:$0xf] }
 0x128   :  { %5753 = vmatpush.bf16.msrb.mxu3 %v8546_v34  ;;  %v11389_v34 = vld [vmem:[#allocation6 + $0x54] sm:$0xf] }
 0x129   :  { %v12425_v7 = vpack.c.bf16 %v1771_v62, %v1771_v62  ;;  %v11984_v62 = vld [vmem:[#allocation6 + $0x12e4] sm:$0xf0] }
 0x12a   :  { %5719 = vmatpush.bf16.msra.mxu0 %v9942_v18  ;;  %5729 = vmatpush.bf16.msra.mxu1 %v10382_v8  ;;  %v1582_v58 = vpop.f32.mrf.mxu0  ;;  %v1558_v41 = vpop.f32.mrf.mxu1  ;;  %v11489_v18 = vld [vmem:[#allocation6 + $0x374] sm:$0xf]  ;;  %v10702_v5 = vor.u32 %v11984_v62, %v10701_v60  ;;  %v9663_v60 = vld [vmem:[#allocation6 + $0xac8] sm:$0xf0] }
 0x12b   :  { %v1545_v16 = vpop.f32.mrf.mxu2  ;;  %5695 = vmatmul.bf16.vlgmr.msrb.gmra.mxu2 %v12425_v7  ;;  %v8746_v23 = vor.u32 %v11489_v18, %v8743_v57  ;;  %v1583_v33 = vadd.f32 %v1582_v58, %v1570_v22  ;;  %v11459_v58 = vld [vmem:[#allocation6 + $0x284] sm:$0xf]  ;;  %v8623_v41 = vld [vmem:[#allocation6 + $0x2a8] sm:$0xf0]  ;;  %v10661_v57 = vld [vmem:[#allocation6 + $0x1270] sm:$0xf] }
 0x12c   :  { %5754 = vmatpush.bf16.msrb.mxu3 %v8506_v45  ;;  %v8346_v45 = vor.u32 %v11389_v34, %v8343_v35  ;;  %v9823_v16 = vld [vmem:[#allocation6 + $0xc08] sm:$0xf0]  ;;  %v8626_v18 = vor.u32 %v11459_v58, %v8623_v41  ;;  %v10662_v9 = vor.u32 %v11974_v19, %v10661_v57  ;;  %v11719_v58 = vld [vmem:[#allocation6 + $0xaa4] sm:$0xf]  ;;  %v11849_v57 = vld [vmem:[#allocation6 + $0xeb4] sm:$0xf] }
 0x12d   :  { %v9826_v22 = vor.u32 %v11759_v15, %v9823_v16  ;;  %v9743_v34 = vld [vmem:[#allocation6 + $0xb68] sm:$0xf0]  ;;  %v9666_v16 = vor.u32 %v11719_v58, %v9663_v60 }
 0x12e   :  { %5720 = vmatpush.bf16.msra.mxu0 %v9902_v27  ;;  %5730 = vmatpush.bf16.msra.mxu1 %v10342_v56  ;;  %v8386_v27 = vor.u32 %v11399_v32, %v8383_v61  ;;  %v9863_v56 = vld [vmem:[#allocation6 + $0xc58] sm:$0xf0]  ;;  %v11589_v32 = vld [vmem:[#allocation6 + $0x694] sm:$0xf]  ;;  %v9343_v58 = vld [vmem:[#allocation6 + $0x848] sm:$0xf0] }
 0x12f   :  { %v9146_v21 = vor.u32 %v11589_v32, %v9143_v20  ;;  %v11539_v32 = vld [vmem:[#allocation6 + $0x504] sm:$0xf]  ;;  %v10183_v20 = vld [vmem:[#allocation6 + $0xed8] sm:$0xf0] }
 0x130   :  { %5755 = vmatpush.bf16.msrb.mxu3 %v8466_v53  ;;  %v1571_v53 = vpop.f32.mrf.mxu3 }
 0x132   :  { %5765 = vmatpush.bf16.msrb.mxu0 %v8906_v31  ;;  %5731 = vmatpush.bf16.msra.mxu1 %v10302_v13  ;;  %v1584_v28 = vpop.f32.mrf.mxu0  ;;  %v10782_v31 = vor.u32 %v12004_v26, %v10781_v25  ;;  %v10621_v25 = vld [vmem:[#allocation6 + $0x1220] sm:$0xf]  ;;  %v11964_v26 = vld [vmem:[#allocation6 + $0x1244] sm:$0xf0] }
 0x133   :  { %v1608_v44 = vpop.f32.mrf.mxu2  ;;  %v10622_v28 = vor.u32 %v11964_v26, %v10621_v25 }
 0x134   :  { %5756 = vmatpush.bf16.msrb.mxu3 %v8426_v17  ;;  %5740 = vmatpush.bf16.msra.mxu2 %v10782_v31 }
 0x136   :  { %5766 = vmatpush.bf16.msrb.mxu0 %v8866_v43  ;;  %5732 = vmatpush.bf16.msra.mxu1 %v10262_v24  ;;  %v1595_v37 = vpop.f32.mrf.mxu1  ;;  %v11609_v43 = vld [vmem:[#allocation6 + $0x734] sm:$0xf]  ;;  %v9783_v24 = vld [vmem:[#allocation6 + $0xbb8] sm:$0xf0] }
 0x137   :  { %v1596_v8 = vadd.f32 %v1595_v37, %v1583_v33  ;;  %v9226_v54 = vor.u32 %v11609_v43, %v9223_v48  ;;  %v11739_v33 = vld [vmem:[#allocation6 + $0xb44] sm:$0xf]  ;;  %v337_v37 = vperm.slane %v12392_v4, 5  ;;  %v9066_v43 = vor.u32 %v11569_v40, %v9063_v42  ;;  %v9543_v4 = vld [vmem:[#allocation6 + $0x9d8] sm:$0xf0] }
 0x138   :  { %5757 = vmatpush.bf16.msrb.mxu3 %v8386_v27  ;;  %5741 = vmatpush.bf16.msra.mxu2 %v10742_v47  ;;  %v11579_v27 = vld [vmem:[#allocation6 + $0x644] sm:$0xf]  ;;  %v11944_v47 = vld [vmem:[#allocation6 + $0x11a4] sm:$0xf0] }
 0x139   :  { %v1609_v55 = vadd.f32 %v1608_v44, %v1596_v8  ;;  %v9106_v30 = vor.u32 %v11579_v27, %v9103_v29  ;;  %v9746_v8 = vor.u32 %v11739_v33, %v9743_v34  ;;  %v11729_v44 = vld [vmem:[#allocation6 + $0xaf4] sm:$0xf]  ;;  %v11559_v48 = vld [vmem:[#allocation6 + $0x5a4] sm:$0xf]  ;;  %v10542_v50 = vor.u32 %v11944_v47, %v10541_v46  ;;  %v8589_v33 = vld [vmem:[#allocation6 + $0x238] sm:$0xf] }
 0x13a   :  { %5767 = vmatpush.bf16.msrb.mxu0 %v8826_v12  ;;  %5733 = vmatpush.bf16.msra.mxu1 %v10222_v39  ;;  %v11769_v12 = vld [vmem:[#allocation6 + $0xc34] sm:$0xf]  ;;  %v10582_v39 = vor.u32 %v11954_v36, %v10581_v3  ;;  %v11699_v27 = vld [vmem:[#allocation6 + $0xa04] sm:$0xf]  ;;  %v10186_v29 = vor.u32 %v11849_v57, %v10183_v20  ;;  %v9383_v47 = vld [vmem:[#allocation6 + $0x898] sm:$0xf0] }
 0x13b   :  { %v1772_v0 = vmax.f32 %v1609_v55, 0.0  ;;  %v9866_v14 = vor.u32 %v11769_v12, %v9863_v56  ;;  %v1610_v61 = vpop.f32.mrf.mxu2  ;;  %v11689_v55 = vld [vmem:[#allocation6 + $0x9b4] sm:$0xf]  ;;  %v11659_v36 = vld [vmem:[#allocation6 + $0x8c4] sm:$0xf] }
 0x13c   :  { %5758 = vmatpush.bf16.msrb.mxu3 %v8346_v45  ;;  %5742 = vmatpush.bf16.msra.mxu2 %v10702_v5  ;;  %v9703_v45 = vld [vmem:[#allocation6 + $0xb18] sm:$0xf0]  ;;  %v9546_v56 = vor.u32 %v11689_v55, %v9543_v4  ;;  %v8943_v61 = vld [vmem:[#allocation6 + $0x528] sm:$0xf0]  ;;  %v11649_v46 = vld [vmem:[#allocation6 + $0x874] sm:$0xf] }
 0x13d   :  { %v12429_v13 = vpack.c.bf16 %v1772_v0, %v1772_v0  ;;  %v9706_v53 = vor.u32 %v11729_v44, %v9703_v45  ;;  %v8983_v0 = vld [vmem:[#allocation6 + $0x578] sm:$0xf0]  ;;  %v8549_v45 = vld [vmem:[#allocation6 + $0x1e8] sm:$0xf]  ;;  %v11819_v55 = vld [vmem:[#allocation6 + $0xdc4] sm:$0xf] }
 0x13e   :  { %5768 = vmatpush.bf16.msrb.mxu0 %v8786_v11  ;;  %5778 = vmatpush.bf16.msrb.mxu1 %v9226_v54  ;;  %v9186_v11 = vor.u32 %v11599_v63, %v9183_v6  ;;  %v1597_v17 = vpop.f32.mrf.mxu1  ;;  %v9023_v54 = vld [vmem:[#allocation6 + $0x5c8] sm:$0xf0]  ;;  %v11549_v63 = vld [vmem:[#allocation6 + $0x554] sm:$0xf]  ;;  %v10103_v44 = vld [vmem:[#allocation6 + $0xe38] sm:$0xf0] }
 0x13f   :  { %5708 = vmatmul.bf16.vlgmr.msra.gmra.mxu3 %v12429_v13  ;;  %v9026_v12 = vor.u32 %v11559_v48, %v9023_v54  ;;  %v8986_v6 = vor.u32 %v11549_v63, %v8983_v0  ;;  %v11709_v17 = vld [vmem:[#allocation6 + $0xa54] sm:$0xf]  ;;  %v10063_v4 = vld [vmem:[#allocation6 + $0xde8] sm:$0xf0]  ;;  %v8429_v20 = vld [vmem:[#allocation6 + $0xf8] sm:$0xf] }
 0x140   :  { %5759 = vmatpush.bf16.msrb.mxu3 %v8306_v10  ;;  %5743 = vmatpush.bf16.msra.mxu2 %v10662_v9  ;;  %v11679_v10 = vld [vmem:[#allocation6 + $0x964] sm:$0xf]  ;;  %v10066_v0 = vor.u32 %v11819_v55, %v10063_v4  ;;  %v10463_v4 = vld [vmem:[#allocation6 + $0x1108] sm:$0xf0] }
 0x141   :  { %v11919_v55 = vld [vmem:[#allocation6 + $0x10e4] sm:$0xf] }
 0x142   :  { %5769 = vmatpush.bf16.msrb.mxu0 %v8746_v23  ;;  %5779 = vmatpush.bf16.msrb.mxu1 %v9186_v11  ;;  %v11749_v23 = vld [vmem:[#allocation6 + $0xb94] sm:$0xf]  ;;  %v9503_v11 = vld [vmem:[#allocation6 + $0x988] sm:$0xf0] }
 0x143   :  { %v9786_v31 = vor.u32 %v11749_v23, %v9783_v24  ;;  %v9463_v23 = vld [vmem:[#allocation6 + $0x938] sm:$0xf0] }
 0x144   :  { %5804 = vmatpush.bf16.msra.mxu3 %v9866_v14  ;;  %5744 = vmatpush.bf16.msra.mxu2 %v10622_v28  ;;  %v9506_v14 = vor.u32 %v11679_v10, %v9503_v11  ;;  %v9583_v28 = vld [vmem:[#allocation6 + $0xa28] sm:$0xf0]  ;;  %v8469_v10 = vld [vmem:[#allocation6 + $0x148] sm:$0xf]  ;;  %v11425_v11 = vld [vmem:[#allocation6 + $0x16c] sm:$0xf0] }
 0x145   :  { %v9586_v40 = vor.u32 %v11699_v27, %v9583_v28  ;;  %v11789_v28 = vld [vmem:[#allocation6 + $0xcd4] sm:$0xf] }
 0x146   :  { %5770 = vmatpush.bf16.msrb.mxu0 %v8706_v38  ;;  %5780 = vmatpush.bf16.msrb.mxu1 %v9146_v21  ;;  %v1660_v35 = vpop.f32.mrf.mxu1  ;;  %v1621_v38 = vpop.f32.mrf.mxu2  ;;  %v8946_v21 = vor.u32 %v11539_v32, %v8943_v61  ;;  %v8470_v32 = vor.u32 %v11425_v11, %v8469_v10  ;;  %v11799_v61 = vld [vmem:[#allocation6 + $0xd24] sm:$0xf] }
 0x147   :  { %v1622_v51 = vadd.f32 %v1621_v38, %v337_v37  ;;  %v9423_v37 = vld [vmem:[#allocation6 + $0x8e8] sm:$0xf0] }
 0x148   :  { %5805 = vmatpush.bf16.msra.mxu3 %v9826_v22  ;;  %5745 = vmatpush.bf16.msra.mxu2 %v10582_v39  ;;  %v11669_v22 = vld [vmem:[#allocation6 + $0x914] sm:$0xf]  ;;  %v9426_v39 = vor.u32 %v11659_v36, %v9423_v37 }
 0x149   :  { %v9466_v24 = vor.u32 %v11669_v22, %v9463_v23  ;;  %v11619_v22 = vld [vmem:[#allocation6 + $0x784] sm:$0xf]  ;;  %v9263_v23 = vld [vmem:[#allocation6 + $0x7a8] sm:$0xf0] }
 0x14a   :  { %5771 = vmatpush.bf16.msrb.mxu0 %v8666_v59  ;;  %5781 = vmatpush.bf16.msrb.mxu1 %v9106_v30  ;;  %v1647_v49 = vpop.f32.mrf.mxu0  ;;  %v1634_v59 = vpop.f32.mrf.mxu3  ;;  %v11839_v30 = vld [vmem:[#allocation6 + $0xe64] sm:$0xf] }
 0x14b   :  { %v1635_v41 = vadd.f32 %v1634_v59, %v1622_v51  ;;  %v9386_v51 = vor.u32 %v11649_v46, %v9383_v47  ;;  %v12438_v59 = vld [vmem:[#allocation4] sm:$0xff]  ;;  %v11535_v47 = vld [vmem:[#allocation6 + $0x4dc] sm:$0xf0] }
 0x14c   :  { %5806 = vmatpush.bf16.msra.mxu3 %v9786_v31  ;;  %5746 = vmatpush.bf16.msra.mxu2 %v10542_v50  ;;  %v10143_v31 = vld [vmem:[#allocation6 + $0xe88] sm:$0xf0]  ;;  %v338_v60 = vperm.slane %v12438_v59, 6  ;;  %v8909_v46 = vld [vmem:[#allocation6 + $0x4b8] sm:$0xf]  ;;  %v339_v10 = vperm.slane %v12438_v59, 7 }
 0x14d   :  { %v1648_v15 = vadd.f32 %v1647_v49, %v1635_v41  ;;  %v10146_v42 = vor.u32 %v11839_v30, %v10143_v31  ;;  %v11445_v49 = vld [vmem:[#allocation6 + $0x20c] sm:$0xf0]  ;;  %v9943_v30 = vld [vmem:[#allocation6 + $0xcf8] sm:$0xf0]  ;;  %v8389_v31 = vld [vmem:[#allocation6 + $0xa8] sm:$0xf] }
 0x14e   :  { %5772 = vmatpush.bf16.msrb.mxu0 %v8626_v18  ;;  %5782 = vmatpush.bf16.msrb.mxu1 %v9066_v43  ;;  %v1662_v62 = vpop.f32.mrf.mxu1  ;;  %v1623_v5 = vpop.f32.mrf.mxu2  ;;  %v9623_v18 = vld [vmem:[#allocation6 + $0xa78] sm:$0xf0]  ;;  %v8550_v54 = vor.u32 %v11445_v49, %v8549_v45  ;;  %v11395_v45 = vld [vmem:[#allocation6 + $0x7c] sm:$0xf0]  ;;  %v10383_v59 = vld [vmem:[#allocation6 + $0x1068] sm:$0xf0] }
 0x14f   :  { %5760 = vmatmul.bf16.vlgmr.msrb.gmra.mxu3 %v12411_v1  ;;  %v1661_v9 = vadd.f32 %v1660_v35, %v1648_v15  ;;  %v9626_v26 = vor.u32 %v11709_v17, %v9623_v18  ;;  %v11455_v35 = vld [vmem:[#allocation6 + $0x25c] sm:$0xf0]  ;;  %v11809_v5 = vld [vmem:[#allocation6 + $0xd74] sm:$0xf]  ;;  %v9303_v15 = vld [vmem:[#allocation6 + $0x7f8] sm:$0xf0] }
 0x150   :  { %5807 = vmatpush.bf16.msra.mxu3 %v9746_v8  ;;  %5791 = vmatpush.bf16.msrb.mxu2 %v9546_v56  ;;  %v8590_v43 = vor.u32 %v11455_v35, %v8589_v33  ;;  %v11829_v8 = vld [vmem:[#allocation6 + $0xe14] sm:$0xf]  ;;  %v11435_v56 = vld [vmem:[#allocation6 + $0x1bc] sm:$0xf0]  ;;  %v11405_v33 = vld [vmem:[#allocation6 + $0xcc] sm:$0xf0] }
 0x151   :  { %v1773_v25 = vmax.f32 %v1661_v9, 0.0  ;;  %v10106_v50 = vor.u32 %v11829_v8, %v10103_v44  ;;  %v9983_v9 = vld [vmem:[#allocation6 + $0xd48] sm:$0xf0]  ;;  %v8349_v44 = vld [vmem:[#allocation6 + $0x58] sm:$0xf] }
 0x152   :  { %5783 = vmatpush.bf16.msrb.mxu1 %v9026_v12  ;;  %v1649_v19 = vpop.f32.mrf.mxu0  ;;  %v1636_v34 = vpop.f32.mrf.mxu3  ;;  %v8509_v12 = vld [vmem:[#allocation6 + $0x198] sm:$0xf]  ;;  %v9903_v8 = vld [vmem:[#allocation6 + $0xca8] sm:$0xf0] }
 0x153   :  { %v12434_v3 = vpack.c.bf16 %v1773_v25, %v1773_v25  ;;  %v8510_v41 = vor.u32 %v11435_v56, %v8509_v12  ;;  %v9266_v25 = vor.u32 %v11619_v22, %v9263_v23  ;;  %v8910_v56 = vor.u32 %v11535_v47, %v8909_v46  ;;  %v12009_v47 = vld [vmem:[#allocation6 + $0x13b4] sm:$0xf] }
 0x154   :  { %5808 = vmatpush.bf16.msra.mxu3 %v9706_v53  ;;  %5792 = vmatpush.bf16.msrb.mxu2 %v9506_v14  ;;  %v11639_v53 = vld [vmem:[#allocation6 + $0x824] sm:$0xf]  ;;  %v11629_v14 = vld [vmem:[#allocation6 + $0x7d4] sm:$0xf] }
 0x155   :  { %5721 = vmatmul.bf16.vlgmr.msra.gmra.mxu0 %v12434_v3  ;;  %v9346_v63 = vor.u32 %v11639_v53, %v9343_v58  ;;  %v9306_v18 = vor.u32 %v11629_v14, %v9303_v15  ;;  %v8309_v53 = vld [vmem:[#allocation6 + $0x8] sm:$0xf]  ;;  %v11385_v58 = vld [vmem:[#allocation6 + $0x2c] sm:$0xf0]  ;;  %v11909_v14 = vld [vmem:[#allocation6 + $0x1094] sm:$0xf] }
 0x156   :  { %5784 = vmatpush.bf16.msrb.mxu1 %v8986_v6  ;;  %5817 = vmatpush.bf16.msra.mxu0 %v10186_v29  ;;  %v10023_v6 = vld [vmem:[#allocation6 + $0xd98] sm:$0xf0]  ;;  %v8310_v11 = vor.u32 %v11385_v58, %v8309_v53  ;;  %v11735_v53 = vld [vmem:[#allocation6 + $0xb1c] sm:$0xf0] }
 0x157   :  { %v10026_v19 = vor.u32 %v11809_v5, %v10023_v6  ;;  %v10466_v5 = vor.u32 %v11919_v55, %v10463_v4  ;;  %v10423_v15 = vld [vmem:[#allocation6 + $0x10b8] sm:$0xf0]  ;;  %v11485_v55 = vld [vmem:[#allocation6 + $0x34c] sm:$0xf0]  ;;  %v12449_v4 = vld [vmem:[#allocation7] sm:$0xff] }
 0x158   :  { %5809 = vmatpush.bf16.msra.mxu3 %v9666_v16  ;;  %5793 = vmatpush.bf16.msrb.mxu2 %v9466_v24 }
 0x15a   :  { %5785 = vmatpush.bf16.msrb.mxu1 %v8946_v21  ;;  %v1673_v38 = vpop.f32.mrf.mxu1  ;;  %v1712_v48 = vpop.f32.mrf.mxu0  ;;  %5818 = vmatpush.bf16.msra.mxu0 %v10146_v42  ;;  %v11415_v21 = vld [vmem:[#allocation6 + $0x11c] sm:$0xf0]  ;;  %v10503_v42 = vld [vmem:[#allocation6 + $0x1158] sm:$0xf0] }
 0x15b   :  { %v1674_v16 = vadd.f32 %v1673_v38, %v338_v60  ;;  %v8430_v27 = vor.u32 %v11415_v21, %v8429_v20  ;;  %v9946_v38 = vor.u32 %v11789_v28, %v9943_v30  ;;  %v8869_v60 = vld [vmem:[#allocation6 + $0x468] sm:$0xf]  ;;  %v11899_v20 = vld [vmem:[#allocation6 + $0x1044] sm:$0xf] }
 0x15c   :  { %5810 = vmatpush.bf16.msra.mxu3 %v9626_v26  ;;  %5794 = vmatpush.bf16.msrb.mxu2 %v9426_v39  ;;  %v9986_v26 = vor.u32 %v11799_v61, %v9983_v9  ;;  %v8390_v39 = vor.u32 %v11405_v33, %v8389_v31  ;;  %v10426_v61 = vor.u32 %v11909_v14, %v10423_v15  ;;  %v11889_v31 = vld [vmem:[#allocation6 + $0xff4] sm:$0xf]  ;;  %v10343_v33 = vld [vmem:[#allocation6 + $0x1018] sm:$0xf0]  ;;  %v10783_v14 = vld [vmem:[#allocation6 + $0x1388] sm:$0xf0] }
 0x15d   :  { %v8669_v15 = vld [vmem:[#allocation6 + $0x2d8] sm:$0xf] }
 0x15e   :  { %5819 = vmatpush.bf16.msra.mxu0 %v10106_v50 }
 0x160   :  { %5811 = vmatpush.bf16.msra.mxu3 %v9586_v40  ;;  %5795 = vmatpush.bf16.msrb.mxu2 %v9386_v51  ;;  %v11929_v40 = vld [vmem:[#allocation6 + $0x1134] sm:$0xf] }
 0x161   :  { %v10506_v51 = vor.u32 %v11929_v40, %v10503_v42  ;;  %v10346_v42 = vor.u32 %v11889_v31, %v10343_v33  ;;  %v11715_v31 = vld [vmem:[#allocation6 + $0xa7c] sm:$0xf0]  ;;  %v10189_v33 = vld [vmem:[#allocation6 + $0xeb8] sm:$0xf] }
 0x162   :  { %v1675_v62 = vpop.f32.mrf.mxu1  ;;  %v1714_v17 = vpop.f32.mrf.mxu0  ;;  %5820 = vmatpush.bf16.msra.mxu0 %v10066_v0  ;;  %v11775_v0 = vld [vmem:[#allocation6 + $0xc5c] sm:$0xf0] }
 0x163   :  { %5812 = vmatmul.bf16.vlgmr.msra.gmra.mxu3 %v12429_v13  ;;  %v1699_v29 = vpop.f32.mrf.mxu3  ;;  %v11525_v62 = vld [vmem:[#allocation6 + $0x48c] sm:$0xf0] }
 0x164   :  { %5856 = vmatpush.bf16.msrb.mxu3 %v8590_v43  ;;  %5796 = vmatpush.bf16.msrb.mxu2 %v9346_v63  ;;  %v11779_v43 = vld [vmem:[#allocation6 + $0xc84] sm:$0xf]  ;;  %v9869_v63 = vld [vmem:[#allocation6 + $0xc38] sm:$0xf] }
 0x165   :  { %5773 = vmatmul.bf16.vlgmr.msrb.gmra.mxu0 %v12413_v2  ;;  %v9870_v17 = vor.u32 %v11775_v0, %v9869_v63 }
 0x166   :  { %v1686_v57 = vpop.f32.mrf.mxu2  ;;  %5821 = vmatpush.bf16.msra.mxu0 %v10026_v19  ;;  %v9829_v19 = vld [vmem:[#allocation6 + $0xbe8] sm:$0xf] }
 0x167   :  { %v1687_v24 = vadd.f32 %v1686_v57, %v1674_v16  ;;  %v8870_v16 = vor.u32 %v11525_v62, %v8869_v60  ;;  %v11515_v57 = vld [vmem:[#allocation6 + $0x43c] sm:$0xf0]  ;;  %v11869_v60 = vld [vmem:[#allocation6 + $0xf54] sm:$0xf]  ;;  %v10263_v62 = vld [vmem:[#allocation6 + $0xf78] sm:$0xf0] }
 0x168   :  { %5857 = vmatpush.bf16.msrb.mxu3 %v8550_v54  ;;  %5797 = vmatpush.bf16.msrb.mxu2 %v9306_v18  ;;  %v9906_v54 = vor.u32 %v11779_v43, %v9903_v8  ;;  %v8829_v18 = vld [vmem:[#allocation6 + $0x418] sm:$0xf]  ;;  %v11879_v8 = vld [vmem:[#allocation6 + $0xfa4] sm:$0xf] }
 0x169   :  { %v1700_v34 = vadd.f32 %v1699_v29, %v1687_v24  ;;  %v8830_v22 = vor.u32 %v11515_v57, %v8829_v18  ;;  %v8789_v24 = vld [vmem:[#allocation6 + $0x3c8] sm:$0xf]  ;;  %v10386_v29 = vor.u32 %v11899_v20, %v10383_v59  ;;  %v10266_v18 = vor.u32 %v11869_v60, %v10263_v62 }
 0x16a   :  { %5822 = vmatpush.bf16.msra.mxu0 %v9986_v26  ;;  %v9789_v26 = vld [vmem:[#allocation6 + $0xb98] sm:$0xf]  ;;  %v9669_v57 = vld [vmem:[#allocation6 + $0xaa8] sm:$0xf] }
 0x16b   :  { %v1713_v37 = vadd.f32 %v1712_v48, %v1700_v34  ;;  %v8350_v48 = vor.u32 %v11395_v45, %v8349_v44  ;;  %v1701_v12 = vpop.f32.mrf.mxu3  ;;  %v10303_v44 = vld [vmem:[#allocation6 + $0xfc8] sm:$0xf0] }
 0x16c   :  { %5858 = vmatpush.bf16.msrb.mxu3 %v8510_v41  ;;  %5798 = vmatpush.bf16.msrb.mxu2 %v9266_v25  ;;  %v11505_v25 = vld [vmem:[#allocation6 + $0x3ec] sm:$0xf0]  ;;  %v10306_v12 = vor.u32 %v11879_v8, %v10303_v44  ;;  %v11979_v44 = vld [vmem:[#allocation6 + $0x12c4] sm:$0xf] }
 0x16d   :  { %v1774_v49 = vmax.f32 %v1713_v37, 0.0  ;;  %v8790_v34 = vor.u32 %v11505_v25, %v8789_v24  ;;  %v11495_v37 = vld [vmem:[#allocation6 + $0x39c] sm:$0xf0] }
 0x16e   :  { %v1688_v35 = vpop.f32.mrf.mxu2  ;;  %v1725_v36 = vpop.f32.mrf.mxu0  ;;  %5823 = vmatpush.bf16.msra.mxu0 %v9946_v38  ;;  %v9749_v38 = vld [vmem:[#allocation6 + $0xb48] sm:$0xf]  ;;  %v11615_v24 = vld [vmem:[#allocation6 + $0x75c] sm:$0xf0] }
 0x16f   :  { %v12442_v50 = vpack.c.bf16 %v1774_v49, %v1774_v49  ;;  %v1726_v9 = vadd.f32 %v1725_v36, %v339_v10  ;;  %v8749_v36 = vld [vmem:[#allocation6 + $0x378] sm:$0xf] }
 0x170   :  { %5859 = vmatpush.bf16.msrb.mxu3 %v8470_v32  ;;  %v11765_v32 = vld [vmem:[#allocation6 + $0xc0c] sm:$0xf0]  ;;  %v8750_v49 = vor.u32 %v11495_v37, %v8749_v36 }
 0x171   :  { %5734 = vmatmul.bf16.vlgmr.msra.gmra.mxu1 %v12442_v50  ;;  %v9830_v23 = vor.u32 %v11765_v32, %v9829_v19  ;;  %v11725_v19 = vld [vmem:[#allocation6 + $0xacc] sm:$0xf0]  ;;  %v11859_v32 = vld [vmem:[#allocation6 + $0xf04] sm:$0xf] }
 0x172   :  { %5830 = vmatpush.bf16.msra.mxu1 %v10506_v51  ;;  %5824 = vmatpush.bf16.msra.mxu0 %v9906_v54  ;;  %v10823_v51 = vld [vmem:[#allocation6 + $0x13d8] sm:$0xf0] }
 0x173   :  { %v1764_v21 = vpop.f32.mrf.mxu3  ;;  %v10826_v0 = vor.u32 %v12009_v47, %v10823_v51  ;;  %v10149_v47 = vld [vmem:[#allocation6 + $0xe68] sm:$0xf]  ;;  %v11845_v51 = vld [vmem:[#allocation6 + $0xe8c] sm:$0xf0] }
 0x174   :  { %5860 = vmatpush.bf16.msrb.mxu3 %v8430_v27  ;;  %v11755_v27 = vld [vmem:[#allocation6 + $0xbbc] sm:$0xf0] }
 0x175   :  { %5825 = vmatmul.bf16.vlgmr.msra.gmra.mxu0 %v12434_v3  ;;  %v9790_v35 = vor.u32 %v11755_v27, %v9789_v26  ;;  %v9670_v26 = vor.u32 %v11725_v19, %v9669_v57  ;;  %v8629_v27 = vld [vmem:[#allocation6 + $0x288] sm:$0xf]  ;;  %v11585_v19 = vld [vmem:[#allocation6 + $0x66c] sm:$0xf0] }
 0x176   :  { %v1727_v6 = vpop.f32.mrf.mxu0  ;;  %5869 = vmatpush.bf16.msrb.mxu0 %v8910_v56  ;;  %5831 = vmatpush.bf16.msra.mxu1 %v10466_v5  ;;  %v9709_v56 = vld [vmem:[#allocation6 + $0xaf8] sm:$0xf]  ;;  %v2428_v5 = vperm.slane %v12449_v4, 0  ;;  %v9109_v57 = vld [vmem:[#allocation6 + $0x648] sm:$0xf] }
 0x177   :  { %v11999_v6 = vld [vmem:[#allocation6 + $0x1364] sm:$0xf] }
 0x178   :  { %5861 = vmatpush.bf16.msrb.mxu3 %v8390_v39  ;;  %v11745_v39 = vld [vmem:[#allocation6 + $0xb6c] sm:$0xf0]  ;;  %v10786_v59 = vor.u32 %v11999_v6, %v10783_v14  ;;  %v11835_v14 = vld [vmem:[#allocation6 + $0xe3c] sm:$0xf0] }
 0x179   :  { %v9750_v46 = vor.u32 %v11745_v39, %v9749_v38 }
 0x17a   :  { %v1738_v41 = vpop.f32.mrf.mxu1  ;;  %5870 = vmatpush.bf16.msrb.mxu0 %v8870_v16  ;;  %5832 = vmatpush.bf16.msra.mxu1 %v10426_v61  ;;  %v11475_v16 = vld [vmem:[#allocation6 + $0x2fc] sm:$0xf0]  ;;  %v10223_v61 = vld [vmem:[#allocation6 + $0xf28] sm:$0xf0] }
 0x17b   :  { %v1739_v30 = vadd.f32 %v1738_v41, %v1726_v9  ;;  %v1766_v45 = vpop.f32.mrf.mxu3  ;;  %v11989_v9 = vld [vmem:[#allocation6 + $0x1314] sm:$0xf] }
 0x17c   :  { %5862 = vmatpush.bf16.msrb.mxu3 %v8350_v48  ;;  %v8709_v48 = vld [vmem:[#allocation6 + $0x328] sm:$0xf]  ;;  %v10703_v45 = vld [vmem:[#allocation6 + $0x12e8] sm:$0xf0] }
 0x17d   :  { %v8710_v41 = vor.u32 %v11485_v55, %v8709_v48  ;;  %v11450_v48 = vld [vmem:[#allocation6 + $0x23c] sm:$0xf]  ;;  %v8591_v55 = vld [vmem:[#allocation6 + $0x260] sm:$0xf0] }
 0x17e   :  { %5871 = vmatpush.bf16.msrb.mxu0 %v8830_v22  ;;  %5833 = vmatpush.bf16.msra.mxu1 %v10386_v29  ;;  %v10743_v22 = vld [vmem:[#allocation6 + $0x1338] sm:$0xf0]  ;;  %v9629_v29 = vld [vmem:[#allocation6 + $0xa58] sm:$0xf]  ;;  %v8594_v6 = vor.u32 %v11450_v48, %v8591_v55  ;;  %v8431_v55 = vld [vmem:[#allocation6 + $0x120] sm:$0xf0] }
 0x17f   :  { %v10746_v38 = vor.u32 %v11989_v9, %v10743_v22  ;;  %v10623_v9 = vld [vmem:[#allocation6 + $0x1248] sm:$0xf0]  ;;  %v9110_v22 = vor.u32 %v11585_v19, %v9109_v57  ;;  %v11410_v48 = vld [vmem:[#allocation6 + $0xfc] sm:$0xf]  ;;  %v9469_v19 = vld [vmem:[#allocation6 + $0x918] sm:$0xf] }
 0x180   :  { %5863 = vmatpush.bf16.msrb.mxu3 %v8310_v11  ;;  %v9710_v11 = vor.u32 %v11735_v53, %v9709_v56  ;;  %v10706_v56 = vor.u32 %v11979_v44, %v10703_v45  ;;  %v9149_v53 = vld [vmem:[#allocation6 + $0x698] sm:$0xf]  ;;  %v10543_v44 = vld [vmem:[#allocation6 + $0x11a8] sm:$0xf0] }
 0x181   :  { %5786 = vmatmul.bf16.vlgmr.msrb.gmra.mxu1 %v12418_v52  ;;  %v9549_v45 = vld [vmem:[#allocation6 + $0x9b8] sm:$0xf] }
 0x182   :  { %v1740_v28 = vpop.f32.mrf.mxu1  ;;  %5872 = vmatpush.bf16.msrb.mxu0 %v8790_v34  ;;  %5834 = vmatpush.bf16.msra.mxu1 %v10346_v42  ;;  %v11855_v34 = vld [vmem:[#allocation6 + $0xedc] sm:$0xf0]  ;;  %v11605_v42 = vld [vmem:[#allocation6 + $0x70c] sm:$0xf0] }
 0x183   :  { %5864 = vmatmul.bf16.vlgmr.msrb.gmra.mxu3 %v12411_v1  ;;  %v11465_v28 = vld [vmem:[#allocation6 + $0x2ac] sm:$0xf0]  ;;  %v10190_v8 = vor.u32 %v11855_v34, %v10189_v33  ;;  %v10029_v34 = vld [vmem:[#allocation6 + $0xd78] sm:$0xf] }
 0x184   :  { %5908 = vmatpush.bf16.msra.mxu3 %v9870_v17  ;;  %v8630_v39 = vor.u32 %v11465_v28, %v8629_v27  ;;  %v11575_v27 = vld [vmem:[#allocation6 + $0x61c] sm:$0xf0] }
 0x186   :  { %v1751_v40 = vpop.f32.mrf.mxu2  ;;  %5873 = vmatpush.bf16.msrb.mxu0 %v8750_v49  ;;  %5835 = vmatpush.bf16.msra.mxu1 %v10306_v12  ;;  %v9589_v49 = vld [vmem:[#allocation6 + $0xa08] sm:$0xf] }
 0x187   :  { %v1752_v43 = vadd.f32 %v1751_v40, %v1739_v30  ;;  %v10226_v30 = vor.u32 %v11859_v32, %v10223_v61  ;;  %v9189_v40 = vld [vmem:[#allocation6 + $0x6e8] sm:$0xf]  ;;  %v11959_v61 = vld [vmem:[#allocation6 + $0x1224] sm:$0xf] }
 0x188   :  { %5909 = vmatpush.bf16.msra.mxu3 %v9830_v23  ;;  %v9229_v23 = vld [vmem:[#allocation6 + $0x738] sm:$0xf] }
 0x189   :  { %v1765_v54 = vadd.f32 %v1764_v21, %v1752_v43  ;;  %v8670_v21 = vor.u32 %v11475_v16, %v8669_v15  ;;  %v9630_v43 = vor.u32 %v11715_v31, %v9629_v29  ;;  %v11440_v16 = vld [vmem:[#allocation6 + $0x1ec] sm:$0xf]  ;;  %v10583_v31 = vld [vmem:[#allocation6 + $0x11f8] sm:$0xf0] }
 0x18a   :  { %5874 = vmatpush.bf16.msrb.mxu0 %v8710_v41  ;;  %v5657_v20 = vpop.f32.mrf.mxu3  ;;  %5836 = vmatpush.bf16.msra.mxu1 %v10266_v18  ;;  %v10663_v41 = vld [vmem:[#allocation6 + $0x1298] sm:$0xf0] }
 0x18b   :  { %v1775_v58 = vmax.f32 %v1765_v54, 0.0  ;;  %v5658_v25 = vadd.f32 %v5657_v20, %v2428_v5  ;;  %v9190_v54 = vor.u32 %v11605_v42, %v9189_v40  ;;  %v9029_v40 = vld [vmem:[#allocation6 + $0x5a8] sm:$0xf]  ;;  %v11565_v42 = vld [vmem:[#allocation6 + $0x5cc] sm:$0xf0] }
 0x18c   :  { %5910 = vmatpush.bf16.msra.mxu3 %v9790_v35  ;;  %v9230_v35 = vor.u32 %v11615_v24, %v9229_v23  ;;  %v11430_v23 = vld [vmem:[#allocation6 + $0x19c] sm:$0xf]  ;;  %v8511_v24 = vld [vmem:[#allocation6 + $0x1c0] sm:$0xf0] }
 0x18d   :  { %v12452_v10 = vpack.c.bf16 %v1775_v58, %v1775_v58  ;;  %v11595_v58 = vld [vmem:[#allocation6 + $0x6bc] sm:$0xf0]  ;;  %v8514_v33 = vor.u32 %v11430_v23, %v8511_v24  ;;  %v11390_v23 = vld [vmem:[#allocation6 + $0x5c] sm:$0xf]  ;;  %v8351_v24 = vld [vmem:[#allocation6 + $0x80] sm:$0xf0] }
 0x18e   :  { %v5670_v63 = vpop.f32.mrf.mxu0  ;;  %v1753_v17 = vpop.f32.mrf.mxu2  ;;  %5875 = vmatpush.bf16.msrb.mxu0 %v8670_v21  ;;  %5837 = vmatpush.bf16.msra.mxu1 %v10226_v30  ;;  %v9150_v15 = vor.u32 %v11595_v58, %v9149_v53  ;;  %v11825_v21 = vld [vmem:[#allocation6 + $0xdec] sm:$0xf0]  ;;  %v11949_v30 = vld [vmem:[#allocation6 + $0x11d4] sm:$0xf]  ;;  %v11555_v53 = vld [vmem:[#allocation6 + $0x57c] sm:$0xf0] }
 0x18f   :  { %5747 = vmatmul.bf16.vlgmr.msra.gmra.mxu2 %v12452_v10  ;;  %v5671_v36 = vadd.f32 %v5670_v63, %v5658_v25  ;;  %v10150_v63 = vor.u32 %v11845_v51, %v10149_v47  ;;  %v8551_v17 = vld [vmem:[#allocation6 + $0x210] sm:$0xf0]  ;;  %v10626_v25 = vor.u32 %v11959_v61, %v10623_v9  ;;  %v9989_v47 = vld [vmem:[#allocation6 + $0xd28] sm:$0xf]  ;;  %v11805_v51 = vld [vmem:[#allocation6 + $0xd4c] sm:$0xf0] }
 0x190   :  { %5911 = vmatpush.bf16.msra.mxu3 %v9750_v46  ;;  %5843 = vmatpush.bf16.msra.mxu2 %v10826_v0  ;;  %v11705_v46 = vld [vmem:[#allocation6 + $0xa2c] sm:$0xf0]  ;;  %v11969_v0 = vld [vmem:[#allocation6 + $0x1274] sm:$0xf]  ;;  %v8554_v20 = vor.u32 %v11440_v16, %v8551_v17  ;;  %v8949_v16 = vld [vmem:[#allocation6 + $0x508] sm:$0xf] }
 0x191   :  { %v9590_v62 = vor.u32 %v11705_v46, %v9589_v49  ;;  %5838 = vmatmul.bf16.vlgmr.msra.gmra.mxu1 %v12442_v50  ;;  %v10666_v18 = vor.u32 %v11969_v0, %v10663_v41  ;;  %v11695_v46 = vld [vmem:[#allocation6 + $0x9dc] sm:$0xf0]  ;;  %v11685_v0 = vld [vmem:[#allocation6 + $0x98c] sm:$0xf0]  ;;  %v9949_v41 = vld [vmem:[#allocation6 + $0xcd8] sm:$0xf] }
 0x192   :  { %5882 = vmatpush.bf16.msrb.mxu1 %v9230_v35  ;;  %5876 = vmatpush.bf16.msrb.mxu0 %v8630_v39  ;;  %v5659_v12 = vpop.f32.mrf.mxu3  ;;  %v11815_v35 = vld [vmem:[#allocation6 + $0xd9c] sm:$0xf0]  ;;  %v10586_v39 = vor.u32 %v11949_v30, %v10583_v31  ;;  %v9550_v58 = vor.u32 %v11695_v46, %v9549_v45  ;;  %v11545_v17 = vld [vmem:[#allocation6 + $0x52c] sm:$0xf0]  ;;  %v10469_v30 = vld [vmem:[#allocation6 + $0x10e8] sm:$0xf] }
 0x193   :  { %v11935_v61 = vld [vmem:[#allocation6 + $0x115c] sm:$0xf0]  ;;  %v11925_v31 = vld [vmem:[#allocation6 + $0x110c] sm:$0xf0]  ;;  %v10429_v45 = vld [vmem:[#allocation6 + $0x1098] sm:$0xf] }
 0x194   :  { %5912 = vmatpush.bf16.msra.mxu3 %v9710_v11  ;;  %5844 = vmatpush.bf16.msra.mxu2 %v10786_v59  ;;  %v10109_v11 = vld [vmem:[#allocation6 + $0xe18] sm:$0xf]  ;;  %v10069_v59 = vld [vmem:[#allocation6 + $0xdc8] sm:$0xf] }
 0x195   :  { %5877 = vmatmul.bf16.vlgmr.msrb.gmra.mxu0 %v12413_v2  ;;  %v10110_v32 = vor.u32 %v11835_v14, %v10109_v11  ;;  %v10070_v29 = vor.u32 %v11825_v21, %v10069_v59  ;;  %v11400_v14 = vld [vmem:[#allocation6 + $0xac] sm:$0xf]  ;;  %v9909_v59 = vld [vmem:[#allocation6 + $0xc88] sm:$0xf]  ;;  %v11785_v21 = vld [vmem:[#allocation6 + $0xcac] sm:$0xf0] }
 0x196   :  { %v5672_v37 = vpop.f32.mrf.mxu0  ;;  %5921 = vmatpush.bf16.msra.mxu0 %v10190_v8  ;;  %5883 = vmatpush.bf16.msrb.mxu1 %v9190_v54  ;;  %v11939_v8 = vld [vmem:[#allocation6 + $0x1184] sm:$0xf]  ;;  %v9030_v54 = vor.u32 %v11565_v42, %v9029_v40  ;;  %v10470_v40 = vor.u32 %v11925_v31, %v10469_v30  ;;  %v8871_v42 = vld [vmem:[#allocation6 + $0x490] sm:$0xf0]  ;;  %v11885_v30 = vld [vmem:[#allocation6 + $0xfcc] sm:$0xf0] }
 0x197   :  { %v11420_v37 = vld [vmem:[#allocation6 + $0x14c] sm:$0xf]  ;;  %v10546_v12 = vor.u32 %v11939_v8, %v10543_v44  ;;  %v9871_v8 = vld [vmem:[#allocation6 + $0xc60] sm:$0xf0]  ;;  %v9269_v31 = vld [vmem:[#allocation6 + $0x788] sm:$0xf] }
 0x198   :  { %5913 = vmatpush.bf16.msra.mxu3 %v9670_v26  ;;  %5845 = vmatpush.bf16.msra.mxu2 %v10746_v38  ;;  %v9069_v26 = vld [vmem:[#allocation6 + $0x5f8] sm:$0xf]  ;;  %v8471_v38 = vld [vmem:[#allocation6 + $0x170] sm:$0xf0] }
 0x199   :  { %v8474_v49 = vor.u32 %v11420_v37, %v8471_v38  ;;  %v11380_v37 = vld [vmem:[#allocation6 + $0xc] sm:$0xf]  ;;  %v8311_v38 = vld [vmem:[#allocation6 + $0x30] sm:$0xf0] }
 0x19a   :  { %v5683_v60 = vpop.f32.mrf.mxu1  ;;  %5922 = vmatpush.bf16.msra.mxu0 %v10150_v63  ;;  %5884 = vmatpush.bf16.msrb.mxu1 %v9150_v15  ;;  %v8434_v63 = vor.u32 %v11410_v48, %v8431_v55  ;;  %v8391_v15 = vld [vmem:[#allocation6 + $0xd0] sm:$0xf0]  ;;  %v8314_v46 = vor.u32 %v11380_v37, %v8311_v38  ;;  %v11510_v55 = vld [vmem:[#allocation6 + $0x41c] sm:$0xf]  ;;  %v12015_v37 = vld [vmem:[#allocation6 + $0x13dc] sm:$0xf0] }
 0x19b   :  { %v12455_v5 = vadd.f32 %v5683_v60, %v5671_v36  ;;  %v9070_v36 = vor.u32 %v11575_v27, %v9069_v26  ;;  %v9990_v60 = vor.u32 %v11805_v51, %v9989_v47  ;;  %v8394_v9 = vor.u32 %v11400_v14, %v8391_v15  ;;  %v11530_v26 = vld [vmem:[#allocation6 + $0x4bc] sm:$0xf]  ;;  %v8911_v27 = vld [vmem:[#allocation6 + $0x4e0] sm:$0xf0]  ;;  %v9389_v47 = vld [vmem:[#allocation6 + $0x878] sm:$0xf] }
 0x19c   :  { %5914 = vmatpush.bf16.msra.mxu3 %v9630_v43  ;;  %5846 = vmatpush.bf16.msra.mxu2 %v10706_v56  ;;  %v10030_v43 = vor.u32 %v11815_v35, %v10029_v34  ;;  %v8989_v56 = vld [vmem:[#allocation6 + $0x558] sm:$0xf]  ;;  %v9429_v34 = vld [vmem:[#allocation6 + $0x8c8] sm:$0xf]  ;;  %v11665_v35 = vld [vmem:[#allocation6 + $0x8ec] sm:$0xf0] }
 0x19d   :  { %v8990_v11 = vor.u32 %v11555_v53, %v8989_v56  ;;  %v9430_v44 = vor.u32 %v11665_v35, %v9429_v34  ;;  %v11655_v51 = vld [vmem:[#allocation6 + $0x89c] sm:$0xf0]  ;;  %v8831_v53 = vld [vmem:[#allocation6 + $0x440] sm:$0xf0]  ;;  %v11480_v38 = vld [vmem:[#allocation6 + $0x32c] sm:$0xf] }
 0x19e   :  { %5923 = vmatpush.bf16.msra.mxu0 %v10110_v32  ;;  %5885 = vmatpush.bf16.msrb.mxu1 %v9110_v22  ;;  %v10509_v32 = vld [vmem:[#allocation6 + $0x1138] sm:$0xf]  ;;  %v8950_v22 = vor.u32 %v11545_v17, %v8949_v16  ;;  %v8834_v14 = vor.u32 %v11510_v55, %v8831_v53  ;;  %v11500_v16 = vld [vmem:[#allocation6 + $0x3cc] sm:$0xf]  ;;  %v11470_v55 = vld [vmem:[#allocation6 + $0x2dc] sm:$0xf] }
 0x19f   :  { %5799 = vmatmul.bf16.vlgmr.msrb.gmra.mxu2 %v12425_v7  ;;  %v8671_v53 = vld [vmem:[#allocation6 + $0x300] sm:$0xf0] }
 0x1a0   :  { %5915 = vmatpush.bf16.msra.mxu3 %v9590_v62  ;;  %5847 = vmatpush.bf16.msra.mxu2 %v10666_v18  ;;  %v9509_v62 = vld [vmem:[#allocation6 + $0x968] sm:$0xf] }
 0x1a1   :  { %v9510_v18 = vor.u32 %v11685_v0, %v9509_v62  ;;  %v10389_v0 = vld [vmem:[#allocation6 + $0x1048] sm:$0xf] }
 0x1a2   :  { %v5685_v28 = vpop.f32.mrf.mxu1  ;;  %5924 = vmatpush.bf16.msra.mxu0 %v10070_v29  ;;  %5886 = vmatpush.bf16.msrb.mxu1 %v9070_v36  ;;  %v9910_v29 = vor.u32 %v11785_v21, %v9909_v59  ;;  %v8914_v36 = vor.u32 %v11530_v26, %v8911_v27  ;;  %v11740_v26 = vld [vmem:[#allocation6 + $0xb4c] sm:$0xf]  ;;  %v9751_v27 = vld [vmem:[#allocation6 + $0xb70] sm:$0xf0] }
 0x1a3   :  { %5916 = vmatmul.bf16.vlgmr.msra.gmra.mxu3 %v12429_v13  ;;  %v9754_v35 = vor.u32 %v11740_v26, %v9751_v27  ;;  %v11985_v26 = vld [vmem:[#allocation6 + $0x12ec] sm:$0xf0] }
 0x1a4   :  { %5960 = vmatpush.bf16.msrb.mxu3 %v8594_v6  ;;  %5848 = vmatpush.bf16.msra.mxu2 %v10626_v25  ;;  %v11795_v6 = vld [vmem:[#allocation6 + $0xcfc] sm:$0xf0]  ;;  %v10510_v25 = vor.u32 %v11935_v61, %v10509_v32  ;;  %v10349_v32 = vld [vmem:[#allocation6 + $0xff8] sm:$0xf] }
 0x1a5   :  { %v9950_v57 = vor.u32 %v11795_v6, %v9949_v41  ;;  %v11905_v41 = vld [vmem:[#allocation6 + $0x106c] sm:$0xf0]  ;;  %v9349_v6 = vld [vmem:[#allocation6 + $0x828] sm:$0xf]  ;;  %v11895_v61 = vld [vmem:[#allocation6 + $0x101c] sm:$0xf0] }
 0x1a6   :  { %5925 = vmatpush.bf16.msra.mxu0 %v10030_v43  ;;  %5887 = vmatpush.bf16.msrb.mxu1 %v9030_v54  ;;  %v11770_v43 = vld [vmem:[#allocation6 + $0xc3c] sm:$0xf]  ;;  %v10390_v17 = vor.u32 %v11905_v41, %v10389_v0  ;;  %v11865_v0 = vld [vmem:[#allocation6 + $0xf2c] sm:$0xf0] }
 0x1a7   :  { %v9874_v48 = vor.u32 %v11770_v43, %v9871_v8  ;;  %v9711_v43 = vld [vmem:[#allocation6 + $0xb20] sm:$0xf0] }
 0x1a8   :  { %5961 = vmatpush.bf16.msrb.mxu3 %v8554_v20  ;;  %5849 = vmatpush.bf16.msra.mxu2 %v10586_v39  ;;  %v11675_v20 = vld [vmem:[#allocation6 + $0x93c] sm:$0xf0]  ;;  %v11520_v39 = vld [vmem:[#allocation6 + $0x46c] sm:$0xf] }
 0x1a9   :  { %v9470_v28 = vor.u32 %v11675_v20, %v9469_v19  ;;  %v8874_v54 = vor.u32 %v11520_v39, %v8871_v42  ;;  %v9791_v19 = vld [vmem:[#allocation6 + $0xbc0] sm:$0xf0]  ;;  %v11635_v20 = vld [vmem:[#allocation6 + $0x7fc] sm:$0xf0]  ;;  %v11730_v42 = vld [vmem:[#allocation6 + $0xafc] sm:$0xf] }
 0x1aa   :  { %5926 = vmatpush.bf16.msra.mxu0 %v9990_v60  ;;  %5888 = vmatpush.bf16.msrb.mxu1 %v8990_v11  ;;  %v9831_v60 = vld [vmem:[#allocation6 + $0xc10] sm:$0xf0]  ;;  %v11645_v11 = vld [vmem:[#allocation6 + $0x84c] sm:$0xf0] }
 0x1ac   :  { %5962 = vmatpush.bf16.msrb.mxu3 %v8514_v33  ;;  %5850 = vmatpush.bf16.msra.mxu2 %v10546_v12  ;;  %v8354_v33 = vor.u32 %v11390_v23, %v8351_v24  ;;  %v10350_v24 = vor.u32 %v11895_v61, %v10349_v32  ;;  %v11850_v61 = vld [vmem:[#allocation6 + $0xebc] sm:$0xf] }
 0x1ae   :  { %5927 = vmatpush.bf16.msra.mxu0 %v9950_v57  ;;  %5889 = vmatpush.bf16.msrb.mxu1 %v8950_v22  ;;  %v5696_v12 = vpop.f32.mrf.mxu2  ;;  %v11750_v57 = vld [vmem:[#allocation6 + $0xb9c] sm:$0xf] }
 0x1af   :  { %5851 = vmatmul.bf16.vlgmr.msra.gmra.mxu2 %v12452_v10  ;;  %v12465_v62 = vadd.f32 %v5696_v12, %v12455_v5  ;;  %v9350_v5 = vor.u32 %v11645_v11, %v9349_v6  ;;  %v9794_v21 = vor.u32 %v11750_v57, %v9791_v19  ;;  %v11490_v22 = vld [vmem:[#allocation6 + $0x37c] sm:$0xf]  ;;  %v9231_v11 = vld [vmem:[#allocation6 + $0x760] sm:$0xf0]  ;;  %v8631_v57 = vld [vmem:[#allocation6 + $0x2b0] sm:$0xf0] }
 0x1b0   :  { %5963 = vmatpush.bf16.msrb.mxu3 %v8474_v49  ;;  %5895 = vmatpush.bf16.msrb.mxu2 %v9550_v58  ;;  %v11915_v49 = vld [vmem:[#allocation6 + $0x10bc] sm:$0xf0]  ;;  %v11760_v58 = vld [vmem:[#allocation6 + $0xbec] sm:$0xf]  ;;  %v11610_v6 = vld [vmem:[#allocation6 + $0x73c] sm:$0xf] }
 0x1b1   :  { %5890 = vmatmul.bf16.vlgmr.msrb.gmra.mxu1 %v12418_v52  ;;  %v10430_v56 = vor.u32 %v11915_v49, %v10429_v45  ;;  %v9834_v15 = vor.u32 %v11760_v58, %v9831_v60  ;;  %v11875_v45 = vld [vmem:[#allocation6 + $0xf7c] sm:$0xf0]  ;;  %v11720_v58 = vld [vmem:[#allocation6 + $0xaac] sm:$0xf]  ;;  %v9671_v60 = vld [vmem:[#allocation6 + $0xad0] sm:$0xf0]  ;;  %v9234_v32 = vor.u32 %v11610_v6, %v9231_v11 }
 0x1b2   :  { %5934 = vmatpush.bf16.msra.mxu1 %v10510_v25  ;;  %5928 = vmatpush.bf16.msra.mxu0 %v9910_v29  ;;  %v8751_v25 = vld [vmem:[#allocation6 + $0x3a0] sm:$0xf0]  ;;  %v10309_v29 = vld [vmem:[#allocation6 + $0xfa8] sm:$0xf]  ;;  %v11710_v19 = vld [vmem:[#allocation6 + $0xa5c] sm:$0xf] }
 0x1b3   :  { %v8754_v34 = vor.u32 %v11490_v22, %v8751_v25  ;;  %v10310_v39 = vor.u32 %v11885_v30, %v10309_v29  ;;  %v10709_v25 = vld [vmem:[#allocation6 + $0x12c8] sm:$0xf]  ;;  %v9591_v29 = vld [vmem:[#allocation6 + $0xa30] sm:$0xf0]  ;;  %v11840_v30 = vld [vmem:[#allocation6 + $0xe6c] sm:$0xf] }
 0x1b4   :  { %5964 = vmatpush.bf16.msrb.mxu3 %v8434_v63  ;;  %5896 = vmatpush.bf16.msrb.mxu2 %v9510_v18  ;;  %v9390_v63 = vor.u32 %v11655_v51, %v9389_v47  ;;  %v8791_v18 = vld [vmem:[#allocation6 + $0x3f0] sm:$0xf0]  ;;  %v9714_v51 = vor.u32 %v11730_v42, %v9711_v43  ;;  %v11975_v42 = vld [vmem:[#allocation6 + $0x129c] sm:$0xf0]  ;;  %v11436_v11 = vld [vmem:[#allocation6 + $0x1c4] sm:$0xf0] }
 0x1b5   :  { %5929 = vmatmul.bf16.vlgmr.msra.gmra.mxu0 %v12434_v3  ;;  %v8794_v59 = vor.u32 %v11500_v16, %v8791_v18  ;;  %v10749_v16 = vld [vmem:[#allocation6 + $0x1318] sm:$0xf]  ;;  %v8517_v6 = vld [vmem:[#allocation6 + $0x1a0] sm:$0xf] }
 0x1b6   :  { %5973 = vmatpush.bf16.msrb.mxu0 %v8914_v36  ;;  %5935 = vmatpush.bf16.msra.mxu1 %v10470_v40  ;;  %v5698_v23 = vpop.f32.mrf.mxu2  ;;  %v10829_v36 = vld [vmem:[#allocation6 + $0x13b8] sm:$0xf]  ;;  %v8711_v40 = vld [vmem:[#allocation6 + $0x350] sm:$0xf0] }
 0x1b7   :  { %v10830_v49 = vor.u32 %v12015_v37, %v10829_v36  ;;  %v8714_v47 = vor.u32 %v11480_v38, %v8711_v40  ;;  %v10710_v36 = vor.u32 %v11985_v26, %v10709_v25  ;;  %v11590_v37 = vld [vmem:[#allocation6 + $0x69c] sm:$0xf]  ;;  %v9151_v38 = vld [vmem:[#allocation6 + $0x6c0] sm:$0xf0]  ;;  %v10669_v40 = vld [vmem:[#allocation6 + $0x1278] sm:$0xf] }
 0x1b8   :  { %5965 = vmatpush.bf16.msrb.mxu3 %v8394_v9  ;;  %5897 = vmatpush.bf16.msrb.mxu2 %v9470_v28  ;;  %v9309_v9 = vld [vmem:[#allocation6 + $0x7d8] sm:$0xf]  ;;  %v10549_v25 = vld [vmem:[#allocation6 + $0x1188] sm:$0xf]  ;;  %v11945_v26 = vld [vmem:[#allocation6 + $0x11ac] sm:$0xf0] }
 0x1b9   :  { %v9310_v28 = vor.u32 %v11635_v20, %v9309_v9  ;;  %v10191_v9 = vld [vmem:[#allocation6 + $0xee0] sm:$0xf0] }
 0x1ba   :  { %5974 = vmatpush.bf16.msrb.mxu0 %v8874_v54  ;;  %5936 = vmatpush.bf16.msra.mxu1 %v10430_v56  ;;  %v10789_v54 = vld [vmem:[#allocation6 + $0x1368] sm:$0xf]  ;;  %v10194_v27 = vor.u32 %v11850_v61, %v10191_v9  ;;  %v10031_v9 = vld [vmem:[#allocation6 + $0xda0] sm:$0xf0] }
 0x1bc   :  { %5966 = vmatpush.bf16.msrb.mxu3 %v8354_v33  ;;  %5898 = vmatpush.bf16.msrb.mxu2 %v9430_v44  ;;  %v11625_v33 = vld [vmem:[#allocation6 + $0x7ac] sm:$0xf0]  ;;  %v10269_v44 = vld [vmem:[#allocation6 + $0xf58] sm:$0xf] }
 0x1bd   :  { %v9270_v8 = vor.u32 %v11625_v33, %v9269_v31  ;;  %v10270_v56 = vor.u32 %v11875_v45, %v10269_v44  ;;  %v10151_v33 = vld [vmem:[#allocation6 + $0xe90] sm:$0xf0]  ;;  %v11830_v44 = vld [vmem:[#allocation6 + $0xe1c] sm:$0xf]  ;;  %v9154_v45 = vor.u32 %v11590_v37, %v9151_v38  ;;  %v8991_v38 = vld [vmem:[#allocation6 + $0x580] sm:$0xf0] }
 0x1be   :  { %5975 = vmatpush.bf16.msrb.mxu0 %v8834_v14  ;;  %5937 = vmatpush.bf16.msra.mxu1 %v10390_v17  ;;  %v8674_v14 = vor.u32 %v11470_v55, %v8671_v53  ;;  %v11995_v17 = vld [vmem:[#allocation6 + $0x133c] sm:$0xf0]  ;;  %v10154_v43 = vor.u32 %v11840_v30, %v10151_v33  ;;  %v11965_v53 = vld [vmem:[#allocation6 + $0x124c] sm:$0xf0]  ;;  %v11800_v30 = vld [vmem:[#allocation6 + $0xd2c] sm:$0xf] }
 0x1bf   :  { %v10750_v20 = vor.u32 %v11995_v17, %v10749_v16  ;;  %v9071_v16 = vld [vmem:[#allocation6 + $0x620] sm:$0xf0]  ;;  %v9991_v33 = vld [vmem:[#allocation6 + $0xd50] sm:$0xf0]  ;;  %v11550_v37 = vld [vmem:[#allocation6 + $0x55c] sm:$0xf] }
 0x1c0   :  { %5967 = vmatpush.bf16.msrb.mxu3 %v8314_v46  ;;  %5899 = vmatpush.bf16.msrb.mxu2 %v9390_v63  ;;  %v10229_v63 = vld [vmem:[#allocation6 + $0xf08] sm:$0xf] }
 0x1c1   :  { %v10230_v18 = vor.u32 %v11865_v0, %v10229_v63  ;;  %v11820_v63 = vld [vmem:[#allocation6 + $0xdcc] sm:$0xf] }
 0x1c2   :  { %5976 = vmatpush.bf16.msrb.mxu0 %v8794_v59  ;;  %5938 = vmatpush.bf16.msra.mxu1 %v10350_v24  ;;  %v5709_v46 = vpop.f32.mrf.mxu3  ;;  %v11600_v59 = vld [vmem:[#allocation6 + $0x6ec] sm:$0xf] }
 0x1c3   :  { %5968 = vmatmul.bf16.vlgmr.msrb.gmra.mxu3 %v12411_v1  ;;  %v12469_v12 = vadd.f32 %v5709_v46, %v12465_v62  ;;  %v11460_v62 = vld [vmem:[#allocation6 + $0x28c] sm:$0xf]  ;;  %v8557_v46 = vld [vmem:[#allocation6 + $0x1f0] sm:$0xf] }
 0x1c4   :  { %6012 = vmatpush.bf16.msra.mxu3 %v9874_v48  ;;  %5900 = vmatpush.bf16.msrb.mxu2 %v9350_v5  ;;  %v12005_v48 = vld [vmem:[#allocation6 + $0x138c] sm:$0xf0]  ;;  %v9631_v5 = vld [vmem:[#allocation6 + $0xa80] sm:$0xf0]  ;;  %v8634_v23 = vor.u32 %v11460_v62, %v8631_v57  ;;  %v10589_v62 = vld [vmem:[#allocation6 + $0x11d8] sm:$0xf] }
 0x1c5   :  { %v10790_v41 = vor.u32 %v12005_v48, %v10789_v54  ;;  %v9634_v24 = vor.u32 %v11710_v19, %v9631_v5  ;;  %v11580_v54 = vld [vmem:[#allocation6 + $0x64c] sm:$0xf]  ;;  %v9111_v48 = vld [vmem:[#allocation6 + $0x670] sm:$0xf0]  ;;  %v8518_v5 = vor.u32 %v11436_v11, %v8517_v6  ;;  %v11670_v6 = vld [vmem:[#allocation6 + $0x91c] sm:$0xf] }
 0x1c6   :  { %5977 = vmatpush.bf16.msrb.mxu0 %v8754_v34  ;;  %5939 = vmatpush.bf16.msra.mxu1 %v10310_v39  ;;  %v8597_v34 = vld [vmem:[#allocation6 + $0x240] sm:$0xf]  ;;  %v9114_v0 = vor.u32 %v11580_v54, %v9111_v48  ;;  %v2429_v54 = vperm.slane %v12449_v4, 1  ;;  %v11540_v48 = vld [vmem:[#allocation6 + $0x50c] sm:$0xf] }
 0x1c7   :  { %v9471_v11 = vld [vmem:[#allocation6 + $0x940] sm:$0xf0] }
 0x1c8   :  { %6013 = vmatpush.bf16.msra.mxu3 %v9834_v15  ;;  %5901 = vmatpush.bf16.msrb.mxu2 %v9310_v28  ;;  %v9674_v15 = vor.u32 %v11720_v58, %v9671_v60  ;;  %v11700_v28 = vld [vmem:[#allocation6 + $0xa0c] sm:$0xf] }
 0x1c9   :  { %v9594_v39 = vor.u32 %v11700_v28, %v9591_v29  ;;  %v11690_v28 = vld [vmem:[#allocation6 + $0x9bc] sm:$0xf]  ;;  %v9551_v29 = vld [vmem:[#allocation6 + $0x9e0] sm:$0xf0] }
 0x1ca   :  { %5978 = vmatpush.bf16.msrb.mxu0 %v8714_v47  ;;  %5940 = vmatpush.bf16.msra.mxu1 %v10270_v56  ;;  %v5711_v22 = vpop.f32.mrf.mxu3  ;;  %v11446_v47 = vld [vmem:[#allocation6 + $0x214] sm:$0xf0]  ;;  %v10629_v56 = vld [vmem:[#allocation6 + $0x1228] sm:$0xf] }
 0x1cb   :  { %v8558_v60 = vor.u32 %v11446_v47, %v8557_v46  ;;  %v11560_v22 = vld [vmem:[#allocation6 + $0x5ac] sm:$0xf]  ;;  %v9951_v46 = vld [vmem:[#allocation6 + $0xd00] sm:$0xf0]  ;;  %v8397_v47 = vld [vmem:[#allocation6 + $0xb0] sm:$0xf] }
 0x1cc   :  { %6014 = vmatpush.bf16.msra.mxu3 %v9794_v21  ;;  %5902 = vmatpush.bf16.msrb.mxu2 %v9270_v8  ;;  %v9191_v21 = vld [vmem:[#allocation6 + $0x710] sm:$0xf0] }
 0x1cd   :  { %v9194_v31 = vor.u32 %v11600_v59, %v9191_v21  ;;  %v11426_v59 = vld [vmem:[#allocation6 + $0x174] sm:$0xf0] }
 0x1ce   :  { %5979 = vmatpush.bf16.msrb.mxu0 %v8674_v14  ;;  %5941 = vmatpush.bf16.msra.mxu1 %v10230_v18  ;;  %v10630_v14 = vor.u32 %v11965_v53, %v10629_v56  ;;  %v11955_v18 = vld [vmem:[#allocation6 + $0x11fc] sm:$0xf0]  ;;  %v8951_v56 = vld [vmem:[#allocation6 + $0x530] sm:$0xf0] }
 0x1cf   :  { %5903 = vmatmul.bf16.vlgmr.msrb.gmra.mxu2 %v12425_v7  ;;  %v10590_v21 = vor.u32 %v11955_v18, %v10589_v62  ;;  %v8954_v4 = vor.u32 %v11540_v48, %v8951_v56  ;;  %v9351_v48 = vld [vmem:[#allocation6 + $0x850] sm:$0xf0] }
 0x1d0   :  { %6015 = vmatpush.bf16.msra.mxu3 %v9754_v35  ;;  %5947 = vmatpush.bf16.msra.mxu2 %v10830_v49  ;;  %v11456_v35 = vld [vmem:[#allocation6 + $0x264] sm:$0xf0]  ;;  %v10111_v49 = vld [vmem:[#allocation6 + $0xe40] sm:$0xf0] }
 0x1d1   :  { %5942 = vmatmul.bf16.vlgmr.msra.gmra.mxu1 %v12442_v50  ;;  %v8598_v8 = vor.u32 %v11456_v35, %v8597_v34  ;;  %v10114_v58 = vor.u32 %v11830_v44, %v10111_v49  ;;  %v8437_v34 = vld [vmem:[#allocation6 + $0x100] sm:$0xf]  ;;  %v11416_v35 = vld [vmem:[#allocation6 + $0x124] sm:$0xf0]  ;;  %v9511_v44 = vld [vmem:[#allocation6 + $0x990] sm:$0xf0]  ;;  %v8994_v49 = vor.u32 %v11550_v37, %v8991_v38 }
 0x1d2   :  { %5986 = vmatpush.bf16.msrb.mxu1 %v9234_v32  ;;  %5980 = vmatpush.bf16.msrb.mxu0 %v8634_v23  ;;  %v12474_v55 = vpop.f32.mrf.mxu3  ;;  %v5722_v17 = vpop.f32.mrf.mxu0  ;;  %v11810_v32 = vld [vmem:[#allocation6 + $0xd7c] sm:$0xf]  ;;  %v9031_v23 = vld [vmem:[#allocation6 + $0x5d0] sm:$0xf0]  ;;  %v9391_v38 = vld [vmem:[#allocation6 + $0x8a0] sm:$0xf0] }
 0x1d3   :  { %v12478_v57 = vadd.f32 %v5722_v17, %v12469_v12  ;;  %v11396_v17 = vld [vmem:[#allocation6 + $0x84] sm:$0xf0]  ;;  %v5762_v62 = vadd.f32 %v12474_v55, %v2429_v54  ;;  %v11386_v55 = vld [vmem:[#allocation6 + $0x34] sm:$0xf0]  ;;  %v11650_v37 = vld [vmem:[#allocation6 + $0x87c] sm:$0xf] }
 0x1d4   :  { %6016 = vmatpush.bf16.msra.mxu3 %v9714_v51  ;;  %5948 = vmatpush.bf16.msra.mxu2 %v10790_v41  ;;  %v10670_v51 = vor.u32 %v11975_v42, %v10669_v40  ;;  %v10071_v41 = vld [vmem:[#allocation6 + $0xdf0] sm:$0xf0]  ;;  %v9554_v40 = vor.u32 %v11690_v28, %v9551_v29  ;;  %v9994_v42 = vor.u32 %v11800_v30, %v9991_v33  ;;  %v11526_v28 = vld [vmem:[#allocation6 + $0x494] sm:$0xf0]  ;;  %v9877_v29 = vld [vmem:[#allocation6 + $0xc40] sm:$0xf] }
 0x1d5   :  { %5981 = vmatmul.bf16.vlgmr.msrb.gmra.mxu0 %v12413_v2  ;;  %v10074_v19 = vor.u32 %v11820_v63, %v10071_v41  ;;  %v11776_v30 = vld [vmem:[#allocation6 + $0xc64] sm:$0xf0]  ;;  %v11910_v33 = vld [vmem:[#allocation6 + $0x109c] sm:$0xf]  ;;  %v11640_v54 = vld [vmem:[#allocation6 + $0x82c] sm:$0xf] }
 0x1d6   :  { %6025 = vmatpush.bf16.msra.mxu0 %v10194_v27  ;;  %5987 = vmatpush.bf16.msrb.mxu1 %v9194_v31  ;;  %v10034_v27 = vor.u32 %v11810_v32, %v10031_v9  ;;  %v9034_v31 = vor.u32 %v11560_v22, %v9031_v23  ;;  %v11920_v9 = vld [vmem:[#allocation6 + $0x10ec] sm:$0xf] }
 0x1d7   :  { %v11660_v23 = vld [vmem:[#allocation6 + $0x8cc] sm:$0xf] }
 0x1d8   :  { %6017 = vmatpush.bf16.msra.mxu3 %v9674_v15  ;;  %5949 = vmatpush.bf16.msra.mxu2 %v10750_v20  ;;  %v11570_v15 = vld [vmem:[#allocation6 + $0x5fc] sm:$0xf]  ;;  %v8477_v20 = vld [vmem:[#allocation6 + $0x150] sm:$0xf] }
 0x1d9   :  { %v9074_v61 = vor.u32 %v11570_v15, %v9071_v16  ;;  %v8478_v12 = vor.u32 %v11426_v59, %v8477_v20  ;;  %v9911_v15 = vld [vmem:[#allocation6 + $0xcb0] sm:$0xf0]  ;;  %v8357_v16 = vld [vmem:[#allocation6 + $0x60] sm:$0xf] }
 0x1da   :  { %6026 = vmatpush.bf16.msra.mxu0 %v10154_v43  ;;  %5988 = vmatpush.bf16.msrb.mxu1 %v9154_v45  ;;  %v8438_v43 = vor.u32 %v11416_v35, %v8437_v34  ;;  %v11790_v45 = vld [vmem:[#allocation6 + $0xcdc] sm:$0xf]  ;;  %v10471_v20 = vld [vmem:[#allocation6 + $0x1110] sm:$0xf0]  ;;  %v8358_v22 = vor.u32 %v11396_v17, %v8357_v16  ;;  %v10431_v34 = vld [vmem:[#allocation6 + $0x10c0] sm:$0xf0] }
 0x1db   :  { %v10351_v16 = vld [vmem:[#allocation6 + $0x1020] sm:$0xf0]  ;;  %v11630_v17 = vld [vmem:[#allocation6 + $0x7dc] sm:$0xf] }
 0x1dc   :  { %6018 = vmatpush.bf16.msra.mxu3 %v9634_v24  ;;  %5950 = vmatpush.bf16.msra.mxu2 %v10710_v36  ;;  %v5763_v24 = vpop.f32.mrf.mxu3  ;;  %v10550_v36 = vor.u32 %v11945_v26, %v10549_v25  ;;  %v8317_v26 = vld [vmem:[#allocation6 + $0x10] sm:$0xf] }
 0x1dd   :  { %v9431_v24 = vld [vmem:[#allocation6 + $0x8f0] sm:$0xf0] }
 0x1de   :  { %6027 = vmatpush.bf16.msra.mxu0 %v10114_v58  ;;  %5989 = vmatpush.bf16.msrb.mxu1 %v9114_v0  ;;  %v11930_v58 = vld [vmem:[#allocation6 + $0x113c] sm:$0xf]  ;;  %v9954_v0 = vor.u32 %v11790_v45, %v9951_v46  ;;  %v11766_v45 = vld [vmem:[#allocation6 + $0xc14] sm:$0xf0]  ;;  %v9394_v46 = vor.u32 %v11650_v37, %v9391_v38  ;;  %v10271_v37 = vld [vmem:[#allocation6 + $0xf80] sm:$0xf0] }
 0x1e0   :  { %6019 = vmatpush.bf16.msra.mxu3 %v9594_v39  ;;  %5951 = vmatpush.bf16.msra.mxu2 %v10670_v51  ;;  %v5724_v39 = vpop.f32.mrf.mxu0  ;;  %v11406_v51 = vld [vmem:[#allocation6 + $0xd4] sm:$0xf0] }
 0x1e1   :  { %v8398_v41 = vor.u32 %v11406_v51, %v8397_v47  ;;  %v11900_v47 = vld [vmem:[#allocation6 + $0x104c] sm:$0xf]  ;;  %v10391_v51 = vld [vmem:[#allocation6 + $0x1070] sm:$0xf0] }
 0x1e2   :  { %6028 = vmatpush.bf16.msra.mxu0 %v10074_v19  ;;  %5990 = vmatpush.bf16.msrb.mxu1 %v9074_v61  ;;  %v8917_v19 = vld [vmem:[#allocation6 + $0x4c0] sm:$0xf]  ;;  %v9474_v61 = vor.u32 %v11670_v6, %v9471_v11  ;;  %v11756_v11 = vld [vmem:[#allocation6 + $0xbc4] sm:$0xf0] }
 0x1e3   :  { %6020 = vmatmul.bf16.vlgmr.msra.gmra.mxu3 %v12429_v13  ;;  %v9797_v6 = vld [vmem:[#allocation6 + $0xba0] sm:$0xf] }
 0x1e4   :  { %6064 = vmatpush.bf16.msrb.mxu3 %v8598_v8  ;;  %5952 = vmatpush.bf16.msra.mxu2 %v10630_v14  ;;  %v11680_v8 = vld [vmem:[#allocation6 + $0x96c] sm:$0xf] }
 0x1e5   :  { %v9514_v53 = vor.u32 %v11680_v8, %v9511_v44  ;;  %v11780_v14 = vld [vmem:[#allocation6 + $0xc8c] sm:$0xf]  ;;  %v11516_v8 = vld [vmem:[#allocation6 + $0x444] sm:$0xf0]  ;;  %v9837_v44 = vld [vmem:[#allocation6 + $0xbf0] sm:$0xf] }
 0x1e6   :  { %6029 = vmatpush.bf16.msra.mxu0 %v10034_v27  ;;  %5991 = vmatpush.bf16.msrb.mxu1 %v9034_v31  ;;  %v12481_v63 = vpop.f32.mrf.mxu3  ;;  %v8877_v27 = vld [vmem:[#allocation6 + $0x470] sm:$0xf]  ;;  %v9434_v31 = vor.u32 %v11660_v23, %v9431_v24  ;;  %v10311_v23 = vld [vmem:[#allocation6 + $0xfd0] sm:$0xf0]  ;;  %v11620_v24 = vld [vmem:[#allocation6 + $0x78c] sm:$0xf] }
 0x1e7   :  { %v8878_v39 = vor.u32 %v11526_v28, %v8877_v27  ;;  %v12010_v27 = vld [vmem:[#allocation6 + $0x13bc] sm:$0xf]  ;;  %v8717_v28 = vld [vmem:[#allocation6 + $0x330] sm:$0xf] }
 0x1e8   :  { %6065 = vmatpush.bf16.msrb.mxu3 %v8558_v60  ;;  %5953 = vmatpush.bf16.msra.mxu2 %v10590_v21  ;;  %v10511_v60 = vld [vmem:[#allocation6 + $0x1160] sm:$0xf0]  ;;  %v5774_v32 = vpop.f32.mrf.mxu0  ;;  %v9914_v21 = vor.u32 %v11780_v14, %v9911_v15  ;;  %v11890_v15 = vld [vmem:[#allocation6 + $0xffc] sm:$0xf] }
 0x1e9   :  { %v10514_v18 = vor.u32 %v11930_v58, %v10511_v60  ;;  %v12485_v59 = vadd.f32 %v5774_v32, %v5762_v62  ;;  %v8797_v58 = vld [vmem:[#allocation6 + $0x3d0] sm:$0xf]  ;;  %v9311_v62 = vld [vmem:[#allocation6 + $0x800] sm:$0xf0]  ;;  %v10354_v32 = vor.u32 %v11890_v15, %v10351_v16  ;;  %v11466_v16 = vld [vmem:[#allocation6 + $0x2b4] sm:$0xf0] }
 0x1ea   :  { %6030 = vmatpush.bf16.msra.mxu0 %v9994_v42  ;;  %5992 = vmatpush.bf16.msrb.mxu1 %v8994_v49  ;;  %v8837_v42 = vld [vmem:[#allocation6 + $0x420] sm:$0xf] }
 0x1eb   :  { %v8838_v56 = vor.u32 %v11516_v8, %v8837_v42  ;;  %v12000_v42 = vld [vmem:[#allocation6 + $0x136c] sm:$0xf]  ;;  %v8677_v8 = vld [vmem:[#allocation6 + $0x2e0] sm:$0xf] }
 0x1ec   :  { %6066 = vmatpush.bf16.msrb.mxu3 %v8518_v5  ;;  %5954 = vmatpush.bf16.msra.mxu2 %v10550_v36  ;;  %v11536_v5 = vld [vmem:[#allocation6 + $0x4e4] sm:$0xf0]  ;;  %v8318_v36 = vor.u32 %v11386_v55, %v8317_v26 }
 0x1ed   :  { %v8918_v25 = vor.u32 %v11536_v5, %v8917_v19  ;;  %v9798_v19 = vor.u32 %v11756_v11, %v9797_v6  ;;  %v8757_v5 = vld [vmem:[#allocation6 + $0x380] sm:$0xf]  ;;  %v10751_v6 = vld [vmem:[#allocation6 + $0x1340] sm:$0xf0]  ;;  %v8637_v11 = vld [vmem:[#allocation6 + $0x290] sm:$0xf] }
 0x1ee   :  { %6031 = vmatpush.bf16.msra.mxu0 %v9954_v0  ;;  %5993 = vmatpush.bf16.msrb.mxu1 %v8954_v4  ;;  %v5815_v35 = vpop.f32.mrf.mxu3  ;;  %v5735_v60 = vpop.f32.mrf.mxu1  ;;  %v10394_v0 = vor.u32 %v11900_v47, %v10391_v51  ;;  %v9354_v4 = vor.u32 %v11640_v54, %v9351_v48  ;;  %v11860_v51 = vld [vmem:[#allocation6 + $0xf0c] sm:$0xf]  ;;  %v10231_v54 = vld [vmem:[#allocation6 + $0xf30] sm:$0xf0] }
 0x1ef   :  { %5955 = vmatmul.bf16.vlgmr.msra.gmra.mxu2 %v12452_v10  ;;  %v12491_v14 = vadd.f32 %v5735_v60, %v12478_v57  ;;  %v9314_v57 = vor.u32 %v11630_v17, %v9311_v62  ;;  %v10234_v15 = vor.u32 %v11860_v51, %v10231_v54  ;;  %v9637_v17 = vld [vmem:[#allocation6 + $0xa60] sm:$0xf]  ;;  %v11716_v62 = vld [vmem:[#allocation6 + $0xa84] sm:$0xf0]  ;;  %v11960_v51 = vld [vmem:[#allocation6 + $0x122c] sm:$0xf] }
 0x1f0   :  { %6067 = vmatpush.bf16.msrb.mxu3 %v8478_v12  ;;  %5999 = vmatpush.bf16.msrb.mxu2 %v9554_v40  ;;  %v10474_v12 = vor.u32 %v11920_v9, %v10471_v20  ;;  %v9878_v40 = vor.u32 %v11776_v30, %v9877_v29  ;;  %v5776_v49 = vpop.f32.mrf.mxu0  ;;  %v9757_v9 = vld [vmem:[#allocation6 + $0xb50] sm:$0xf]  ;;  %v11746_v20 = vld [vmem:[#allocation6 + $0xb74] sm:$0xf0]  ;;  %v10631_v54 = vld [vmem:[#allocation6 + $0x1250] sm:$0xf0] }
 0x1f1   :  { %5994 = vmatmul.bf16.vlgmr.msrb.gmra.mxu1 %v12418_v52  ;;  %v9758_v55 = vor.u32 %v11746_v20, %v9757_v9  ;;  %v9677_v49 = vld [vmem:[#allocation6 + $0xab0] sm:$0xf]  ;;  %v11606_v20 = vld [vmem:[#allocation6 + $0x714] sm:$0xf0] }
 0x1f2   :  { %6038 = vmatpush.bf16.msra.mxu1 %v10514_v18  ;;  %6032 = vmatpush.bf16.msra.mxu0 %v9914_v21  ;;  %v9197_v9 = vld [vmem:[#allocation6 + $0x6f0] sm:$0xf] }
 0x1f4   :  { %6068 = vmatpush.bf16.msrb.mxu3 %v8438_v43  ;;  %6000 = vmatpush.bf16.msrb.mxu2 %v9514_v53  ;;  %v10434_v43 = vor.u32 %v11910_v33, %v10431_v34  ;;  %v9838_v53 = vor.u32 %v11766_v45, %v9837_v44  ;;  %v9717_v33 = vld [vmem:[#allocation6 + $0xb00] sm:$0xf]  ;;  %v11736_v34 = vld [vmem:[#allocation6 + $0xb24] sm:$0xf0] }
 0x1f5   :  { %6033 = vmatmul.bf16.vlgmr.msra.gmra.mxu0 %v12434_v3  ;;  %v11476_v45 = vld [vmem:[#allocation6 + $0x304] sm:$0xf0] }
 0x1f6   :  { %6077 = vmatpush.bf16.msrb.mxu0 %v8918_v25  ;;  %6039 = vmatpush.bf16.msra.mxu1 %v10474_v12  ;;  %v9271_v25 = vld [vmem:[#allocation6 + $0x7b0] sm:$0xf0]  ;;  %v10831_v12 = vld [vmem:[#allocation6 + $0x13e0] sm:$0xf0]  ;;  %v5737_v29 = vpop.f32.mrf.mxu1  ;;  %v8678_v60 = vor.u32 %v11476_v45, %v8677_v8  ;;  %v11836_v8 = vld [vmem:[#allocation6 + $0xe44] sm:$0xf0] }
 0x1f7   :  { %v9274_v35 = vor.u32 %v11620_v24, %v9271_v25  ;;  %v10834_v38 = vor.u32 %v12010_v27, %v10831_v12  ;;  %v10711_v24 = vld [vmem:[#allocation6 + $0x12f0] sm:$0xf0]  ;;  %v10157_v27 = vld [vmem:[#allocation6 + $0xe70] sm:$0xf]  ;;  %v11846_v12 = vld [vmem:[#allocation6 + $0xe94] sm:$0xf0] }
 0x1f8   :  { %6069 = vmatpush.bf16.msrb.mxu3 %v8398_v41  ;;  %6001 = vmatpush.bf16.msrb.mxu2 %v9474_v61  ;;  %v11506_v41 = vld [vmem:[#allocation6 + $0x3f4] sm:$0xf0]  ;;  %v11496_v61 = vld [vmem:[#allocation6 + $0x3a4] sm:$0xf0]  ;;  %v12493_v21 = vpop.f32.mrf.mxu0  ;;  %v8599_v29 = vld [vmem:[#allocation6 + $0x268] sm:$0xf0] }
 0x1f9   :  { %v8798_v18 = vor.u32 %v11506_v41, %v8797_v58  ;;  %v8758_v26 = vor.u32 %v11496_v61, %v8757_v5  ;;  %v11990_v41 = vld [vmem:[#allocation6 + $0x131c] sm:$0xf]  ;;  %v10197_v5 = vld [vmem:[#allocation6 + $0xec0] sm:$0xf] }
 0x1fa   :  { %6078 = vmatpush.bf16.msrb.mxu0 %v8878_v39  ;;  %6040 = vmatpush.bf16.msra.mxu1 %v10434_v43  ;;  %v10791_v43 = vld [vmem:[#allocation6 + $0x1390] sm:$0xf0]  ;;  %v10754_v61 = vor.u32 %v11990_v41, %v10751_v6  ;;  %v8559_v45 = vld [vmem:[#allocation6 + $0x218] sm:$0xf0]  ;;  %v10077_v41 = vld [vmem:[#allocation6 + $0xdd0] sm:$0xf] }
 0x1fb   :  { %v10794_v48 = vor.u32 %v12000_v42, %v10791_v43  ;;  %v10117_v42 = vld [vmem:[#allocation6 + $0xe20] sm:$0xf] }
 0x1fc   :  { %6070 = vmatpush.bf16.msrb.mxu3 %v8358_v22  ;;  %6002 = vmatpush.bf16.msrb.mxu2 %v9434_v31  ;;  %v11880_v22 = vld [vmem:[#allocation6 + $0xfac] sm:$0xf]  ;;  %v11486_v31 = vld [vmem:[#allocation6 + $0x354] sm:$0xf0] }
 0x1fd   :  { %v10314_v30 = vor.u32 %v11880_v22, %v10311_v23  ;;  %v8718_v39 = vor.u32 %v11486_v31, %v8717_v28  ;;  %v9638_v22 = vor.u32 %v11716_v62, %v9637_v17  ;;  %v11980_v23 = vld [vmem:[#allocation6 + $0x12cc] sm:$0xf]  ;;  %v11451_v28 = vld [vmem:[#allocation6 + $0x244] sm:$0xf]  ;;  %v9157_v31 = vld [vmem:[#allocation6 + $0x6a0] sm:$0xf]  ;;  %v10634_v17 = vor.u32 %v11960_v51, %v10631_v54 }
 0x1fe   :  { %6079 = vmatpush.bf16.msrb.mxu0 %v8838_v56  ;;  %6041 = vmatpush.bf16.msra.mxu1 %v10394_v0  ;;  %v9237_v56 = vld [vmem:[#allocation6 + $0x740] sm:$0xf] }
 0x1ff   :  { %v9077_v62 = vld [vmem:[#allocation6 + $0x600] sm:$0xf] }
 0x200   :  { %6071 = vmatpush.bf16.msrb.mxu3 %v8318_v36  ;;  %6003 = vmatpush.bf16.msrb.mxu2 %v9394_v46  ;;  %v11870_v36 = vld [vmem:[#allocation6 + $0xf5c] sm:$0xf]  ;;  %v11726_v46 = vld [vmem:[#allocation6 + $0xad4] sm:$0xf0]  ;;  %v5828_v47 = vpop.f32.mrf.mxu0 }
 0x201   :  { %v10274_v44 = vor.u32 %v11870_v36, %v10271_v37  ;;  %v9678_v0 = vor.u32 %v11726_v46, %v9677_v49  ;;  %v11970_v36 = vld [vmem:[#allocation6 + $0x127c] sm:$0xf]  ;;  %v10671_v37 = vld [vmem:[#allocation6 + $0x12a0] sm:$0xf0]  ;;  %v9117_v46 = vld [vmem:[#allocation6 + $0x650] sm:$0xf] }
 0x202   :  { %6080 = vmatpush.bf16.msrb.mxu0 %v8798_v18  ;;  %6042 = vmatpush.bf16.msra.mxu1 %v10354_v32  ;;  %v11856_v32 = vld [vmem:[#allocation6 + $0xee4] sm:$0xf0]  ;;  %v10674_v49 = vor.u32 %v11970_v36, %v10671_v37  ;;  %v11586_v47 = vld [vmem:[#allocation6 + $0x674] sm:$0xf0] }
 0x203   :  { %6072 = vmatmul.bf16.vlgmr.msrb.gmra.mxu3 %v12411_v1  ;;  %v10198_v25 = vor.u32 %v11856_v32, %v10197_v5  ;;  %v11950_v5 = vld [vmem:[#allocation6 + $0x11dc] sm:$0xf]  ;;  %v10591_v32 = vld [vmem:[#allocation6 + $0x1200] sm:$0xf0]  ;;  %v11806_v37 = vld [vmem:[#allocation6 + $0xd54] sm:$0xf0] }
 0x204   :  { %6116 = vmatpush.bf16.msra.mxu3 %v9878_v40  ;;  %6004 = vmatpush.bf16.msrb.mxu2 %v9354_v4  ;;  %v9718_v40 = vor.u32 %v11736_v34, %v9717_v33  ;;  %v5787_v4 = vpop.f32.mrf.mxu1  ;;  %v11596_v33 = vld [vmem:[#allocation6 + $0x6c4] sm:$0xf0] }
 0x205   :  { %v12499_v18 = vadd.f32 %v5787_v4, %v12485_v59  ;;  %v9198_v59 = vor.u32 %v11606_v20, %v9197_v9  ;;  %v9158_v43 = vor.u32 %v11596_v33, %v9157_v31  ;;  %v11826_v4 = vld [vmem:[#allocation6 + $0xdf4] sm:$0xf0]  ;;  %v10037_v20 = vld [vmem:[#allocation6 + $0xd80] sm:$0xf] }
 0x206   :  { %6081 = vmatpush.bf16.msrb.mxu0 %v8758_v26  ;;  %6043 = vmatpush.bf16.msra.mxu1 %v10314_v30  ;;  %v12495_v58 = vpop.f32.mrf.mxu3  ;;  %v9597_v26 = vld [vmem:[#allocation6 + $0xa10] sm:$0xf]  ;;  %v10714_v30 = vor.u32 %v11980_v23, %v10711_v24  ;;  %v11816_v23 = vld [vmem:[#allocation6 + $0xda4] sm:$0xf0]  ;;  %v11421_v24 = vld [vmem:[#allocation6 + $0x154] sm:$0xf] }
 0x207   :  { %v9557_v33 = vld [vmem:[#allocation6 + $0x9c0] sm:$0xf] }
 0x208   :  { %6117 = vmatpush.bf16.msra.mxu3 %v9838_v53  ;;  %6005 = vmatpush.bf16.msrb.mxu2 %v9314_v57  ;;  %v11616_v53 = vld [vmem:[#allocation6 + $0x764] sm:$0xf0]  ;;  %v8638_v57 = vor.u32 %v11466_v16, %v8637_v11  ;;  %v9118_v11 = vor.u32 %v11586_v47, %v9117_v46  ;;  %v8519_v16 = vld [vmem:[#allocation6 + $0x1c8] sm:$0xf0]  ;;  %v11686_v46 = vld [vmem:[#allocation6 + $0x994] sm:$0xf0] }
 0x209   :  { %v9957_v47 = vld [vmem:[#allocation6 + $0xce0] sm:$0xf] }
 0x20a   :  { %6082 = vmatpush.bf16.msrb.mxu0 %v8718_v39  ;;  %6044 = vmatpush.bf16.msra.mxu1 %v10274_v44  ;;  %v10158_v39 = vor.u32 %v11846_v12, %v10157_v27  ;;  %v11441_v44 = vld [vmem:[#allocation6 + $0x1f4] sm:$0xf]  ;;  %v9037_v27 = vld [vmem:[#allocation6 + $0x5b0] sm:$0xf] }
 0x20c   :  { %6118 = vmatpush.bf16.msra.mxu3 %v9798_v19  ;;  %6006 = vmatpush.bf16.msrb.mxu2 %v9274_v35  ;;  %v9238_v19 = vor.u32 %v11616_v53, %v9237_v56 }
 0x20e   :  { %6083 = vmatpush.bf16.msrb.mxu0 %v8678_v60  ;;  %6045 = vmatpush.bf16.msra.mxu1 %v10234_v15  ;;  %v5867_v34 = vpop.f32.mrf.mxu3  ;;  %v10118_v60 = vor.u32 %v11836_v8, %v10117_v42  ;;  %v11431_v15 = vld [vmem:[#allocation6 + $0x1a4] sm:$0xf]  ;;  %v8997_v42 = vld [vmem:[#allocation6 + $0x560] sm:$0xf] }
 0x20f   :  { %6007 = vmatmul.bf16.vlgmr.msrb.gmra.mxu2 %v12425_v7  ;;  %v8522_v9 = vor.u32 %v11431_v15, %v8519_v16  ;;  %v11696_v34 = vld [vmem:[#allocation6 + $0x9e4] sm:$0xf0]  ;;  %v10517_v15 = vld [vmem:[#allocation6 + $0x1140] sm:$0xf] }
 0x210   :  { %6119 = vmatpush.bf16.msra.mxu3 %v9758_v55  ;;  %6051 = vmatpush.bf16.msra.mxu2 %v10834_v38  ;;  %v11706_v55 = vld [vmem:[#allocation6 + $0xa34] sm:$0xf0]  ;;  %v5789_v38 = vpop.f32.mrf.mxu1  ;;  %v9558_v8 = vor.u32 %v11696_v34, %v9557_v33  ;;  %v11936_v16 = vld [vmem:[#allocation6 + $0x1164] sm:$0xf0]  ;;  %v11381_v34 = vld [vmem:[#allocation6 + $0x14] sm:$0xf] }
 0x211   :  { %v9598_v35 = vor.u32 %v11706_v55, %v9597_v26  ;;  %6046 = vmatmul.bf16.vlgmr.msra.gmra.mxu1 %v12442_v50  ;;  %v10594_v55 = vor.u32 %v11950_v5, %v10591_v32  ;;  %v11411_v38 = vld [vmem:[#allocation6 + $0x104] sm:$0xf]  ;;  %v9477_v5 = vld [vmem:[#allocation6 + $0x920] sm:$0xf]  ;;  %v11676_v32 = vld [vmem:[#allocation6 + $0x944] sm:$0xf0] }
 0x212   :  { %6090 = vmatpush.bf16.msrb.mxu1 %v9238_v19  ;;  %6084 = vmatpush.bf16.msrb.mxu0 %v8638_v57  ;;  %v5748_v53 = vpop.f32.mrf.mxu2  ;;  %v11576_v19 = vld [vmem:[#allocation6 + $0x624] sm:$0xf0]  ;;  %v5878_v26 = vpop.f32.mrf.mxu0 }
 0x213   :  { %v12507_v6 = vadd.f32 %v5748_v53, %v12491_v14  ;;  %v11401_v53 = vld [vmem:[#allocation6 + $0xb4] sm:$0xf] }
 0x214   :  { %6120 = vmatpush.bf16.msra.mxu3 %v9718_v40  ;;  %6052 = vmatpush.bf16.msra.mxu2 %v10794_v48  ;;  %v8602_v40 = vor.u32 %v11451_v28, %v8599_v29  ;;  %v12503_v48 = vld [vmem:[#allocation7] sm:$0xff]  ;;  %v11940_v28 = vld [vmem:[#allocation6 + $0x118c] sm:$0xf]  ;;  %v10551_v29 = vld [vmem:[#allocation6 + $0x11b0] sm:$0xf0] }
 0x215   :  { %6085 = vmatmul.bf16.vlgmr.msrb.gmra.mxu0 %v12413_v2  ;;  %v2430_v56 = vperm.slane %v12503_v48, 2 }
 0x216   :  { %6129 = vmatpush.bf16.msra.mxu0 %v10198_v25  ;;  %6091 = vmatpush.bf16.msrb.mxu1 %v9198_v59  ;;  %v8479_v25 = vld [vmem:[#allocation6 + $0x178] sm:$0xf0]  ;;  %v11566_v59 = vld [vmem:[#allocation6 + $0x5d4] sm:$0xf0] }
 0x217   :  { %v5866_v14 = vadd.f32 %v12495_v58, %v2430_v56  ;;  %v10038_v58 = vor.u32 %v11816_v23, %v10037_v20  ;;  %v8482_v31 = vor.u32 %v11421_v24, %v8479_v25  ;;  %v9038_v36 = vor.u32 %v11566_v59, %v9037_v27  ;;  %v11796_v56 = vld [vmem:[#allocation6 + $0xd04] sm:$0xf0]  ;;  %v11391_v23 = vld [vmem:[#allocation6 + $0x64] sm:$0xf]  ;;  %v8359_v24 = vld [vmem:[#allocation6 + $0x88] sm:$0xf0] }
 0x218   :  { %6121 = vmatpush.bf16.msra.mxu3 %v9678_v0  ;;  %6053 = vmatpush.bf16.msra.mxu2 %v10754_v61  ;;  %v8562_v0 = vor.u32 %v11441_v44, %v8559_v45  ;;  %v10078_v61 = vor.u32 %v11826_v4, %v10077_v41  ;;  %v12511_v57 = vpop.f32.mrf.mxu1  ;;  %v8957_v41 = vld [vmem:[#allocation6 + $0x510] sm:$0xf]  ;;  %v10518_v25 = vor.u32 %v11936_v16, %v10517_v15  ;;  %v11646_v16 = vld [vmem:[#allocation6 + $0x854] sm:$0xf0] }
 0x219   :  { %v12513_v12 = vadd.f32 %v5878_v26, %v5866_v14  ;;  %v11531_v26 = vld [vmem:[#allocation6 + $0x4c4] sm:$0xf]  ;;  %v9478_v59 = vor.u32 %v11676_v32, %v9477_v5  ;;  %v9357_v15 = vld [vmem:[#allocation6 + $0x830] sm:$0xf]  ;;  %v8799_v32 = vld [vmem:[#allocation6 + $0x3f8] sm:$0xf0] }
 0x21a   :  { %6130 = vmatpush.bf16.msra.mxu0 %v10158_v39  ;;  %6092 = vmatpush.bf16.msrb.mxu1 %v9158_v43  ;;  %v8439_v39 = vld [vmem:[#allocation6 + $0x128] sm:$0xf0]  ;;  %v11556_v43 = vld [vmem:[#allocation6 + $0x584] sm:$0xf0] }
 0x21b   :  { %v8442_v45 = vor.u32 %v11411_v38, %v8439_v39  ;;  %v8998_v54 = vor.u32 %v11556_v43, %v8997_v42  ;;  %v11771_v39 = vld [vmem:[#allocation6 + $0xc44] sm:$0xf]  ;;  %v10437_v43 = vld [vmem:[#allocation6 + $0x10a0] sm:$0xf] }
 0x21c   :  { %6122 = vmatpush.bf16.msra.mxu3 %v9638_v22  ;;  %6054 = vmatpush.bf16.msra.mxu2 %v10714_v30  ;;  %v9078_v22 = vor.u32 %v11576_v19, %v9077_v62  ;;  %v5750_v30 = vpop.f32.mrf.mxu2  ;;  %v9958_v62 = vor.u32 %v11796_v56, %v9957_v47  ;;  %v11656_v47 = vld [vmem:[#allocation6 + $0x8a4] sm:$0xf0]  ;;  %v11511_v56 = vld [vmem:[#allocation6 + $0x424] sm:$0xf] }
 0x21d   :  { %v8362_v30 = vor.u32 %v11391_v23, %v8359_v24  ;;  %v11896_v23 = vld [vmem:[#allocation6 + $0x1024] sm:$0xf0] }
 0x21e   :  { %6131 = vmatpush.bf16.msra.mxu0 %v10118_v60  ;;  %6093 = vmatpush.bf16.msrb.mxu1 %v9118_v11  ;;  %v8399_v60 = vld [vmem:[#allocation6 + $0xd8] sm:$0xf0]  ;;  %v11546_v11 = vld [vmem:[#allocation6 + $0x534] sm:$0xf0] }
 0x21f   :  { %v8402_v19 = vor.u32 %v11401_v53, %v8399_v60  ;;  %v8958_v14 = vor.u32 %v11546_v11, %v8957_v41  ;;  %v8839_v60 = vld [vmem:[#allocation6 + $0x448] sm:$0xf0]  ;;  %v9839_v41 = vld [vmem:[#allocation6 + $0xc18] sm:$0xf0]  ;;  %v10397_v11 = vld [vmem:[#allocation6 + $0x1050] sm:$0xf] }
 0x220   :  { %6123 = vmatpush.bf16.msra.mxu3 %v9598_v35  ;;  %6055 = vmatpush.bf16.msra.mxu2 %v10674_v49  ;;  %v9997_v35 = vld [vmem:[#allocation6 + $0xd30] sm:$0xf]  ;;  %v5841_v51 = vpop.f32.mrf.mxu1 }
 0x221   :  { %v9998_v44 = vor.u32 %v11806_v37, %v9997_v35  ;;  %v9517_v49 = vld [vmem:[#allocation6 + $0x970] sm:$0xf]  ;;  %v8319_v35 = vld [vmem:[#allocation6 + $0x38] sm:$0xf0] }
 0x222   :  { %6132 = vmatpush.bf16.msra.mxu0 %v10078_v61  ;;  %6094 = vmatpush.bf16.msrb.mxu1 %v9078_v22  ;;  %v9518_v4 = vor.u32 %v11686_v46, %v9517_v49  ;;  %v9917_v61 = vld [vmem:[#allocation6 + $0xc90] sm:$0xf]  ;;  %v11786_v22 = vld [vmem:[#allocation6 + $0xcb4] sm:$0xf0]  ;;  %v8322_v49 = vor.u32 %v11381_v34, %v8319_v35  ;;  %v9397_v46 = vld [vmem:[#allocation6 + $0x880] sm:$0xf] }
 0x223   :  { %6124 = vmatmul.bf16.vlgmr.msra.gmra.mxu3 %v12429_v13 }
 0x224   :  { %6168 = vmatpush.bf16.msrb.mxu3 %v8602_v40  ;;  %6056 = vmatpush.bf16.msra.mxu2 %v10634_v17  ;;  %v10554_v40 = vor.u32 %v11940_v28, %v10551_v29  ;;  %v5800_v17 = vpop.f32.mrf.mxu2  ;;  %v10477_v28 = vld [vmem:[#allocation6 + $0x10f0] sm:$0xf]  ;;  %v11926_v29 = vld [vmem:[#allocation6 + $0x1114] sm:$0xf0] }
 0x225   :  { %v10478_v38 = vor.u32 %v11926_v29, %v10477_v28  ;;  %v11491_v29 = vld [vmem:[#allocation6 + $0x384] sm:$0xf] }
 0x226   :  { %6133 = vmatpush.bf16.msra.mxu0 %v10038_v58  ;;  %6095 = vmatpush.bf16.msrb.mxu1 %v9038_v36  ;;  %v12516_v20 = vpop.f32.mrf.mxu3  ;;  %v9437_v58 = vld [vmem:[#allocation6 + $0x8d0] sm:$0xf]  ;;  %v11521_v36 = vld [vmem:[#allocation6 + $0x474] sm:$0xf] }
 0x228   :  { %6169 = vmatpush.bf16.msrb.mxu3 %v8562_v0  ;;  %6057 = vmatpush.bf16.msra.mxu2 %v10594_v55  ;;  %v5880_v0 = vpop.f32.mrf.mxu0  ;;  %v8919_v55 = vld [vmem:[#allocation6 + $0x4e8] sm:$0xf0] }
 0x229   :  { %v8922_v33 = vor.u32 %v11531_v26, %v8919_v55  ;;  %v11761_v0 = vld [vmem:[#allocation6 + $0xbf4] sm:$0xf]  ;;  %v11636_v26 = vld [vmem:[#allocation6 + $0x804] sm:$0xf0] }
 0x22a   :  { %6134 = vmatpush.bf16.msra.mxu0 %v9998_v44  ;;  %6096 = vmatpush.bf16.msrb.mxu1 %v8998_v54 }
 0x22c   :  { %6170 = vmatpush.bf16.msrb.mxu3 %v8522_v9  ;;  %6058 = vmatpush.bf16.msra.mxu2 %v10554_v40  ;;  %v5801_v9 = vadd.f32 %v5800_v17, %v12499_v18  ;;  %v9918_v18 = vor.u32 %v11786_v22, %v9917_v61  ;;  %v9879_v40 = vld [vmem:[#allocation6 + $0xc68] sm:$0xf0]  ;;  %v8842_v17 = vor.u32 %v11511_v56, %v8839_v60  ;;  %v11751_v61 = vld [vmem:[#allocation6 + $0xba4] sm:$0xf]  ;;  %v10357_v22 = vld [vmem:[#allocation6 + $0x1000] sm:$0xf] }
 0x22d   :  { %v9882_v54 = vor.u32 %v11771_v39, %v9879_v40 }
 0x22e   :  { %v5814_v27 = vadd.f32 %v12481_v63, %v5801_v9  ;;  %6135 = vmatpush.bf16.msra.mxu0 %v9958_v62  ;;  %6097 = vmatpush.bf16.msrb.mxu1 %v8958_v14  ;;  %v8879_v63 = vld [vmem:[#allocation6 + $0x498] sm:$0xf0]  ;;  %v5919_v51 = vpop.f32.mrf.mxu3  ;;  %v9842_v62 = vor.u32 %v11761_v0, %v9839_v41  ;;  %v9799_v9 = vld [vmem:[#allocation6 + $0xbc8] sm:$0xf0]  ;;  %v9358_v14 = vor.u32 %v11646_v16, %v9357_v15  ;;  %v10797_v0 = vld [vmem:[#allocation6 + $0x1370] sm:$0xf] }
 0x22f   :  { %6059 = vmatmul.bf16.vlgmr.msra.gmra.mxu2 %v12452_v10  ;;  %v9802_v28 = vor.u32 %v11751_v61, %v9799_v9  ;;  %v11876_v51 = vld [vmem:[#allocation6 + $0xf84] sm:$0xf0]  ;;  %v12006_v41 = vld [vmem:[#allocation6 + $0x1394] sm:$0xf0]  ;;  %v11721_v15 = vld [vmem:[#allocation6 + $0xab4] sm:$0xf] }
 0x230   :  { %6171 = vmatpush.bf16.msrb.mxu3 %v8482_v31  ;;  %6103 = vmatpush.bf16.msrb.mxu2 %v9558_v8  ;;  %v11666_v31 = vld [vmem:[#allocation6 + $0x8f4] sm:$0xf0]  ;;  %v5827_v37 = vadd.f32 %v12493_v21, %v5814_v27  ;;  %v11916_v8 = vld [vmem:[#allocation6 + $0x10c4] sm:$0xf0]  ;;  %v8882_v21 = vor.u32 %v11521_v36, %v8879_v63  ;;  %v5891_v27 = vpop.f32.mrf.mxu1  ;;  %v10317_v36 = vld [vmem:[#allocation6 + $0xfb0] sm:$0xf] }
 0x231   :  { %v9438_v42 = vor.u32 %v11666_v31, %v9437_v58  ;;  %6098 = vmatmul.bf16.vlgmr.msrb.gmra.mxu1 %v12418_v52  ;;  %v10438_v53 = vor.u32 %v11916_v8, %v10437_v43  ;;  %v8759_v58 = vld [vmem:[#allocation6 + $0x3a8] sm:$0xf0]  ;;  %v11741_v31 = vld [vmem:[#allocation6 + $0xb54] sm:$0xf]  ;;  %v11626_v63 = vld [vmem:[#allocation6 + $0x7b4] sm:$0xf0] }
 0x232   :  { %6142 = vmatpush.bf16.msra.mxu1 %v10518_v25  ;;  %v5840_v44 = vadd.f32 %v12511_v57, %v5827_v37  ;;  %6136 = vmatpush.bf16.msra.mxu0 %v9918_v18  ;;  %v9398_v57 = vor.u32 %v11656_v47, %v9397_v46  ;;  %v9317_v25 = vld [vmem:[#allocation6 + $0x7e0] sm:$0xf]  ;;  %v12528_v18 = vadd.f32 %v5891_v27, %v12513_v12  ;;  %v12530_v34 = vpop.f32.mrf.mxu0  ;;  %v11886_v37 = vld [vmem:[#allocation6 + $0xfd4] sm:$0xf0]  ;;  %v12016_v12 = vld [vmem:[#allocation6 + $0x13e4] sm:$0xf0] }
 0x233   :  { %v9318_v35 = vor.u32 %v11636_v26, %v9317_v25  ;;  %v8762_v39 = vor.u32 %v11491_v29, %v8759_v58  ;;  %v11481_v43 = vld [vmem:[#allocation6 + $0x334] sm:$0xf]  ;;  %v10318_v8 = vor.u32 %v11886_v37, %v10317_v36  ;;  %v10277_v47 = vld [vmem:[#allocation6 + $0xf60] sm:$0xf]  ;;  %v9679_v16 = vld [vmem:[#allocation6 + $0xad8] sm:$0xf0] }
 0x234   :  { %6172 = vmatpush.bf16.msrb.mxu3 %v8442_v45  ;;  %6104 = vmatpush.bf16.msrb.mxu2 %v9518_v4  ;;  %v5802_v45 = vpop.f32.mrf.mxu2  ;;  %v11906_v4 = vld [vmem:[#allocation6 + $0x1074] sm:$0xf0]  ;;  %v9239_v61 = vld [vmem:[#allocation6 + $0x768] sm:$0xf0]  ;;  %v8639_v27 = vld [vmem:[#allocation6 + $0x2b8] sm:$0xf0] }
 0x235   :  { %6137 = vmatmul.bf16.vlgmr.msra.gmra.mxu0 %v12434_v3  ;;  %v10398_v5 = vor.u32 %v11906_v4, %v10397_v11  ;;  %v11731_v45 = vld [vmem:[#allocation6 + $0xb04] sm:$0xf]  ;;  %v10278_v11 = vor.u32 %v11876_v51, %v10277_v47  ;;  %v8679_v4 = vld [vmem:[#allocation6 + $0x308] sm:$0xf0] }
 0x236   :  { %6181 = vmatpush.bf16.msrb.mxu0 %v8922_v33  ;;  %6143 = vmatpush.bf16.msra.mxu1 %v10478_v38  ;;  %v9759_v33 = vld [vmem:[#allocation6 + $0xb78] sm:$0xf0]  ;;  %v9277_v38 = vld [vmem:[#allocation6 + $0x790] sm:$0xf]  ;;  %v10199_v58 = vld [vmem:[#allocation6 + $0xee8] sm:$0xf0] }
 0x237   :  { %v9762_v40 = vor.u32 %v11741_v31, %v9759_v33  ;;  %v9278_v46 = vor.u32 %v11626_v63, %v9277_v38  ;;  %v11601_v33 = vld [vmem:[#allocation6 + $0x6f4] sm:$0xf]  ;;  %v10717_v38 = vld [vmem:[#allocation6 + $0x12d0] sm:$0xf]  ;;  %v11986_v63 = vld [vmem:[#allocation6 + $0x12f4] sm:$0xf0] }
 0x238   :  { %6173 = vmatpush.bf16.msrb.mxu3 %v8402_v19  ;;  %6105 = vmatpush.bf16.msrb.mxu2 %v9478_v59  ;;  %v11501_v19 = vld [vmem:[#allocation6 + $0x3d4] sm:$0xf]  ;;  %v5893_v56 = vpop.f32.mrf.mxu1  ;;  %v9159_v47 = vld [vmem:[#allocation6 + $0x6c8] sm:$0xf0] }
 0x239   :  { %v8802_v59 = vor.u32 %v11501_v19, %v8799_v32  ;;  %v11866_v19 = vld [vmem:[#allocation6 + $0xf34] sm:$0xf0]  ;;  %v11611_v32 = vld [vmem:[#allocation6 + $0x744] sm:$0xf] }
 0x23a   :  { %6182 = vmatpush.bf16.msrb.mxu0 %v8882_v21  ;;  %6144 = vmatpush.bf16.msra.mxu1 %v10438_v53  ;;  %v9242_v29 = vor.u32 %v11611_v32, %v9239_v61  ;;  %v11821_v61 = vld [vmem:[#allocation6 + $0xdd4] sm:$0xf] }
 0x23c   :  { %6174 = vmatpush.bf16.msrb.mxu3 %v8362_v30  ;;  %6106 = vmatpush.bf16.msrb.mxu2 %v9438_v42  ;;  %v5852_v24 = vpop.f32.mrf.mxu2  ;;  %v10358_v30 = vor.u32 %v11896_v23, %v10357_v22  ;;  %v10837_v42 = vld [vmem:[#allocation6 + $0x13c0] sm:$0xf]  ;;  %v11996_v23 = vld [vmem:[#allocation6 + $0x1344] sm:$0xf0] }
 0x23d   :  { %v12525_v55 = vadd.f32 %v5852_v24, %v5840_v44  ;;  %v8719_v44 = vld [vmem:[#allocation6 + $0x358] sm:$0xf0]  ;;  %v10757_v22 = vld [vmem:[#allocation6 + $0x1320] sm:$0xf]  ;;  %v11461_v24 = vld [vmem:[#allocation6 + $0x294] sm:$0xf] }
 0x23e   :  { %6183 = vmatpush.bf16.msrb.mxu0 %v8842_v17  ;;  %6145 = vmatpush.bf16.msra.mxu1 %v10398_v5  ;;  %v8722_v53 = vor.u32 %v11481_v43, %v8719_v44  ;;  %v5932_v17 = vpop.f32.mrf.mxu0  ;;  %v10798_v5 = vor.u32 %v12006_v41, %v10797_v0  ;;  %v10758_v31 = vor.u32 %v11996_v23, %v10757_v22  ;;  %v8605_v44 = vld [vmem:[#allocation6 + $0x248] sm:$0xf]  ;;  %v11831_v0 = vld [vmem:[#allocation6 + $0xe24] sm:$0xf]  ;;  %v11437_v23 = vld [vmem:[#allocation6 + $0x1cc] sm:$0xf0] }
 0x23f   :  { %v8642_v36 = vor.u32 %v11461_v24, %v8639_v27  ;;  %v9119_v17 = vld [vmem:[#allocation6 + $0x678] sm:$0xf0]  ;;  %v8525_v22 = vld [vmem:[#allocation6 + $0x1a8] sm:$0xf]  ;;  %v2431_v24 = vperm.slane %v12503_v48, 3 }
 0x240   :  { %6175 = vmatpush.bf16.msrb.mxu3 %v8322_v49  ;;  %6107 = vmatpush.bf16.msrb.mxu2 %v9398_v57  ;;  %v9719_v49 = vld [vmem:[#allocation6 + $0xb28] sm:$0xf0]  ;;  %v11471_v57 = vld [vmem:[#allocation6 + $0x2e4] sm:$0xf] }
 0x241   :  { %v9722_v60 = vor.u32 %v11731_v45, %v9719_v49  ;;  %v8682_v9 = vor.u32 %v11471_v57, %v8679_v4  ;;  %v11457_v45 = vld [vmem:[#allocation6 + $0x26c] sm:$0xf0]  ;;  %v10718_v49 = vor.u32 %v11986_v63, %v10717_v38  ;;  %v10119_v57 = vld [vmem:[#allocation6 + $0xe48] sm:$0xf0]  ;;  %v11447_v4 = vld [vmem:[#allocation6 + $0x21c] sm:$0xf0] }
 0x242   :  { %6184 = vmatpush.bf16.msrb.mxu0 %v8802_v59  ;;  %6146 = vmatpush.bf16.msra.mxu1 %v10358_v30  ;;  %v11711_v59 = vld [vmem:[#allocation6 + $0xa64] sm:$0xf]  ;;  %v8485_v38 = vld [vmem:[#allocation6 + $0x158] sm:$0xf]  ;;  %v11427_v63 = vld [vmem:[#allocation6 + $0x17c] sm:$0xf0] }
 0x243   :  { %6176 = vmatmul.bf16.vlgmr.msrb.gmra.mxu3 %v12411_v1  ;;  %v11851_v30 = vld [vmem:[#allocation6 + $0xec4] sm:$0xf] }
 0x244   :  { %6220 = vmatpush.bf16.msra.mxu3 %v9882_v54  ;;  %6108 = vmatpush.bf16.msrb.mxu2 %v9358_v14  ;;  %v5854_v21 = vpop.f32.mrf.mxu2  ;;  %v10838_v54 = vor.u32 %v12016_v12, %v10837_v42  ;;  %v9682_v14 = vor.u32 %v11721_v15, %v9679_v16  ;;  %v9599_v42 = vld [vmem:[#allocation6 + $0xa38] sm:$0xf0]  ;;  %v11841_v12 = vld [vmem:[#allocation6 + $0xe74] sm:$0xf]  ;;  %v11571_v27 = vld [vmem:[#allocation6 + $0x604] sm:$0xf] }
 0x245   :  { %v10677_v21 = vld [vmem:[#allocation6 + $0x1280] sm:$0xf]  ;;  %v11581_v16 = vld [vmem:[#allocation6 + $0x654] sm:$0xf] }
 0x246   :  { %6185 = vmatpush.bf16.msrb.mxu0 %v8762_v39  ;;  %6147 = vmatpush.bf16.msra.mxu1 %v10318_v8  ;;  %v12532_v25 = vpop.f32.mrf.mxu3  ;;  %v10202_v39 = vor.u32 %v11851_v30, %v10199_v58  ;;  %v10159_v8 = vld [vmem:[#allocation6 + $0xe98] sm:$0xf0]  ;;  %v11956_v30 = vld [vmem:[#allocation6 + $0x1204] sm:$0xf0] }
 0x248   :  { %6221 = vmatpush.bf16.msra.mxu3 %v9842_v62  ;;  %6109 = vmatpush.bf16.msrb.mxu2 %v9318_v35  ;;  %v10237_v62 = vld [vmem:[#allocation6 + $0xf10] sm:$0xf]  ;;  %v9199_v35 = vld [vmem:[#allocation6 + $0x718] sm:$0xf0] }
 0x249   :  { %v10238_v26 = vor.u32 %v11866_v19, %v10237_v62  ;;  %v9202_v43 = vor.u32 %v11601_v33, %v9199_v35  ;;  %v10637_v62 = vld [vmem:[#allocation6 + $0x1230] sm:$0xf]  ;;  %v11966_v19 = vld [vmem:[#allocation6 + $0x1254] sm:$0xf0]  ;;  %v8526_v33 = vor.u32 %v11437_v23, %v8525_v22  ;;  %v11811_v35 = vld [vmem:[#allocation6 + $0xd84] sm:$0xf] }
 0x24a   :  { %6186 = vmatpush.bf16.msrb.mxu0 %v8722_v53  ;;  %6148 = vmatpush.bf16.msra.mxu1 %v10278_v11  ;;  %v10162_v53 = vor.u32 %v11841_v12, %v10159_v8  ;;  %v8565_v11 = vld [vmem:[#allocation6 + $0x1f8] sm:$0xf]  ;;  %v11561_v12 = vld [vmem:[#allocation6 + $0x5b4] sm:$0xf]  ;;  %v8959_v22 = vld [vmem:[#allocation6 + $0x538] sm:$0xf0] }
 0x24b   :  { %v8566_v32 = vor.u32 %v11447_v4, %v8565_v11 }
 0x24c   :  { %6222 = vmatpush.bf16.msra.mxu3 %v9802_v28  ;;  %6110 = vmatpush.bf16.msrb.mxu2 %v9278_v46  ;;  %v9639_v28 = vld [vmem:[#allocation6 + $0xa88] sm:$0xf0]  ;;  %v11591_v46 = vld [vmem:[#allocation6 + $0x6a4] sm:$0xf] }
 0x24d   :  { %v9642_v37 = vor.u32 %v11711_v59, %v9639_v28  ;;  %v9162_v41 = vor.u32 %v11591_v46, %v9159_v47  ;;  %v9079_v59 = vld [vmem:[#allocation6 + $0x628] sm:$0xf0]  ;;  %v8486_v47 = vor.u32 %v11427_v63, %v8485_v38  ;;  %v8925_v38 = vld [vmem:[#allocation6 + $0x4c8] sm:$0xf]  ;;  %v11537_v63 = vld [vmem:[#allocation6 + $0x4ec] sm:$0xf0] }
 0x24e   :  { %6187 = vmatpush.bf16.msrb.mxu0 %v8682_v9  ;;  %6149 = vmatpush.bf16.msra.mxu1 %v10238_v26  ;;  %v5971_v56 = vpop.f32.mrf.mxu3  ;;  %v9122_v9 = vor.u32 %v11581_v16, %v9119_v17  ;;  %v10638_v26 = vor.u32 %v11966_v19, %v10637_v62  ;;  %v9082_v48 = vor.u32 %v11571_v27, %v9079_v59  ;;  %v11681_v16 = vld [vmem:[#allocation6 + $0x974] sm:$0xf]  ;;  %v9519_v17 = vld [vmem:[#allocation6 + $0x998] sm:$0xf0]  ;;  %v11791_v62 = vld [vmem:[#allocation6 + $0xce4] sm:$0xf] }
 0x24f   :  { %6111 = vmatmul.bf16.vlgmr.msrb.gmra.mxu2 %v12425_v7  ;;  %v8445_v56 = vld [vmem:[#allocation6 + $0x108] sm:$0xf]  ;;  %v10519_v27 = vld [vmem:[#allocation6 + $0x1168] sm:$0xf0] }
 0x250   :  { %6223 = vmatpush.bf16.msra.mxu3 %v9762_v40  ;;  %6155 = vmatpush.bf16.msra.mxu2 %v10838_v54  ;;  %v11701_v40 = vld [vmem:[#allocation6 + $0xa14] sm:$0xf]  ;;  %v11976_v54 = vld [vmem:[#allocation6 + $0x12a4] sm:$0xf0] }
 0x251   :  { %v9602_v51 = vor.u32 %v11701_v40, %v9599_v42  ;;  %6150 = vmatmul.bf16.vlgmr.msra.gmra.mxu1 %v12442_v50  ;;  %v10678_v15 = vor.u32 %v11976_v54, %v10677_v21  ;;  %v9559_v21 = vld [vmem:[#allocation6 + $0x9e8] sm:$0xf0]  ;;  %v9999_v54 = vld [vmem:[#allocation6 + $0xd58] sm:$0xf0] }
 0x252   :  { %6194 = vmatpush.bf16.msrb.mxu1 %v9242_v29  ;;  %6188 = vmatpush.bf16.msrb.mxu0 %v8642_v36  ;;  %v5904_v28 = vpop.f32.mrf.mxu2  ;;  %v10597_v29 = vld [vmem:[#allocation6 + $0x11e0] sm:$0xf]  ;;  %v10039_v36 = vld [vmem:[#allocation6 + $0xda8] sm:$0xf0] }
 0x253   :  { %v5905_v58 = vadd.f32 %v5904_v28, %v12528_v18  ;;  %v10598_v42 = vor.u32 %v11956_v30, %v10597_v29  ;;  %v5982_v18 = vpop.f32.mrf.mxu0  ;;  %v10042_v8 = vor.u32 %v11811_v35, %v10039_v36  ;;  %v11671_v29 = vld [vmem:[#allocation6 + $0x924] sm:$0xf]  ;;  %v9479_v30 = vld [vmem:[#allocation6 + $0x948] sm:$0xf0]  ;;  %v9919_v35 = vld [vmem:[#allocation6 + $0xcb8] sm:$0xf0] }
 0x254   :  { %6224 = vmatpush.bf16.msra.mxu3 %v9722_v60  ;;  %6156 = vmatpush.bf16.msra.mxu2 %v10798_v5  ;;  %v8606_v60 = vor.u32 %v11457_v45, %v8605_v44  ;;  %v10122_v5 = vor.u32 %v11831_v0, %v10119_v57  ;;  %v10557_v44 = vld [vmem:[#allocation6 + $0x1190] sm:$0xf]  ;;  %v11946_v45 = vld [vmem:[#allocation6 + $0x11b4] sm:$0xf0]  ;;  %v8999_v57 = vld [vmem:[#allocation6 + $0x588] sm:$0xf0] }
 0x255   :  { %6189 = vmatmul.bf16.vlgmr.msrb.gmra.mxu0 %v12413_v2  ;;  %v5918_v40 = vadd.f32 %v12516_v20, %v5905_v58  ;;  %v10558_v0 = vor.u32 %v11946_v45, %v10557_v44  ;;  %v11781_v58 = vld [vmem:[#allocation6 + $0xc94] sm:$0xf]  ;;  %v8365_v36 = vld [vmem:[#allocation6 + $0x68] sm:$0xf]  ;;  %v8926_v44 = vor.u32 %v11537_v63, %v8925_v38  ;;  %v8325_v45 = vld [vmem:[#allocation6 + $0x18] sm:$0xf] }
 0x256   :  { %6233 = vmatpush.bf16.msra.mxu0 %v10202_v39  ;;  %6195 = vmatpush.bf16.msrb.mxu1 %v9202_v43  ;;  %v5970_v39 = vadd.f32 %v12532_v25, %v2431_v24  ;;  %v9039_v43 = vld [vmem:[#allocation6 + $0x5d8] sm:$0xf0]  ;;  %v11801_v25 = vld [vmem:[#allocation6 + $0xd34] sm:$0xf]  ;;  %v9522_v24 = vor.u32 %v11681_v16, %v9519_v17  ;;  %v11517_v17 = vld [vmem:[#allocation6 + $0x44c] sm:$0xf0] }
 0x257   :  { %v9042_v20 = vor.u32 %v11561_v12, %v9039_v43  ;;  %v10002_v4 = vor.u32 %v11801_v25, %v9999_v54  ;;  %v9922_v12 = vor.u32 %v11781_v58, %v9919_v35  ;;  %v9885_v25 = vld [vmem:[#allocation6 + $0xc48] sm:$0xf]  ;;  %v10359_v58 = vld [vmem:[#allocation6 + $0x1028] sm:$0xf0]  ;;  %v11631_v35 = vld [vmem:[#allocation6 + $0x7e4] sm:$0xf] }
 0x258   :  { %6225 = vmatpush.bf16.msra.mxu3 %v9682_v14  ;;  %6157 = vmatpush.bf16.msra.mxu2 %v10758_v31  ;;  %v10079_v14 = vld [vmem:[#allocation6 + $0xdf8] sm:$0xf0]  ;;  %v12543_v46 = vadd.f32 %v5982_v18, %v5970_v39  ;;  %v9482_v39 = vor.u32 %v11671_v29, %v9479_v30  ;;  %v11661_v18 = vld [vmem:[#allocation6 + $0x8d4] sm:$0xf]  ;;  %v11891_v30 = vld [vmem:[#allocation6 + $0x1004] sm:$0xf] }
 0x259   :  { %v10082_v31 = vor.u32 %v11821_v61, %v10079_v14  ;;  %v8405_v61 = vld [vmem:[#allocation6 + $0xb8] sm:$0xf]  ;;  %v11541_v14 = vld [vmem:[#allocation6 + $0x514] sm:$0xf]  ;;  %v8765_v63 = vld [vmem:[#allocation6 + $0x388] sm:$0xf] }
 0x25a   :  { %6234 = vmatpush.bf16.msra.mxu0 %v10162_v53  ;;  %6196 = vmatpush.bf16.msrb.mxu1 %v9162_v41  ;;  %v11417_v53 = vld [vmem:[#allocation6 + $0x12c] sm:$0xf0]  ;;  %v11551_v41 = vld [vmem:[#allocation6 + $0x564] sm:$0xf] }
 0x25b   :  { %v5984_v23 = vpop.f32.mrf.mxu0 }
 0x25c   :  { %6226 = vmatpush.bf16.msra.mxu3 %v9642_v37  ;;  %6158 = vmatpush.bf16.msra.mxu2 %v10718_v49  ;;  %v5943_v37 = vpop.f32.mrf.mxu1  ;;  %v5931_v49 = vadd.f32 %v12530_v34, %v5918_v40  ;;  %v5906_v34 = vpop.f32.mrf.mxu2  ;;  %v11921_v40 = vld [vmem:[#allocation6 + $0x10f4] sm:$0xf] }
 0x25e   :  { %6235 = vmatpush.bf16.msra.mxu0 %v10122_v5  ;;  %6197 = vmatpush.bf16.msrb.mxu1 %v9122_v9  ;;  %v9002_v5 = vor.u32 %v11551_v41, %v8999_v57  ;;  %v11407_v9 = vld [vmem:[#allocation6 + $0xdc] sm:$0xf0]  ;;  %v11651_v41 = vld [vmem:[#allocation6 + $0x884] sm:$0xf]  ;;  %v9399_v57 = vld [vmem:[#allocation6 + $0x8a8] sm:$0xf0] }
 0x25f   :  { %v8406_v28 = vor.u32 %v11407_v9, %v8405_v61  ;;  %v10399_v61 = vld [vmem:[#allocation6 + $0x1078] sm:$0xf0]  ;;  %v11641_v9 = vld [vmem:[#allocation6 + $0x834] sm:$0xf] }
 0x260   :  { %6227 = vmatpush.bf16.msra.mxu3 %v9602_v51  ;;  %6159 = vmatpush.bf16.msra.mxu2 %v10678_v15  ;;  %v11691_v51 = vld [vmem:[#allocation6 + $0x9c4] sm:$0xf]  ;;  %v8446_v15 = vor.u32 %v11417_v53, %v8445_v56  ;;  %v10439_v53 = vld [vmem:[#allocation6 + $0x10c8] sm:$0xf0] }
 0x261   :  { %v9562_v11 = vor.u32 %v11691_v51, %v9559_v21  ;;  %v11527_v21 = vld [vmem:[#allocation6 + $0x49c] sm:$0xf0]  ;;  %v11911_v56 = vld [vmem:[#allocation6 + $0x10a4] sm:$0xf] }
 0x262   :  { %6236 = vmatpush.bf16.msra.mxu0 %v10082_v31  ;;  %6198 = vmatpush.bf16.msrb.mxu1 %v9082_v48  ;;  %v10442_v16 = vor.u32 %v11911_v56, %v10439_v53  ;;  %v11487_v53 = vld [vmem:[#allocation6 + $0x35c] sm:$0xf0] }
 0x263   :  { %6228 = vmatmul.bf16.vlgmr.msra.gmra.mxu3 %v12429_v13 }
 0x264   :  { %6272 = vmatpush.bf16.msrb.mxu3 %v8606_v60  ;;  %6160 = vmatpush.bf16.msra.mxu2 %v10638_v26  ;;  %v12545_v60 = vadd.f32 %v5943_v37, %v5931_v49  ;;  %v5945_v19 = vpop.f32.mrf.mxu1  ;;  %v11931_v26 = vld [vmem:[#allocation6 + $0x1144] sm:$0xf]  ;;  %v11397_v37 = vld [vmem:[#allocation6 + $0x8c] sm:$0xf0]  ;;  %v11387_v49 = vld [vmem:[#allocation6 + $0x3c] sm:$0xf0] }
 0x265   :  { %v10522_v48 = vor.u32 %v11931_v26, %v10519_v27  ;;  %v8366_v43 = vor.u32 %v11397_v37, %v8365_v36  ;;  %v11767_v19 = vld [vmem:[#allocation6 + $0xc1c] sm:$0xf0]  ;;  %v9319_v36 = vld [vmem:[#allocation6 + $0x808] sm:$0xf0] }
 0x266   :  { %6237 = vmatpush.bf16.msra.mxu0 %v10042_v8  ;;  %6199 = vmatpush.bf16.msrb.mxu1 %v9042_v20  ;;  %v12547_v31 = vpop.f32.mrf.mxu3  ;;  %v9439_v8 = vld [vmem:[#allocation6 + $0x8f8] sm:$0xf0]  ;;  %v11777_v20 = vld [vmem:[#allocation6 + $0xc6c] sm:$0xf0]  ;;  %v11507_v27 = vld [vmem:[#allocation6 + $0x3fc] sm:$0xf0] }
 0x267   :  { %v9442_v54 = vor.u32 %v11661_v18, %v9439_v8  ;;  %v9322_v8 = vor.u32 %v11631_v35, %v9319_v36 }
 0x268   :  { %6273 = vmatpush.bf16.msrb.mxu3 %v8566_v32  ;;  %6161 = vmatpush.bf16.msra.mxu2 %v10598_v42  ;;  %v9959_v32 = vld [vmem:[#allocation6 + $0xd08] sm:$0xf0]  ;;  %v10479_v42 = vld [vmem:[#allocation6 + $0x1118] sm:$0xf0] }
 0x269   :  { %v9962_v59 = vor.u32 %v11791_v62, %v9959_v32  ;;  %v10482_v51 = vor.u32 %v11921_v40, %v10479_v42  ;;  %v9845_v62 = vld [vmem:[#allocation6 + $0xbf8] sm:$0xf]  ;;  %v11901_v32 = vld [vmem:[#allocation6 + $0x1054] sm:$0xf]  ;;  %v10362_v40 = vor.u32 %v11891_v30, %v10359_v58  ;;  %v11497_v42 = vld [vmem:[#allocation6 + $0x3ac] sm:$0xf0] }
 0x26a   :  { %6238 = vmatpush.bf16.msra.mxu0 %v10002_v4  ;;  %6200 = vmatpush.bf16.msrb.mxu1 %v9002_v5  ;;  %v9886_v4 = vor.u32 %v11777_v20, %v9885_v25  ;;  %v9402_v5 = vor.u32 %v11651_v41, %v9399_v57  ;;  %v9846_v23 = vor.u32 %v11767_v19, %v9845_v62  ;;  %v12011_v25 = vld [vmem:[#allocation6 + $0x13c4] sm:$0xf]  ;;  %v10839_v20 = vld [vmem:[#allocation6 + $0x13e8] sm:$0xf0]  ;;  %v10799_v62 = vld [vmem:[#allocation6 + $0x1398] sm:$0xf0] }
 0x26b   :  { %v10402_v26 = vor.u32 %v11901_v32, %v10399_v61  ;;  %v11871_v57 = vld [vmem:[#allocation6 + $0xf64] sm:$0xf]  ;;  %v8685_v19 = vld [vmem:[#allocation6 + $0x2e8] sm:$0xf]  ;;  %v11477_v61 = vld [vmem:[#allocation6 + $0x30c] sm:$0xf0] }
 0x26c   :  { %6274 = vmatpush.bf16.msrb.mxu3 %v8526_v33  ;;  %6162 = vmatpush.bf16.msra.mxu2 %v10558_v0  ;;  %v8962_v33 = vor.u32 %v11541_v14, %v8959_v22  ;;  %v8326_v0 = vor.u32 %v11387_v49, %v8325_v45  ;;  %v9359_v14 = vld [vmem:[#allocation6 + $0x858] sm:$0xf0]  ;;  %v11621_v49 = vld [vmem:[#allocation6 + $0x794] sm:$0xf]  ;;  %v11991_v30 = vld [vmem:[#allocation6 + $0x1324] sm:$0xf] }
 0x26d   :  { %v9362_v29 = vor.u32 %v11641_v9, %v9359_v14  ;;  %v10319_v45 = vld [vmem:[#allocation6 + $0xfd8] sm:$0xf0]  ;;  %v9685_v9 = vld [vmem:[#allocation6 + $0xab8] sm:$0xf]  ;;  %v11727_v14 = vld [vmem:[#allocation6 + $0xadc] sm:$0xf0] }
 0x26e   :  { %6239 = vmatpush.bf16.msra.mxu0 %v9962_v59  ;;  %6201 = vmatpush.bf16.msrb.mxu1 %v8962_v33  ;;  %v6023_v34 = vpop.f32.mrf.mxu3  ;;  %v9805_v59 = vld [vmem:[#allocation6 + $0xba8] sm:$0xf]  ;;  %v10759_v58 = vld [vmem:[#allocation6 + $0x1348] sm:$0xf0] }
 0x26f   :  { %6163 = vmatmul.bf16.vlgmr.msra.gmra.mxu2 %v12452_v10  ;;  %v10279_v34 = vld [vmem:[#allocation6 + $0xf88] sm:$0xf0] }
 0x270   :  { %6275 = vmatpush.bf16.msrb.mxu3 %v8486_v47  ;;  %6207 = vmatpush.bf16.msrb.mxu2 %v9562_v11  ;;  %v8885_v47 = vld [vmem:[#allocation6 + $0x478] sm:$0xf]  ;;  %v10282_v32 = vor.u32 %v11871_v57, %v10279_v34  ;;  %v11597_v57 = vld [vmem:[#allocation6 + $0x6cc] sm:$0xf0] }
 0x271   :  { %6202 = vmatmul.bf16.vlgmr.msrb.gmra.mxu1 %v12418_v52  ;;  %v8886_v11 = vor.u32 %v11527_v21, %v8885_v47  ;;  %v9279_v47 = vld [vmem:[#allocation6 + $0x7b8] sm:$0xf0] }
 0x272   :  { %6246 = vmatpush.bf16.msra.mxu1 %v10522_v48  ;;  %6240 = vmatpush.bf16.msra.mxu0 %v9922_v12  ;;  %v5956_v33 = vpop.f32.mrf.mxu2  ;;  %v9765_v12 = vld [vmem:[#allocation6 + $0xb58] sm:$0xf]  ;;  %v9282_v41 = vor.u32 %v11621_v49, %v9279_v47  ;;  %v11981_v49 = vld [vmem:[#allocation6 + $0x12d4] sm:$0xf]  ;;  %v10719_v47 = vld [vmem:[#allocation6 + $0x12f8] sm:$0xf0] }
 0x273   :  { %v12554_v37 = vadd.f32 %v5956_v33, %v12545_v60  ;;  %v12559_v60 = vpop.f32.mrf.mxu0  ;;  %v8645_v33 = vld [vmem:[#allocation6 + $0x298] sm:$0xf] }
 0x274   :  { %6276 = vmatpush.bf16.msrb.mxu3 %v8446_v15  ;;  %6208 = vmatpush.bf16.msrb.mxu2 %v9522_v24  ;;  %v8845_v15 = vld [vmem:[#allocation6 + $0x428] sm:$0xf]  ;;  %v8805_v24 = vld [vmem:[#allocation6 + $0x3d8] sm:$0xf] }
 0x275   :  { %6241 = vmatmul.bf16.vlgmr.msra.gmra.mxu0 %v12434_v3  ;;  %v8846_v22 = vor.u32 %v11517_v17, %v8845_v15  ;;  %v8806_v48 = vor.u32 %v11507_v27, %v8805_v24  ;;  %v12001_v17 = vld [vmem:[#allocation6 + $0x1374] sm:$0xf]  ;;  %v9245_v27 = vld [vmem:[#allocation6 + $0x748] sm:$0xf] }
 0x276   :  { %6285 = vmatpush.bf16.msrb.mxu0 %v8926_v44  ;;  %6247 = vmatpush.bf16.msra.mxu1 %v10482_v51  ;;  %v11881_v44 = vld [vmem:[#allocation6 + $0xfb4] sm:$0xf]  ;;  %v8766_v51 = vor.u32 %v11497_v42, %v8765_v63  ;;  %v11717_v63 = vld [vmem:[#allocation6 + $0xa8c] sm:$0xf0] }
 0x277   :  { %v10322_v56 = vor.u32 %v11881_v44, %v10319_v45  ;;  %v11857_v42 = vld [vmem:[#allocation6 + $0xeec] sm:$0xf0] }
 0x278   :  { %6277 = vmatpush.bf16.msrb.mxu3 %v8406_v28  ;;  %6209 = vmatpush.bf16.msrb.mxu2 %v9482_v39  ;;  %v11757_v28 = vld [vmem:[#allocation6 + $0xbcc] sm:$0xf0]  ;;  %v5995_v39 = vpop.f32.mrf.mxu1 }
 0x279   :  { %v9806_v38 = vor.u32 %v11757_v28, %v9805_v59  ;;  %v12557_v18 = vadd.f32 %v5995_v39, %v12543_v46  ;;  %v9725_v46 = vld [vmem:[#allocation6 + $0xb08] sm:$0xf]  ;;  %v11617_v59 = vld [vmem:[#allocation6 + $0x76c] sm:$0xf0]  ;;  %v8686_v28 = vor.u32 %v11477_v61, %v8685_v19  ;;  %v8567_v61 = vld [vmem:[#allocation6 + $0x220] sm:$0xf0] }
 0x27a   :  { %6286 = vmatpush.bf16.msrb.mxu0 %v8886_v11  ;;  %6248 = vmatpush.bf16.msra.mxu1 %v10442_v16  ;;  %v5958_v11 = vpop.f32.mrf.mxu2  ;;  %v9246_v39 = vor.u32 %v11617_v59, %v9245_v27  ;;  %v10085_v59 = vld [vmem:[#allocation6 + $0xdd8] sm:$0xf] }
 0x27b   :  { %v6036_v24 = vpop.f32.mrf.mxu0  ;;  %v11971_v11 = vld [vmem:[#allocation6 + $0x1284] sm:$0xf] }
 0x27c   :  { %6278 = vmatpush.bf16.msrb.mxu3 %v8366_v43  ;;  %6210 = vmatpush.bf16.msrb.mxu2 %v9442_v54  ;;  %v11747_v43 = vld [vmem:[#allocation6 + $0xb7c] sm:$0xf0]  ;;  %v8725_v54 = vld [vmem:[#allocation6 + $0x338] sm:$0xf]  ;;  %v10639_v24 = vld [vmem:[#allocation6 + $0x1258] sm:$0xf0] }
 0x27d   :  { %v9766_v21 = vor.u32 %v11747_v43, %v9765_v12  ;;  %v8726_v15 = vor.u32 %v11487_v53, %v8725_v54  ;;  %v10762_v12 = vor.u32 %v11991_v30, %v10759_v58  ;;  %v9205_v43 = vld [vmem:[#allocation6 + $0x6f8] sm:$0xf]  ;;  %v11452_v53 = vld [vmem:[#allocation6 + $0x24c] sm:$0xf]  ;;  %v8527_v58 = vld [vmem:[#allocation6 + $0x1d0] sm:$0xf0] }
 0x27e   :  { %6287 = vmatpush.bf16.msrb.mxu0 %v8846_v22  ;;  %6249 = vmatpush.bf16.msra.mxu1 %v10402_v26  ;;  %v11861_v22 = vld [vmem:[#allocation6 + $0xf14] sm:$0xf]  ;;  %v10802_v26 = vor.u32 %v12001_v17, %v10799_v62  ;;  %v10125_v62 = vld [vmem:[#allocation6 + $0xe28] sm:$0xf]  ;;  %v11432_v30 = vld [vmem:[#allocation6 + $0x1ac] sm:$0xf] }
 0x280   :  { %6279 = vmatpush.bf16.msrb.mxu3 %v8326_v0  ;;  %6211 = vmatpush.bf16.msrb.mxu2 %v9402_v5  ;;  %v11737_v0 = vld [vmem:[#allocation6 + $0xb2c] sm:$0xf0]  ;;  %v5997_v5 = vpop.f32.mrf.mxu1 }
 0x281   :  { %v9726_v16 = vor.u32 %v11737_v0, %v9725_v46  ;;  %v8607_v46 = vld [vmem:[#allocation6 + $0x270] sm:$0xf0]  ;;  %v10722_v0 = vor.u32 %v11981_v49, %v10719_v47  ;;  %v11837_v5 = vld [vmem:[#allocation6 + $0xe4c] sm:$0xf0] }
 0x282   :  { %6288 = vmatpush.bf16.msrb.mxu0 %v8806_v48  ;;  %6250 = vmatpush.bf16.msra.mxu1 %v10362_v40  ;;  %v11467_v48 = vld [vmem:[#allocation6 + $0x2bc] sm:$0xf0]  ;;  %v10205_v40 = vld [vmem:[#allocation6 + $0xec8] sm:$0xf]  ;;  %v8610_v17 = vor.u32 %v11452_v53, %v8607_v46 }
 0x283   :  { %6280 = vmatmul.bf16.vlgmr.msrb.gmra.mxu3 %v12411_v1  ;;  %v8646_v44 = vor.u32 %v11467_v48, %v8645_v33  ;;  %v12566_v33 = vld [vmem:[#allocation7] sm:$0xff] }
 0x284   :  { %6324 = vmatpush.bf16.msra.mxu3 %v9886_v4  ;;  %6212 = vmatpush.bf16.msrb.mxu2 %v9362_v29  ;;  %v10842_v4 = vor.u32 %v12011_v25, %v10839_v20  ;;  %v9686_v29 = vor.u32 %v11727_v14, %v9685_v9  ;;  %v11707_v25 = vld [vmem:[#allocation6 + $0xa3c] sm:$0xf0]  ;;  %v10165_v20 = vld [vmem:[#allocation6 + $0xe78] sm:$0xf] }
 0x285   :  { %v9125_v14 = vld [vmem:[#allocation6 + $0x658] sm:$0xf]  ;;  %v11567_v53 = vld [vmem:[#allocation6 + $0x5dc] sm:$0xf0] }
 0x286   :  { %6289 = vmatpush.bf16.msrb.mxu0 %v8766_v51  ;;  %6251 = vmatpush.bf16.msra.mxu1 %v10322_v56  ;;  %v12561_v35 = vpop.f32.mrf.mxu3  ;;  %v10206_v51 = vor.u32 %v11857_v42, %v10205_v40  ;;  %v11847_v56 = vld [vmem:[#allocation6 + $0xe9c] sm:$0xf0]  ;;  %v11951_v40 = vld [vmem:[#allocation6 + $0x11e4] sm:$0xf]  ;;  %v10599_v42 = vld [vmem:[#allocation6 + $0x1208] sm:$0xf0] }
 0x288   :  { %6325 = vmatpush.bf16.msra.mxu3 %v9846_v23  ;;  %6213 = vmatpush.bf16.msrb.mxu2 %v9322_v8  ;;  %v10239_v23 = vld [vmem:[#allocation6 + $0xf38] sm:$0xf0]  ;;  %v11607_v8 = vld [vmem:[#allocation6 + $0x71c] sm:$0xf0] }
 0x289   :  { %v10242_v36 = vor.u32 %v11861_v22, %v10239_v23  ;;  %v9206_v54 = vor.u32 %v11607_v8, %v9205_v43  ;;  %v11587_v22 = vld [vmem:[#allocation6 + $0x67c] sm:$0xf0]  ;;  %v11961_v23 = vld [vmem:[#allocation6 + $0x1234] sm:$0xf]  ;;  %v8530_v8 = vor.u32 %v11432_v30, %v8527_v58  ;;  %v8407_v30 = vld [vmem:[#allocation6 + $0xe0] sm:$0xf0] }
 0x28a   :  { %6290 = vmatpush.bf16.msrb.mxu0 %v8726_v15  ;;  %6252 = vmatpush.bf16.msra.mxu1 %v10282_v32  ;;  %v11442_v32 = vld [vmem:[#allocation6 + $0x1fc] sm:$0xf]  ;;  %v10642_v48 = vor.u32 %v11961_v23, %v10639_v24  ;;  %v9525_v23 = vld [vmem:[#allocation6 + $0x978] sm:$0xf]  ;;  %v11687_v24 = vld [vmem:[#allocation6 + $0x99c] sm:$0xf0] }
 0x28b   :  { %v8570_v27 = vor.u32 %v11442_v32, %v8567_v61  ;;  %v9005_v32 = vld [vmem:[#allocation6 + $0x568] sm:$0xf]  ;;  %v11557_v61 = vld [vmem:[#allocation6 + $0x58c] sm:$0xf0]  ;;  %v8965_v58 = vld [vmem:[#allocation6 + $0x518] sm:$0xf] }
 0x28c   :  { %6326 = vmatpush.bf16.msra.mxu3 %v9806_v38  ;;  %6214 = vmatpush.bf16.msrb.mxu2 %v9282_v41  ;;  %v9645_v38 = vld [vmem:[#allocation6 + $0xa68] sm:$0xf] }
 0x28d   :  { %v9646_v45 = vor.u32 %v11717_v63, %v9645_v38  ;;  %v9165_v41 = vld [vmem:[#allocation6 + $0x6a8] sm:$0xf]  ;;  %v11577_v63 = vld [vmem:[#allocation6 + $0x62c] sm:$0xf0] }
 0x28e   :  { %6291 = vmatpush.bf16.msrb.mxu0 %v8686_v28  ;;  %6253 = vmatpush.bf16.msra.mxu1 %v10242_v36  ;;  %v6075_v15 = vpop.f32.mrf.mxu3  ;;  %v9166_v19 = vor.u32 %v11597_v57, %v9165_v41  ;;  %v9126_v28 = vor.u32 %v11587_v22, %v9125_v14  ;;  %v2432_v36 = vperm.slane %v12566_v33, 4  ;;  %v9085_v38 = vld [vmem:[#allocation6 + $0x608] sm:$0xf]  ;;  %v6047_v49 = vpop.f32.mrf.mxu1  ;;  %v10559_v41 = vld [vmem:[#allocation6 + $0x11b8] sm:$0xf0] }
 0x28f   :  { %6215 = vmatmul.bf16.vlgmr.msrb.gmra.mxu2 %v12425_v7  ;;  %v9086_v47 = vor.u32 %v11577_v63, %v9085_v38  ;;  %v11697_v15 = vld [vmem:[#allocation6 + $0x9ec] sm:$0xf0]  ;;  %v9526_v38 = vor.u32 %v11687_v24, %v9525_v23  ;;  %v10525_v63 = vld [vmem:[#allocation6 + $0x1148] sm:$0xf]  ;;  %v11512_v24 = vld [vmem:[#allocation6 + $0x42c] sm:$0xf] }
 0x290   :  { %6327 = vmatpush.bf16.msra.mxu3 %v9766_v21  ;;  %6259 = vmatpush.bf16.msra.mxu2 %v10842_v4  ;;  %v9605_v21 = vld [vmem:[#allocation6 + $0xa18] sm:$0xf]  ;;  %v10679_v4 = vld [vmem:[#allocation6 + $0x12a8] sm:$0xf0] }
 0x291   :  { %v9606_v34 = vor.u32 %v11707_v25, %v9605_v21  ;;  %6254 = vmatmul.bf16.vlgmr.msra.gmra.mxu1 %v12442_v50  ;;  %v10682_v9 = vor.u32 %v11971_v11, %v10679_v4  ;;  %v8487_v21 = vld [vmem:[#allocation6 + $0x180] sm:$0xf0]  ;;  %v6074_v25 = vadd.f32 %v12561_v35, %v2432_v36  ;;  %v9565_v4 = vld [vmem:[#allocation6 + $0x9c8] sm:$0xf]  ;;  %v10005_v35 = vld [vmem:[#allocation6 + $0xd38] sm:$0xf] }
 0x292   :  { %6298 = vmatpush.bf16.msrb.mxu1 %v9246_v39  ;;  %6292 = vmatpush.bf16.msrb.mxu0 %v8646_v44  ;;  %v6008_v39 = vpop.f32.mrf.mxu2  ;;  %v10045_v44 = vld [vmem:[#allocation6 + $0xd88] sm:$0xf]  ;;  %v11547_v36 = vld [vmem:[#allocation6 + $0x53c] sm:$0xf0] }
 0x294   :  { %6328 = vmatpush.bf16.msra.mxu3 %v9726_v16  ;;  %6260 = vmatpush.bf16.msra.mxu2 %v10802_v26  ;;  %v10166_v16 = vor.u32 %v11847_v56, %v10165_v20  ;;  %v10126_v26 = vor.u32 %v11837_v5, %v10125_v62  ;;  %v9045_v56 = vld [vmem:[#allocation6 + $0x5b8] sm:$0xf]  ;;  %v8447_v62 = vld [vmem:[#allocation6 + $0x130] sm:$0xf0] }
 0x295   :  { %6293 = vmatmul.bf16.vlgmr.msrb.gmra.mxu0 %v12413_v2 }
 0x296   :  { %6337 = vmatpush.bf16.msra.mxu0 %v10206_v51  ;;  %6299 = vmatpush.bf16.msrb.mxu1 %v9206_v54  ;;  %v11422_v51 = vld [vmem:[#allocation6 + $0x15c] sm:$0xf]  ;;  %v10602_v54 = vor.u32 %v11951_v40, %v10599_v42 }
 0x297   :  { %v8490_v11 = vor.u32 %v11422_v51, %v8487_v21  ;;  %v8367_v51 = vld [vmem:[#allocation6 + $0x90] sm:$0xf0] }
 0x298   :  { %6329 = vmatpush.bf16.msra.mxu3 %v9686_v29  ;;  %6261 = vmatpush.bf16.msra.mxu2 %v10762_v12  ;;  %v11827_v29 = vld [vmem:[#allocation6 + $0xdfc] sm:$0xf0]  ;;  %v6009_v12 = vadd.f32 %v6008_v39, %v12557_v18  ;;  %v6086_v18 = vpop.f32.mrf.mxu0  ;;  %v11937_v39 = vld [vmem:[#allocation6 + $0x116c] sm:$0xf0] }
 0x299   :  { %v10086_v43 = vor.u32 %v11827_v29, %v10085_v59  ;;  %v9006_v59 = vor.u32 %v11557_v61, %v9005_v32  ;;  %v11402_v29 = vld [vmem:[#allocation6 + $0xbc] sm:$0xf]  ;;  %v10526_v21 = vor.u32 %v11937_v39, %v10525_v63  ;;  %v11917_v32 = vld [vmem:[#allocation6 + $0x10cc] sm:$0xf0] }
 0x29a   :  { %6338 = vmatpush.bf16.msra.mxu0 %v10166_v16  ;;  %6300 = vmatpush.bf16.msrb.mxu1 %v9166_v19  ;;  %v6022_v20 = vadd.f32 %v12547_v31, %v6009_v12  ;;  %v9046_v31 = vor.u32 %v11567_v53, %v9045_v56  ;;  %v11807_v16 = vld [vmem:[#allocation6 + $0xd5c] sm:$0xf0]  ;;  %v8410_v42 = vor.u32 %v11402_v29, %v8407_v30  ;;  %v9485_v12 = vld [vmem:[#allocation6 + $0x928] sm:$0xf]  ;;  %v10485_v56 = vld [vmem:[#allocation6 + $0x10f8] sm:$0xf] }
 0x29b   :  { %v10006_v14 = vor.u32 %v11807_v16, %v10005_v35  ;;  %v11927_v53 = vld [vmem:[#allocation6 + $0x111c] sm:$0xf0]  ;;  %v11772_v16 = vld [vmem:[#allocation6 + $0xc4c] sm:$0xf]  ;;  %v10405_v30 = vld [vmem:[#allocation6 + $0x1058] sm:$0xf] }
 0x29c   :  { %6330 = vmatpush.bf16.msra.mxu3 %v9646_v45  ;;  %6262 = vmatpush.bf16.msra.mxu2 %v10722_v0  ;;  %v11817_v45 = vld [vmem:[#allocation6 + $0xdac] sm:$0xf0]  ;;  %v11941_v0 = vld [vmem:[#allocation6 + $0x1194] sm:$0xf]  ;;  %v6035_v57 = vadd.f32 %v12559_v60, %v6022_v20  ;;  %v6010_v60 = vpop.f32.mrf.mxu2  ;;  %v10486_v35 = vor.u32 %v11927_v53, %v10485_v56  ;;  %v11502_v39 = vld [vmem:[#allocation6 + $0x3dc] sm:$0xf] }
 0x29d   :  { %v10046_v46 = vor.u32 %v11817_v45, %v10045_v44  ;;  %v10562_v5 = vor.u32 %v11941_v0, %v10559_v41  ;;  %v8966_v45 = vor.u32 %v11547_v36, %v8965_v58  ;;  %v8927_v20 = vld [vmem:[#allocation6 + $0x4f0] sm:$0xf0]  ;;  %v9445_v0 = vld [vmem:[#allocation6 + $0x8d8] sm:$0xf]  ;;  %v11667_v41 = vld [vmem:[#allocation6 + $0x8fc] sm:$0xf0] }
 0x29e   :  { %6339 = vmatpush.bf16.msra.mxu0 %v10126_v26  ;;  %6301 = vmatpush.bf16.msrb.mxu1 %v9126_v28  ;;  %v12576_v19 = vadd.f32 %v6047_v49, %v6035_v57  ;;  %v9965_v26 = vld [vmem:[#allocation6 + $0xce8] sm:$0xf]  ;;  %v11797_v28 = vld [vmem:[#allocation6 + $0xd0c] sm:$0xf0]  ;;  %v11787_v49 = vld [vmem:[#allocation6 + $0xcbc] sm:$0xf0] }
 0x29f   :  { %v9966_v40 = vor.u32 %v11797_v28, %v9965_v26  ;;  %v9405_v60 = vld [vmem:[#allocation6 + $0x888] sm:$0xf]  ;;  %v9847_v28 = vld [vmem:[#allocation6 + $0xc20] sm:$0xf0]  ;;  %v11907_v58 = vld [vmem:[#allocation6 + $0x107c] sm:$0xf0] }
 0x2a0   :  { %6331 = vmatpush.bf16.msra.mxu3 %v9606_v34  ;;  %6263 = vmatpush.bf16.msra.mxu2 %v10682_v9  ;;  %v12574_v34 = vadd.f32 %v6086_v18, %v6074_v25  ;;  %v9566_v9 = vor.u32 %v11697_v15, %v9565_v4  ;;  %v11532_v25 = vld [vmem:[#allocation6 + $0x4cc] sm:$0xf]  ;;  %v8327_v4 = vld [vmem:[#allocation6 + $0x40] sm:$0xf0]  ;;  %v11522_v15 = vld [vmem:[#allocation6 + $0x47c] sm:$0xf] }
 0x2a1   :  { %v8930_v57 = vor.u32 %v11532_v25, %v8927_v20  ;;  %v9365_v36 = vld [vmem:[#allocation6 + $0x838] sm:$0xf]  ;;  %v11492_v56 = vld [vmem:[#allocation6 + $0x38c] sm:$0xf] }
 0x2a2   :  { %6340 = vmatpush.bf16.msra.mxu0 %v10086_v43  ;;  %6302 = vmatpush.bf16.msrb.mxu1 %v9086_v47  ;;  %v11677_v43 = vld [vmem:[#allocation6 + $0x94c] sm:$0xf0]  ;;  %v11392_v47 = vld [vmem:[#allocation6 + $0x6c] sm:$0xf] }
 0x2a3   :  { %6332 = vmatmul.bf16.vlgmr.msra.gmra.mxu3 %v12429_v13 }
 0x2a4   :  { %6376 = vmatpush.bf16.msrb.mxu3 %v8610_v17  ;;  %6264 = vmatpush.bf16.msra.mxu2 %v10642_v48  ;;  %v11412_v17 = vld [vmem:[#allocation6 + $0x10c] sm:$0xf]  ;;  %v6088_v48 = vpop.f32.mrf.mxu0 }
 0x2a5   :  { %v8450_v22 = vor.u32 %v11412_v17, %v8447_v62  ;;  %v9887_v17 = vld [vmem:[#allocation6 + $0xc70] sm:$0xf0]  ;;  %v9446_v62 = vor.u32 %v11667_v41, %v9445_v0  ;;  %v11647_v48 = vld [vmem:[#allocation6 + $0x85c] sm:$0xf0]  ;;  %v11742_v0 = vld [vmem:[#allocation6 + $0xb5c] sm:$0xf] }
 0x2a6   :  { %6341 = vmatpush.bf16.msra.mxu0 %v10046_v46  ;;  %6303 = vmatpush.bf16.msrb.mxu1 %v9046_v31  ;;  %v12578_v44 = vpop.f32.mrf.mxu3  ;;  %v8370_v46 = vor.u32 %v11392_v47, %v8367_v51  ;;  %v8887_v31 = vld [vmem:[#allocation6 + $0x4a0] sm:$0xf0]  ;;  %v9890_v23 = vor.u32 %v11772_v16, %v9887_v17  ;;  %v9325_v51 = vld [vmem:[#allocation6 + $0x7e8] sm:$0xf] }
 0x2a7   :  { %v9767_v41 = vld [vmem:[#allocation6 + $0xb80] sm:$0xf0] }
 0x2a8   :  { %6377 = vmatpush.bf16.msrb.mxu3 %v8570_v27  ;;  %6265 = vmatpush.bf16.msra.mxu2 %v10602_v54  ;;  %v6049_v27 = vpop.f32.mrf.mxu1  ;;  %v9486_v54 = vor.u32 %v11677_v43, %v9485_v12  ;;  %v11752_v12 = vld [vmem:[#allocation6 + $0xbac] sm:$0xf]  ;;  %v9807_v43 = vld [vmem:[#allocation6 + $0xbd0] sm:$0xf0]  ;;  %v9770_v17 = vor.u32 %v11742_v0, %v9767_v41 }
 0x2a9   :  { %v8847_v27 = vld [vmem:[#allocation6 + $0x450] sm:$0xf0]  ;;  %v11852_v0 = vld [vmem:[#allocation6 + $0xecc] sm:$0xf] }
 0x2aa   :  { %6342 = vmatpush.bf16.msra.mxu0 %v10006_v14  ;;  %6304 = vmatpush.bf16.msrb.mxu1 %v9006_v59  ;;  %v11762_v59 = vld [vmem:[#allocation6 + $0xbfc] sm:$0xf]  ;;  %v10207_v41 = vld [vmem:[#allocation6 + $0xef0] sm:$0xf0] }
 0x2ab   :  { %v9850_v63 = vor.u32 %v11762_v59, %v9847_v28  ;;  %v10805_v28 = vld [vmem:[#allocation6 + $0x1378] sm:$0xf] }
 0x2ac   :  { %6378 = vmatpush.bf16.msrb.mxu3 %v8530_v8  ;;  %6266 = vmatpush.bf16.msra.mxu2 %v10562_v5  ;;  %v9925_v8 = vld [vmem:[#allocation6 + $0xc98] sm:$0xf]  ;;  %v10445_v5 = vld [vmem:[#allocation6 + $0x10a8] sm:$0xf] }
 0x2ad   :  { %v9926_v18 = vor.u32 %v11787_v49, %v9925_v8  ;;  %v10446_v26 = vor.u32 %v11917_v32, %v10445_v5  ;;  %v9366_v8 = vor.u32 %v11647_v48, %v9365_v36  ;;  %v11897_v49 = vld [vmem:[#allocation6 + $0x102c] sm:$0xf0]  ;;  %v11482_v32 = vld [vmem:[#allocation6 + $0x33c] sm:$0xf]  ;;  %v8687_v48 = vld [vmem:[#allocation6 + $0x310] sm:$0xf0] }
 0x2ae   :  { %6343 = vmatpush.bf16.msra.mxu0 %v9966_v40  ;;  %6305 = vmatpush.bf16.msrb.mxu1 %v8966_v45  ;;  %v6127_v14 = vpop.f32.mrf.mxu3  ;;  %v10406_v40 = vor.u32 %v11907_v58, %v10405_v30  ;;  %v10365_v45 = vld [vmem:[#allocation6 + $0x1008] sm:$0xf]  ;;  %v12017_v5 = vld [vmem:[#allocation6 + $0x13ec] sm:$0xf0]  ;;  %v11472_v30 = vld [vmem:[#allocation6 + $0x2ec] sm:$0xf] }
 0x2af   :  { %6267 = vmatmul.bf16.vlgmr.msra.gmra.mxu2 %v12452_v10 }
 0x2b0   :  { %6379 = vmatpush.bf16.msrb.mxu3 %v8490_v11  ;;  %6311 = vmatpush.bf16.msrb.mxu2 %v9566_v9  ;;  %v11382_v11 = vld [vmem:[#allocation6 + $0x1c] sm:$0xf]  ;;  %v11657_v9 = vld [vmem:[#allocation6 + $0x8ac] sm:$0xf0]  ;;  %v6099_v53 = vpop.f32.mrf.mxu1 }
 0x2b1   :  { %v8330_v61 = vor.u32 %v11382_v11, %v8327_v4  ;;  %6306 = vmatmul.bf16.vlgmr.msrb.gmra.mxu1 %v12418_v52  ;;  %v9406_v29 = vor.u32 %v11657_v9, %v9405_v60  ;;  %v10325_v4 = vld [vmem:[#allocation6 + $0xfb8] sm:$0xf]  ;;  %v8727_v60 = vld [vmem:[#allocation6 + $0x360] sm:$0xf0]  ;;  %v9727_v9 = vld [vmem:[#allocation6 + $0xb30] sm:$0xf0] }
 0x2b2   :  { %6350 = vmatpush.bf16.msra.mxu1 %v10526_v21  ;;  %6344 = vmatpush.bf16.msra.mxu0 %v9926_v18  ;;  %v6060_v47 = vpop.f32.mrf.mxu2  ;;  %v11637_v21 = vld [vmem:[#allocation6 + $0x80c] sm:$0xf0]  ;;  %v10366_v18 = vor.u32 %v11897_v49, %v10365_v45  ;;  %v8690_v45 = vor.u32 %v11472_v30, %v8687_v48  ;;  %v10127_v48 = vld [vmem:[#allocation6 + $0xe50] sm:$0xf0] }
 0x2b3   :  { %v12585_v25 = vadd.f32 %v6060_v47, %v12576_v19  ;;  %v9326_v11 = vor.u32 %v11637_v21, %v9325_v51  ;;  %v12590_v19 = vpop.f32.mrf.mxu0  ;;  %v10765_v47 = vld [vmem:[#allocation6 + $0x1328] sm:$0xf]  ;;  %v11997_v51 = vld [vmem:[#allocation6 + $0x134c] sm:$0xf0]  ;;  %v11462_v21 = vld [vmem:[#allocation6 + $0x29c] sm:$0xf] }
 0x2b4   :  { %6380 = vmatpush.bf16.msrb.mxu3 %v8450_v22  ;;  %6312 = vmatpush.bf16.msrb.mxu2 %v9526_v38  ;;  %v8890_v22 = vor.u32 %v11522_v15, %v8887_v31  ;;  %v8850_v38 = vor.u32 %v11512_v24, %v8847_v27  ;;  %v11887_v15 = vld [vmem:[#allocation6 + $0xfdc] sm:$0xf0]  ;;  %v8730_v27 = vor.u32 %v11482_v32, %v8727_v60  ;;  %v9607_v32 = vld [vmem:[#allocation6 + $0xa40] sm:$0xf0] }
 0x2b5   :  { %6345 = vmatmul.bf16.vlgmr.msra.gmra.mxu0 %v12434_v3  ;;  %v11627_v31 = vld [vmem:[#allocation6 + $0x7bc] sm:$0xf0] }
 0x2b6   :  { %6389 = vmatpush.bf16.msrb.mxu0 %v8930_v57  ;;  %6351 = vmatpush.bf16.msra.mxu1 %v10486_v35  ;;  %v12588_v57 = vadd.f32 %v6099_v53, %v12574_v34  ;;  %v9285_v35 = vld [vmem:[#allocation6 + $0x798] sm:$0xf]  ;;  %v11732_v34 = vld [vmem:[#allocation6 + $0xb0c] sm:$0xf] }
 0x2b7   :  { %v9286_v14 = vor.u32 %v11627_v31, %v9285_v35  ;;  %v9730_v59 = vor.u32 %v11732_v34, %v9727_v9  ;;  %v11712_v53 = vld [vmem:[#allocation6 + $0xa6c] sm:$0xf]  ;;  %v10167_v34 = vld [vmem:[#allocation6 + $0xea0] sm:$0xf0]  ;;  %v8613_v9 = vld [vmem:[#allocation6 + $0x250] sm:$0xf] }
 0x2b8   :  { %6381 = vmatpush.bf16.msrb.mxu3 %v8410_v42  ;;  %6313 = vmatpush.bf16.msrb.mxu2 %v9486_v54  ;;  %v8807_v42 = vld [vmem:[#allocation6 + $0x400] sm:$0xf0]  ;;  %v9810_v54 = vor.u32 %v11752_v12, %v9807_v43  ;;  %v6101_v58 = vpop.f32.mrf.mxu1  ;;  %v11612_v43 = vld [vmem:[#allocation6 + $0x74c] sm:$0xf] }
 0x2b9   :  { %v8810_v20 = vor.u32 %v11502_v39, %v8807_v42  ;;  %v10245_v39 = vld [vmem:[#allocation6 + $0xf18] sm:$0xf]  ;;  %v11832_v58 = vld [vmem:[#allocation6 + $0xe2c] sm:$0xf] }
 0x2ba   :  { %6390 = vmatpush.bf16.msrb.mxu0 %v8890_v22  ;;  %6352 = vmatpush.bf16.msra.mxu1 %v10446_v26  ;;  %v10285_v22 = vld [vmem:[#allocation6 + $0xf68] sm:$0xf]  ;;  %v6062_v24 = vpop.f32.mrf.mxu2 }
 0x2bb   :  { %v6140_v42 = vpop.f32.mrf.mxu0  ;;  %v9167_v24 = vld [vmem:[#allocation6 + $0x6d0] sm:$0xf0] }
 0x2bc   :  { %6382 = vmatpush.bf16.msrb.mxu3 %v8370_v46  ;;  %6314 = vmatpush.bf16.msrb.mxu2 %v9446_v62  ;;  %v8767_v46 = vld [vmem:[#allocation6 + $0x3b0] sm:$0xf0]  ;;  %v10845_v62 = vld [vmem:[#allocation6 + $0x13c8] sm:$0xf]  ;;  %v9127_v42 = vld [vmem:[#allocation6 + $0x680] sm:$0xf0] }
 0x2bd   :  { %v8770_v16 = vor.u32 %v11492_v56, %v8767_v46  ;;  %v10846_v26 = vor.u32 %v12017_v5, %v10845_v62  ;;  %v8647_v56 = vld [vmem:[#allocation6 + $0x2c0] sm:$0xf0]  ;;  %v10210_v62 = vor.u32 %v11852_v0, %v10207_v41  ;;  %v11702_v5 = vld [vmem:[#allocation6 + $0xa1c] sm:$0xf]  ;;  %v10605_v41 = vld [vmem:[#allocation6 + $0x11e8] sm:$0xf] }
 0x2be   :  { %6391 = vmatpush.bf16.msrb.mxu0 %v8850_v38  ;;  %6353 = vmatpush.bf16.msra.mxu1 %v10406_v40  ;;  %v11722_v38 = vld [vmem:[#allocation6 + $0xabc] sm:$0xf]  ;;  %v11867_v40 = vld [vmem:[#allocation6 + $0xf3c] sm:$0xf0]  ;;  %v8650_v35 = vor.u32 %v11462_v21, %v8647_v56  ;;  %v8533_v21 = vld [vmem:[#allocation6 + $0x1b0] sm:$0xf] }
 0x2bf   :  { %v2433_v56 = vperm.slane %v12566_v33, 5 }
 0x2c0   :  { %6383 = vmatpush.bf16.msrb.mxu3 %v8330_v61  ;;  %6315 = vmatpush.bf16.msrb.mxu2 %v9406_v29  ;;  %v10326_v61 = vor.u32 %v11887_v15, %v10325_v4  ;;  %v12007_v29 = vld [vmem:[#allocation6 + $0x139c] sm:$0xf0]  ;;  %v11602_v4 = vld [vmem:[#allocation6 + $0x6fc] sm:$0xf]  ;;  %v9207_v15 = vld [vmem:[#allocation6 + $0x720] sm:$0xf0] }
 0x2c1   :  { %v10806_v12 = vor.u32 %v12007_v29, %v10805_v28  ;;  %v9210_v60 = vor.u32 %v11602_v4, %v9207_v15 }
 0x2c2   :  { %6392 = vmatpush.bf16.msrb.mxu0 %v8810_v20  ;;  %6354 = vmatpush.bf16.msra.mxu1 %v10366_v18  ;;  %v9647_v18 = vld [vmem:[#allocation6 + $0xa90] sm:$0xf0] }
 0x2c3   :  { %6384 = vmatmul.bf16.vlgmr.msrb.gmra.mxu3 %v12411_v1  ;;  %v9650_v31 = vor.u32 %v11712_v53, %v9647_v18  ;;  %v11572_v18 = vld [vmem:[#allocation6 + $0x60c] sm:$0xf] }
 0x2c4   :  { %6428 = vmatpush.bf16.msra.mxu3 %v9890_v23  ;;  %6316 = vmatpush.bf16.msrb.mxu2 %v9366_v8  ;;  %v11877_v23 = vld [vmem:[#allocation6 + $0xf8c] sm:$0xf0]  ;;  %v9247_v8 = vld [vmem:[#allocation6 + $0x770] sm:$0xf0] }
 0x2c5   :  { %v10286_v36 = vor.u32 %v11877_v23, %v10285_v22  ;;  %v9250_v46 = vor.u32 %v11612_v43, %v9247_v8  ;;  %v11592_v23 = vld [vmem:[#allocation6 + $0x6ac] sm:$0xf]  ;;  %v11967_v43 = vld [vmem:[#allocation6 + $0x125c] sm:$0xf0]  ;;  %v10130_v8 = vor.u32 %v11832_v58, %v10127_v48  ;;  %v11418_v58 = vld [vmem:[#allocation6 + $0x134] sm:$0xf0] }
 0x2c6   :  { %6393 = vmatpush.bf16.msrb.mxu0 %v8770_v16  ;;  %6355 = vmatpush.bf16.msra.mxu1 %v10326_v61  ;;  %v12592_v20 = vpop.f32.mrf.mxu3  ;;  %v10725_v16 = vld [vmem:[#allocation6 + $0x12d8] sm:$0xf]  ;;  %v11842_v61 = vld [vmem:[#allocation6 + $0xe7c] sm:$0xf] }
 0x2c7   :  { %v10170_v29 = vor.u32 %v11842_v61, %v10167_v34  ;;  %v11562_v34 = vld [vmem:[#allocation6 + $0x5bc] sm:$0xf] }
 0x2c8   :  { %6429 = vmatpush.bf16.msra.mxu3 %v9850_v63  ;;  %6317 = vmatpush.bf16.msrb.mxu2 %v9326_v11  ;;  %v9687_v63 = vld [vmem:[#allocation6 + $0xae0] sm:$0xf0]  ;;  %v10766_v11 = vor.u32 %v11997_v51, %v10765_v47 }
 0x2c9   :  { %v9690_v49 = vor.u32 %v11722_v38, %v9687_v63  ;;  %v8573_v38 = vld [vmem:[#allocation6 + $0x200] sm:$0xf]  ;;  %v11448_v63 = vld [vmem:[#allocation6 + $0x224] sm:$0xf0]  ;;  %v10087_v51 = vld [vmem:[#allocation6 + $0xe00] sm:$0xf0] }
 0x2ca   :  { %6394 = vmatpush.bf16.msrb.mxu0 %v8730_v27  ;;  %6356 = vmatpush.bf16.msra.mxu1 %v10286_v36  ;;  %v10685_v27 = vld [vmem:[#allocation6 + $0x1288] sm:$0xf]  ;;  %v9170_v36 = vor.u32 %v11592_v23, %v9167_v24  ;;  %v11947_v23 = vld [vmem:[#allocation6 + $0x11bc] sm:$0xf0] }
 0x2cc   :  { %6430 = vmatpush.bf16.msra.mxu3 %v9810_v54  ;;  %6318 = vmatpush.bf16.msrb.mxu2 %v9286_v14  ;;  %v10246_v54 = vor.u32 %v11867_v40, %v10245_v39  ;;  %v11458_v14 = vld [vmem:[#allocation6 + $0x274] sm:$0xf0]  ;;  %v11582_v40 = vld [vmem:[#allocation6 + $0x65c] sm:$0xf] }
 0x2cd   :  { %v8614_v30 = vor.u32 %v11458_v14, %v8613_v9  ;;  %v9130_v47 = vor.u32 %v11582_v40, %v9127_v42  ;;  %v9047_v9 = vld [vmem:[#allocation6 + $0x5e0] sm:$0xf0] }
 0x2ce   :  { %6395 = vmatpush.bf16.msrb.mxu0 %v8690_v45  ;;  %6357 = vmatpush.bf16.msra.mxu1 %v10246_v54  ;;  %v6179_v28 = vpop.f32.mrf.mxu3  ;;  %v8574_v45 = vor.u32 %v11448_v63, %v8573_v38  ;;  %v11438_v54 = vld [vmem:[#allocation6 + $0x1d4] sm:$0xf0]  ;;  %v11552_v38 = vld [vmem:[#allocation6 + $0x56c] sm:$0xf]  ;;  %v9007_v63 = vld [vmem:[#allocation6 + $0x590] sm:$0xf0] }
 0x2cf   :  { %6319 = vmatmul.bf16.vlgmr.msrb.gmra.mxu2 %v12425_v7  ;;  %v9567_v28 = vld [vmem:[#allocation6 + $0x9f0] sm:$0xf0] }
 0x2d0   :  { %6431 = vmatpush.bf16.msra.mxu3 %v9770_v17  ;;  %6363 = vmatpush.bf16.msra.mxu2 %v10846_v26  ;;  %v11987_v17 = vld [vmem:[#allocation6 + $0x12fc] sm:$0xf0]  ;;  %v9610_v26 = vor.u32 %v11702_v5, %v9607_v32  ;;  %v11428_v5 = vld [vmem:[#allocation6 + $0x184] sm:$0xf0]  ;;  %v6178_v32 = vadd.f32 %v12592_v20, %v2433_v56  ;;  %v11802_v20 = vld [vmem:[#allocation6 + $0xd3c] sm:$0xf] }
 0x2d1   :  { %v10726_v22 = vor.u32 %v11987_v17, %v10725_v16  ;;  %6358 = vmatmul.bf16.vlgmr.msra.gmra.mxu1 %v12442_v50  ;;  %v10047_v16 = vld [vmem:[#allocation6 + $0xdb0] sm:$0xf0]  ;;  %v6151_v17 = vpop.f32.mrf.mxu1  ;;  %v8967_v56 = vld [vmem:[#allocation6 + $0x540] sm:$0xf0] }
 0x2d2   :  { %6402 = vmatpush.bf16.msrb.mxu1 %v9250_v46  ;;  %6396 = vmatpush.bf16.msrb.mxu0 %v8650_v35  ;;  %v9087_v46 = vld [vmem:[#allocation6 + $0x630] sm:$0xf0]  ;;  %v6112_v0 = vpop.f32.mrf.mxu2  ;;  %v8534_v35 = vor.u32 %v11438_v54, %v8533_v21  ;;  %v11408_v21 = vld [vmem:[#allocation6 + $0xe4] sm:$0xf0]  ;;  %v11542_v54 = vld [vmem:[#allocation6 + $0x51c] sm:$0xf] }
 0x2d3   :  { %v6113_v4 = vadd.f32 %v6112_v0, %v12588_v57  ;;  %v9090_v33 = vor.u32 %v11572_v18, %v9087_v46  ;;  %v6190_v57 = vpop.f32.mrf.mxu0  ;;  %v11932_v46 = vld [vmem:[#allocation6 + $0x114c] sm:$0xf]  ;;  %v10527_v0 = vld [vmem:[#allocation6 + $0x1170] sm:$0xf0] }
 0x2d4   :  { %6432 = vmatpush.bf16.msra.mxu3 %v9730_v59  ;;  %6364 = vmatpush.bf16.msra.mxu2 %v10806_v12  ;;  %v11977_v59 = vld [vmem:[#allocation6 + $0x12ac] sm:$0xf0]  ;;  %v10645_v12 = vld [vmem:[#allocation6 + $0x1238] sm:$0xf] }
 0x2d5   :  { %6397 = vmatmul.bf16.vlgmr.msrb.gmra.mxu0 %v12413_v2  ;;  %v10686_v39 = vor.u32 %v11977_v59, %v10685_v27  ;;  %v10646_v53 = vor.u32 %v11967_v43, %v10645_v12  ;;  %v6126_v61 = vadd.f32 %v12578_v44, %v6113_v4  ;;  %v11692_v59 = vld [vmem:[#allocation6 + $0x9cc] sm:$0xf]  ;;  %v9050_v44 = vor.u32 %v11562_v34, %v9047_v9  ;;  %v11682_v12 = vld [vmem:[#allocation6 + $0x97c] sm:$0xf]  ;;  %v9527_v43 = vld [vmem:[#allocation6 + $0x9a0] sm:$0xf0] }
 0x2d6   :  { %6441 = vmatpush.bf16.msra.mxu0 %v10210_v62  ;;  %6403 = vmatpush.bf16.msrb.mxu1 %v9210_v60  ;;  %v8493_v62 = vld [vmem:[#allocation6 + $0x160] sm:$0xf]  ;;  %v9530_v18 = vor.u32 %v11682_v12, %v9527_v43  ;;  %v11672_v4 = vld [vmem:[#allocation6 + $0x92c] sm:$0xf]  ;;  %v11922_v34 = vld [vmem:[#allocation6 + $0x10fc] sm:$0xf] }
 0x2d7   :  { %v6139_v24 = vadd.f32 %v12590_v19, %v6126_v61  ;;  %v8494_v27 = vor.u32 %v11428_v5, %v8493_v62  ;;  %v11398_v62 = vld [vmem:[#allocation6 + $0x94] sm:$0xf0]  ;;  %v10530_v5 = vor.u32 %v11932_v46, %v10527_v0  ;;  %v10487_v9 = vld [vmem:[#allocation6 + $0x1120] sm:$0xf0]  ;;  %v8853_v43 = vld [vmem:[#allocation6 + $0x430] sm:$0xf] }
 0x2d8   :  { %6433 = vmatpush.bf16.msra.mxu3 %v9690_v49  ;;  %6365 = vmatpush.bf16.msra.mxu2 %v10766_v11  ;;  %v11822_v49 = vld [vmem:[#allocation6 + $0xddc] sm:$0xf]  ;;  %v11957_v11 = vld [vmem:[#allocation6 + $0x120c] sm:$0xf0]  ;;  %v11538_v61 = vld [vmem:[#allocation6 + $0x4f4] sm:$0xf0] }
 0x2d9   :  { %v10090_v15 = vor.u32 %v11822_v49, %v10087_v51  ;;  %v10606_v60 = vor.u32 %v11957_v11, %v10605_v41  ;;  %v9010_v49 = vor.u32 %v11552_v38, %v9007_v63  ;;  %v8413_v51 = vld [vmem:[#allocation6 + $0xc0] sm:$0xf]  ;;  %v10447_v38 = vld [vmem:[#allocation6 + $0x10d0] sm:$0xf0] }
 0x2da   :  { %6442 = vmatpush.bf16.msra.mxu0 %v10170_v29  ;;  %6404 = vmatpush.bf16.msrb.mxu1 %v9170_v36  ;;  %v10007_v29 = vld [vmem:[#allocation6 + $0xd60] sm:$0xf0]  ;;  %v12605_v36 = vadd.f32 %v6151_v17, %v6139_v24  ;;  %v6114_v19 = vpop.f32.mrf.mxu2  ;;  %v8414_v11 = vor.u32 %v11408_v21, %v8413_v51  ;;  %v11902_v21 = vld [vmem:[#allocation6 + $0x105c] sm:$0xf]  ;;  %v8813_v0 = vld [vmem:[#allocation6 + $0x3e0] sm:$0xf] }
 0x2db   :  { %v10010_v40 = vor.u32 %v11802_v20, %v10007_v29  ;;  %v9927_v17 = vld [vmem:[#allocation6 + $0xcc0] sm:$0xf0]  ;;  %v10490_v20 = vor.u32 %v11922_v34, %v10487_v9  ;;  %v9893_v29 = vld [vmem:[#allocation6 + $0xc50] sm:$0xf]  ;;  %v11652_v19 = vld [vmem:[#allocation6 + $0x88c] sm:$0xf] }
 0x2dc   :  { %6434 = vmatpush.bf16.msra.mxu3 %v9650_v31  ;;  %6366 = vmatpush.bf16.msra.mxu2 %v10726_v22  ;;  %v11812_v31 = vld [vmem:[#allocation6 + $0xd8c] sm:$0xf]  ;;  %v10565_v22 = vld [vmem:[#allocation6 + $0x1198] sm:$0xf]  ;;  %v8773_v34 = vld [vmem:[#allocation6 + $0x390] sm:$0xf] }
 0x2dd   :  { %v10050_v14 = vor.u32 %v11812_v31, %v10047_v16  ;;  %v10566_v48 = vor.u32 %v11947_v23, %v10565_v22  ;;  %v8970_v16 = vor.u32 %v11542_v54, %v8967_v56  ;;  %v11662_v22 = vld [vmem:[#allocation6 + $0x8dc] sm:$0xf]  ;;  %v9447_v23 = vld [vmem:[#allocation6 + $0x900] sm:$0xf0] }
 0x2de   :  { %6443 = vmatpush.bf16.msra.mxu0 %v10130_v8  ;;  %6405 = vmatpush.bf16.msrb.mxu1 %v9130_v47  ;;  %v11792_v8 = vld [vmem:[#allocation6 + $0xcec] sm:$0xf]  ;;  %v9967_v47 = vld [vmem:[#allocation6 + $0xd10] sm:$0xf0]  ;;  %v10407_v54 = vld [vmem:[#allocation6 + $0x1080] sm:$0xf0] }
 0x2df   :  { %v9970_v41 = vor.u32 %v11792_v8, %v9967_v47  ;;  %v11768_v47 = vld [vmem:[#allocation6 + $0xc24] sm:$0xf0]  ;;  %v11642_v56 = vld [vmem:[#allocation6 + $0x83c] sm:$0xf] }
 0x2e0   :  { %6435 = vmatpush.bf16.msra.mxu3 %v9610_v26  ;;  %6367 = vmatpush.bf16.msra.mxu2 %v10686_v39  ;;  %v12603_v26 = vadd.f32 %v6190_v57, %v6178_v32  ;;  %v9570_v39 = vor.u32 %v11692_v59, %v9567_v28  ;;  %v8933_v32 = vld [vmem:[#allocation6 + $0x4d0] sm:$0xf]  ;;  %v11388_v59 = vld [vmem:[#allocation6 + $0x44] sm:$0xf0]  ;;  %v8893_v28 = vld [vmem:[#allocation6 + $0x480] sm:$0xf] }
 0x2e1   :  { %v8934_v24 = vor.u32 %v11538_v61, %v8933_v32 }
 0x2e2   :  { %6444 = vmatpush.bf16.msra.mxu0 %v10090_v15  ;;  %6406 = vmatpush.bf16.msrb.mxu1 %v9090_v33  ;;  %v9487_v15 = vld [vmem:[#allocation6 + $0x950] sm:$0xf0]  ;;  %v8373_v33 = vld [vmem:[#allocation6 + $0x70] sm:$0xf] }
 0x2e3   :  { %6436 = vmatmul.bf16.vlgmr.msra.gmra.mxu3 %v12429_v13 }
 0x2e4   :  { %6480 = vmatpush.bf16.msrb.mxu3 %v8614_v30  ;;  %6368 = vmatpush.bf16.msra.mxu2 %v10646_v53  ;;  %v8453_v30 = vld [vmem:[#allocation6 + $0x110] sm:$0xf]  ;;  %v6192_v53 = vpop.f32.mrf.mxu0 }
 0x2e5   :  { %v8454_v42 = vor.u32 %v11418_v58, %v8453_v30  ;;  %v11778_v30 = vld [vmem:[#allocation6 + $0xc74] sm:$0xf0]  ;;  %v9450_v58 = vor.u32 %v11662_v22, %v9447_v23  ;;  %v9367_v53 = vld [vmem:[#allocation6 + $0x860] sm:$0xf0]  ;;  %v9773_v22 = vld [vmem:[#allocation6 + $0xb60] sm:$0xf] }
 0x2e6   :  { %6445 = vmatpush.bf16.msra.mxu0 %v10050_v14  ;;  %6407 = vmatpush.bf16.msrb.mxu1 %v9050_v44  ;;  %v12607_v31 = vpop.f32.mrf.mxu3  ;;  %v8374_v14 = vor.u32 %v11398_v62, %v8373_v33  ;;  %v11528_v44 = vld [vmem:[#allocation6 + $0x4a4] sm:$0xf0]  ;;  %v9894_v12 = vor.u32 %v11778_v30, %v9893_v29  ;;  %v11632_v62 = vld [vmem:[#allocation6 + $0x7ec] sm:$0xf] }
 0x2e7   :  { %v11748_v23 = vld [vmem:[#allocation6 + $0xb84] sm:$0xf0] }
 0x2e8   :  { %6481 = vmatpush.bf16.msrb.mxu3 %v8574_v45  ;;  %6369 = vmatpush.bf16.msra.mxu2 %v10606_v60  ;;  %v6153_v45 = vpop.f32.mrf.mxu1  ;;  %v9490_v60 = vor.u32 %v11672_v4, %v9487_v15  ;;  %v9813_v4 = vld [vmem:[#allocation6 + $0xbb0] sm:$0xf]  ;;  %v11758_v15 = vld [vmem:[#allocation6 + $0xbd4] sm:$0xf0]  ;;  %v9774_v30 = vor.u32 %v11748_v23, %v9773_v22 }
 0x2e9   :  { %v11518_v45 = vld [vmem:[#allocation6 + $0x454] sm:$0xf0]  ;;  %v10213_v22 = vld [vmem:[#allocation6 + $0xed0] sm:$0xf] }
 0x2ea   :  { %6446 = vmatpush.bf16.msra.mxu0 %v10010_v40  ;;  %6408 = vmatpush.bf16.msrb.mxu1 %v9010_v49  ;;  %v9853_v49 = vld [vmem:[#allocation6 + $0xc00] sm:$0xf]  ;;  %v11858_v23 = vld [vmem:[#allocation6 + $0xef4] sm:$0xf0] }
 0x2eb   :  { %v9854_v46 = vor.u32 %v11768_v47, %v9853_v49  ;;  %v12002_v47 = vld [vmem:[#allocation6 + $0x137c] sm:$0xf] }
 0x2ec   :  { %6482 = vmatpush.bf16.msrb.mxu3 %v8534_v35  ;;  %6370 = vmatpush.bf16.msra.mxu2 %v10566_v48  ;;  %v11782_v35 = vld [vmem:[#allocation6 + $0xc9c] sm:$0xf]  ;;  %v11912_v48 = vld [vmem:[#allocation6 + $0x10ac] sm:$0xf] }
 0x2ed   :  { %v9930_v57 = vor.u32 %v11782_v35, %v9927_v17  ;;  %v10450_v8 = vor.u32 %v11912_v48, %v10447_v38  ;;  %v9370_v35 = vor.u32 %v11642_v56, %v9367_v53  ;;  %v10367_v17 = vld [vmem:[#allocation6 + $0x1030] sm:$0xf0]  ;;  %v8733_v38 = vld [vmem:[#allocation6 + $0x340] sm:$0xf]  ;;  %v11478_v53 = vld [vmem:[#allocation6 + $0x314] sm:$0xf0] }
 0x2ee   :  { %6447 = vmatpush.bf16.msra.mxu0 %v9970_v41  ;;  %6409 = vmatpush.bf16.msrb.mxu1 %v8970_v16  ;;  %v6231_v40 = vpop.f32.mrf.mxu3  ;;  %v10410_v41 = vor.u32 %v11902_v21, %v10407_v54  ;;  %v11892_v16 = vld [vmem:[#allocation6 + $0x100c] sm:$0xf]  ;;  %v10847_v48 = vld [vmem:[#allocation6 + $0x13f0] sm:$0xf0]  ;;  %v8693_v21 = vld [vmem:[#allocation6 + $0x2f0] sm:$0xf] }
 0x2ef   :  { %6371 = vmatmul.bf16.vlgmr.msra.gmra.mxu2 %v12452_v10 }
 0x2f0   :  { %6483 = vmatpush.bf16.msrb.mxu3 %v8494_v27  ;;  %6415 = vmatpush.bf16.msrb.mxu2 %v9570_v39  ;;  %v8333_v27 = vld [vmem:[#allocation6 + $0x20] sm:$0xf]  ;;  %v9407_v39 = vld [vmem:[#allocation6 + $0x8b0] sm:$0xf0]  ;;  %v6203_v9 = vpop.f32.mrf.mxu1 }
 0x2f1   :  { %v8334_v63 = vor.u32 %v11388_v59, %v8333_v27  ;;  %6410 = vmatmul.bf16.vlgmr.msrb.gmra.mxu1 %v12418_v52  ;;  %v9410_v51 = vor.u32 %v11652_v19, %v9407_v39  ;;  %v11882_v59 = vld [vmem:[#allocation6 + $0xfbc] sm:$0xf]  ;;  %v11488_v19 = vld [vmem:[#allocation6 + $0x364] sm:$0xf0]  ;;  %v11738_v39 = vld [vmem:[#allocation6 + $0xb34] sm:$0xf0] }
 0x2f2   :  { %6454 = vmatpush.bf16.msra.mxu1 %v10530_v5  ;;  %6448 = vmatpush.bf16.msra.mxu0 %v9930_v57  ;;  %v6164_v33 = vpop.f32.mrf.mxu2  ;;  %v9327_v5 = vld [vmem:[#allocation6 + $0x810] sm:$0xf0]  ;;  %v10370_v57 = vor.u32 %v11892_v16, %v10367_v17  ;;  %v8694_v16 = vor.u32 %v11478_v53, %v8693_v21  ;;  %v11838_v53 = vld [vmem:[#allocation6 + $0xe54] sm:$0xf0] }
 0x2f3   :  { %v12614_v32 = vadd.f32 %v6164_v33, %v12605_v36  ;;  %v9330_v27 = vor.u32 %v11632_v62, %v9327_v5  ;;  %v12619_v36 = vpop.f32.mrf.mxu0  ;;  %v11992_v33 = vld [vmem:[#allocation6 + $0x132c] sm:$0xf]  ;;  %v10767_v62 = vld [vmem:[#allocation6 + $0x1350] sm:$0xf0]  ;;  %v8653_v5 = vld [vmem:[#allocation6 + $0x2a0] sm:$0xf] }
 0x2f4   :  { %6484 = vmatpush.bf16.msrb.mxu3 %v8454_v42  ;;  %6416 = vmatpush.bf16.msrb.mxu2 %v9530_v18  ;;  %v8894_v42 = vor.u32 %v11528_v44, %v8893_v28  ;;  %v8854_v18 = vor.u32 %v11518_v45, %v8853_v43  ;;  %v10327_v28 = vld [vmem:[#allocation6 + $0xfe0] sm:$0xf0]  ;;  %v8734_v45 = vor.u32 %v11488_v19, %v8733_v38  ;;  %v11708_v38 = vld [vmem:[#allocation6 + $0xa44] sm:$0xf0] }
 0x2f5   :  { %6449 = vmatmul.bf16.vlgmr.msra.gmra.mxu0 %v12434_v3  ;;  %v9287_v44 = vld [vmem:[#allocation6 + $0x7c0] sm:$0xf0] }
 0x2f6   :  { %6493 = vmatpush.bf16.msrb.mxu0 %v8934_v24  ;;  %6455 = vmatpush.bf16.msra.mxu1 %v10490_v20  ;;  %v12617_v24 = vadd.f32 %v6203_v9, %v12603_v26  ;;  %v11622_v20 = vld [vmem:[#allocation6 + $0x79c] sm:$0xf]  ;;  %v9733_v26 = vld [vmem:[#allocation6 + $0xb10] sm:$0xf] }
 0x2f7   :  { %v9290_v40 = vor.u32 %v11622_v20, %v9287_v44  ;;  %v9734_v49 = vor.u32 %v11738_v39, %v9733_v26  ;;  %v9653_v9 = vld [vmem:[#allocation6 + $0xa70] sm:$0xf]  ;;  %v11848_v26 = vld [vmem:[#allocation6 + $0xea4] sm:$0xf0]  ;;  %v11453_v39 = vld [vmem:[#allocation6 + $0x254] sm:$0xf] }
 0x2f8   :  { %6485 = vmatpush.bf16.msrb.mxu3 %v8414_v11  ;;  %6417 = vmatpush.bf16.msrb.mxu2 %v9490_v60  ;;  %v11508_v11 = vld [vmem:[#allocation6 + $0x404] sm:$0xf0]  ;;  %v9814_v60 = vor.u32 %v11758_v15, %v9813_v4  ;;  %v6205_v54 = vpop.f32.mrf.mxu1  ;;  %v9253_v15 = vld [vmem:[#allocation6 + $0x750] sm:$0xf] }
 0x2f9   :  { %v8814_v61 = vor.u32 %v11508_v11, %v8813_v0  ;;  %v11862_v0 = vld [vmem:[#allocation6 + $0xf1c] sm:$0xf]  ;;  %v10133_v54 = vld [vmem:[#allocation6 + $0xe30] sm:$0xf] }
 0x2fa   :  { %6494 = vmatpush.bf16.msrb.mxu0 %v8894_v42  ;;  %6456 = vmatpush.bf16.msra.mxu1 %v10450_v8  ;;  %v11872_v42 = vld [vmem:[#allocation6 + $0xf6c] sm:$0xf]  ;;  %v6166_v43 = vpop.f32.mrf.mxu2 }
 0x2fb   :  { %v6244_v11 = vpop.f32.mrf.mxu0  ;;  %v11598_v43 = vld [vmem:[#allocation6 + $0x6d4] sm:$0xf0] }
 0x2fc   :  { %6486 = vmatpush.bf16.msrb.mxu3 %v8374_v14  ;;  %6418 = vmatpush.bf16.msrb.mxu2 %v9450_v58  ;;  %v11498_v14 = vld [vmem:[#allocation6 + $0x3b4] sm:$0xf0]  ;;  %v12012_v58 = vld [vmem:[#allocation6 + $0x13cc] sm:$0xf]  ;;  %v11588_v11 = vld [vmem:[#allocation6 + $0x684] sm:$0xf0] }
 0x2fd   :  { %v8774_v29 = vor.u32 %v11498_v14, %v8773_v34  ;;  %v10850_v8 = vor.u32 %v12012_v58, %v10847_v48  ;;  %v11468_v34 = vld [vmem:[#allocation6 + $0x2c4] sm:$0xf0]  ;;  %v10214_v58 = vor.u32 %v11858_v23, %v10213_v22  ;;  %v9613_v48 = vld [vmem:[#allocation6 + $0xa20] sm:$0xf]  ;;  %v11578_v22 = vld [vmem:[#allocation6 + $0x634] sm:$0xf0] }
 0x2fe   :  { %6495 = vmatpush.bf16.msrb.mxu0 %v8854_v18  ;;  %6457 = vmatpush.bf16.msra.mxu1 %v10410_v41  ;;  %v9693_v18 = vld [vmem:[#allocation6 + $0xac0] sm:$0xf]  ;;  %v10247_v41 = vld [vmem:[#allocation6 + $0xf40] sm:$0xf0]  ;;  %v8654_v20 = vor.u32 %v11468_v34, %v8653_v5  ;;  %v11433_v5 = vld [vmem:[#allocation6 + $0x1b4] sm:$0xf] }
 0x2ff   :  { %v12626_v34 = vld [vmem:[#allocation7] sm:$0xff] }
 0x300   :  { %6487 = vmatpush.bf16.msrb.mxu3 %v8334_v63  ;;  %6419 = vmatpush.bf16.msrb.mxu2 %v9410_v51  ;;  %v10330_v63 = vor.u32 %v11882_v59, %v10327_v28  ;;  %v10807_v51 = vld [vmem:[#allocation6 + $0x13a0] sm:$0xf0]  ;;  %v9213_v59 = vld [vmem:[#allocation6 + $0x700] sm:$0xf]  ;;  %v11608_v28 = vld [vmem:[#allocation6 + $0x724] sm:$0xf0] }
 0x301   :  { %v10810_v4 = vor.u32 %v12002_v47, %v10807_v51  ;;  %v9214_v19 = vor.u32 %v11608_v28, %v9213_v59  ;;  %v10607_v59 = vld [vmem:[#allocation6 + $0x1210] sm:$0xf0] }
 0x302   :  { %6496 = vmatpush.bf16.msrb.mxu0 %v8814_v61  ;;  %6458 = vmatpush.bf16.msra.mxu1 %v10370_v57  ;;  %v11718_v57 = vld [vmem:[#allocation6 + $0xa94] sm:$0xf0] }
 0x303   :  { %6488 = vmatmul.bf16.vlgmr.msrb.gmra.mxu3 %v12411_v1  ;;  %v9654_v44 = vor.u32 %v11718_v57, %v9653_v9  ;;  %v2434_v9 = vperm.slane %v12626_v34, 6 }
 0x304   :  { %6532 = vmatpush.bf16.msra.mxu3 %v9894_v12  ;;  %6420 = vmatpush.bf16.msrb.mxu2 %v9370_v35  ;;  %v10287_v12 = vld [vmem:[#allocation6 + $0xf90] sm:$0xf0]  ;;  %v11618_v35 = vld [vmem:[#allocation6 + $0x774] sm:$0xf0] }
 0x305   :  { %v10290_v56 = vor.u32 %v11872_v42, %v10287_v12  ;;  %v9254_v14 = vor.u32 %v11618_v35, %v9253_v15  ;;  %v9173_v12 = vld [vmem:[#allocation6 + $0x6b0] sm:$0xf]  ;;  %v10647_v15 = vld [vmem:[#allocation6 + $0x1260] sm:$0xf0]  ;;  %v10134_v35 = vor.u32 %v11838_v53, %v10133_v54  ;;  %v11808_v54 = vld [vmem:[#allocation6 + $0xd64] sm:$0xf0] }
 0x306   :  { %6497 = vmatpush.bf16.msrb.mxu0 %v8774_v29  ;;  %6459 = vmatpush.bf16.msra.mxu1 %v10330_v63  ;;  %v12621_v61 = vpop.f32.mrf.mxu3  ;;  %v11982_v29 = vld [vmem:[#allocation6 + $0x12dc] sm:$0xf]  ;;  %v10173_v63 = vld [vmem:[#allocation6 + $0xe80] sm:$0xf] }
 0x307   :  { %v10174_v51 = vor.u32 %v11848_v26, %v10173_v63  ;;  %v8495_v63 = vld [vmem:[#allocation6 + $0x188] sm:$0xf0]  ;;  %v8455_v53 = vld [vmem:[#allocation6 + $0x138] sm:$0xf0] }
 0x308   :  { %6533 = vmatpush.bf16.msra.mxu3 %v9854_v46  ;;  %6421 = vmatpush.bf16.msrb.mxu2 %v9330_v27  ;;  %v11728_v46 = vld [vmem:[#allocation6 + $0xae4] sm:$0xf0]  ;;  %v10770_v27 = vor.u32 %v11992_v33, %v10767_v62 }
 0x309   :  { %v9694_v17 = vor.u32 %v11728_v46, %v9693_v18  ;;  %v11443_v18 = vld [vmem:[#allocation6 + $0x204] sm:$0xf]  ;;  %v8575_v46 = vld [vmem:[#allocation6 + $0x228] sm:$0xf0]  ;;  %v11828_v62 = vld [vmem:[#allocation6 + $0xe04] sm:$0xf0] }
 0x30a   :  { %6498 = vmatpush.bf16.msrb.mxu0 %v8734_v45  ;;  %6460 = vmatpush.bf16.msra.mxu1 %v10290_v56  ;;  %v11972_v45 = vld [vmem:[#allocation6 + $0x128c] sm:$0xf]  ;;  %v9174_v56 = vor.u32 %v11598_v43, %v9173_v12  ;;  %v11942_v43 = vld [vmem:[#allocation6 + $0x119c] sm:$0xf] }
 0x30c   :  { %6534 = vmatpush.bf16.msra.mxu3 %v9814_v60  ;;  %6422 = vmatpush.bf16.msrb.mxu2 %v9290_v40  ;;  %v10250_v60 = vor.u32 %v11862_v0, %v10247_v41  ;;  %v8615_v40 = vld [vmem:[#allocation6 + $0x278] sm:$0xf0]  ;;  %v9133_v41 = vld [vmem:[#allocation6 + $0x660] sm:$0xf] }
 0x30d   :  { %v8618_v21 = vor.u32 %v11453_v39, %v8615_v40  ;;  %v9134_v33 = vor.u32 %v11588_v11, %v9133_v41  ;;  %v9053_v40 = vld [vmem:[#allocation6 + $0x5c0] sm:$0xf]  ;;  %v11558_v41 = vld [vmem:[#allocation6 + $0x594] sm:$0xf0] }
 0x30e   :  { %6499 = vmatpush.bf16.msrb.mxu0 %v8694_v16  ;;  %6461 = vmatpush.bf16.msra.mxu1 %v10250_v60  ;;  %v6283_v47 = vpop.f32.mrf.mxu3  ;;  %v8578_v16 = vor.u32 %v11443_v18, %v8575_v46  ;;  %v8535_v60 = vld [vmem:[#allocation6 + $0x1d8] sm:$0xf0] }
 0x30f   :  { %6423 = vmatmul.bf16.vlgmr.msrb.gmra.mxu2 %v12425_v7 }
 0x310   :  { %6535 = vmatpush.bf16.msra.mxu3 %v9774_v30  ;;  %6467 = vmatpush.bf16.msra.mxu2 %v10850_v8  ;;  %v10727_v30 = vld [vmem:[#allocation6 + $0x1300] sm:$0xf0]  ;;  %v9614_v8 = vor.u32 %v11708_v38, %v9613_v48 }
 0x311   :  { %v10730_v42 = vor.u32 %v11982_v29, %v10727_v30  ;;  %6462 = vmatmul.bf16.vlgmr.msra.gmra.mxu1 %v12442_v50  ;;  %v10053_v29 = vld [vmem:[#allocation6 + $0xd90] sm:$0xf]  ;;  %v11818_v30 = vld [vmem:[#allocation6 + $0xdb4] sm:$0xf0]  ;;  %v11423_v38 = vld [vmem:[#allocation6 + $0x164] sm:$0xf] }
 0x312   :  { %6506 = vmatpush.bf16.msrb.mxu1 %v9254_v14  ;;  %6500 = vmatpush.bf16.msrb.mxu0 %v8654_v20  ;;  %v9093_v14 = vld [vmem:[#allocation6 + $0x610] sm:$0xf]  ;;  %v6216_v23 = vpop.f32.mrf.mxu2  ;;  %v10054_v12 = vor.u32 %v11818_v30, %v10053_v29  ;;  %v8498_v47 = vor.u32 %v11423_v38, %v8495_v63  ;;  %v11678_v29 = vld [vmem:[#allocation6 + $0x954] sm:$0xf0]  ;;  %v9933_v30 = vld [vmem:[#allocation6 + $0xca0] sm:$0xf] }
 0x313   :  { %v6217_v28 = vadd.f32 %v6216_v23, %v12617_v24  ;;  %v9094_v48 = vor.u32 %v11578_v22, %v9093_v14  ;;  %v6294_v24 = vpop.f32.mrf.mxu0  ;;  %v11548_v14 = vld [vmem:[#allocation6 + $0x544] sm:$0xf0]  ;;  %v11393_v63 = vld [vmem:[#allocation6 + $0x74] sm:$0xf] }
 0x314   :  { %6536 = vmatpush.bf16.msra.mxu3 %v9734_v49  ;;  %6468 = vmatpush.bf16.msra.mxu2 %v10810_v4  ;;  %v10687_v49 = vld [vmem:[#allocation6 + $0x12b0] sm:$0xf0]  ;;  %v11962_v4 = vld [vmem:[#allocation6 + $0x123c] sm:$0xf]  ;;  %v11788_v38 = vld [vmem:[#allocation6 + $0xcc4] sm:$0xf0] }
 0x315   :  { %6501 = vmatmul.bf16.vlgmr.msrb.gmra.mxu0 %v12413_v2  ;;  %v10690_v0 = vor.u32 %v11972_v45, %v10687_v49  ;;  %v10650_v57 = vor.u32 %v11962_v4, %v10647_v15  ;;  %v6230_v26 = vadd.f32 %v12607_v31, %v6217_v28 }
 0x316   :  { %6545 = vmatpush.bf16.msra.mxu0 %v10214_v58  ;;  %6507 = vmatpush.bf16.msrb.mxu1 %v9214_v19  ;;  %v6255_v58 = vpop.f32.mrf.mxu1  ;;  %v6282_v19 = vadd.f32 %v12621_v61, %v2434_v9  ;;  %v10013_v61 = vld [vmem:[#allocation6 + $0xd40] sm:$0xf]  ;;  %v8415_v9 = vld [vmem:[#allocation6 + $0xe8] sm:$0xf0] }
 0x317   :  { %v6243_v45 = vadd.f32 %v12619_v36, %v6230_v26  ;;  %v10014_v4 = vor.u32 %v11808_v54, %v10013_v61  ;;  %v8335_v61 = vld [vmem:[#allocation6 + $0x48] sm:$0xf0] }
 0x318   :  { %6537 = vmatpush.bf16.msra.mxu3 %v9694_v17  ;;  %6469 = vmatpush.bf16.msra.mxu2 %v10770_v27  ;;  %v10093_v17 = vld [vmem:[#allocation6 + $0xde0] sm:$0xf]  ;;  %v11952_v27 = vld [vmem:[#allocation6 + $0x11ec] sm:$0xf]  ;;  %v12634_v49 = vadd.f32 %v6294_v24, %v6282_v19  ;;  %v8375_v19 = vld [vmem:[#allocation6 + $0x98] sm:$0xf0] }
 0x319   :  { %v10094_v20 = vor.u32 %v11828_v62, %v10093_v17  ;;  %v10610_v39 = vor.u32 %v11952_v27, %v10607_v59  ;;  %v12636_v18 = vadd.f32 %v6255_v58, %v6243_v45  ;;  %v9973_v17 = vld [vmem:[#allocation6 + $0xcf0] sm:$0xf]  ;;  %v11938_v59 = vld [vmem:[#allocation6 + $0x1174] sm:$0xf0]  ;;  %v10493_v24 = vld [vmem:[#allocation6 + $0x1100] sm:$0xf] }
 0x31a   :  { %6546 = vmatpush.bf16.msra.mxu0 %v10174_v51  ;;  %6508 = vmatpush.bf16.msrb.mxu1 %v9174_v56  ;;  %v9573_v51 = vld [vmem:[#allocation6 + $0x9d0] sm:$0xf]  ;;  %v11413_v56 = vld [vmem:[#allocation6 + $0x114] sm:$0xf]  ;;  %v6218_v36 = vpop.f32.mrf.mxu2  ;;  %v9453_v45 = vld [vmem:[#allocation6 + $0x8e0] sm:$0xf] }
 0x31b   :  { %v8458_v15 = vor.u32 %v11413_v56, %v8455_v53  ;;  %v6296_v22 = vpop.f32.mrf.mxu0  ;;  %v10533_v27 = vld [vmem:[#allocation6 + $0x1150] sm:$0xf]  ;;  %v8895_v56 = vld [vmem:[#allocation6 + $0x4a8] sm:$0xf0]  ;;  %v11773_v53 = vld [vmem:[#allocation6 + $0xc54] sm:$0xf] }
 0x31c   :  { %6538 = vmatpush.bf16.msra.mxu3 %v9654_v44  ;;  %6470 = vmatpush.bf16.msra.mxu2 %v10730_v42  ;;  %v8538_v44 = vor.u32 %v11433_v5, %v8535_v60  ;;  %v11568_v42 = vld [vmem:[#allocation6 + $0x5e4] sm:$0xf0]  ;;  %v11798_v5 = vld [vmem:[#allocation6 + $0xd14] sm:$0xf0]  ;;  %v11403_v60 = vld [vmem:[#allocation6 + $0xc4] sm:$0xf]  ;;  %v10534_v26 = vor.u32 %v11938_v59, %v10533_v27 }
 0x31d   :  { %v9054_v31 = vor.u32 %v11568_v42, %v9053_v40  ;;  %v9974_v28 = vor.u32 %v11798_v5, %v9973_v17  ;;  %v8935_v40 = vld [vmem:[#allocation6 + $0x4f8] sm:$0xf0]  ;;  %v11918_v36 = vld [vmem:[#allocation6 + $0x10d4] sm:$0xf0]  ;;  %v11908_v22 = vld [vmem:[#allocation6 + $0x1084] sm:$0xf0] }
 0x31e   :  { %6547 = vmatpush.bf16.msra.mxu0 %v10134_v35  ;;  %6509 = vmatpush.bf16.msrb.mxu1 %v9134_v33  ;;  %v9533_v35 = vld [vmem:[#allocation6 + $0x980] sm:$0xf]  ;;  %v6257_v33 = vpop.f32.mrf.mxu1  ;;  %v8855_v5 = vld [vmem:[#allocation6 + $0x458] sm:$0xf0]  ;;  %v11648_v27 = vld [vmem:[#allocation6 + $0x864] sm:$0xf0] }
 0x31f   :  { %v11513_v33 = vld [vmem:[#allocation6 + $0x434] sm:$0xf] }
 0x320   :  { %6539 = vmatpush.bf16.msra.mxu3 %v9614_v8  ;;  %6471 = vmatpush.bf16.msra.mxu2 %v10690_v0  ;;  %v10567_v8 = vld [vmem:[#allocation6 + $0x11c0] sm:$0xf0]  ;;  %v9013_v0 = vld [vmem:[#allocation6 + $0x570] sm:$0xf]  ;;  %v8858_v59 = vor.u32 %v11513_v33, %v8855_v5  ;;  %v11878_v33 = vld [vmem:[#allocation6 + $0xf94] sm:$0xf0] }
 0x321   :  { %v10570_v46 = vor.u32 %v11942_v43, %v10567_v8  ;;  %v9014_v62 = vor.u32 %v11558_v41, %v9013_v0  ;;  %v9934_v43 = vor.u32 %v11788_v38, %v9933_v30  ;;  %v8378_v8 = vor.u32 %v11393_v63, %v8375_v19  ;;  %v10453_v41 = vld [vmem:[#allocation6 + $0x10b0] sm:$0xf]  ;;  %v11753_v30 = vld [vmem:[#allocation6 + $0xbb4] sm:$0xf]  ;;  %v11898_v19 = vld [vmem:[#allocation6 + $0x1034] sm:$0xf0] }
 0x322   :  { %6548 = vmatpush.bf16.msra.mxu0 %v10094_v20  ;;  %6510 = vmatpush.bf16.msrb.mxu1 %v9094_v48  ;;  %v8418_v20 = vor.u32 %v11403_v60, %v8415_v9  ;;  %v11763_v60 = vld [vmem:[#allocation6 + $0xc04] sm:$0xf]  ;;  %v9855_v9 = vld [vmem:[#allocation6 + $0xc28] sm:$0xf0]  ;;  %v10373_v63 = vld [vmem:[#allocation6 + $0x1010] sm:$0xf] }
 0x323   :  { %6540 = vmatmul.bf16.vlgmr.msra.gmra.mxu3 %v12429_v13 }
 0x324   :  { %6584 = vmatpush.bf16.msrb.mxu3 %v8618_v21  ;;  %6472 = vmatpush.bf16.msra.mxu2 %v10650_v57  ;;  %v11698_v21 = vld [vmem:[#allocation6 + $0x9f4] sm:$0xf0]  ;;  %v8973_v57 = vld [vmem:[#allocation6 + $0x520] sm:$0xf] }
 0x325   :  { %v9574_v11 = vor.u32 %v11698_v21, %v9573_v51  ;;  %v8974_v48 = vor.u32 %v11548_v14, %v8973_v57  ;;  %v11383_v21 = vld [vmem:[#allocation6 + $0x24] sm:$0xf]  ;;  %v10413_v14 = vld [vmem:[#allocation6 + $0x1060] sm:$0xf] }
 0x326   :  { %6549 = vmatpush.bf16.msra.mxu0 %v10054_v12  ;;  %6511 = vmatpush.bf16.msrb.mxu1 %v9054_v31  ;;  %v12638_v58 = vpop.f32.mrf.mxu3  ;;  %v11928_v12 = vld [vmem:[#allocation6 + $0x1124] sm:$0xf0]  ;;  %v11523_v31 = vld [vmem:[#allocation6 + $0x484] sm:$0xf] }
 0x327   :  { %v10494_v54 = vor.u32 %v11928_v12, %v10493_v24 }
 0x328   :  { %6585 = vmatpush.bf16.msrb.mxu3 %v8578_v16  ;;  %6473 = vmatpush.bf16.msra.mxu2 %v10610_v39  ;;  %v11688_v16 = vld [vmem:[#allocation6 + $0x9a4] sm:$0xf0]  ;;  %v11533_v39 = vld [vmem:[#allocation6 + $0x4d4] sm:$0xf] }
 0x329   :  { %v9534_v23 = vor.u32 %v11688_v16, %v9533_v35  ;;  %v8938_v51 = vor.u32 %v11533_v39, %v8935_v40  ;;  %v8898_v16 = vor.u32 %v11523_v31, %v8895_v56  ;;  %v9333_v39 = vld [vmem:[#allocation6 + $0x7f0] sm:$0xf]  ;;  %v11638_v40 = vld [vmem:[#allocation6 + $0x814] sm:$0xf0]  ;;  %v10333_v31 = vld [vmem:[#allocation6 + $0xfc0] sm:$0xf] }
 0x32a   :  { %6550 = vmatpush.bf16.msra.mxu0 %v10014_v4  ;;  %6512 = vmatpush.bf16.msrb.mxu1 %v9014_v62  ;;  %v9413_v4 = vld [vmem:[#allocation6 + $0x890] sm:$0xf]  ;;  %v10454_v62 = vor.u32 %v11918_v36, %v10453_v41  ;;  %v9293_v56 = vld [vmem:[#allocation6 + $0x7a0] sm:$0xf]  ;;  %v12018_v36 = vld [vmem:[#allocation6 + $0x13f4] sm:$0xf0] }
 0x32b   :  { %v10853_v41 = vld [vmem:[#allocation6 + $0x13d0] sm:$0xf] }
 0x32c   :  { %6586 = vmatpush.bf16.msrb.mxu3 %v8538_v44  ;;  %6474 = vmatpush.bf16.msra.mxu2 %v10570_v46  ;;  %v9493_v44 = vld [vmem:[#allocation6 + $0x930] sm:$0xf]  ;;  %v9895_v46 = vld [vmem:[#allocation6 + $0xc78] sm:$0xf0]  ;;  %v10854_v5 = vor.u32 %v12018_v36, %v10853_v41  ;;  %v11988_v41 = vld [vmem:[#allocation6 + $0x1304] sm:$0xf0] }
 0x32d   :  { %v9494_v42 = vor.u32 %v11678_v29, %v9493_v44  ;;  %v9898_v17 = vor.u32 %v11773_v53, %v9895_v46  ;;  %v10414_v44 = vor.u32 %v11908_v22, %v10413_v14  ;;  %v8815_v29 = vld [vmem:[#allocation6 + $0x408] sm:$0xf0]  ;;  %v11628_v53 = vld [vmem:[#allocation6 + $0x7c4] sm:$0xf0]  ;;  %v11473_v22 = vld [vmem:[#allocation6 + $0x2f4] sm:$0xf] }
 0x32e   :  { %6551 = vmatpush.bf16.msra.mxu0 %v9974_v28  ;;  %6513 = vmatpush.bf16.msrb.mxu1 %v8974_v48  ;;  %v6335_v35 = vpop.f32.mrf.mxu3  ;;  %v9858_v28 = vor.u32 %v11763_v60, %v9855_v9  ;;  %v9815_v48 = vld [vmem:[#allocation6 + $0xbd8] sm:$0xf0]  ;;  %v12008_v14 = vld [vmem:[#allocation6 + $0x13a4] sm:$0xf0] }
 0x32f   :  { %6475 = vmatmul.bf16.vlgmr.msra.gmra.mxu2 %v12452_v10  ;;  %v9818_v12 = vor.u32 %v11753_v30, %v9815_v48  ;;  %v9735_v35 = vld [vmem:[#allocation6 + $0xb38] sm:$0xf0] }
 0x330   :  { %6587 = vmatpush.bf16.msrb.mxu3 %v8498_v47  ;;  %6519 = vmatpush.bf16.msrb.mxu2 %v9574_v11  ;;  %v11668_v47 = vld [vmem:[#allocation6 + $0x904] sm:$0xf0]  ;;  %v8338_v11 = vor.u32 %v11383_v21, %v8335_v61  ;;  %v9334_v61 = vor.u32 %v11638_v40, %v9333_v39  ;;  %v10773_v39 = vld [vmem:[#allocation6 + $0x1330] sm:$0xf]  ;;  %v11998_v40 = vld [vmem:[#allocation6 + $0x1354] sm:$0xf0] }
 0x331   :  { %v9454_v0 = vor.u32 %v11668_v47, %v9453_v45  ;;  %6514 = vmatmul.bf16.vlgmr.msrb.gmra.mxu1 %v12418_v52  ;;  %v10374_v45 = vor.u32 %v11898_v19, %v10373_v63  ;;  %v8775_v47 = vld [vmem:[#allocation6 + $0x3b8] sm:$0xf0] }
 0x332   :  { %6558 = vmatpush.bf16.msra.mxu1 %v10534_v26  ;;  %6552 = vmatpush.bf16.msra.mxu0 %v9934_v43  ;;  %v6268_v26 = vpop.f32.mrf.mxu2  ;;  %v11493_v43 = vld [vmem:[#allocation6 + $0x394] sm:$0xf]  ;;  %v9255_v63 = vld [vmem:[#allocation6 + $0x778] sm:$0xf0] }
 0x333   :  { %v8778_v46 = vor.u32 %v11493_v43, %v8775_v47  ;;  %v9655_v47 = vld [vmem:[#allocation6 + $0xa98] sm:$0xf0] }
 0x334   :  { %6588 = vmatpush.bf16.msrb.mxu3 %v8458_v15  ;;  %6520 = vmatpush.bf16.msrb.mxu2 %v9534_v23  ;;  %v11658_v15 = vld [vmem:[#allocation6 + $0x8b4] sm:$0xf0]  ;;  %v9373_v23 = vld [vmem:[#allocation6 + $0x840] sm:$0xf] }
 0x335   :  { %6553 = vmatmul.bf16.vlgmr.msra.gmra.mxu0 %v12434_v3  ;;  %v9414_v57 = vor.u32 %v11658_v15, %v9413_v4  ;;  %v9374_v38 = vor.u32 %v11648_v27, %v9373_v23  ;;  %v8735_v15 = vld [vmem:[#allocation6 + $0x368] sm:$0xf0] }
 0x336   :  { %6597 = vmatpush.bf16.msrb.mxu0 %v8938_v51  ;;  %6559 = vmatpush.bf16.msra.mxu1 %v10494_v54  ;;  %v11743_v51 = vld [vmem:[#allocation6 + $0xb64] sm:$0xf]  ;;  %v11888_v54 = vld [vmem:[#allocation6 + $0xfe4] sm:$0xf0] }
 0x337   :  { %v10334_v4 = vor.u32 %v11888_v54, %v10333_v31  ;;  %v10774_v31 = vor.u32 %v11998_v40, %v10773_v39  ;;  %v11603_v54 = vld [vmem:[#allocation6 + $0x704] sm:$0xf]  ;;  %v11573_v39 = vld [vmem:[#allocation6 + $0x614] sm:$0xf]  ;;  %v9095_v40 = vld [vmem:[#allocation6 + $0x638] sm:$0xf0] }
 0x338   :  { %6589 = vmatpush.bf16.msrb.mxu3 %v8418_v20  ;;  %6521 = vmatpush.bf16.msrb.mxu2 %v9494_v42  ;;  %v11503_v20 = vld [vmem:[#allocation6 + $0x3e4] sm:$0xf]  ;;  %v12645_v42 = vadd.f32 %v6268_v26, %v12636_v18  ;;  %v12650_v18 = vpop.f32.mrf.mxu0 }
 0x339   :  { %v8818_v24 = vor.u32 %v11503_v20, %v8815_v29  ;;  %v9695_v20 = vld [vmem:[#allocation6 + $0xae8] sm:$0xf0]  ;;  %v11868_v29 = vld [vmem:[#allocation6 + $0xf44] sm:$0xf0] }
 0x33a   :  { %6598 = vmatpush.bf16.msrb.mxu0 %v8898_v16  ;;  %6560 = vmatpush.bf16.msra.mxu1 %v10454_v62  ;;  %v9294_v16 = vor.u32 %v11628_v53, %v9293_v56  ;;  %v6270_v62 = vpop.f32.mrf.mxu2  ;;  %v9215_v56 = vld [vmem:[#allocation6 + $0x728] sm:$0xf0] }
 0x33c   :  { %6590 = vmatpush.bf16.msrb.mxu3 %v8378_v8  ;;  %6522 = vmatpush.bf16.msrb.mxu2 %v9454_v0  ;;  %v6307_v8 = vpop.f32.mrf.mxu1 }
 0x33d   :  { %v12648_v21 = vadd.f32 %v6307_v8, %v12634_v49  ;;  %v11733_v49 = vld [vmem:[#allocation6 + $0xb14] sm:$0xf]  ;;  %v8655_v8 = vld [vmem:[#allocation6 + $0x2c8] sm:$0xf0] }
 0x33e   :  { %6599 = vmatpush.bf16.msrb.mxu0 %v8858_v59  ;;  %6561 = vmatpush.bf16.msra.mxu1 %v10414_v44  ;;  %v9738_v9 = vor.u32 %v11733_v49, %v9735_v35  ;;  %v8695_v59 = vld [vmem:[#allocation6 + $0x318] sm:$0xf0]  ;;  %v10253_v44 = vld [vmem:[#allocation6 + $0xf20] sm:$0xf]  ;;  %v11843_v49 = vld [vmem:[#allocation6 + $0xe84] sm:$0xf] }
 0x33f   :  { %v8698_v19 = vor.u32 %v11473_v22, %v8695_v59  ;;  %v10254_v43 = vor.u32 %v11868_v29, %v10253_v44  ;;  %v10175_v35 = vld [vmem:[#allocation6 + $0xea8] sm:$0xf0]  ;;  %v10653_v44 = vld [vmem:[#allocation6 + $0x1240] sm:$0xf]  ;;  %v11968_v29 = vld [vmem:[#allocation6 + $0x1264] sm:$0xf0] }
 0x340   :  { %6591 = vmatpush.bf16.msrb.mxu3 %v8338_v11  ;;  %6523 = vmatpush.bf16.msrb.mxu2 %v9414_v57  ;;  %v11483_v11 = vld [vmem:[#allocation6 + $0x344] sm:$0xf]  ;;  %v10813_v57 = vld [vmem:[#allocation6 + $0x1380] sm:$0xf]  ;;  %v6348_v30 = vpop.f32.mrf.mxu0 }
 0x341   :  { %v8738_v60 = vor.u32 %v11483_v11, %v8735_v15  ;;  %v10814_v48 = vor.u32 %v12008_v14, %v10813_v57  ;;  %v11703_v11 = vld [vmem:[#allocation6 + $0xa24] sm:$0xf]  ;;  %v9218_v15 = vor.u32 %v11603_v54, %v9215_v56  ;;  %v10178_v57 = vor.u32 %v11843_v49, %v10175_v35  ;;  %v11693_v49 = vld [vmem:[#allocation6 + $0x9d4] sm:$0xf]  ;;  %v9575_v35 = vld [vmem:[#allocation6 + $0x9f8] sm:$0xf0] }
 0x342   :  { %6600 = vmatpush.bf16.msrb.mxu0 %v8818_v24  ;;  %6562 = vmatpush.bf16.msra.mxu1 %v10374_v45  ;;  %v11463_v24 = vld [vmem:[#allocation6 + $0x2a4] sm:$0xf]  ;;  %v11713_v45 = vld [vmem:[#allocation6 + $0xa74] sm:$0xf] }
 0x343   :  { %6592 = vmatmul.bf16.vlgmr.msrb.gmra.mxu3 %v12411_v1  ;;  %v9775_v1 = vld [vmem:[#allocation6 + $0xb88] sm:$0xf0]  ;;  %v8658_v53 = vor.u32 %v11463_v24, %v8655_v8  ;;  %v12026_v14 = vld [vmem:[#allocation9 + $0x38] sm:$0xff]  ;;  %v11958_v8 = vld [vmem:[#allocation6 + $0x1214] sm:$0xf0] }
 0x344   :  { %6636 = vmatpush.bf16.msra.mxu3 %v9898_v17  ;;  %6524 = vmatpush.bf16.msrb.mxu2 %v9374_v38  ;;  %v9778_v0 = vor.u32 %v11743_v51, %v9775_v1  ;;  %v10293_v17 = vld [vmem:[#allocation6 + $0xf70] sm:$0xf]  ;;  %v6309_v23 = vpop.f32.mrf.mxu1  ;;  %v11613_v38 = vld [vmem:[#allocation6 + $0x754] sm:$0xf] }
 0x345   :  { %v10294_v27 = vor.u32 %v11878_v33, %v10293_v17  ;;  %v9258_v51 = vor.u32 %v11613_v38, %v9255_v63  ;;  %v11853_v1 = vld [vmem:[#allocation6 + $0xed4] sm:$0xf]  ;;  %v9175_v33 = vld [vmem:[#allocation6 + $0x6d8] sm:$0xf0]  ;;  %v11823_v63 = vld [vmem:[#allocation6 + $0xde4] sm:$0xf] }
 0x346   :  { %6601 = vmatpush.bf16.msrb.mxu0 %v8778_v46  ;;  %6563 = vmatpush.bf16.msra.mxu1 %v10334_v4  ;;  %v9658_v46 = vor.u32 %v11713_v45, %v9655_v47  ;;  %v9615_v4 = vld [vmem:[#allocation6 + $0xa48] sm:$0xf0]  ;;  %v11593_v17 = vld [vmem:[#allocation6 + $0x6b4] sm:$0xf] }
 0x347   :  { %v9618_v62 = vor.u32 %v11703_v11, %v9615_v4  ;;  %v9178_v22 = vor.u32 %v11593_v17, %v9175_v33  ;;  %v11833_v23 = vld [vmem:[#allocation6 + $0xe34] sm:$0xf] }
 0x348   :  { %6637 = vmatpush.bf16.msra.mxu3 %v9858_v28  ;;  %6525 = vmatpush.bf16.msrb.mxu2 %v9334_v61  ;;  %v11723_v28 = vld [vmem:[#allocation6 + $0xac4] sm:$0xf]  ;;  %v10215_v61 = vld [vmem:[#allocation6 + $0xef8] sm:$0xf0] }
 0x349   :  { %v9698_v26 = vor.u32 %v11723_v28, %v9695_v20  ;;  %v10218_v36 = vor.u32 %v11853_v1, %v10215_v61  ;;  %v11583_v28 = vld [vmem:[#allocation6 + $0x664] sm:$0xf]  ;;  %v9135_v20 = vld [vmem:[#allocation6 + $0x688] sm:$0xf0]  ;;  %v9098_v61 = vor.u32 %v11573_v39, %v9095_v40 }
 0x34a   :  { %6602 = vmatpush.bf16.msrb.mxu0 %v8738_v60  ;;  %6564 = vmatpush.bf16.msra.mxu1 %v10294_v27  ;;  %v11978_v60 = vld [vmem:[#allocation6 + $0x12b4] sm:$0xf0]  ;;  %v10135_v27 = vld [vmem:[#allocation6 + $0xe58] sm:$0xf0]  ;;  %v9138_v38 = vor.u32 %v11583_v28, %v9135_v20  ;;  %v11543_v20 = vld [vmem:[#allocation6 + $0x524] sm:$0xf] }
 0x34b   :  { %v10138_v30 = vor.u32 %v11833_v23, %v10135_v27  ;;  %v9975_v28 = vld [vmem:[#allocation6 + $0xd18] sm:$0xf0] }
 0x34c   :  { %6638 = vmatpush.bf16.msra.mxu3 %v9818_v12  ;;  %6526 = vmatpush.bf16.msrb.mxu2 %v9294_v16  ;;  %v12652_v12 = vpop.f32.mrf.mxu3 }
 0x34e   :  { %6603 = vmatpush.bf16.msrb.mxu0 %v8698_v19  ;;  %6565 = vmatpush.bf16.msra.mxu1 %v10254_v43  ;;  %v10095_v19 = vld [vmem:[#allocation6 + $0xe08] sm:$0xf0]  ;;  %v10613_v43 = vld [vmem:[#allocation6 + $0x11f0] sm:$0xf]  ;;  %v6359_v1 = vpop.f32.mrf.mxu1 }
 0x34f   :  { %6527 = vmatmul.bf16.vlgmr.msrb.gmra.mxu2 %v12425_v7  ;;  %v10098_v47 = vor.u32 %v11823_v63, %v10095_v19  ;;  %v10614_v56 = vor.u32 %v11958_v8, %v10613_v43  ;;  %v12021_v19 = vld [vmem:[#allocation9 + $0x10] sm:$0xff]  ;;  %v9935_v43 = vld [vmem:[#allocation6 + $0xcc8] sm:$0xf0] }
 0x350   :  { %6639 = vmatpush.bf16.msra.mxu3 %v9778_v0  ;;  %6571 = vmatpush.bf16.msra.mxu2 %v10854_v5  ;;  %v10733_v0 = vld [vmem:[#allocation6 + $0x12e0] sm:$0xf]  ;;  %v10693_v5 = vld [vmem:[#allocation6 + $0x1290] sm:$0xf] }
 0x351   :  { %v10734_v16 = vor.u32 %v11988_v41, %v10733_v0  ;;  %6566 = vmatmul.bf16.vlgmr.msra.gmra.mxu1 %v12442_v50  ;;  %v10694_v59 = vor.u32 %v11978_v60, %v10693_v5  ;;  %v10573_v41 = vld [vmem:[#allocation6 + $0x11a0] sm:$0xf]  ;;  %v9015_v5 = vld [vmem:[#allocation6 + $0x598] sm:$0xf0] }
 0x352   :  { %6610 = vmatpush.bf16.msrb.mxu1 %v9258_v51  ;;  %6604 = vmatpush.bf16.msrb.mxu0 %v8658_v53  ;;  %v6320_v24 = vpop.f32.mrf.mxu2  ;;  %v12024_v51 = vld [vmem:[#allocation9 + $0x28] sm:$0xff]  ;;  %v11563_v53 = vld [vmem:[#allocation6 + $0x5c4] sm:$0xf]  ;;  %v6398_v0 = vpop.f32.mrf.mxu0 }
 0x353   :  { %v6321_v45 = vadd.f32 %v6320_v24, %v12648_v21  ;;  %v11948_v21 = vld [vmem:[#allocation6 + $0x11c4] sm:$0xf0]  ;;  %v11783_v24 = vld [vmem:[#allocation6 + $0xca4] sm:$0xf] }
 0x354   :  { %6640 = vmatpush.bf16.msra.mxu3 %v9738_v9  ;;  %6572 = vmatpush.bf16.msra.mxu2 %v10814_v48  ;;  %v6387_v9 = vpop.f32.mrf.mxu3  ;;  %v12025_v48 = vld [vmem:[#allocation9 + $0x30] sm:$0xff]  ;;  %v10574_v33 = vor.u32 %v11948_v21, %v10573_v41  ;;  %v11653_v41 = vld [vmem:[#allocation6 + $0x894] sm:$0xf] }
 0x355   :  { %6605 = vmatmul.bf16.vlgmr.msrb.gmra.mxu0 %v12413_v2  ;;  %v10654_v2 = vor.u32 %v11968_v29, %v10653_v44  ;;  %v8975_v44 = vld [vmem:[#allocation6 + $0x548] sm:$0xf0]  ;;  %v9415_v21 = vld [vmem:[#allocation6 + $0x8b8] sm:$0xf0] }
 0x356   :  { %6649 = vmatpush.bf16.msra.mxu0 %v10218_v36  ;;  %6611 = vmatpush.bf16.msrb.mxu1 %v9218_v15  ;;  %v12023_v15 = vld [vmem:[#allocation9 + $0x20] sm:$0xff]  ;;  %v6361_v23 = vpop.f32.mrf.mxu1  ;;  %v8978_v40 = vor.u32 %v11543_v20, %v8975_v44 }
 0x358   :  { %6641 = vmatpush.bf16.msra.mxu3 %v9698_v26  ;;  %6573 = vmatpush.bf16.msra.mxu2 %v10774_v31  ;;  %v2435_v26 = vperm.slane %v12626_v34, 7  ;;  %v11813_v31 = vld [vmem:[#allocation6 + $0xd94] sm:$0xf]  ;;  %v10055_v34 = vld [vmem:[#allocation6 + $0xdb8] sm:$0xf0] }
 0x359   :  { %v10058_v4 = vor.u32 %v11813_v31, %v10055_v34  ;;  %v11663_v31 = vld [vmem:[#allocation6 + $0x8e4] sm:$0xf]  ;;  %v9455_v34 = vld [vmem:[#allocation6 + $0x908] sm:$0xf0] }
 0x35a   :  { %6650 = vmatpush.bf16.msra.mxu0 %v10178_v57  ;;  %6612 = vmatpush.bf16.msrb.mxu1 %v9178_v22  ;;  %v6386_v54 = vadd.f32 %v12652_v12, %v2435_v26  ;;  %v6322_v60 = vpop.f32.mrf.mxu2  ;;  %v12022_v57 = vld [vmem:[#allocation9 + $0x18] sm:$0xff]  ;;  %v9535_v22 = vld [vmem:[#allocation6 + $0x9a8] sm:$0xf0]  ;;  %v6400_v29 = vpop.f32.mrf.mxu0  ;;  %v11673_v26 = vld [vmem:[#allocation6 + $0x934] sm:$0xf] }
 0x35b   :  { %v12057_v60 = vld [vmem:[#allocation9 + $0x130] sm:$0xff] }
 0x35c   :  { %6642 = vmatpush.bf16.msra.mxu3 %v9658_v46  ;;  %6574 = vmatpush.bf16.msra.mxu2 %v10734_v16  ;;  %v9055_v46 = vld [vmem:[#allocation6 + $0x5e8] sm:$0xf0]  ;;  %v12663_v11 = vadd.f32 %v6398_v0, %v6386_v54  ;;  %v12034_v54 = vld [vmem:[#allocation9 + $0x78] sm:$0xff] }
 0x35d   :  { %v9058_v12 = vor.u32 %v11563_v53, %v9055_v46  ;;  %v10015_v16 = vld [vmem:[#allocation6 + $0xd68] sm:$0xf0]  ;;  %v11913_v53 = vld [vmem:[#allocation6 + $0x10b4] sm:$0xf]  ;;  %v10455_v46 = vld [vmem:[#allocation6 + $0x10d8] sm:$0xf0] }
 0x35e   :  { %6651 = vmatpush.bf16.msra.mxu0 %v10138_v30  ;;  %6613 = vmatpush.bf16.msrb.mxu1 %v9138_v38  ;;  %v10535_v38 = vld [vmem:[#allocation6 + $0x1178] sm:$0xf0]  ;;  %v12019_v0 = vld [vmem:[#allocation9] sm:$0xff] }
 0x360   :  { %6643 = vmatpush.bf16.msra.mxu3 %v9618_v62  ;;  %6575 = vmatpush.bf16.msra.mxu2 %v10694_v59  ;;  %v11553_v62 = vld [vmem:[#allocation6 + $0x574] sm:$0xf] }
 0x361   :  { %v9018_v27 = vor.u32 %v11553_v62, %v9015_v5  ;;  %v11793_v59 = vld [vmem:[#allocation6 + $0xcf4] sm:$0xf]  ;;  %v9375_v62 = vld [vmem:[#allocation6 + $0x868] sm:$0xf0] }
 0x362   :  { %6652 = vmatpush.bf16.msra.mxu0 %v10098_v47  ;;  %6614 = vmatpush.bf16.msrb.mxu1 %v9098_v61  ;;  %v9978_v63 = vor.u32 %v11793_v59, %v9975_v28  ;;  %v11923_v47 = vld [vmem:[#allocation6 + $0x1104] sm:$0xf]  ;;  %v12020_v61 = vld [vmem:[#allocation9 + $0x8] sm:$0xff] }
 0x363   :  { %6644 = vmatmul.bf16.vlgmr.msra.gmra.mxu3 %v12429_v13  ;;  %v6334_v13 = vadd.f32 %v12638_v58, %v6321_v45  ;;  %v11803_v58 = vld [vmem:[#allocation6 + $0xd44] sm:$0xf]  ;;  %v12056_v59 = vld [vmem:[#allocation9 + $0x128] sm:$0xff] }
 0x364   :  { %7352 = vmatpush.bf16.msrb.mxu3 %v12026_v14  ;;  %6576 = vmatpush.bf16.msra.mxu2 %v10654_v2  ;;  %v10018_v9 = vor.u32 %v11803_v58, %v10015_v16  ;;  %v11683_v14 = vld [vmem:[#allocation6 + $0x984] sm:$0xf]  ;;  %v9495_v2 = vld [vmem:[#allocation6 + $0x958] sm:$0xf0]  ;;  %v10415_v16 = vld [vmem:[#allocation6 + $0x1088] sm:$0xf0] }
 0x365   :  { %v6347_v36 = vadd.f32 %v12650_v18, %v6334_v13  ;;  %v9578_v18 = vor.u32 %v11693_v49, %v9575_v35  ;;  %v9538_v30 = vor.u32 %v11683_v14, %v9535_v22  ;;  %v9498_v45 = vor.u32 %v11673_v26, %v9495_v2  ;;  %v12058_v49 = vld [vmem:[#allocation9 + $0x138] sm:$0xff]  ;;  %v9335_v22 = vld [vmem:[#allocation6 + $0x818] sm:$0xf0]  ;;  %v12055_v26 = vld [vmem:[#allocation9 + $0x120] sm:$0xff] }
 0x366   :  { %6653 = vmatpush.bf16.msra.mxu0 %v10058_v4  ;;  %6615 = vmatpush.bf16.msrb.mxu1 %v9058_v12  ;;  %v12667_v39 = vpop.f32.mrf.mxu3  ;;  %v10458_v35 = vor.u32 %v11913_v53, %v10455_v46  ;;  %v9418_v12 = vor.u32 %v11653_v41, %v9415_v21  ;;  %v11903_v58 = vld [vmem:[#allocation6 + $0x1064] sm:$0xf]  ;;  %v12013_v2 = vld [vmem:[#allocation6 + $0x13d4] sm:$0xf]  ;;  %v12053_v41 = vld [vmem:[#allocation9 + $0x110] sm:$0xff] }
 0x367   :  { %v12665_v17 = vadd.f32 %v6359_v1, %v6347_v36  ;;  %v9938_v1 = vor.u32 %v11783_v24, %v9935_v43  ;;  %v6688_v36 = vmax.f32 %v12507_v6, 0.0  ;;  %v12032_v6 = vld [vmem:[#allocation9 + $0x68] sm:$0xff] }
 0x368   :  { %7353 = vmatpush.bf16.msrb.mxu3 %v12025_v48  ;;  %6577 = vmatpush.bf16.msra.mxu2 %v10614_v56  ;;  %v11933_v48 = vld [vmem:[#allocation6 + $0x1154] sm:$0xf]  ;;  %v9458_v56 = vor.u32 %v11663_v31, %v9455_v34  ;;  %v10815_v31 = vld [vmem:[#allocation6 + $0x13a8] sm:$0xf0] }
 0x369   :  { %v10538_v8 = vor.u32 %v11933_v48, %v10535_v38  ;;  %v6698_v5 = vpack.c.bf16 %v6688_v36, %v6688_v36  ;;  %v10335_v48 = vld [vmem:[#allocation6 + $0xfe8] sm:$0xf0]  ;;  %v11993_v21 = vld [vmem:[#allocation6 + $0x1334] sm:$0xf]  ;;  %v10775_v36 = vld [vmem:[#allocation6 + $0x1358] sm:$0xf0] }
 0x36a   :  { %6654 = vmatpush.bf16.msra.mxu0 %v10018_v9  ;;  %6616 = vmatpush.bf16.msrb.mxu1 %v9018_v27  ;;  %v11893_v9 = vld [vmem:[#allocation6 + $0x1014] sm:$0xf]  ;;  %v12031_v27 = vld [vmem:[#allocation9 + $0x60] sm:$0xff] }
 0x36c   :  { %7354 = vmatpush.bf16.msrb.mxu3 %v12024_v51  ;;  %6578 = vmatpush.bf16.msra.mxu2 %v10574_v33  ;;  %v10495_v51 = vld [vmem:[#allocation6 + $0x1128] sm:$0xf0]  ;;  %v11643_v33 = vld [vmem:[#allocation6 + $0x844] sm:$0xf] }
 0x36d   :  { %v10498_v13 = vor.u32 %v11923_v47, %v10495_v51  ;;  %v12029_v51 = vld [vmem:[#allocation9 + $0x50] sm:$0xff] }
 0x36e   :  { %6655 = vmatpush.bf16.msra.mxu0 %v9978_v63  ;;  %6617 = vmatpush.bf16.msrb.mxu1 %v8978_v40  ;;  %v6439_v4 = vpop.f32.mrf.mxu3  ;;  %v6411_v28 = vpop.f32.mrf.mxu1  ;;  %v12030_v63 = vld [vmem:[#allocation9 + $0x58] sm:$0xff]  ;;  %v10855_v40 = vld [vmem:[#allocation6 + $0x13f8] sm:$0xf0] }
 0x36f   :  { %6579 = vmatmul.bf16.vlgmr.msra.gmra.mxu2 %v12452_v10  ;;  %v12677_v44 = vadd.f32 %v6411_v28, %v12663_v11  ;;  %v11873_v11 = vld [vmem:[#allocation6 + $0xf74] sm:$0xf]  ;;  %v10858_v47 = vor.u32 %v12013_v2, %v10855_v40  ;;  %v10655_v28 = vld [vmem:[#allocation6 + $0x1268] sm:$0xf0]  ;;  %v12038_v40 = vld [vmem:[#allocation9 + $0x98] sm:$0xff] }
 0x370   :  { %7355 = vmatpush.bf16.msrb.mxu3 %v12023_v15  ;;  %6623 = vmatpush.bf16.msrb.mxu2 %v9578_v18  ;;  %v12033_v15 = vld [vmem:[#allocation9 + $0x70] sm:$0xff]  ;;  %v9378_v18 = vor.u32 %v11643_v33, %v9375_v62  ;;  %v10735_v33 = vld [vmem:[#allocation6 + $0x1308] sm:$0xf0]  ;;  %v6689_v62 = vmax.f32 %v12525_v55, 0.0  ;;  %v12040_v55 = vld [vmem:[#allocation9 + $0xa8] sm:$0xff] }
 0x371   :  { %6618 = vmatmul.bf16.vlgmr.msrb.gmra.mxu1 %v12418_v52  ;;  %v10418_v52 = vor.u32 %v11903_v58, %v10415_v16  ;;  %v12052_v58 = vld [vmem:[#allocation9 + $0x108] sm:$0xff]  ;;  %v11983_v16 = vld [vmem:[#allocation6 + $0x12e4] sm:$0xf] }
 0x372   :  { %6662 = vmatpush.bf16.msra.mxu1 %v10538_v8  ;;  %6656 = vmatpush.bf16.msra.mxu0 %v9938_v1  ;;  %v6372_v14 = vpop.f32.mrf.mxu2  ;;  %v12679_v38 = vpop.f32.mrf.mxu0  ;;  %v10295_v8 = vld [vmem:[#allocation6 + $0xf98] sm:$0xf0]  ;;  %v12054_v1 = vld [vmem:[#allocation9 + $0x118] sm:$0xff] }
 0x373   :  { %v12674_v23 = vadd.f32 %v6372_v14, %v12665_v17  ;;  %v9295_v17 = vld [vmem:[#allocation6 + $0x7c8] sm:$0xf0] }
 0x374   :  { %7356 = vmatpush.bf16.msrb.mxu3 %v12022_v57  ;;  %6624 = vmatpush.bf16.msrb.mxu2 %v9538_v30  ;;  %v10375_v57 = vld [vmem:[#allocation6 + $0x1038] sm:$0xf0]  ;;  %v11883_v30 = vld [vmem:[#allocation6 + $0xfc4] sm:$0xf] }
 0x375   :  { %6657 = vmatmul.bf16.vlgmr.msra.gmra.mxu0 %v12434_v3  ;;  %v11633_v3 = vld [vmem:[#allocation6 + $0x7f4] sm:$0xf]  ;;  %v10378_v20 = vor.u32 %v11893_v9, %v10375_v57  ;;  %v10338_v24 = vor.u32 %v11883_v30, %v10335_v48  ;;  %v6699_v9 = vpack.c.bf16 %v6689_v62, %v6689_v62  ;;  %v6692_v57 = vmax.f32 %v12614_v32, 0.0  ;;  %v12039_v32 = vld [vmem:[#allocation9 + $0xa0] sm:$0xff] }
 0x376   :  { %7365 = vmatpush.bf16.msrb.mxu0 %v12034_v54  ;;  %6663 = vmatpush.bf16.msra.mxu1 %v10498_v13  ;;  %v9338_v29 = vor.u32 %v11633_v3, %v9335_v22  ;;  %v6413_v34 = vpop.f32.mrf.mxu1  ;;  %v10298_v54 = vor.u32 %v11873_v11, %v10295_v8  ;;  %v11863_v13 = vld [vmem:[#allocation6 + $0xf24] sm:$0xf]  ;;  %v12065_v3 = vld [vmem:[#allocation9 + $0x170] sm:$0xff]  ;;  %v12071_v62 = vld [vmem:[#allocation9 + $0x1a0] sm:$0xff] }
 0x378   :  { %7357 = vmatpush.bf16.msrb.mxu3 %v12021_v19  ;;  %6625 = vmatpush.bf16.msrb.mxu2 %v9498_v45  ;;  %v11623_v19 = vld [vmem:[#allocation6 + $0x7a4] sm:$0xf] }
 0x379   :  { %v9298_v43 = vor.u32 %v11623_v19, %v9295_v17  ;;  %v10615_v19 = vld [vmem:[#allocation6 + $0x1218] sm:$0xf0] }
 0x37a   :  { %7366 = vmatpush.bf16.msrb.mxu0 %v12033_v15  ;;  %6664 = vmatpush.bf16.msra.mxu1 %v10458_v35  ;;  %v6374_v45 = vpop.f32.mrf.mxu2  ;;  %v6452_v53 = vpop.f32.mrf.mxu0  ;;  %v10778_v35 = vor.u32 %v11993_v21, %v10775_v36  ;;  %v6690_v21 = vmax.f32 %v12554_v37, 0.0  ;;  %v12074_v36 = vld [vmem:[#allocation9 + $0x1b8] sm:$0xff] }
 0x37b   :  { %v11943_v45 = vld [vmem:[#allocation6 + $0x11a4] sm:$0xf] }
 0x37c   :  { %7358 = vmatpush.bf16.msrb.mxu3 %v12020_v61  ;;  %6626 = vmatpush.bf16.msrb.mxu2 %v9458_v56  ;;  %v12003_v61 = vld [vmem:[#allocation6 + $0x1384] sm:$0xf]  ;;  %v10255_v56 = vld [vmem:[#allocation6 + $0xf48] sm:$0xf0] }
 0x37d   :  { %v10818_v46 = vor.u32 %v12003_v61, %v10815_v31  ;;  %v10258_v15 = vor.u32 %v11863_v13, %v10255_v56  ;;  %v12037_v61 = vld [vmem:[#allocation9 + $0x90] sm:$0xff]  ;;  %v12036_v56 = vld [vmem:[#allocation9 + $0x88] sm:$0xff]  ;;  %v12046_v37 = vld [vmem:[#allocation9 + $0xd8] sm:$0xff] }
 0x37e   :  { %7367 = vmatpush.bf16.msrb.mxu0 %v12032_v6  ;;  %6665 = vmatpush.bf16.msra.mxu1 %v10418_v52  ;;  %v12041_v6 = vld [vmem:[#allocation9 + $0xb0] sm:$0xff]  ;;  %v11973_v52 = vld [vmem:[#allocation6 + $0x1294] sm:$0xf] }
 0x380   :  { %7359 = vmatpush.bf16.msrb.mxu3 %v12019_v0  ;;  %6627 = vmatpush.bf16.msrb.mxu2 %v9418_v12  ;;  %v12028_v0 = vld [vmem:[#allocation9 + $0x48] sm:$0xff]  ;;  %v12027_v12 = vld [vmem:[#allocation9 + $0x40] sm:$0xff] }
 0x382   :  { %7368 = vmatpush.bf16.msrb.mxu0 %v12031_v27  ;;  %6666 = vmatpush.bf16.msra.mxu1 %v10378_v20  ;;  %v12685_v27 = vld [vmem:[#allocation7 + $0x8] sm:$0x3]  ;;  %v6702_v20 = vpack.c.bf16 %v6692_v57, %v6692_v57  ;;  %v12069_v57 = vld [vmem:[#allocation9 + $0x190] sm:$0xff] }
 0x383   :  { %7360 = vmatmul.bf16.vlgmr.msrb.gmra.mxu3 %v6698_v5  ;;  %v12066_v5 = vld [vmem:[#allocation9 + $0x178] sm:$0xff]  ;;  %v2436_v30 = vperm.slane %v12685_v27, 0 }
 0x384   :  { %7404 = vmatpush.bf16.msra.mxu3 %v12058_v49  ;;  %6628 = vmatpush.bf16.msrb.mxu2 %v9378_v18  ;;  %v12042_v49 = vld [vmem:[#allocation9 + $0xb8] sm:$0xff]  ;;  %v10695_v18 = vld [vmem:[#allocation6 + $0x12b8] sm:$0xf0] }
 0x385   :  { %v10698_v22 = vor.u32 %v11973_v52, %v10695_v18  ;;  %v12044_v52 = vld [vmem:[#allocation9 + $0xc8] sm:$0xff] }
 0x386   :  { %7369 = vmatpush.bf16.msrb.mxu0 %v12030_v63  ;;  %6667 = vmatpush.bf16.msra.mxu1 %v10338_v24  ;;  %v6489_v4 = vpop.f32.mrf.mxu3  ;;  %v11953_v63 = vld [vmem:[#allocation6 + $0x11f4] sm:$0xf] }
 0x387   :  { %v6490_v24 = vadd.f32 %v6489_v4, %v2436_v30  ;;  %v10618_v11 = vor.u32 %v11953_v63, %v10615_v19  ;;  %v12048_v4 = vld [vmem:[#allocation9 + $0xe8] sm:$0xff]  ;;  %v12067_v63 = vld [vmem:[#allocation9 + $0x180] sm:$0xff]  ;;  %v6694_v19 = vmax.f32 %v12674_v23, 0.0  ;;  %v2437_v23 = vperm.slane %v12685_v27, 1 }
 0x388   :  { %7405 = vmatpush.bf16.msra.mxu3 %v12057_v60  ;;  %6629 = vmatpush.bf16.msrb.mxu2 %v9338_v29  ;;  %v10738_v60 = vor.u32 %v11983_v16, %v10735_v33  ;;  %v12064_v29 = vld [vmem:[#allocation9 + $0x168] sm:$0xff]  ;;  %v12075_v27 = vld [vmem:[#allocation9 + $0x1c0] sm:$0xff] }
 0x389   :  { %v12072_v33 = vld [vmem:[#allocation9 + $0x1a8] sm:$0xff] }
 0x38a   :  { %7370 = vmatpush.bf16.msrb.mxu0 %v12029_v51  ;;  %6668 = vmatpush.bf16.msra.mxu1 %v10298_v54  ;;  %v12050_v54 = vld [vmem:[#allocation9 + $0xf8] sm:$0xff] }
 0x38c   :  { %7406 = vmatpush.bf16.msra.mxu3 %v12056_v59  ;;  %6630 = vmatpush.bf16.msrb.mxu2 %v9298_v43  ;;  %v11963_v59 = vld [vmem:[#allocation6 + $0x1244] sm:$0xf] }
 0x38e   :  { %7371 = vmatpush.bf16.msrb.mxu0 %v12028_v0  ;;  %6669 = vmatpush.bf16.msra.mxu1 %v10258_v15  ;;  %v6491_v14 = vpop.f32.mrf.mxu3  ;;  %v12689_v2 = vpop.f32.mrf.mxu1  ;;  %v12059_v15 = vld [vmem:[#allocation9 + $0x140] sm:$0xff] }
 0x38f   :  { %6631 = vmatmul.bf16.vlgmr.msrb.gmra.mxu2 %v12425_v7  ;;  %v12051_v7 = vld [vmem:[#allocation9 + $0x100] sm:$0xff] }
 0x390   :  { %7407 = vmatpush.bf16.msra.mxu3 %v12055_v26  ;;  %6675 = vmatpush.bf16.msra.mxu2 %v10858_v47  ;;  %v12063_v26 = vld [vmem:[#allocation9 + $0x160] sm:$0xff] }
 0x391   :  { %6670 = vmatmul.bf16.vlgmr.msra.gmra.mxu1 %v12442_v50  ;;  %v10658_v50 = vor.u32 %v11963_v59, %v10655_v28  ;;  %v10575_v47 = vld [vmem:[#allocation6 + $0x11c8] sm:$0xf0]  ;;  %v12088_v59 = vld [vmem:[#allocation9 + $0x228] sm:$0xff] }
 0x392   :  { %7378 = vmatpush.bf16.msrb.mxu1 %v12042_v49  ;;  %7372 = vmatpush.bf16.msrb.mxu0 %v12027_v12  ;;  %v6424_v48 = vpop.f32.mrf.mxu2  ;;  %v6502_v8 = vpop.f32.mrf.mxu0  ;;  %v10578_v31 = vor.u32 %v11943_v45, %v10575_v47  ;;  %v6693_v49 = vmax.f32 %v12645_v42, 0.0  ;;  %v12073_v12 = vld [vmem:[#allocation9 + $0x1b0] sm:$0xff]  ;;  %v12043_v14 = vld [vmem:[#allocation9 + $0xc0] sm:$0xff] }
 0x393   :  { %v6425_v17 = vadd.f32 %v6424_v48, %v12677_v44  ;;  %v12062_v44 = vld [vmem:[#allocation9 + $0x158] sm:$0xff]  ;;  %v12077_v47 = vld [vmem:[#allocation9 + $0x1d0] sm:$0xff] }
 0x394   :  { %7408 = vmatpush.bf16.msra.mxu3 %v12054_v1  ;;  %6676 = vmatpush.bf16.msra.mxu2 %v10818_v46  ;;  %v12695_v1 = vadd.f32 %v6502_v8, %v6490_v24  ;;  %v12060_v46 = vld [vmem:[#allocation9 + $0x148] sm:$0xff]  ;;  %v12079_v24 = vld [vmem:[#allocation9 + $0x1e0] sm:$0xff] }
 0x395   :  { %7373 = vmatmul.bf16.vlgmr.msrb.gmra.mxu0 %v6699_v9  ;;  %v6438_v43 = vadd.f32 %v12667_v39, %v6425_v17  ;;  %v12061_v39 = vld [vmem:[#allocation9 + $0x150] sm:$0xff]  ;;  %v12080_v17 = vld [vmem:[#allocation9 + $0x1e8] sm:$0xff] }
 0x396   :  { %7417 = vmatpush.bf16.msra.mxu0 %v12066_v5  ;;  %7379 = vmatpush.bf16.msrb.mxu1 %v12041_v6  ;;  %v6465_v13 = vpop.f32.mrf.mxu1  ;;  %v12045_v5 = vld [vmem:[#allocation9 + $0xd0] sm:$0xff]  ;;  %v12090_v6 = vld [vmem:[#allocation9 + $0x238] sm:$0xff]  ;;  %v12084_v8 = vld [vmem:[#allocation9 + $0x208] sm:$0xff] }
 0x397   :  { %v12693_v51 = vadd.f32 %v12679_v38, %v6438_v43  ;;  %v12049_v38 = vld [vmem:[#allocation9 + $0xf0] sm:$0xff] }
 0x398   :  { %7409 = vmatpush.bf16.msra.mxu3 %v12053_v41  ;;  %6677 = vmatpush.bf16.msra.mxu2 %v10778_v35  ;;  %v12035_v41 = vld [vmem:[#allocation9 + $0x80] sm:$0xff]  ;;  %v6700_v35 = vpack.c.bf16 %v6690_v21, %v6690_v21  ;;  %v12089_v9 = vld [vmem:[#allocation9 + $0x230] sm:$0xff] }
 0x39a   :  { %7418 = vmatpush.bf16.msra.mxu0 %v12065_v3  ;;  %7380 = vmatpush.bf16.msrb.mxu1 %v12040_v55  ;;  %v6426_v34 = vpop.f32.mrf.mxu2  ;;  %v6504_v53 = vpop.f32.mrf.mxu0  ;;  %v6691_v3 = vmax.f32 %v12585_v25, 0.0  ;;  %v12086_v25 = vld [vmem:[#allocation9 + $0x218] sm:$0xff] }
 0x39b   :  { %v6464_v34 = vadd.f32 %v12689_v2, %v12693_v51 }
 0x39c   :  { %7410 = vmatpush.bf16.msra.mxu3 %v12052_v58  ;;  %6678 = vmatpush.bf16.msra.mxu2 %v10738_v60  ;;  %v12047_v58 = vld [vmem:[#allocation9 + $0xe0] sm:$0xff] }
 0x39e   :  { %7419 = vmatpush.bf16.msra.mxu0 %v12064_v29  ;;  %7381 = vmatpush.bf16.msrb.mxu1 %v12039_v32  ;;  %v12087_v29 = vld [vmem:[#allocation9 + $0x220] sm:$0xff]  ;;  %v6701_v32 = vpack.c.bf16 %v6691_v3, %v6691_v3 }
 0x39f   :  { %v12111_v3 = vld [vmem:[#allocation10] ss:$0 sm:$0xff] }
 0x3a0   :  { %7411 = vmatpush.bf16.msra.mxu3 %v12051_v7  ;;  %6679 = vmatpush.bf16.msra.mxu2 %v10698_v22  ;;  %v12070_v7 = vld [vmem:[#allocation9 + $0x198] sm:$0xff] }
 0x3a1   :  { %v12082_v22 = vld [vmem:[#allocation9 + $0x1f8] sm:$0xff] }
 0x3a2   :  { %7420 = vmatpush.bf16.msra.mxu0 %v12063_v26  ;;  %7382 = vmatpush.bf16.msrb.mxu1 %v12038_v40  ;;  %v6704_v26 = vpack.c.bf16 %v6694_v19, %v6694_v19  ;;  %v12085_v40 = vld [vmem:[#allocation9 + $0x210] sm:$0xff] }
 0x3a3   :  { %7412 = vmatmul.bf16.vlgmr.msra.gmra.mxu3 %v6702_v20  ;;  %v12068_v20 = vld [vmem:[#allocation9 + $0x188] sm:$0xff] }
 0x3a4   :  { %6680 = vmatpush.bf16.msra.mxu2 %v10658_v50  ;;  %7456 = vmatpush.bf16.msrb.mxu3 %v12090_v6  ;;  %v12081_v50 = vld [vmem:[#allocation9 + $0x1f0] sm:$0xff]  ;;  %v12095_v6 = vld [vmem:[#allocation9 + $0x260] sm:$0xff] }
 0x3a6   :  { %7421 = vmatpush.bf16.msra.mxu0 %v12062_v44  ;;  %7383 = vmatpush.bf16.msrb.mxu1 %v12037_v61  ;;  %v12697_v0 = vpop.f32.mrf.mxu3  ;;  %v12083_v44 = vld [vmem:[#allocation9 + $0x200] sm:$0xff] }
 0x3a8   :  { %6681 = vmatpush.bf16.msra.mxu2 %v10618_v11  ;;  %7457 = vmatpush.bf16.msrb.mxu3 %v12089_v9  ;;  %v12078_v11 = vld [vmem:[#allocation9 + $0x1d8] sm:$0xff] }
 0x3aa   :  { %7422 = vmatpush.bf16.msra.mxu0 %v12061_v39  ;;  %7384 = vmatpush.bf16.msrb.mxu1 %v12036_v56  ;;  %v12076_v56 = vld [vmem:[#allocation9 + $0x1c8] sm:$0xff] }
 0x3ac   :  { %6682 = vmatpush.bf16.msra.mxu2 %v10578_v31  ;;  %7458 = vmatpush.bf16.msrb.mxu3 %v12088_v59 }
 0x3ae   :  { %7423 = vmatpush.bf16.msra.mxu0 %v12060_v46  ;;  %7385 = vmatpush.bf16.msrb.mxu1 %v12035_v41  ;;  %v6543_v16 = vpop.f32.mrf.mxu3  ;;  %v6515_v60 = vpop.f32.mrf.mxu1 }
 0x3af   :  { %6683 = vmatmul.bf16.vlgmr.msra.gmra.mxu2 %v12452_v10  ;;  %v6703_v10 = vpack.c.bf16 %v6693_v49, %v6693_v49  ;;  %v6516_v45 = vadd.f32 %v6515_v60, %v12695_v1 }
 0x3b0   :  { %7391 = vmatpush.bf16.msrb.mxu2 %v12050_v54  ;;  %7459 = vmatpush.bf16.msrb.mxu3 %v12087_v29 }
 0x3b1   :  { %7386 = vmatmul.bf16.vlgmr.msrb.gmra.mxu1 %v6700_v35  ;;  %v12098_v35 = vld [vmem:[#allocation9 + $0x278] sm:$0xff] }
 0x3b2   :  { %7430 = vmatpush.bf16.msra.mxu1 %v12074_v36  ;;  %7424 = vmatpush.bf16.msra.mxu0 %v12059_v15  ;;  %v12702_v42 = vpop.f32.mrf.mxu2  ;;  %v12704_v18 = vpop.f32.mrf.mxu0 }
 0x3b3   :  { %v6477_v53 = vadd.f32 %v12702_v42, %v6464_v34 }
 0x3b4   :  { %7392 = vmatpush.bf16.msrb.mxu2 %v12049_v38  ;;  %7460 = vmatpush.bf16.msrb.mxu3 %v12086_v25 }
 0x3b5   :  { %7425 = vmatmul.bf16.vlgmr.msra.gmra.mxu0 %v6703_v10  ;;  %v6695_v46 = vmax.f32 %v6477_v53, 0.0 }
 0x3b6   :  { %7431 = vmatpush.bf16.msra.mxu1 %v12073_v12  ;;  %v6517_v28 = vpop.f32.mrf.mxu1  ;;  %7469 = vmatpush.bf16.msrb.mxu0 %v12098_v35 }
 0x3b7   :  { %v6705_v36 = vpack.c.bf16 %v6695_v46, %v6695_v46 }
 0x3b8   :  { %7393 = vmatpush.bf16.msrb.mxu2 %v12048_v4  ;;  %7461 = vmatpush.bf16.msrb.mxu3 %v12085_v40 }
 0x3ba   :  { %7432 = vmatpush.bf16.msra.mxu1 %v12072_v33  ;;  %v6478_v55 = vpop.f32.mrf.mxu2  ;;  %v6556_v30 = vpop.f32.mrf.mxu0  ;;  %v12097_v33 = vld [vmem:[#allocation9 + $0x270] sm:$0xff] }
 0x3bb   :  { %7470 = vmatpush.bf16.msrb.mxu0 %v12097_v33  ;;  %v12091_v55 = vld [vmem:[#allocation9 + $0x240] sm:$0xff] }
 0x3bc   :  { %7394 = vmatpush.bf16.msrb.mxu2 %v12047_v58  ;;  %7462 = vmatpush.bf16.msrb.mxu3 %v12084_v8 }
 0x3be   :  { %7433 = vmatpush.bf16.msra.mxu1 %v12071_v62 }
 0x3c0   :  { %7395 = vmatpush.bf16.msrb.mxu2 %v12046_v37  ;;  %7463 = vmatpush.bf16.msrb.mxu3 %v12083_v44 }
 0x3c2   :  { %7434 = vmatpush.bf16.msra.mxu1 %v12070_v7 }
 0x3c4   :  { %7396 = vmatpush.bf16.msrb.mxu2 %v12045_v5  ;;  %v12096_v5 = vld [vmem:[#allocation9 + $0x268] sm:$0xff] }
 0x3c5   :  { %7471 = vmatpush.bf16.msrb.mxu0 %v12096_v5 }
 0x3c6   :  { %7435 = vmatpush.bf16.msra.mxu1 %v12069_v57  ;;  %v6593_v48 = vpop.f32.mrf.mxu3  ;;  %v12092_v57 = vld [vmem:[#allocation9 + $0x248] sm:$0xff] }
 0x3c7   :  { %v6594_v39 = vadd.f32 %v6593_v48, %v2437_v23 }
 0x3c8   :  { %7397 = vmatpush.bf16.msrb.mxu2 %v12044_v52  ;;  %v12094_v52 = vld [vmem:[#allocation9 + $0x258] sm:$0xff] }
 0x3c9   :  { %7472 = vmatpush.bf16.msrb.mxu0 %v12095_v6 }
 0x3ca   :  { %7436 = vmatpush.bf16.msra.mxu1 %v12068_v20 }
 0x3cc   :  { %7398 = vmatpush.bf16.msrb.mxu2 %v12043_v14 }
 0x3cd   :  { %7473 = vmatpush.bf16.msrb.mxu0 %v12094_v52 }
 0x3ce   :  { %7437 = vmatpush.bf16.msra.mxu1 %v12067_v63  ;;  %v6595_v43 = vpop.f32.mrf.mxu3  ;;  %v6567_v54 = vpop.f32.mrf.mxu1 }
 0x3cf   :  { %7399 = vmatmul.bf16.vlgmr.msrb.gmra.mxu2 %v6701_v32 }
 0x3d0   :  { %7443 = vmatpush.bf16.msra.mxu2 %v12082_v22 }
 0x3d1   :  { %7438 = vmatmul.bf16.vlgmr.msra.gmra.mxu1 %v6704_v26 }
 0x3d2   :  { %v6528_v61 = vpop.f32.mrf.mxu2  ;;  %v6606_v1 = vpop.f32.mrf.mxu0 }
 0x3d3   :  { %v6529_v31 = vadd.f32 %v6528_v61, %v6516_v45  ;;  %v6607_v38 = vadd.f32 %v6606_v1, %v6594_v39 }
 0x3d4   :  { %7444 = vmatpush.bf16.msra.mxu2 %v12081_v50 }
 0x3d5   :  { %v6542_v13 = vadd.f32 %v12697_v0, %v6529_v31 }
 0x3d6   :  { %v6569_v21 = vpop.f32.mrf.mxu1 }
 0x3d7   :  { %v6555_v15 = vadd.f32 %v12704_v18, %v6542_v13  ;;  %v12093_v18 = vld [vmem:[#allocation9 + $0x250] sm:$0xff] }
 0x3d8   :  { %7445 = vmatpush.bf16.msra.mxu2 %v12080_v17  ;;  %7474 = vmatpush.bf16.msrb.mxu0 %v12093_v18 }
 0x3d9   :  { %v6568_v0 = vadd.f32 %v6567_v54, %v6555_v15 }
 0x3da   :  { %v6530_v41 = vpop.f32.mrf.mxu2  ;;  %v6608_v4 = vpop.f32.mrf.mxu0 }
 0x3dc   :  { %7446 = vmatpush.bf16.msra.mxu2 %v12079_v24  ;;  %7475 = vmatpush.bf16.msrb.mxu0 %v12092_v57 }
 0x3e0   :  { %7447 = vmatpush.bf16.msra.mxu2 %v12078_v11  ;;  %7476 = vmatpush.bf16.msrb.mxu0 %v12091_v55 }
 0x3e4   :  { %7448 = vmatpush.bf16.msra.mxu2 %v12077_v47 }
 0x3e6   :  { %v6645_v2 = vpop.f32.mrf.mxu3 }
 0x3e8   :  { %7449 = vmatpush.bf16.msra.mxu2 %v12076_v56 }
 0x3ec   :  { %7450 = vmatpush.bf16.msra.mxu2 %v12075_v27 }
 0x3ee   :  { %v6647_v51 = vpop.f32.mrf.mxu3  ;;  %v6619_v58 = vpop.f32.mrf.mxu1 }
 0x3ef   :  { %7451 = vmatmul.bf16.vlgmr.msra.gmra.mxu2 %v6705_v36  ;;  %v6620_v14 = vadd.f32 %v6619_v58, %v6607_v38 }
 0x3f2   :  { %v6580_v49 = vpop.f32.mrf.mxu2  ;;  %v6658_v16 = vpop.f32.mrf.mxu0 }
 0x3f3   :  { %v6581_v12 = vadd.f32 %v6580_v49, %v6568_v0 }
 0x3f5   :  { %v6696_v10 = vmax.f32 %v6581_v12, 0.0 }
 0x3f6   :  { %v6621_v42 = vpop.f32.mrf.mxu1 }
 0x3f7   :  { %v6706_v37 = vpack.c.bf16 %v6696_v10, %v6696_v10 }
 0x3f9   :  { %7464 = vmatmul.bf16.vlgmr.msrb.gmra.mxu3 %v6706_v37 }
 0x3fa   :  { %v6582_v62 = vpop.f32.mrf.mxu2  ;;  %v6660_v60 = vpop.f32.mrf.mxu0 }
 0x406   :  { %v7361_v7 = vpop.f32.mrf.mxu3 }
 0x407   :  { %v7362_v20 = vadd.f32 %v12111_v3, %v7361_v7 }
 0x40e   :  { %v7363_v9 = vpop.f32.mrf.mxu3  ;;  %v6671_v28 = vpop.f32.mrf.mxu1 }
 0x412   :  { %v6632_v22 = vpop.f32.mrf.mxu2  ;;  %v7374_v32 = vpop.f32.mrf.mxu0 }
 0x413   :  { %v6633_v59 = vadd.f32 %v6632_v22, %v6620_v14  ;;  %v7375_v30 = vadd.f32 %v7374_v32, %v7362_v20 }
 0x415   :  { %v6646_v29 = vadd.f32 %v6645_v2, %v6633_v59 }
 0x416   :  { %v6673_v48 = vpop.f32.mrf.mxu1 }
 0x417   :  { %v6659_v17 = vadd.f32 %v6658_v16, %v6646_v29 }
 0x419   :  { %v6672_v26 = vadd.f32 %v6671_v28, %v6659_v17 }
 0x41a   :  { %v6634_v50 = vpop.f32.mrf.mxu2  ;;  %v7376_v63 = vpop.f32.mrf.mxu0 }
 0x426   :  { %v7413_v19 = vpop.f32.mrf.mxu3 }
 0x42e   :  { %v7415_v25 = vpop.f32.mrf.mxu3  ;;  %v7387_v43 = vpop.f32.mrf.mxu1 }
 0x42f   :  { %v7388_v11 = vadd.f32 %v7387_v43, %v7375_v30 }
 0x432   :  { %v6684_v40 = vpop.f32.mrf.mxu2  ;;  %v7426_v45 = vpop.f32.mrf.mxu0 }
 0x433   :  { %v6685_v24 = vadd.f32 %v6684_v40, %v6672_v26 }
 0x435   :  { %v6697_v8 = vmax.f32 %v6685_v24, 0.0 }
 0x436   :  { %v7389_v44 = vpop.f32.mrf.mxu1 }
 0x437   :  { %v6707_v23 = vpack.c.bf16 %v6697_v8, %v6697_v8 }
 0x439   :  { %7477 = vmatmul.bf16.vlgmr.msrb.gmra.mxu0 %v6707_v23 }
 0x43a   :  { %v6686_v47 = vpop.f32.mrf.mxu2  ;;  %v7428_v61 = vpop.f32.mrf.mxu0 }
 0x44e   :  { %v7439_v54 = vpop.f32.mrf.mxu1 }
 0x452   :  { %v7400_v31 = vpop.f32.mrf.mxu2 }
 0x453   :  { %v7401_v34 = vadd.f32 %v7400_v31, %v7388_v11 }
 0x455   :  { %v7414_v39 = vadd.f32 %v7413_v19, %v7401_v34 }
 0x456   :  { %v7441_v1 = vpop.f32.mrf.mxu1 }
 0x457   :  { %v7427_v13 = vadd.f32 %v7426_v45, %v7414_v39 }
 0x459   :  { %v7440_v56 = vadd.f32 %v7439_v54, %v7427_v13 }
 0x45a   :  { %v7402_v53 = vpop.f32.mrf.mxu2 }
 0x472   :  { %v7452_v38 = vpop.f32.mrf.mxu2 }
 0x473   :  { %v7453_v27 = vadd.f32 %v7452_v38, %v7440_v56 }
 0x47a   :  { %v7454_v46 = vpop.f32.mrf.mxu2 }
 0x47c   :  { %v7465_v41 = vpop.f32.mrf.mxu3 }
 0x47d   :  { %v7466_v36 = vadd.f32 %v7465_v41, %v7453_v27 }
 0x484   :  { %v7467_v21 = vpop.f32.mrf.mxu3 }
 0x4b6   :  { %v7478_v4 = vpop.f32.mrf.mxu0 }
 0x4b7   :  { %v7479_v2 = vadd.f32 %v7478_v4, %v7466_v36 }
 0x4b9   :  { %7482 = vst [vmem:[%s12725_s7] sm:$0x3] %v7479_v2 }
 0x4be   :  { %v7480_v51 = vpop.f32.mrf.mxu0 }
 0x4bf   :  { %7487 = vsyncpa [#allocation3], 1 }
 0x4c0   :  { %7488 = vsyncpa [#allocation5], 1 }
 0x4c1   :  { %7489 = vsyncpa [#allocation8], 1 }
 0x4c2   :  { %7490 = vsyncpa [#allocation11], 1 }

</bundles_post_ra>
